<compile_context>
chip_gen: v5e
topology: v5e:2x2
jax: 0.10.0
libtpu: 0.0.40
codegen_flags: <defaults>
</compile_context>

<pallas_src>
import functools
from math import pi as PI

import jax
import jax.numpy as jnp
from jax.experimental import pallas as pl
from jax.experimental.pallas import tpu as pltpu

# ----------------------------- small config ---------------------------------
HIDDEN   = 32     # hidden_channels
FILTERS  = 32     # num_filters
GAUSS    = 16     # num_gaussians
N_INTER  = 2      # num_interactions
CUTOFF   = 10.0
N_ATOMS  = 16
N_GRAPHS = 2
E_MAX    = 128    # padded number of radius-graph edges
N_BONDS  = 8

_LOG2 = float(jnp.log(2.0))


def _ssp(x):
    # ShiftedSoftplus: softplus(x) - log(2)
    return jnp.logaddexp(x, 0.0) - _LOG2


# ------------------------------ fused kernel ----------------------------------
def fused_forward_kernel(
        # graph / node inputs
        dist_ref, mask_ref, offset_ref, h_ref, src_oh_ref, tgt_sc_ref,
        # stacked interaction weights [N_INTER, ...]
        mlp_w1_ref, mlp_b1_ref, mlp_w2_ref, mlp_b2_ref,
        lin1_ref, lin2_ref, lin2b_ref, lin_ref, linb_ref,
        # readout weights
        ol1_ref, ol1b_ref, ol2_ref, ol2b_ref, batch_oh_ref,
        # output
        out_ref,
        *, n_inter, coeff, cutoff):
    # --- GaussianSmearing + cosine cutoff (kept in VMEM, never stored) -------
    d = dist_ref[...]                                     # [E, 1]
    off = offset_ref[...]                                 # [1, G]
    diff = d - off                                        # [E, G]
    attr = jnp.exp(coeff * diff * diff)                   # GaussianSmearing
    c = 0.5 * (jnp.cos(d * (PI / cutoff)) + 1.0)          # cosine cutoff
    c = c * mask_ref[...]                                 # zero padded edges  [E, 1]

    h = h_ref[...]                                        # [N, H]
    src_oh = src_oh_ref[...]                              # [E, N] gather
    tgt_sc = tgt_sc_ref[...]                              # [N, E] scatter-add

    # --- h = h + InteractionBlock_i(h) — statically unrolled ------------------
    for i in range(n_inter):
        # CFConv edge filter network:  W = (Lin -> ssp -> Lin)(edge_attr) * C
        w = jnp.dot(attr, mlp_w1_ref[i], preferred_element_type=jnp.float32) + mlp_b1_ref[i]
        w = _ssp(w)
        w = jnp.dot(w, mlp_w2_ref[i], preferred_element_type=jnp.float32) + mlp_b2_ref[i]
        w = w * c                                         # [E, F]

        x = jnp.dot(h, lin1_ref[i], preferred_element_type=jnp.float32)       # [N, F]
        x_j = jnp.dot(src_oh, x, preferred_element_type=jnp.float32)          # gather  [E, F]
        msg = x_j * w                                                          # per-edge message
        agg = jnp.dot(tgt_sc, msg, preferred_element_type=jnp.float32)         # scatter-add [N, F]

        y = jnp.dot(agg, lin2_ref[i], preferred_element_type=jnp.float32) + lin2b_ref[i]
        y = _ssp(y)                                       # InteractionBlock.act
        y = jnp.dot(y, lin_ref[i], preferred_element_type=jnp.float32) + linb_ref[i]
        h = h + y                                         # residual add

    # --- readout: lin1 -> ssp -> lin2 -> sum per graph ------------------------
    y = jnp.dot(h, ol1_ref[...], preferred_element_type=jnp.float32) + ol1b_ref[...]
    y = _ssp(y)
    y = jnp.dot(y, ol2_ref[...], preferred_element_type=jnp.float32) + ol2b_ref[...]   # [N, 1]
    out_ref[...] = jnp.dot(batch_oh_ref[...], y, preferred_element_type=jnp.float32)   # [G, 1]


# --------------------------- pallas_call wrapper -------------------------------
def _vmem_specs(n):
    return [pl.BlockSpec(memory_space=pltpu.MemorySpace.VMEM) for _ in range(n)]


def schnet_forward_fused(dist, mask, offset, h, src_oh, tgt_sc, stacked, p,
                         batch_oh, coeff, cutoff):
    kern = functools.partial(fused_forward_kernel,
                             n_inter=N_INTER, coeff=coeff, cutoff=cutoff)
    return pl.pallas_call(
        kern,
        out_shape=jax.ShapeDtypeStruct((batch_oh.shape[0], 1), jnp.float32),
        in_specs=_vmem_specs(20),
        out_specs=pl.BlockSpec(memory_space=pltpu.MemorySpace.VMEM),
    )(dist, mask, offset, h, src_oh, tgt_sc,
      stacked["mlp_w1"], stacked["mlp_b1"], stacked["mlp_w2"], stacked["mlp_b2"],
      stacked["lin1_w"], stacked["lin2_w"], stacked["lin2_b"],
      stacked["lin_w"], stacked["lin_b"],
      p["out_lin1_w"], p["out_lin1_b"], p["out_lin2_w"], p["out_lin2_b"],
      batch_oh)


# ------------------------------ glue (plain JAX) ------------------------------
def xavier_uniform(key, fan_in, fan_out):
    limit = (6.0 / (fan_in + fan_out)) ** 0.5
    return jax.random.uniform(key, (fan_in, fan_out), jnp.float32, -limit, limit)


def init_params(key):
    keys = jax.random.split(key, 4 + 6 * N_INTER)
    ki = iter(keys)
    params = {}
    # Embedding(100, HIDDEN, padding_idx=0) -> N(0,1) with row 0 zeroed
    emb = jax.random.normal(next(ki), (100, HIDDEN), jnp.float32)
    params["embedding"] = emb.at[0].set(0.0)
    # Embedding(30, GAUSS) -- used only by the (omitted) RGIN branch
    params["bond_embedding"] = jax.random.normal(next(ki), (30, GAUSS), jnp.float32)

    blocks = []
    for _ in range(N_INTER):
        blocks.append({
            "mlp_w1": xavier_uniform(next(ki), GAUSS, FILTERS),
            "mlp_b1": jnp.zeros((1, FILTERS), jnp.float32),
            "mlp_w2": xavier_uniform(next(ki), FILTERS, FILTERS),
            "mlp_b2": jnp.zeros((1, FILTERS), jnp.float32),
            "lin1_w": xavier_uniform(next(ki), HIDDEN, FILTERS),   # CFConv.lin1 (no bias)
            "lin2_w": xavier_uniform(next(ki), FILTERS, HIDDEN),   # CFConv.lin2
            "lin2_b": jnp.zeros((1, HIDDEN), jnp.float32),
            "lin_w": xavier_uniform(next(ki), HIDDEN, HIDDEN),     # InteractionBlock.lin
            "lin_b": jnp.zeros((1, HIDDEN), jnp.float32),
        })
    # Stack per-block weights along a leading [N_INTER, ...] axis so each
    # weight tensor is passed (and DMA'd) exactly once to the fused kernel.
    params["interactions_stacked"] = {
        k: jnp.stack([b[k] for b in blocks], axis=0) for k in blocks[0]
    }

    params["out_lin1_w"] = xavier_uniform(next(ki), HIDDEN, HIDDEN // 2)
    params["out_lin1_b"] = jnp.zeros((1, HIDDEN // 2), jnp.float32)
    params["out_lin2_w"] = xavier_uniform(next(ki), HIDDEN // 2, 1)
    params["out_lin2_b"] = jnp.zeros((1, 1), jnp.float32)
    return params


def build_radius_graph(pos, batch, cutoff, e_max):
    """RadiusInteractionGraph -> padded edge list + one-hot gather/scatter mats."""
    n = pos.shape[0]
    diff = pos[:, None, :] - pos[None, :, :]
    dist = jnp.sqrt(jnp.sum(diff * diff, axis=-1))
    adj = (batch[:, None] == batch[None, :]) & (~jnp.eye(n, dtype=bool)) & (dist < cutoff)
    src, tgt = jnp.nonzero(adj, size=e_max, fill_value=0)
    num_edges = jnp.sum(adj)
    emask = (jnp.arange(e_max) < num_edges).astype(jnp.float32)        # [E]
    edge_dist = dist[src, tgt] * emask                                  # [E]
    ar = jnp.arange(n)
    src_oh = (src[:, None] == ar[None, :]).astype(jnp.float32) * emask[:, None]   # [E, N]
    tgt_sc = (tgt[None, :] == ar[:, None]).astype(jnp.float32) * emask[None, :]   # [N, E]
    return edge_dist, emask, src_oh, tgt_sc


def forward(params, z, pos, bond_index, bond_type, batch):
    # h = embedding(z)
    h = params["embedding"][z]                                          # [N, H]
    # bond_emb = bond_embedding(bond_type)   (only consumed by RGIN branch)
    _bond_emb = params["bond_embedding"][bond_type]
    # TODO(synk): RGINConv / MLP / bond_type_combiner definitions are not provided
    # in the reference, so the `for rgin in self.rgins` residual branch is omitted.

    # interaction_graph (radius graph; plain-JAX glue producing padded edge list)
    edge_dist, emask, src_oh, tgt_sc = build_radius_graph(pos, batch, CUTOFF, E_MAX)
    offset = jnp.linspace(0.0, CUTOFF, GAUSS).reshape(1, GAUSS).astype(jnp.float32)
    coeff = -0.5 / (CUTOFF / (GAUSS - 1)) ** 2
    batch_oh = (batch[None, :] == jnp.arange(N_GRAPHS)[:, None]).astype(jnp.float32)  # [G, N]

    # Single fused kernel: GaussianSmearing + cutoff + N_INTER interaction
    # blocks + readout MLP + per-graph sum, all VMEM-resident.
    out = schnet_forward_fused(
        edge_dist.reshape(E_MAX, 1).astype(jnp.float32),
        emask.reshape(E_MAX, 1),
        offset, h, src_oh, tgt_sc,
        params["interactions_stacked"], params, batch_oh,
        coeff, CUTOFF)
    return out                                                          # [N_GRAPHS, 1]


# ------------------------------------ main ------------------------------------
if __name__ == "__main__":
    key = jax.random.PRNGKey(0)
    k_param, k_z, k_pos, k_bi, k_bt = jax.random.split(key, 5)

    params = init_params(k_param)

    z = jax.random.randint(k_z, (N_ATOMS,), 1, 10, dtype=jnp.int32)          # atomic numbers
    pos = jax.random.normal(k_pos, (N_ATOMS, 3), jnp.float32) * 2.0           # coordinates
    batch = jnp.concatenate([jnp.zeros(N_ATOMS // 2, jnp.int32),
                             jnp.ones(N_ATOMS // 2, jnp.int32)])              # 2 molecules
    bond_index = jax.random.randint(k_bi, (2, N_BONDS), 0, N_ATOMS, dtype=jnp.int32)
    bond_type = jax.random.randint(k_bt, (N_BONDS,), 0, 30, dtype=jnp.int32)

    out = forward(params, z, pos, bond_index, bond_type, batch)   # [N_GRAPHS, 1]
    out = jax.block_until_ready(out)
    assert out.shape == (N_GRAPHS, 1)
    print("KERNEL_OK")
</pallas_src>

<mosaic_0001>
module attributes {stable_mosaic.version = 11 : i64} {
  func.func @fused_forward_kernel(%arg0: memref<128x1xf32, #tpu.memory_space<vmem>>, %arg1: memref<128x1xf32, #tpu.memory_space<vmem>>, %arg2: memref<1x16xf32, #tpu.memory_space<vmem>>, %arg3: memref<16x32xf32, #tpu.memory_space<vmem>>, %arg4: memref<128x16xf32, #tpu.memory_space<vmem>>, %arg5: memref<16x128xf32, #tpu.memory_space<vmem>>, %arg6: memref<2x16x32xf32, #tpu.memory_space<vmem>>, %arg7: memref<2x1x32xf32, #tpu.memory_space<vmem>>, %arg8: memref<2x32x32xf32, #tpu.memory_space<vmem>>, %arg9: memref<2x1x32xf32, #tpu.memory_space<vmem>>, %arg10: memref<2x32x32xf32, #tpu.memory_space<vmem>>, %arg11: memref<2x32x32xf32, #tpu.memory_space<vmem>>, %arg12: memref<2x1x32xf32, #tpu.memory_space<vmem>>, %arg13: memref<2x32x32xf32, #tpu.memory_space<vmem>>, %arg14: memref<2x1x32xf32, #tpu.memory_space<vmem>>, %arg15: memref<32x16xf32, #tpu.memory_space<vmem>>, %arg16: memref<1x16xf32, #tpu.memory_space<vmem>>, %arg17: memref<16x1xf32, #tpu.memory_space<vmem>>, %arg18: memref<1x1xf32, #tpu.memory_space<vmem>>, %arg19: memref<2x16xf32, #tpu.memory_space<vmem>>, %arg20: memref<2x1xf32, #tpu.memory_space<vmem>>) attributes {dimension_semantics = [], scalar_prefetch = 0 : i64, scratch_operands = 0 : i64, tpu.core_type = #tpu.core_type<tc>} {
    %c0 = arith.constant 0 : index
    %c0_0 = arith.constant 0 : index
    %0 = vector.load %arg0[%c0, %c0_0] : memref<128x1xf32, #tpu.memory_space<vmem>>, vector<128x1xf32>
    %c0_1 = arith.constant 0 : index
    %c0_2 = arith.constant 0 : index
    %1 = vector.load %arg2[%c0_1, %c0_2] : memref<1x16xf32, #tpu.memory_space<vmem>>, vector<1x16xf32>
    %2 = vector.broadcast %0 : vector<128x1xf32> to vector<128x16xf32>
    %3 = vector.broadcast %1 : vector<1x16xf32> to vector<128x16xf32>
    %4 = arith.subf %2, %3 : vector<128x16xf32>
    %cst = arith.constant -1.125000e+00 : f32
    %5 = vector.broadcast %cst : f32 to vector<128x16xf32>
    %6 = arith.mulf %5, %4 : vector<128x16xf32>
    %7 = arith.mulf %6, %4 : vector<128x16xf32>
    %8 = math.exp %7 : vector<128x16xf32>
    %cst_3 = arith.constant 0.314159274 : f32
    %9 = vector.broadcast %cst_3 : f32 to vector<128x1xf32>
    %10 = arith.mulf %0, %9 : vector<128x1xf32>
    %11 = math.cos %10 : vector<128x1xf32>
    %cst_4 = arith.constant 1.000000e+00 : f32
    %12 = vector.broadcast %cst_4 : f32 to vector<128x1xf32>
    %13 = arith.addf %11, %12 : vector<128x1xf32>
    %cst_5 = arith.constant 5.000000e-01 : f32
    %14 = vector.broadcast %cst_5 : f32 to vector<128x1xf32>
    %15 = arith.mulf %14, %13 : vector<128x1xf32>
    %c0_6 = arith.constant 0 : index
    %c0_7 = arith.constant 0 : index
    %16 = vector.load %arg1[%c0_6, %c0_7] : memref<128x1xf32, #tpu.memory_space<vmem>>, vector<128x1xf32>
    %17 = arith.mulf %15, %16 : vector<128x1xf32>
    %c0_8 = arith.constant 0 : index
    %c0_9 = arith.constant 0 : index
    %18 = vector.load %arg3[%c0_8, %c0_9] : memref<16x32xf32, #tpu.memory_space<vmem>>, vector<16x32xf32>
    %c0_10 = arith.constant 0 : index
    %c0_11 = arith.constant 0 : index
    %19 = vector.load %arg4[%c0_10, %c0_11] : memref<128x16xf32, #tpu.memory_space<vmem>>, vector<128x16xf32>
    %c0_12 = arith.constant 0 : index
    %c0_13 = arith.constant 0 : index
    %20 = vector.load %arg5[%c0_12, %c0_13] : memref<16x128xf32, #tpu.memory_space<vmem>>, vector<16x128xf32>
    %c0_14 = arith.constant 0 : index
    %c0_15 = arith.constant 0 : index
    %c0_16 = arith.constant 0 : index
    %21 = vector.load %arg6[%c0_14, %c0_15, %c0_16] : memref<2x16x32xf32, #tpu.memory_space<vmem>>, vector<1x16x32xf32>
    %22 = vector.shape_cast %21 : vector<1x16x32xf32> to vector<16x32xf32>
    %cst_17 = arith.constant dense<0.000000e+00> : vector<128x32xf32>
    %23 = tpu.matmul %8, %22, %cst_17 {dimension_numbers = #tpu.dot_dimension_numbers<[1], [0], [0], [1], [0, 0, 1, 1], [], []>} : vector<128x16xf32>, vector<16x32xf32>, vector<128x32xf32> -> vector<128x32xf32>
    %c0_18 = arith.constant 0 : index
    %c0_19 = arith.constant 0 : index
    %c0_20 = arith.constant 0 : index
    %24 = vector.load %arg7[%c0_18, %c0_19, %c0_20] : memref<2x1x32xf32, #tpu.memory_space<vmem>>, vector<1x1x32xf32>
    %25 = vector.shape_cast %24 : vector<1x1x32xf32> to vector<1x32xf32>
    %26 = vector.broadcast %25 : vector<1x32xf32> to vector<128x32xf32>
    %27 = arith.addf %23, %26 : vector<128x32xf32>
    %cst_21 = arith.constant 0.000000e+00 : f32
    %28 = vector.broadcast %cst_21 : f32 to vector<128x32xf32>
    %29 = arith.maximumf %27, %28 : vector<128x32xf32>
    %30 = vector.broadcast %cst_21 : f32 to vector<128x32xf32>
    %31 = arith.subf %27, %30 : vector<128x32xf32>
    %32 = arith.cmpf one, %31, %31 : vector<128x32xf32>
    %33 = vector.broadcast %cst_21 : f32 to vector<128x32xf32>
    %34 = arith.addf %27, %33 : vector<128x32xf32>
    %35 = math.absf %31 : vector<128x32xf32>
    %cst_22 = arith.constant 0.000000e+00 : f32
    %36 = vector.broadcast %cst_22 : f32 to vector<128x32xf32>
    %37 = arith.subf %36, %35 : vector<128x32xf32>
    %38 = math.exp %37 : vector<128x32xf32>
    %39 = math.log1p %38 : vector<128x32xf32>
    %40 = arith.addf %29, %39 : vector<128x32xf32>
    %41 = arith.select %32, %34, %40 : vector<128x32xi1>, vector<128x32xf32>
    %cst_23 = arith.constant 0.693147182 : f32
    %42 = vector.broadcast %cst_23 : f32 to vector<128x32xf32>
    %43 = arith.subf %41, %42 : vector<128x32xf32>
    %c0_24 = arith.constant 0 : index
    %c0_25 = arith.constant 0 : index
    %c0_26 = arith.constant 0 : index
    %44 = vector.load %arg8[%c0_24, %c0_25, %c0_26] : memref<2x32x32xf32, #tpu.memory_space<vmem>>, vector<1x32x32xf32>
    %45 = vector.shape_cast %44 : vector<1x32x32xf32> to vector<32x32xf32>
    %cst_27 = arith.constant dense<0.000000e+00> : vector<128x32xf32>
    %46 = tpu.matmul %43, %45, %cst_27 {dimension_numbers = #tpu.dot_dimension_numbers<[1], [0], [0], [1], [0, 0, 1, 1], [], []>} : vector<128x32xf32>, vector<32x32xf32>, vector<128x32xf32> -> vector<128x32xf32>
    %c0_28 = arith.constant 0 : index
    %c0_29 = arith.constant 0 : index
    %c0_30 = arith.constant 0 : index
    %47 = vector.load %arg9[%c0_28, %c0_29, %c0_30] : memref<2x1x32xf32, #tpu.memory_space<vmem>>, vector<1x1x32xf32>
    %48 = vector.shape_cast %47 : vector<1x1x32xf32> to vector<1x32xf32>
    %49 = vector.broadcast %48 : vector<1x32xf32> to vector<128x32xf32>
    %50 = arith.addf %46, %49 : vector<128x32xf32>
    %51 = vector.broadcast %17 : vector<128x1xf32> to vector<128x32xf32>
    %52 = arith.mulf %50, %51 : vector<128x32xf32>
    %c0_31 = arith.constant 0 : index
    %c0_32 = arith.constant 0 : index
    %c0_33 = arith.constant 0 : index
    %53 = vector.load %arg10[%c0_31, %c0_32, %c0_33] : memref<2x32x32xf32, #tpu.memory_space<vmem>>, vector<1x32x32xf32>
    %54 = vector.shape_cast %53 : vector<1x32x32xf32> to vector<32x32xf32>
    %cst_34 = arith.constant dense<0.000000e+00> : vector<16x32xf32>
    %55 = tpu.matmul %18, %54, %cst_34 {dimension_numbers = #tpu.dot_dimension_numbers<[1], [0], [0], [1], [0, 0, 1, 1], [], []>} : vector<16x32xf32>, vector<32x32xf32>, vector<16x32xf32> -> vector<16x32xf32>
    %cst_35 = arith.constant dense<0.000000e+00> : vector<128x32xf32>
    %56 = tpu.matmul %19, %55, %cst_35 {dimension_numbers = #tpu.dot_dimension_numbers<[1], [0], [0], [1], [0, 0, 1, 1], [], []>} : vector<128x16xf32>, vector<16x32xf32>, vector<128x32xf32> -> vector<128x32xf32>
    %57 = arith.mulf %56, %52 : vector<128x32xf32>
    %cst_36 = arith.constant dense<0.000000e+00> : vector<16x32xf32>
    %58 = tpu.matmul %20, %57, %cst_36 {dimension_numbers = #tpu.dot_dimension_numbers<[1], [0], [0], [1], [0, 0, 1, 1], [], []>} : vector<16x128xf32>, vector<128x32xf32>, vector<16x32xf32> -> vector<16x32xf32>
    %c0_37 = arith.constant 0 : index
    %c0_38 = arith.constant 0 : index
    %c0_39 = arith.constant 0 : index
    %59 = vector.load %arg11[%c0_37, %c0_38, %c0_39] : memref<2x32x32xf32, #tpu.memory_space<vmem>>, vector<1x32x32xf32>
    %60 = vector.shape_cast %59 : vector<1x32x32xf32> to vector<32x32xf32>
    %cst_40 = arith.constant dense<0.000000e+00> : vector<16x32xf32>
    %61 = tpu.matmul %58, %60, %cst_40 {dimension_numbers = #tpu.dot_dimension_numbers<[1], [0], [0], [1], [0, 0, 1, 1], [], []>} : vector<16x32xf32>, vector<32x32xf32>, vector<16x32xf32> -> vector<16x32xf32>
    %c0_41 = arith.constant 0 : index
    %c0_42 = arith.constant 0 : index
    %c0_43 = arith.constant 0 : index
    %62 = vector.load %arg12[%c0_41, %c0_42, %c0_43] : memref<2x1x32xf32, #tpu.memory_space<vmem>>, vector<1x1x32xf32>
    %63 = vector.shape_cast %62 : vector<1x1x32xf32> to vector<1x32xf32>
    %64 = vector.broadcast %63 : vector<1x32xf32> to vector<16x32xf32>
    %65 = arith.addf %61, %64 : vector<16x32xf32>
    %cst_44 = arith.constant 0.000000e+00 : f32
    %66 = vector.broadcast %cst_44 : f32 to vector<16x32xf32>
    %67 = arith.maximumf %65, %66 : vector<16x32xf32>
    %68 = vector.broadcast %cst_44 : f32 to vector<16x32xf32>
    %69 = arith.subf %65, %68 : vector<16x32xf32>
    %70 = arith.cmpf one, %69, %69 : vector<16x32xf32>
    %71 = vector.broadcast %cst_44 : f32 to vector<16x32xf32>
    %72 = arith.addf %65, %71 : vector<16x32xf32>
    %73 = math.absf %69 : vector<16x32xf32>
    %cst_45 = arith.constant 0.000000e+00 : f32
    %74 = vector.broadcast %cst_45 : f32 to vector<16x32xf32>
    %75 = arith.subf %74, %73 : vector<16x32xf32>
    %76 = math.exp %75 : vector<16x32xf32>
    %77 = math.log1p %76 : vector<16x32xf32>
    %78 = arith.addf %67, %77 : vector<16x32xf32>
    %79 = arith.select %70, %72, %78 : vector<16x32xi1>, vector<16x32xf32>
    %cst_46 = arith.constant 0.693147182 : f32
    %80 = vector.broadcast %cst_46 : f32 to vector<16x32xf32>
    %81 = arith.subf %79, %80 : vector<16x32xf32>
    %c0_47 = arith.constant 0 : index
    %c0_48 = arith.constant 0 : index
    %c0_49 = arith.constant 0 : index
    %82 = vector.load %arg13[%c0_47, %c0_48, %c0_49] : memref<2x32x32xf32, #tpu.memory_space<vmem>>, vector<1x32x32xf32>
    %83 = vector.shape_cast %82 : vector<1x32x32xf32> to vector<32x32xf32>
    %cst_50 = arith.constant dense<0.000000e+00> : vector<16x32xf32>
    %84 = tpu.matmul %81, %83, %cst_50 {dimension_numbers = #tpu.dot_dimension_numbers<[1], [0], [0], [1], [0, 0, 1, 1], [], []>} : vector<16x32xf32>, vector<32x32xf32>, vector<16x32xf32> -> vector<16x32xf32>
    %c0_51 = arith.constant 0 : index
    %c0_52 = arith.constant 0 : index
    %c0_53 = arith.constant 0 : index
    %85 = vector.load %arg14[%c0_51, %c0_52, %c0_53] : memref<2x1x32xf32, #tpu.memory_space<vmem>>, vector<1x1x32xf32>
    %86 = vector.shape_cast %85 : vector<1x1x32xf32> to vector<1x32xf32>
    %87 = vector.broadcast %86 : vector<1x32xf32> to vector<16x32xf32>
    %88 = arith.addf %84, %87 : vector<16x32xf32>
    %89 = arith.addf %18, %88 : vector<16x32xf32>
    %c1 = arith.constant 1 : index
    %c0_54 = arith.constant 0 : index
    %c0_55 = arith.constant 0 : index
    %90 = vector.load %arg6[%c1, %c0_54, %c0_55] : memref<2x16x32xf32, #tpu.memory_space<vmem>>, vector<1x16x32xf32>
    %91 = vector.shape_cast %90 : vector<1x16x32xf32> to vector<16x32xf32>
    %cst_56 = arith.constant dense<0.000000e+00> : vector<128x32xf32>
    %92 = tpu.matmul %8, %91, %cst_56 {dimension_numbers = #tpu.dot_dimension_numbers<[1], [0], [0], [1], [0, 0, 1, 1], [], []>} : vector<128x16xf32>, vector<16x32xf32>, vector<128x32xf32> -> vector<128x32xf32>
    %c1_57 = arith.constant 1 : index
    %c0_58 = arith.constant 0 : index
    %c0_59 = arith.constant 0 : index
    %93 = vector.load %arg7[%c1_57, %c0_58, %c0_59] : memref<2x1x32xf32, #tpu.memory_space<vmem>>, vector<1x1x32xf32>
    %94 = vector.shape_cast %93 : vector<1x1x32xf32> to vector<1x32xf32>
    %95 = vector.broadcast %94 : vector<1x32xf32> to vector<128x32xf32>
    %96 = arith.addf %92, %95 : vector<128x32xf32>
    %cst_60 = arith.constant 0.000000e+00 : f32
    %97 = vector.broadcast %cst_60 : f32 to vector<128x32xf32>
    %98 = arith.maximumf %96, %97 : vector<128x32xf32>
    %99 = vector.broadcast %cst_60 : f32 to vector<128x32xf32>
    %100 = arith.subf %96, %99 : vector<128x32xf32>
    %101 = arith.cmpf one, %100, %100 : vector<128x32xf32>
    %102 = vector.broadcast %cst_60 : f32 to vector<128x32xf32>
    %103 = arith.addf %96, %102 : vector<128x32xf32>
    %104 = math.absf %100 : vector<128x32xf32>
    %cst_61 = arith.constant 0.000000e+00 : f32
    %105 = vector.broadcast %cst_61 : f32 to vector<128x32xf32>
    %106 = arith.subf %105, %104 : vector<128x32xf32>
    %107 = math.exp %106 : vector<128x32xf32>
    %108 = math.log1p %107 : vector<128x32xf32>
    %109 = arith.addf %98, %108 : vector<128x32xf32>
    %110 = arith.select %101, %103, %109 : vector<128x32xi1>, vector<128x32xf32>
    %cst_62 = arith.constant 0.693147182 : f32
    %111 = vector.broadcast %cst_62 : f32 to vector<128x32xf32>
    %112 = arith.subf %110, %111 : vector<128x32xf32>
    %c1_63 = arith.constant 1 : index
    %c0_64 = arith.constant 0 : index
    %c0_65 = arith.constant 0 : index
    %113 = vector.load %arg8[%c1_63, %c0_64, %c0_65] : memref<2x32x32xf32, #tpu.memory_space<vmem>>, vector<1x32x32xf32>
    %114 = vector.shape_cast %113 : vector<1x32x32xf32> to vector<32x32xf32>
    %cst_66 = arith.constant dense<0.000000e+00> : vector<128x32xf32>
    %115 = tpu.matmul %112, %114, %cst_66 {dimension_numbers = #tpu.dot_dimension_numbers<[1], [0], [0], [1], [0, 0, 1, 1], [], []>} : vector<128x32xf32>, vector<32x32xf32>, vector<128x32xf32> -> vector<128x32xf32>
    %c1_67 = arith.constant 1 : index
    %c0_68 = arith.constant 0 : index
    %c0_69 = arith.constant 0 : index
    %116 = vector.load %arg9[%c1_67, %c0_68, %c0_69] : memref<2x1x32xf32, #tpu.memory_space<vmem>>, vector<1x1x32xf32>
    %117 = vector.shape_cast %116 : vector<1x1x32xf32> to vector<1x32xf32>
    %118 = vector.broadcast %117 : vector<1x32xf32> to vector<128x32xf32>
    %119 = arith.addf %115, %118 : vector<128x32xf32>
    %120 = vector.broadcast %17 : vector<128x1xf32> to vector<128x32xf32>
    %121 = arith.mulf %119, %120 : vector<128x32xf32>
    %c1_70 = arith.constant 1 : index
    %c0_71 = arith.constant 0 : index
    %c0_72 = arith.constant 0 : index
    %122 = vector.load %arg10[%c1_70, %c0_71, %c0_72] : memref<2x32x32xf32, #tpu.memory_space<vmem>>, vector<1x32x32xf32>
    %123 = vector.shape_cast %122 : vector<1x32x32xf32> to vector<32x32xf32>
    %cst_73 = arith.constant dense<0.000000e+00> : vector<16x32xf32>
    %124 = tpu.matmul %89, %123, %cst_73 {dimension_numbers = #tpu.dot_dimension_numbers<[1], [0], [0], [1], [0, 0, 1, 1], [], []>} : vector<16x32xf32>, vector<32x32xf32>, vector<16x32xf32> -> vector<16x32xf32>
    %cst_74 = arith.constant dense<0.000000e+00> : vector<128x32xf32>
    %125 = tpu.matmul %19, %124, %cst_74 {dimension_numbers = #tpu.dot_dimension_numbers<[1], [0], [0], [1], [0, 0, 1, 1], [], []>} : vector<128x16xf32>, vector<16x32xf32>, vector<128x32xf32> -> vector<128x32xf32>
    %126 = arith.mulf %125, %121 : vector<128x32xf32>
    %cst_75 = arith.constant dense<0.000000e+00> : vector<16x32xf32>
    %127 = tpu.matmul %20, %126, %cst_75 {dimension_numbers = #tpu.dot_dimension_numbers<[1], [0], [0], [1], [0, 0, 1, 1], [], []>} : vector<16x128xf32>, vector<128x32xf32>, vector<16x32xf32> -> vector<16x32xf32>
    %c1_76 = arith.constant 1 : index
    %c0_77 = arith.constant 0 : index
    %c0_78 = arith.constant 0 : index
    %128 = vector.load %arg11[%c1_76, %c0_77, %c0_78] : memref<2x32x32xf32, #tpu.memory_space<vmem>>, vector<1x32x32xf32>
    %129 = vector.shape_cast %128 : vector<1x32x32xf32> to vector<32x32xf32>
    %cst_79 = arith.constant dense<0.000000e+00> : vector<16x32xf32>
    %130 = tpu.matmul %127, %129, %cst_79 {dimension_numbers = #tpu.dot_dimension_numbers<[1], [0], [0], [1], [0, 0, 1, 1], [], []>} : vector<16x32xf32>, vector<32x32xf32>, vector<16x32xf32> -> vector<16x32xf32>
    %c1_80 = arith.constant 1 : index
    %c0_81 = arith.constant 0 : index
    %c0_82 = arith.constant 0 : index
    %131 = vector.load %arg12[%c1_80, %c0_81, %c0_82] : memref<2x1x32xf32, #tpu.memory_space<vmem>>, vector<1x1x32xf32>
    %132 = vector.shape_cast %131 : vector<1x1x32xf32> to vector<1x32xf32>
    %133 = vector.broadcast %132 : vector<1x32xf32> to vector<16x32xf32>
    %134 = arith.addf %130, %133 : vector<16x32xf32>
    %cst_83 = arith.constant 0.000000e+00 : f32
    %135 = vector.broadcast %cst_83 : f32 to vector<16x32xf32>
    %136 = arith.maximumf %134, %135 : vector<16x32xf32>
    %137 = vector.broadcast %cst_83 : f32 to vector<16x32xf32>
    %138 = arith.subf %134, %137 : vector<16x32xf32>
    %139 = arith.cmpf one, %138, %138 : vector<16x32xf32>
    %140 = vector.broadcast %cst_83 : f32 to vector<16x32xf32>
    %141 = arith.addf %134, %140 : vector<16x32xf32>
    %142 = math.absf %138 : vector<16x32xf32>
    %cst_84 = arith.constant 0.000000e+00 : f32
    %143 = vector.broadcast %cst_84 : f32 to vector<16x32xf32>
    %144 = arith.subf %143, %142 : vector<16x32xf32>
    %145 = math.exp %144 : vector<16x32xf32>
    %146 = math.log1p %145 : vector<16x32xf32>
    %147 = arith.addf %136, %146 : vector<16x32xf32>
    %148 = arith.select %139, %141, %147 : vector<16x32xi1>, vector<16x32xf32>
    %cst_85 = arith.constant 0.693147182 : f32
    %149 = vector.broadcast %cst_85 : f32 to vector<16x32xf32>
    %150 = arith.subf %148, %149 : vector<16x32xf32>
    %c1_86 = arith.constant 1 : index
    %c0_87 = arith.constant 0 : index
    %c0_88 = arith.constant 0 : index
    %151 = vector.load %arg13[%c1_86, %c0_87, %c0_88] : memref<2x32x32xf32, #tpu.memory_space<vmem>>, vector<1x32x32xf32>
    %152 = vector.shape_cast %151 : vector<1x32x32xf32> to vector<32x32xf32>
    %cst_89 = arith.constant dense<0.000000e+00> : vector<16x32xf32>
    %153 = tpu.matmul %150, %152, %cst_89 {dimension_numbers = #tpu.dot_dimension_numbers<[1], [0], [0], [1], [0, 0, 1, 1], [], []>} : vector<16x32xf32>, vector<32x32xf32>, vector<16x32xf32> -> vector<16x32xf32>
    %c1_90 = arith.constant 1 : index
    %c0_91 = arith.constant 0 : index
    %c0_92 = arith.constant 0 : index
    %154 = vector.load %arg14[%c1_90, %c0_91, %c0_92] : memref<2x1x32xf32, #tpu.memory_space<vmem>>, vector<1x1x32xf32>
    %155 = vector.shape_cast %154 : vector<1x1x32xf32> to vector<1x32xf32>
    %156 = vector.broadcast %155 : vector<1x32xf32> to vector<16x32xf32>
    %157 = arith.addf %153, %156 : vector<16x32xf32>
    %158 = arith.addf %89, %157 : vector<16x32xf32>
    %c0_93 = arith.constant 0 : index
    %c0_94 = arith.constant 0 : index
    %159 = vector.load %arg15[%c0_93, %c0_94] : memref<32x16xf32, #tpu.memory_space<vmem>>, vector<32x16xf32>
    %cst_95 = arith.constant dense<0.000000e+00> : vector<16x16xf32>
    %160 = tpu.matmul %158, %159, %cst_95 {dimension_numbers = #tpu.dot_dimension_numbers<[1], [0], [0], [1], [0, 0, 1, 1], [], []>} : vector<16x32xf32>, vector<32x16xf32>, vector<16x16xf32> -> vector<16x16xf32>
    %c0_96 = arith.constant 0 : index
    %c0_97 = arith.constant 0 : index
    %161 = vector.load %arg16[%c0_96, %c0_97] : memref<1x16xf32, #tpu.memory_space<vmem>>, vector<1x16xf32>
    %162 = vector.broadcast %161 : vector<1x16xf32> to vector<16x16xf32>
    %163 = arith.addf %160, %162 : vector<16x16xf32>
    %cst_98 = arith.constant 0.000000e+00 : f32
    %164 = vector.broadcast %cst_98 : f32 to vector<16x16xf32>
    %165 = arith.maximumf %163, %164 : vector<16x16xf32>
    %166 = vector.broadcast %cst_98 : f32 to vector<16x16xf32>
    %167 = arith.subf %163, %166 : vector<16x16xf32>
    %168 = arith.cmpf one, %167, %167 : vector<16x16xf32>
    %169 = vector.broadcast %cst_98 : f32 to vector<16x16xf32>
    %170 = arith.addf %163, %169 : vector<16x16xf32>
    %171 = math.absf %167 : vector<16x16xf32>
    %cst_99 = arith.constant 0.000000e+00 : f32
    %172 = vector.broadcast %cst_99 : f32 to vector<16x16xf32>
    %173 = arith.subf %172, %171 : vector<16x16xf32>
    %174 = math.exp %173 : vector<16x16xf32>
    %175 = math.log1p %174 : vector<16x16xf32>
    %176 = arith.addf %165, %175 : vector<16x16xf32>
    %177 = arith.select %168, %170, %176 : vector<16x16xi1>, vector<16x16xf32>
    %cst_100 = arith.constant 0.693147182 : f32
    %178 = vector.broadcast %cst_100 : f32 to vector<16x16xf32>
    %179 = arith.subf %177, %178 : vector<16x16xf32>
    %c0_101 = arith.constant 0 : index
    %c0_102 = arith.constant 0 : index
    %180 = vector.load %arg17[%c0_101, %c0_102] : memref<16x1xf32, #tpu.memory_space<vmem>>, vector<16x1xf32>
    %cst_103 = arith.constant dense<0.000000e+00> : vector<16x1xf32>
    %181 = tpu.matmul %179, %180, %cst_103 {dimension_numbers = #tpu.dot_dimension_numbers<[1], [0], [0], [1], [0, 0, 1, 1], [], []>} : vector<16x16xf32>, vector<16x1xf32>, vector<16x1xf32> -> vector<16x1xf32>
    %c0_104 = arith.constant 0 : index
    %c0_105 = arith.constant 0 : index
    %182 = vector.load %arg18[%c0_104, %c0_105] : memref<1x1xf32, #tpu.memory_space<vmem>>, vector<1x1xf32>
    %183 = vector.broadcast %182 : vector<1x1xf32> to vector<16x1xf32>
    %184 = arith.addf %181, %183 : vector<16x1xf32>
    %c0_106 = arith.constant 0 : index
    %c0_107 = arith.constant 0 : index
    %185 = vector.load %arg19[%c0_106, %c0_107] : memref<2x16xf32, #tpu.memory_space<vmem>>, vector<2x16xf32>
    %cst_108 = arith.constant dense<0.000000e+00> : vector<2x1xf32>
    %186 = tpu.matmul %185, %184, %cst_108 {dimension_numbers = #tpu.dot_dimension_numbers<[1], [0], [0], [1], [0, 0, 1, 1], [], []>} : vector<2x16xf32>, vector<16x1xf32>, vector<2x1xf32> -> vector<2x1xf32>
    %c0_109 = arith.constant 0 : index
    %c0_110 = arith.constant 0 : index
    %187 = vector.load %arg20[%c0_109, %c0_110] : memref<2x1xf32, #tpu.memory_space<vmem>>, vector<2x1xf32>
    tpu.vector_store %arg20[%c0_109, %c0_110], %186 {strides = array<i32>} : memref<2x1xf32, #tpu.memory_space<vmem>>, vector<2x1xf32>,
    return
  }
}

</mosaic_0001>

<bundles_post_ra>
// kernel: tpu_custom_call.1
= control target key start
LH: loop header
LB: loop body
LE: loop exit
PB: predicated region body
PF: predicated region fallthrough
CT: control target
= control target key end

     0   :  { %v9081_v0 = vmov 0   ;;  %v9079_v18 = vmov 683565275   ;;  %v9077_v20 = vmov 2475754826   ;;  %s9037_s0 = inlined_call_operand.vmem [shape: f32[128,1], index: 0, kind: input, shape index: {}]   ;;  %s9038_s2 = inlined_call_operand.vmem [shape: f32[1,16], index: 2, kind: input, shape index: {}]   ;;  %s9039_s1 = inlined_call_operand.vmem [shape: f32[128,1], index: 1, kind: input, shape index: {}]   ;;  %s9040_s6 = inlined_call_operand.vmem [shape: f32[2,16,32], index: 6, kind: input, shape index: {}]   ;;  %s9041_s7 = inlined_call_operand.vmem [shape: f32[2,1,32], index: 7, kind: input, shape index: {}]   ;;  %s9042_s8 = inlined_call_operand.vmem [shape: f32[2,32,32], index: 8, kind: input, shape index: {}]   ;;  %s9043_s9 = inlined_call_operand.vmem [shape: f32[2,1,32], index: 9, kind: input, shape index: {}]   ;;  %s9044_s10 = inlined_call_operand.vmem [shape: f32[2,32,32], index: 10, kind: input, shape index: {}]   ;;  %s9045_s3 = inlined_call_operand.vmem [shape: f32[16,32], index: 3, kind: input, shape index: {}]   ;;  %s9046_s4 = inlined_call_operand.vmem [shape: f32[128,16], index: 4, kind: input, shape index: {}]   ;;  %s9047_s5 = inlined_call_operand.vmem [shape: f32[16,128], index: 5, kind: input, shape index: {}]   ;;  %s9048_s11 = inlined_call_operand.vmem [shape: f32[2,32,32], index: 11, kind: input, shape index: {}]   ;;  %s9049_s12 = inlined_call_operand.vmem [shape: f32[2,1,32], index: 12, kind: input, shape index: {}]   ;;  %s9050_s13 = inlined_call_operand.vmem [shape: f32[2,32,32], index: 13, kind: input, shape index: {}]   ;;  %s9051_s14 = inlined_call_operand.vmem [shape: f32[2,1,32], index: 14, kind: input, shape index: {}]   ;;  %s9052_s15 = inlined_call_operand.vmem [shape: f32[32,16], index: 15, kind: input, shape index: {}]   ;;  %s9053_s16 = inlined_call_operand.vmem [shape: f32[1,16], index: 16, kind: input, shape index: {}]   ;;  %s9054_s17 = inlined_call_operand.vmem [shape: f32[16,1], index: 17, kind: input, shape index: {}]   ;;  %s9055_s18 = inlined_call_operand.<no memory space> [shape: f32[1,1], index: 18, kind: input, shape index: {}]   ;;  %s9056_s19 = inlined_call_operand.vmem [shape: f32[2,16], index: 19, kind: input, shape index: {}]   ;;  %s9057_s20 = inlined_call_operand.vmem [shape: f32[2,1], index: 20, kind: output, shape index: {}]  }
   0x1   :  { %9185 = sst [smem:[#allocation39_spill]] %s9037_s0  ;;  %4899 = vset.pattern.permute.xlu1 %v9081_v0  ;;  %4898 = vset.pattern.permute.xlu0 %v9081_v0  ;;  %v9067_v22 = vmov 2131351028   ;;  %v9069_v25 = vmov 2102212464  }
   0x2   :  { %9186 = sst [smem:[#allocation40_spill]] %s9038_s2  ;;  %4900 = vset.pattern.permute.xlu2 %v9081_v0  ;;  %v9071_v27 = vmov 920167782   ;;  %v9073_v33 = vmov 1326507024  }
   0x3   :  { %9187 = sst [smem:[#allocation41_spill]] %s9039_s1 }
   0x4   :  { %9188 = sst [smem:[#allocation42_spill]] %s9040_s6 }
   0x5   :  { %9189 = sst [smem:[#allocation43_spill]] %s9041_s7 }
   0x6   :  { %s9190_s23 = sld [smem:[#allocation39_spill]] }
   0x7   :  { %s9342_s6 = sld [smem:[#allocation41_spill]] }
   0x8   :  { %s9369_s24 = sld [smem:[#allocation42_spill]] }
   0x9   :  { %s9374_s27 = sld [smem:[#allocation40_spill]] }
   0xa   :  { %s9409_s25 = sld [smem:[#allocation43_spill]] }
   0xc   :  { %v69_v1 = vld [vmem:[%s9190_s23 + $0x10] sm:$0xff]  ;;  %v67_v2 = vld [vmem:[%s9190_s23] sm:$0xff]  ;;  %v5241_v6 = vld [vmem:[%s9190_s23 + $0x18] sm:$0xff] }
   0xd   :  { %96 = vperm.xlu1 %4899, %v69_v1   ;;  %v5234_v3 = vmul.f32 0.31415927, %v69_v1  ;;  %86 = vperm.xlu0 %4898, %v67_v2   ;;  %v5246_v7 = vld [vmem:[%s9190_s23 + $0x8] sm:$0xff]  ;;  %v5251_v11 = vmul.f32 0.31415927, %v67_v2 }
   0xf   :  { %9191 = vst [vmem:[#allocation3_spill] sm:$0xff] %v5234_v3  ;;  %v574_v4 = vand.u32 2139095040, %v5234_v3  ;;  %v9066_v9 = vand.u32 2147483647, %v5234_v3  ;;  %v266_v16 = vand.u32 2139095040, %v5251_v11 }
  0x10   :  { %9192 = vst [vmem:[#allocation4_spill] sm:$0xff] %v5251_v11 }
  0x11   :  { %v575_v5 = vshrl.u32 %v574_v4, 23  ;;  %v578_v12 = vand.u32 8388607, %v9066_v9  ;;  %v267_v35 = vshrl.u32 %v266_v16, 23 }
  0x13   :  { %v4670_v8 = vadd.s32 4294967169, %v575_v5  ;;  %v579_v24 = vor.u32 8388608, %v578_v12  ;;  %v4664_v48 = vadd.s32 4294967169, %v267_v35 }
  0x15   :  { %v581_v10 = vadd.s32 1, %v4670_v8  ;;  %101 = vperm.xlu1 %4899, %v5241_v6   ;;  %91 = vperm.xlu0 %4898, %v5246_v7   ;;  %v5284_v41 = vshll.u32 %v579_v24, 8  ;;  %v273_v56 = vadd.s32 1, %v4664_v48 }
  0x17   :  { %vm582_vm0 = vcmp.gt.s32.totalorder %v581_v10, 0  ;;  %v620_v51 = vand.u32 65535, %v5284_v41  ;;  %v621_v54 = vshrl.u32 %v5284_v41, 16  ;;  %vm274_vm5 = vcmp.gt.s32.totalorder %v273_v56, 0 }
  0x18   :  { %v583_v13 = vsel %vm582_vm0, %v581_v10, 0  ;;  %v275_v4 = vsel %vm274_vm5, %v273_v56, 0 }
  0x19   :  { %v585_v14 = vand.u32 31, %v583_v13  ;;  %v5255_v15 = vshrl.u32 %v583_v13, 5  ;;  %v5317_v13 = vmul.f32 0.31415927, %v5241_v6  ;;  %v277_v16 = vand.u32 31, %v275_v4  ;;  %v5328_v6 = vld [vmem:[%s9190_s23 + $0x38] sm:$0xff] }
  0x1b   :  { %v5258_v17 = vsub.s32 32, %v585_v14  ;;  %v588_v19 = vshll.u32 %v9079_v18, %v585_v14  ;;  %v591_v21 = vshll.u32 %v9077_v20, %v585_v14  ;;  %v594_v23 = vshll.u32 %v9067_v22, %v585_v14  ;;  %9193 = vst [vmem:[#allocation5_spill] sm:$0xff] %v5317_v13 }
  0x1c   :  { %v597_v26 = vshll.u32 %v9069_v25, %v585_v14  ;;  %v600_v28 = vshll.u32 %v9071_v27, %v585_v14  ;;  %vm603_vm1 = vcmp.lt.s32.totalorder %v5255_v15, 1  ;;  %vm606_vm2 = vcmp.lt.s32.totalorder %v5255_v15, 4 }
  0x1d   :  { %v589_v29 = vshrl.u32 %v9077_v20, %v5258_v17  ;;  %v592_v30 = vshrl.u32 %v9067_v22, %v5258_v17  ;;  %v595_v31 = vshrl.u32 %v9069_v25, %v5258_v17  ;;  %v598_v32 = vshrl.u32 %v9071_v27, %v5258_v17  ;;  %121 = vperm.xlu1 %4899, %v5328_v6  }
  0x1e   :  { %v601_v34 = vshrl.u32 %v9073_v33, %v5258_v17  ;;  %vm605_vm3 = vcmp.lt.s32.totalorder %v5255_v15, 3  ;;  %vm604_vm4 = vcmp.lt.s32.totalorder %v5255_v15, 2  ;;  %v728_v24 = vand.u32 2139095040, %v5317_v13 }
  0x1f   :  { %v5276_v36 = vor.u32 %v589_v29, %v588_v19  ;;  %v5278_v37 = vor.u32 %v592_v30, %v591_v21  ;;  %v5280_v38 = vor.u32 %v595_v31, %v594_v23  ;;  %v599_v39 = vor.u32 %v598_v32, %v597_v26 }
  0x20   :  { %v602_v40 = vor.u32 %v601_v34, %v600_v28  ;;  %v5322_v28 = vsub.s32 32, %v277_v16  ;;  %v9062_v34 = vand.u32 2147483647, %v5251_v11  ;;  %v729_v35 = vshrl.u32 %v728_v24, 23 }
  0x21   :  { %v611_v42 = vsel %vm603_vm1, %v5276_v36, %v5278_v37  ;;  %v615_v43 = vsel %vm603_vm1, %v5278_v37, %v5280_v38  ;;  %v612_v44 = vsel %vm606_vm2, %v599_v39, 920167782  ;;  %v587_v48 = vshrl.u32 %v9079_v18, %v5258_v17 }
  0x22   :  { %v616_v45 = vsel %vm606_vm2, %v602_v40, 1326507024  ;;  %v613_v46 = vsel %vm605_vm3, %v5280_v38, %v612_v44 }
  0x23   :  { %v617_v47 = vsel %vm605_vm3, %v599_v39, %v616_v45  ;;  %v614_v49 = vsel %vm604_vm4, %v611_v42, %v613_v46  ;;  %v292_v42 = vshll.u32 %v9071_v27, %v277_v16  ;;  %v5336_v45 = vshrl.u32 %v275_v4, 5 }
  0x24   :  { %v618_v50 = vsel %vm604_vm4, %v615_v43, %v617_v47  ;;  %v645_v53 = vshrl.u32 %v614_v49, 16  ;;  %v644_v55 = vand.u32 65535, %v614_v49  ;;  %v293_v43 = vshrl.u32 %v9073_v33, %v5322_v28 }
  0x25   :  { %v623_v52 = vshrl.u32 %v618_v50, 16  ;;  %v622_v57 = vand.u32 65535, %v618_v50  ;;  %v289_v46 = vshll.u32 %v9069_v25, %v277_v16  ;;  %v290_v47 = vshrl.u32 %v9071_v27, %v5322_v28 }
  0x26   :  { %v647_v59 = vmul.u32 %v645_v53, %v620_v51  ;;  %v646_v60 = vmul.u32 %v644_v55, %v620_v51  ;;  %v5310_v61 = vmul.u32 %v644_v55, %v621_v54  ;;  %v649_v14 = vmul.u32 %v645_v53, %v621_v54 }
  0x27   :  { %v625_v58 = vmul.u32 %v623_v52, %v620_v51  ;;  %v624_v63 = vmul.u32 %v622_v57, %v620_v51  ;;  %v5312_v1 = vmul.u32 %v622_v57, %v621_v54  ;;  %v627_v19 = vmul.u32 %v623_v52, %v621_v54 }
  0x28   :  { %v650_v62 = vshll.u32 %v647_v59, 16  ;;  %v652_v5 = vshll.u32 %v5310_v61, 16  ;;  %v651_v39 = vshrl.u32 %v647_v59, 16  ;;  %v608_v49 = vsel %vm606_vm2, %v5280_v38, 2102212464 }
  0x29   :  { %v628_v2 = vshll.u32 %v625_v58, 16  ;;  %v630_v10 = vshll.u32 %v5312_v1, 16  ;;  %v629_v32 = vshrl.u32 %v625_v58, 16  ;;  %v280_v50 = vshll.u32 %v9079_v18, %v277_v16 }
  0x2a   :  { %vm654_vm6 = vc.u32 %v646_v60, %v650_v62  ;;  %v656_v8 = vadd.s32 %v650_v62, %v646_v60  ;;  %v283_v51 = vshll.u32 %v9077_v20, %v277_v16  ;;  %v281_v52 = vshrl.u32 %v9077_v20, %v5322_v28 }
  0x2b   :  { %vm632_vm7 = vc.u32 %v624_v63, %v628_v2  ;;  %v634_v12 = vadd.s32 %v628_v2, %v624_v63  ;;  %v655_v21 = vsel %vm654_vm6, 1, %v9081_v0  ;;  %v284_v53 = vshrl.u32 %v9067_v22, %v5322_v28 }
  0x2c   :  { %v633_v23 = vsel %vm632_vm7, 1, %v9081_v0  ;;  %vm658_vm8 = vc.u32 %v656_v8, %v652_v5  ;;  %v657_v26 = vadd.s32 %v655_v21, %v649_v14  ;;  %v286_v54 = vshll.u32 %v9067_v22, %v277_v16 }
  0x2d   :  { %vm636_vm9 = vc.u32 %v634_v12, %v630_v10  ;;  %v635_v29 = vadd.s32 %v633_v23, %v627_v19  ;;  %v659_v30 = vsel %vm658_vm8, 1, %v9081_v0  ;;  %v287_v55 = vshrl.u32 %v9069_v25, %v5322_v28 }
  0x2e   :  { %v637_v31 = vsel %vm636_vm9, 1, %v9081_v0  ;;  %v661_v40 = vadd.s32 %v659_v30, %v657_v26  ;;  %v653_v17 = vshrl.u32 %v5310_v61, 16  ;;  %v270_v38 = vand.u32 8388607, %v9062_v34 }
  0x2f   :  { %v639_v44 = vadd.s32 %v637_v31, %v635_v29  ;;  %v294_v57 = vor.u32 %v293_v43, %v292_v42  ;;  %v631_v58 = vshrl.u32 %v5312_v1, 16  ;;  %v291_v60 = vor.u32 %v290_v47, %v289_v46 }
  0x30   :  { %v662_v56 = vadd.s32 %v661_v40, %v651_v39  ;;  %vm298_vm10 = vcmp.lt.s32.totalorder %v5336_v45, 4  ;;  %v607_v62 = vsel %vm603_vm1, %v587_v48, %v5276_v36  ;;  %v4673_v63 = vadd.s32 4294967169, %v729_v35 }
  0x31   :  { %v640_v59 = vadd.s32 %v639_v44, %v629_v32  ;;  %v609_v61 = vsel %vm605_vm3, %v5278_v37, %v608_v49  ;;  %v5366_v2 = vor.u32 %v281_v52, %v280_v50  ;;  %v5368_v4 = vor.u32 %v284_v53, %v283_v51 }
  0x32   :  { %v5370_v10 = vor.u32 %v287_v55, %v286_v54  ;;  %v663_v1 = vadd.s32 %v662_v56, %v653_v17  ;;  %vm295_vm11 = vcmp.lt.s32.totalorder %v5336_v45, 1  ;;  %vm297_vm12 = vcmp.lt.s32.totalorder %v5336_v45, 3 }
  0x33   :  { %v308_v12 = vsel %vm298_vm10, %v294_v57, 1326507024  ;;  %v5376_v36 = vadd.s32 %v640_v59, %v631_v58  ;;  %v5378_v14 = vadd.s32 %v656_v8, %v652_v5  ;;  %v271_v16 = vor.u32 8388608, %v270_v38 }
  0x34   :  { %v304_v37 = vsel %vm298_vm10, %v291_v60, 920167782  ;;  %v735_v19 = vadd.s32 1, %v4673_v63  ;;  %vm296_vm13 = vcmp.lt.s32.totalorder %v5336_v45, 2  ;;  %v307_v21 = vsel %vm295_vm11, %v5368_v4, %v5370_v10 }
  0x35   :  { %v309_v23 = vsel %vm297_vm12, %v291_v60, %v308_v12  ;;  %v610_v24 = vsel %vm604_vm4, %v607_v62, %v609_v61  ;;  %v667_v5 = vadd.s32 1, %v663_v1  ;;  %v303_v8 = vsel %vm295_vm11, %v5366_v2, %v5368_v4 }
  0x36   :  { %v305_v26 = vsel %vm297_vm12, %v5370_v10, %v304_v37  ;;  %vm666_vm14 = vc.u32 %v5376_v36, %v5378_v14  ;;  %v5400_v29 = vshll.u32 %v271_v16, 8  ;;  %v310_v30 = vsel %vm296_vm13, %v307_v21, %v309_v23 }
  0x37   :  { %vm736_vm15 = vcmp.gt.s32.totalorder %v735_v19, 0  ;;  %v664_v15 = vmul.u32 %v5284_v41, %v610_v24  ;;  %v306_v31 = vsel %vm296_vm13, %v303_v8, %v305_v26  ;;  %v668_v32 = vsel %vm666_vm14, %v667_v5, %v663_v1 }
  0x38   :  { %v312_v35 = vand.u32 65535, %v5400_v29  ;;  %v315_v39 = vshrl.u32 %v310_v30, 16  ;;  %v737_v40 = vsel %vm736_vm15, %v735_v19, 0  ;;  %v337_v42 = vshrl.u32 %v306_v31, 16 }
  0x39   :  { %v5408_v43 = vadd.s32 %v668_v32, %v664_v15  ;;  %v739_v44 = vand.u32 31, %v737_v40  ;;  %v313_v46 = vshrl.u32 %v5400_v29, 16  ;;  %v314_v47 = vand.u32 65535, %v310_v30 }
  0x3a   :  { %v5411_v48 = vmul.u32 %v315_v39, %v312_v35  ;;  %v336_v49 = vand.u32 65535, %v306_v31  ;;  %v5413_v50 = vmul.u32 %v337_v42, %v312_v35  ;;  %v9063_v57 = vand.u32 2147483647, %v5317_v13 }
  0x3b   :  { %v670_v41 = vadd.s32 536870912, %v5408_v43  ;;  %v5416_v51 = vsub.s32 32, %v739_v44  ;;  %v316_v52 = vmul.u32 %v314_v47, %v312_v35  ;;  %v5418_v53 = vmul.u32 %v314_v47, %v313_v46 }
  0x3c   :  { %v320_v54 = vshll.u32 %v5411_v48, 16  ;;  %v5421_v55 = vmul.u32 %v336_v49, %v313_v46  ;;  %v338_v17 = vmul.u32 %v336_v49, %v312_v35  ;;  %v342_v56 = vshll.u32 %v5413_v50, 16 }
  0x3d   :  { %v5424_v38 = vshrl.u32 %v670_v41, 30  ;;  %v5427_v58 = vshrl.u32 %v737_v40, 5  ;;  %v751_v59 = vshll.u32 %v9069_v25, %v739_v44  ;;  %v752_v60 = vshrl.u32 %v9071_v27, %v5416_v51 }
  0x3e   :  { %v754_v62 = vshll.u32 %v9071_v27, %v739_v44  ;;  %v755_v63 = vshrl.u32 %v9073_v33, %v5416_v51  ;;  %v322_v61 = vshll.u32 %v5418_v53, 16  ;;  %vm5436_vm0 = vc.u32 %v316_v52, %v320_v54 }
  0x3f   :  { %9194 = vst [vmem:[#allocation6_spill] sm:$0xff] %v5424_v38  ;;  %v326_v12 = vadd.s32 %v320_v54, %v316_v52  ;;  %v344_v16 = vshll.u32 %v5421_v55, 16  ;;  %vm346_vm1 = vc.u32 %v338_v17, %v342_v56  ;;  %v5441_v37 = vadd.s32 %v342_v56, %v338_v17 }
  0x40   :  { %v742_v19 = vshll.u32 %v9079_v18, %v739_v44  ;;  %v743_v21 = vshrl.u32 %v9077_v20, %v5416_v51  ;;  %v745_v23 = vshll.u32 %v9077_v20, %v739_v44  ;;  %v746_v24 = vshrl.u32 %v9067_v22, %v5416_v51 }
  0x41   :  { %v748_v5 = vshll.u32 %v9067_v22, %v739_v44  ;;  %v749_v8 = vshrl.u32 %v9069_v25, %v5416_v51  ;;  %v341_v26 = vmul.u32 %v337_v42, %v313_v46  ;;  %v753_v30 = vor.u32 %v752_v60, %v751_v59 }
  0x42   :  { %v756_v15 = vor.u32 %v755_v63, %v754_v62  ;;  %v347_v31 = vsel %vm346_vm1, 1, %v9081_v0  ;;  %v732_v32 = vand.u32 8388607, %v9063_v57  ;;  %vm757_vm2 = vcmp.lt.s32.totalorder %v5427_v58, 1 }
  0x43   :  { %vm760_vm3 = vcmp.lt.s32.totalorder %v5427_v58, 4  ;;  %v672_v35 = vshll.u32 %v5424_v38, 30  ;;  %v319_v40 = vmul.u32 %v315_v39, %v313_v46  ;;  %v325_v44 = vsel %vm5436_vm0, 1, %v9081_v0 }
  0x44   :  { %vm350_vm4 = vc.u32 %v5441_v37, %v344_v16  ;;  %vm328_vm5 = vc.u32 %v326_v12, %v322_v61  ;;  %v5464_v42 = vor.u32 %v743_v21, %v742_v19  ;;  %v5466_v47 = vor.u32 %v746_v24, %v745_v23  ;;  %v5501_v19 = vld [vmem:[%s9190_s23 + $0x30] sm:$0xff] }
  0x45   :  { %v5468_v49 = vor.u32 %v749_v8, %v748_v5  ;;  %v349_v41 = vadd.s32 %v347_v31, %v341_v26  ;;  %vm759_vm6 = vcmp.lt.s32.totalorder %v5427_v58, 3  ;;  %v766_v39 = vsel %vm760_vm3, %v753_v30, 920167782  ;;  %116 = vperm.xlu0 %4898, %v5501_v19  }
  0x46   :  { %v770_v46 = vsel %vm760_vm3, %v756_v15, 1326507024  ;;  %v351_v52 = vsel %vm350_vm4, 1, %v9081_v0  ;;  %v733_v54 = vor.u32 8388608, %v732_v32  ;;  %v5477_v17 = vmul.f32 0.31415927, %v5246_v7 }
  0x47   :  { %v327_v56 = vadd.s32 %v325_v44, %v319_v40  ;;  %v329_v59 = vsel %vm328_vm5, 1, %v9081_v0  ;;  %vm758_vm7 = vcmp.lt.s32.totalorder %v5427_v58, 2  ;;  %v765_v60 = vsel %vm757_vm2, %v5464_v42, %v5466_v47 }
  0x48   :  { %9197 = vst [vmem:[#allocation7_spill] sm:$0xff] %v5477_v17  ;;  %v767_v62 = vsel %vm759_vm6, %v5468_v49, %v766_v39  ;;  %v769_v7 = vsel %vm757_vm2, %v5466_v47, %v5468_v49  ;;  %v771_v63 = vsel %vm759_vm6, %v753_v30, %v770_v46  ;;  %v5495_v61 = vsub.s32 %v5408_v43, %v672_v35 }
  0x49   :  { %v343_v1 = vshrl.u32 %v5413_v50, 16  ;;  %v353_v12 = vadd.s32 %v351_v52, %v349_v41  ;;  %v5503_v21 = vshll.u32 %v733_v54, 8  ;;  %v420_v23 = vand.u32 2139095040, %v5477_v17 }
  0x4a   :  { %v321_v24 = vshrl.u32 %v5411_v48, 16  ;;  %v331_v5 = vadd.s32 %v329_v59, %v327_v56  ;;  %v768_v43 = vsel %vm758_vm7, %v765_v60, %v767_v62  ;;  %v5512_v50 = vsel %vm758_vm7, %v769_v7, %v771_v63 }
  0x4b   :  { %v279_v8 = vshrl.u32 %v9079_v18, %v5322_v28  ;;  %v300_v26 = vsel %vm298_vm10, %v5370_v10, 2102212464  ;;  %v675_v30 = vsub.s32 0, %v5495_v61  ;;  %v345_v15 = vshrl.u32 %v5421_v55, 16 }
  0x4c   :  { %v354_v48 = vadd.s32 %v353_v12, %v343_v1  ;;  %v421_v31 = vshrl.u32 %v420_v23, 23  ;;  %vm674_vm8 = vcmp.lt.s32.totalorder %v5495_v61, 0  ;;  %v774_v32 = vand.u32 65535, %v5503_v21 }
  0x4d   :  { %v777_v35 = vshrl.u32 %v5512_v50, 16  ;;  %v799_v40 = vshrl.u32 %v768_v43, 16  ;;  %v323_v44 = vshrl.u32 %v5418_v53, 16  ;;  %v332_v28 = vadd.s32 %v331_v5, %v321_v24 }
  0x4e   :  { %v4667_v41 = vadd.s32 4294967169, %v421_v31  ;;  %v299_v10 = vsel %vm295_vm11, %v279_v8, %v5366_v2  ;;  %v301_v39 = vsel %vm297_vm12, %v5368_v4, %v300_v26  ;;  %v676_v46 = vsel %vm674_vm8, %v675_v30, %v5495_v61 }
  0x4f   :  { %v355_v52 = vadd.s32 %v354_v48, %v345_v15  ;;  %v776_v54 = vand.u32 65535, %v5512_v50  ;;  %v775_v59 = vshrl.u32 %v5503_v21, 16  ;;  %v5534_v60 = vmul.u32 %v777_v35, %v774_v32 }
  0x50   :  { %v427_v56 = vadd.s32 1, %v4667_v41  ;;  %v798_v53 = vand.u32 65535, %v768_v43  ;;  %v5536_v62 = vmul.u32 %v799_v40, %v774_v32  ;;  %v5538_v7 = vadd.s32 %v332_v28, %v323_v44 }
  0x51   :  { %v5543_v2 = vadd.s32 %v5441_v37, %v344_v16  ;;  %v677_v4 = vclz %v676_v46  ;;  %v302_v63 = vsel %vm296_vm13, %v299_v10, %v301_v39  ;;  %v359_v12 = vadd.s32 1, %v355_v52 }
  0x52   :  { %vm428_vm9 = vcmp.gt.s32.totalorder %v427_v56, 0  ;;  %v778_v23 = vmul.u32 %v776_v54, %v774_v32  ;;  %v5548_v5 = vmul.f32 0.31415927, %v5328_v6  ;;  %v5550_v43 = vmul.u32 %v776_v54, %v775_v59 }
  0x53   :  { %v429_v1 = vsel %vm428_vm9, %v427_v56, 0  ;;  %v782_v50 = vshll.u32 %v5534_v60, 16  ;;  %v800_v55 = vmul.u32 %v798_v53, %v774_v32  ;;  %v804_v16 = vshll.u32 %v5536_v62, 16 }
  0x54   :  { %v431_v24 = vand.u32 31, %v429_v1  ;;  %9198 = vst [vmem:[#allocation8_spill] sm:$0xff] %v5548_v5  ;;  %vm358_vm10 = vc.u32 %v5538_v7, %v5543_v2  ;;  %v5556_v37 = vmul.u32 %v798_v53, %v775_v59  ;;  %v5560_v8 = vadd.s32 4294967294, %v677_v4 }
  0x55   :  { %v356_v26 = vmul.u32 %v5400_v29, %v302_v63  ;;  %v1344_v6 = vand.u32 2139095040, %v5548_v5  ;;  %v360_v30 = vsel %vm358_vm10, %v359_v12, %v355_v52  ;;  %v784_v15 = vshll.u32 %v5550_v43, 16 }
  0x56   :  { %v5558_v45 = vsub.s32 32, %v431_v24  ;;  %vm5565_vm11 = vc.u32 %v778_v23, %v782_v50  ;;  %vm808_vm12 = vc.u32 %v800_v55, %v804_v16  ;;  %v806_v31 = vshll.u32 %v5556_v37, 16 }
  0x57   :  { %v5570_v32 = vadd.s32 %v804_v16, %v800_v55  ;;  %v446_v44 = vshll.u32 %v9071_v27, %v431_v24  ;;  %v788_v29 = vadd.s32 %v782_v50, %v778_v23  ;;  %v803_v41 = vmul.u32 %v799_v40, %v775_v59 }
  0x58   :  { %v447_v28 = vshrl.u32 %v9073_v33, %v5558_v45  ;;  %v9064_v10 = vand.u32 2147483647, %v5477_v17  ;;  %v5576_v39 = vshrl.u32 %v429_v1, 5  ;;  %v809_v46 = vsel %vm808_vm12, 1, %v9081_v0 }
  0x59   :  { %v443_v52 = vshll.u32 %v9069_v25, %v431_v24  ;;  %v444_v54 = vshrl.u32 %v9071_v27, %v5558_v45  ;;  %v1345_v56 = vshrl.u32 %v1344_v6, 23  ;;  %v437_v53 = vshll.u32 %v9077_v20, %v431_v24 }
  0x5a   :  { %v438_v4 = vshrl.u32 %v9067_v22, %v5558_v45  ;;  %v440_v63 = vshll.u32 %v9067_v22, %v431_v24  ;;  %v441_v40 = vshrl.u32 %v9069_v25, %v5558_v45  ;;  %v781_v1 = vmul.u32 %v777_v35, %v775_v59 }
  0x5b   :  { %v787_v12 = vsel %vm5565_vm11, 1, %v9081_v0  ;;  %vm812_vm13 = vc.u32 %v5570_v32, %v806_v31  ;;  %v448_v23 = vor.u32 %v447_v28, %v446_v44  ;;  %v424_v50 = vand.u32 8388607, %v9064_v10 }
  0x5c   :  { %v434_v55 = vshll.u32 %v9079_v18, %v431_v24  ;;  %v435_v16 = vshrl.u32 %v9077_v20, %v5558_v45  ;;  %vm452_vm14 = vcmp.lt.s32.totalorder %v5576_v39, 4  ;;  %vm790_vm15 = vc.u32 %v788_v29, %v784_v15 }
  0x5d   :  { %v811_v35 = vadd.s32 %v809_v46, %v803_v41  ;;  %v445_v59 = vor.u32 %v444_v54, %v443_v52  ;;  %v4685_v6 = vadd.s32 4294967169, %v1345_v56  ;;  %v5600_v48 = vadd.s32 %v360_v30, %v356_v26  ;;  %v5622_v56 = vld [vmem:[%s9190_s23 + $0x20] sm:$0xff] }
  0x5e   :  { %v813_v34 = vsel %vm812_vm13, 1, %v9081_v0  ;;  %v5603_v57 = vor.u32 %v438_v4, %v437_v53  ;;  %v5605_v44 = vor.u32 %v441_v40, %v440_v63  ;;  %v789_v28 = vadd.s32 %v787_v12, %v781_v1  ;;  %106 = vperm.xlu2 %4900, %v5622_v56  }
  0x5f   :  { %vm449_vm0 = vcmp.lt.s32.totalorder %v5576_v39, 1  ;;  %vm451_vm1 = vcmp.lt.s32.totalorder %v5576_v39, 3  ;;  %v462_v24 = vsel %vm452_vm14, %v448_v23, 1326507024  ;;  %v741_v15 = vshrl.u32 %v9079_v18, %v5416_v51 }
  0x60   :  { %v791_v26 = vsel %vm790_vm15, 1, %v9081_v0  ;;  %v425_v30 = vor.u32 8388608, %v424_v50  ;;  %v5614_v29 = vor.u32 %v435_v16, %v434_v55  ;;  %v805_v41 = vshrl.u32 %v5536_v62, 16 }
  0x61   :  { %v815_v46 = vadd.s32 %v813_v34, %v811_v35  ;;  %v458_v52 = vsel %vm452_vm14, %v445_v59, 920167782  ;;  %v1351_v54 = vadd.s32 1, %v4685_v6  ;;  %vm4672_vm4 = vcmp.lt.s32.totalorder %v5560_v8, 0 }
  0x62   :  { %vm450_vm5 = vcmp.lt.s32.totalorder %v5576_v39, 2  ;;  %v461_v51 = vsel %vm449_vm0, %v5603_v57, %v5605_v44  ;;  %v463_v34 = vsel %vm451_vm1, %v445_v59, %v462_v24  ;;  %v362_v62 = vadd.s32 536870912, %v5600_v48 }
  0x63   :  { %v762_v53 = vsel %vm760_vm3, %v5468_v49, 2102212464  ;;  %v783_v4 = vshrl.u32 %v5534_v60, 16  ;;  %v793_v63 = vadd.s32 %v791_v26, %v789_v28  ;;  %v457_v40 = vsel %vm449_vm0, %v5614_v29, %v5603_v57 }
  0x64   :  { %v459_v1 = vsel %vm451_vm1, %v5605_v44, %v458_v52  ;;  %v5645_v12 = vshll.u32 %v425_v30, 8  ;;  %v9065_v23 = vand.u32 2147483647, %v5548_v5  ;;  %v807_v50 = vshrl.u32 %v5556_v37, 16 }
  0x65   :  { %v816_v55 = vadd.s32 %v815_v46, %v805_v41  ;;  %v5651_v49 = vsel %vm450_vm5, %v461_v51, %v463_v34  ;;  %vm1352_vm3 = vcmp.gt.s32.totalorder %v1351_v54, 0  ;;  %v5656_v60 = vsel %vm4672_vm4, 0, %v5560_v8 }
  0x66   :  { %v761_v16 = vsel %vm757_vm2, %v741_v15, %v5464_v42  ;;  %v763_v35 = vsel %vm759_vm6, %v5466_v47, %v762_v53  ;;  %v5664_v59 = vshrl.u32 %v362_v62, 30  ;;  %v785_v6 = vshrl.u32 %v5550_v43, 16 }
  0x67   :  { %v794_v28 = vadd.s32 %v793_v63, %v783_v4  ;;  %v5669_v24 = vsel %vm450_vm5, %v457_v40, %v459_v1  ;;  %v466_v8 = vand.u32 65535, %v5645_v12  ;;  %v469_v26 = vshrl.u32 %v5651_v49, 16 }
  0x68   :  { %9201 = vst [vmem:[#allocation9_spill] sm:$0xff] %v5664_v59  ;;  %v5675_v42 = vand.u32 8388607, %v9065_v23  ;;  %v1353_v15 = vsel %vm1352_vm3, %v1351_v54, 0  ;;  %v5679_v47 = vadd.s32 %v5378_v14, %v5376_v36  ;;  %v681_v43 = vsub.s32 32, %v5656_v60 }
  0x69   :  { %v5682_v30 = vadd.s32 %v816_v55, %v807_v50  ;;  %v685_v41 = vsub.s32 4294967266, %v5656_v60  ;;  %v467_v46 = vshrl.u32 %v5645_v12, 16  ;;  %v468_v52 = vand.u32 65535, %v5651_v49 }
  0x6a   :  { %v491_v51 = vshrl.u32 %v5669_v24, 16  ;;  %v5690_v34 = vsel %vm758_vm7, %v761_v16, %v763_v35  ;;  %v5692_v54 = vadd.s32 %v794_v28, %v785_v6  ;;  %v5697_v36 = vadd.s32 %v5570_v32, %v806_v31 }
  0x6b   :  { %v1355_v14 = vand.u32 31, %v1353_v15  ;;  %v364_v62 = vshll.u32 %v5664_v59, 30  ;;  %v5700_v53 = vmul.u32 %v469_v26, %v466_v8  ;;  %v490_v4 = vand.u32 65535, %v5669_v24 }
  0x6c   :  { %v1349_v63 = vor.u32 8388608, %v5675_v42  ;;  %v821_v58 = vadd.s32 1, %v5682_v30  ;;  %v5709_v50 = vmul.u32 %v468_v52, %v467_v46  ;;  %v5711_v31 = vmul.u32 %v491_v51, %v466_v8 }
  0x6d   :  { %v5705_v40 = vsub.s32 32, %v1355_v14  ;;  %v1358_v1 = vshll.u32 %v9079_v18, %v1355_v14  ;;  %v1361_v37 = vshll.u32 %v9077_v20, %v1355_v14  ;;  %v5713_v32 = vshrl.u32 %v1353_v15, 5 }
  0x6e   :  { %v5716_v55 = vmul.f32 0.31415927, %v5501_v19  ;;  %vm820_vm2 = vc.u32 %v5692_v54, %v5697_v36  ;;  %v1364_v35 = vshll.u32 %v9067_v22, %v1355_v14  ;;  %v1367_v6 = vshll.u32 %v9069_v25, %v1355_v14 }
  0x6f   :  { %v1359_v49 = vshrl.u32 %v9077_v20, %v5705_v40  ;;  %v1362_v16 = vshrl.u32 %v9067_v22, %v5705_v40  ;;  %v470_v28 = vmul.u32 %v468_v52, %v466_v8  ;;  %v474_v24 = vshll.u32 %v5700_v53, 16  ;;  %v5740_v22 = vld [vmem:[%s9190_s23 + $0x50] sm:$0xff] }
  0x70   :  { %9202 = vst [vmem:[#allocation10_spill] sm:$0xff] %v5716_v55  ;;  %v492_v42 = vmul.u32 %v490_v4, %v466_v8  ;;  %v1365_v19 = vshrl.u32 %v9069_v25, %v5705_v40  ;;  %v5729_v15 = vmul.u32 %v490_v4, %v467_v46  ;;  %v1368_v9 = vshrl.u32 %v9071_v27, %v5705_v40 }
  0x71   :  { %v5731_v10 = vor.u32 %v1359_v49, %v1358_v1  ;;  %v5733_v23 = vor.u32 %v1362_v16, %v1361_v37  ;;  %v496_v52 = vshll.u32 %v5711_v31, 16  ;;  %v1370_v8 = vshll.u32 %v9071_v27, %v1355_v14  ;;  %136 = vperm.xlu1 %4899, %v5740_v22  }
  0x72   :  { %v1371_v4 = vshrl.u32 %v9073_v33, %v5705_v40  ;;  %vm1373_vm6 = vcmp.lt.s32.totalorder %v5713_v32, 1  ;;  %v476_v1 = vshll.u32 %v5709_v50, 16  ;;  %v5749_v37 = vor.u32 %v1365_v19, %v1364_v35 }
  0x73   :  { %v1369_v49 = vor.u32 %v1368_v9, %v1367_v6  ;;  %vm1376_vm7 = vcmp.lt.s32.totalorder %v5713_v32, 4  ;;  %vm478_vm8 = vc.u32 %v470_v28, %v474_v24  ;;  %v480_v16 = vadd.s32 %v474_v24, %v470_v28 }
  0x74   :  { %v1372_v25 = vor.u32 %v1371_v4, %v1370_v8  ;;  %vm1375_vm9 = vcmp.lt.s32.totalorder %v5713_v32, 3  ;;  %v473_v14 = vmul.u32 %v469_v26, %v467_v46  ;;  %v498_v27 = vshll.u32 %v5729_v15, 16 }
  0x75   :  { %vm1374_vm10 = vcmp.lt.s32.totalorder %v5713_v32, 2  ;;  %v1381_v33 = vsel %vm1373_vm6, %v5731_v10, %v5733_v23  ;;  %vm500_vm11 = vc.u32 %v492_v42, %v496_v52  ;;  %v5759_v35 = vadd.s32 %v496_v52, %v492_v42 }
  0x76   :  { %v1382_v9 = vsel %vm1376_vm7, %v1369_v49, 920167782  ;;  %v1386_v6 = vsel %vm1376_vm7, %v1372_v25, 1326507024  ;;  %v479_v26 = vsel %vm478_vm8, 1, %v9081_v0  ;;  %v1385_v24 = vsel %vm1373_vm6, %v5733_v23, %v5749_v37 }
  0x77   :  { %v1383_v28 = vsel %vm1375_vm9, %v5749_v37, %v1382_v9  ;;  %v1387_v42 = vsel %vm1375_vm9, %v1369_v49, %v1386_v6  ;;  %vm482_vm12 = vc.u32 %v480_v16, %v476_v1  ;;  %v495_v19 = vmul.u32 %v491_v51, %v467_v46 }
  0x78   :  { %v5777_v52 = vsel %vm1374_vm10, %v1381_v33, %v1383_v28  ;;  %v5779_v25 = vshll.u32 %v1349_v63, 8  ;;  %v682_v8 = vshll.u32 %v5495_v61, %v5656_v60  ;;  %v683_v4 = vshrl.u32 %v5679_v47, %v681_v43 }
  0x79   :  { %v818_v9 = vmul.u32 %v5503_v21, %v5690_v34  ;;  %v501_v49 = vsel %vm500_vm11, 1, %v9081_v0  ;;  %v822_v33 = vsel %vm820_vm2, %v821_v58, %v5682_v30  ;;  %v481_v46 = vadd.s32 %v479_v26, %v473_v14 }
  0x7a   :  { %vm504_vm13 = vc.u32 %v5759_v35, %v498_v27  ;;  %v5798_v61 = vsel %vm1374_vm10, %v1385_v24, %v1387_v42  ;;  %v483_v47 = vsel %vm482_vm12, 1, %v9081_v0  ;;  %v1390_v21 = vand.u32 65535, %v5779_v25 }
  0x7b   :  { %v1415_v43 = vshrl.u32 %v5777_v52, 16  ;;  %v1190_v51 = vand.u32 2139095040, %v5716_v55  ;;  %v686_v30 = vadd.s32 127, %v685_v41  ;;  %v5809_v34 = vsub.s32 %v5600_v48, %v364_v62 }
  0x7c   :  { %v503_v63 = vadd.s32 %v501_v49, %v495_v19  ;;  %v5811_v58 = vor.u32 %v683_v4, %v682_v8  ;;  %v5813_v1 = vadd.s32 %v822_v33, %v818_v9  ;;  %v505_v16 = vsel %vm504_vm13, 1, %v9081_v0 }
  0x7d   :  { %v1393_v14 = vshrl.u32 %v5798_v61, 16  ;;  %v433_v6 = vshrl.u32 %v9079_v18, %v5558_v45  ;;  %v454_v60 = vsel %vm452_vm14, %v5605_v44, 2102212464  ;;  %v475_v41 = vshrl.u32 %v5700_v53, 16 }
  0x7e   :  { %v485_v48 = vadd.s32 %v483_v47, %v481_v46  ;;  %v1391_v62 = vshrl.u32 %v5779_v25, 16  ;;  %v1414_v26 = vand.u32 65535, %v5777_v52  ;;  %v5825_v28 = vmul.u32 %v1415_v43, %v1390_v21 }
  0x7f   :  { %v1191_v24 = vshrl.u32 %v1190_v51, 23  ;;  %v687_v42 = vshll.u32 %v686_v30, 23  ;;  %v367_v19 = vsub.s32 0, %v5809_v34  ;;  %v497_v8 = vshrl.u32 %v5711_v31, 16 }
  0x80   :  { %v507_v45 = vadd.s32 %v505_v16, %v503_v63  ;;  %vm366_vm15 = vcmp.lt.s32.totalorder %v5809_v34, 0  ;;  %v824_v44 = vadd.s32 536870912, %v5813_v1  ;;  %v1392_v53 = vand.u32 65535, %v5798_v61 }
  0x81   :  { %v5832_v4 = vmul.u32 %v1393_v14, %v1390_v21  ;;  %v453_v52 = vsel %vm449_vm0, %v433_v6, %v5614_v29  ;;  %v455_v9 = vsel %vm451_vm1, %v5603_v57, %v454_v60  ;;  %v477_v49 = vshrl.u32 %v5709_v50, 16 }
  0x82   :  { %v486_v31 = vadd.s32 %v485_v48, %v475_v41  ;;  %v1416_v33 = vmul.u32 %v1414_v26, %v1390_v21  ;;  %v5841_v46 = vmul.u32 %v1414_v26, %v1391_v62  ;;  %v1420_v47 = vshll.u32 %v5825_v28, 16 }
  0x83   :  { %v4682_v51 = vadd.s32 4294967169, %v1191_v24  ;;  %v5844_v61 = vor.u32 4788187, %v687_v42  ;;  %v5847_v30 = vsel %vm366_vm15, %v367_v19, %v5809_v34  ;;  %v499_v29 = vshrl.u32 %v5729_v15, 16 }
  0x84   :  { %v508_v63 = vadd.s32 %v507_v45, %v497_v8  ;;  %v1394_v16 = vmul.u32 %v1392_v53, %v1390_v21  ;;  %v5850_v6 = vmul.u32 %v1392_v53, %v1391_v62  ;;  %v1398_v57 = vshll.u32 %v5832_v4, 16 }
  0x85   :  { %v1197_v50 = vadd.s32 1, %v4682_v51  ;;  %v5853_v60 = vshrl.u32 %v824_v44, 30  ;;  %v5857_v41 = vsel %vm450_vm5, %v453_v52, %v455_v9  ;;  %v5862_v48 = vadd.s32 %v5759_v35, %v498_v27 }
  0x86   :  { %v9075_v26 = vand.u32 2147483647, %v5716_v55  ;;  %v5865_v24 = vadd.s32 %v486_v31, %v477_v49  ;;  %v9076_v21 = vshll.u32 %v5841_v46, 16  ;;  %v5868_v42 = vadd.s32 %v1420_v47, %v1416_v33 }
  0x87   :  { %9203 = vst [vmem:[#allocation11_spill] sm:$0xff] %v5853_v60  ;;  %vm1198_vm14 = vcmp.gt.s32.totalorder %v1197_v50, 0  ;;  %v509_v8 = vadd.s32 %v508_v63, %v499_v29  ;;  %vm1424_vm0 = vc.u32 %v1416_v33, %v1420_v47  ;;  %v1400_v15 = vshll.u32 %v5850_v6, 16 }
  0x88   :  { %vm1402_vm1 = vc.u32 %v1394_v16, %v1398_v57  ;;  %v1404_v27 = vadd.s32 %v1398_v57, %v1394_v16  ;;  %v1199_v35 = vsel %vm1198_vm14, %v1197_v50, 0  ;;  %v1419_v53 = vmul.u32 %v1415_v43, %v1391_v62 }
  0x89   :  { %v1194_v52 = vand.u32 8388607, %v9075_v26  ;;  %vm512_vm4 = vc.u32 %v5865_v24, %v5862_v48  ;;  %v1425_v9 = vsel %vm1424_vm0, 1, %v9081_v0  ;;  %vm1428_vm5 = vc.u32 %v5868_v42, %v9076_v21 }
  0x8a   :  { %v1201_v49 = vand.u32 31, %v1199_v35  ;;  %v513_v31 = vadd.s32 1, %v509_v8  ;;  %v1397_v33 = vmul.u32 %v1393_v14, %v1391_v62  ;;  %v1403_v47 = vsel %vm1402_vm1, 1, %v9081_v0 }
  0x8b   :  { %v5886_v51 = vmul.f32 0.31415927, %v5622_v56  ;;  %vm5888_vm3 = vc.u32 %v1404_v27, %v1400_v15  ;;  %v1427_v57 = vadd.s32 %v1425_v9, %v1419_v53  ;;  %v1429_v50 = vsel %vm1428_vm5, 1, %v9081_v0 }
  0x8c   :  { %v5892_v29 = vsub.s32 32, %v1201_v49  ;;  %v1204_v63 = vshll.u32 %v9079_v18, %v1201_v49  ;;  %v1207_v16 = vshll.u32 %v9077_v20, %v1201_v49  ;;  %v1195_v26 = vor.u32 8388608, %v1194_v52 }
  0x8d   :  { %9204 = vst [vmem:[#allocation12_spill] sm:$0xff] %v5886_v51  ;;  %v9207_v14 = vmov 2102212464   ;;  %v5898_v19 = vshrl.u32 %v1199_v35, 5  ;;  %v9208_v15 = vmov 2131351028   ;;  %v1405_v45 = vadd.s32 %v1403_v47, %v1397_v33 }
  0x8e   :  { %v1213_v62 = vshll.u32 %v9207_v14, %v1201_v49  ;;  %v1205_v56 = vshrl.u32 %v9077_v20, %v5892_v29  ;;  %v1208_v27 = vshrl.u32 %v9208_v15, %v5892_v29  ;;  %v1210_v39 = vshll.u32 %v9208_v15, %v1201_v49 }
  0x8f   :  { %v1421_v21 = vshrl.u32 %v5825_v28, 16  ;;  %v1211_v53 = vshrl.u32 %v9207_v14, %v5892_v29  ;;  %v9209_v52 = vmov 920167782   ;;  %v9210_v18 = vmov 1326507024  }
  0x90   :  { %v1214_v9 = vshrl.u32 %v9209_v52, %v5892_v29  ;;  %v5910_v44 = vor.u32 %v1205_v56, %v1204_v63  ;;  %v5912_v35 = vor.u32 %v1208_v27, %v1207_v16  ;;  %v1216_v20 = vshll.u32 %v9209_v52, %v1201_v49 }
  0x91   :  { %v1217_v0 = vshrl.u32 %v9210_v18, %v5892_v29  ;;  %v9211_v59 = vmov 0   ;;  %v1431_v28 = vadd.s32 %v1429_v50, %v1427_v57  ;;  %v882_v38 = vand.u32 2139095040, %v5886_v51 }
  0x92   :  { %v1407_v33 = vsel %vm5888_vm3, 1, %v9211_v59  ;;  %v1215_v47 = vor.u32 %v1214_v9, %v1213_v62  ;;  %v5921_v55 = vor.u32 %v1211_v53, %v1210_v39  ;;  %vm1219_vm2 = vcmp.lt.s32.totalorder %v5898_v19, 1 }
  0x93   :  { %v1218_v5 = vor.u32 %v1217_v0, %v1216_v20  ;;  %v5924_v63 = vshll.u32 %v1195_v26, 8  ;;  %v514_v49 = vsel %vm512_vm4, %v513_v31, %v509_v8  ;;  %v9212_v16 = vmov 683565275  }
  0x94   :  { %v1357_v56 = vshrl.u32 %v9212_v16, %v5705_v40  ;;  %v1399_v43 = vshrl.u32 %v5832_v4, 16  ;;  %vm1221_vm8 = vcmp.lt.s32.totalorder %v5898_v19, 3  ;;  %v1409_v57 = vadd.s32 %v1407_v33, %v1405_v45 }
  0x95   :  { %vm1220_vm11 = vcmp.lt.s32.totalorder %v5898_v19, 2  ;;  %vm1222_vm12 = vcmp.lt.s32.totalorder %v5898_v19, 4  ;;  %v1227_v0 = vsel %vm1219_vm2, %v5910_v44, %v5912_v35  ;;  %v1423_v20 = vshrl.u32 %v5841_v46, 16 }
  0x96   :  { %v1432_v26 = vadd.s32 %v1431_v28, %v1421_v21  ;;  %v1228_v40 = vsel %vm1222_vm12, %v1215_v47, 920167782  ;;  %v883_v39 = vshrl.u32 %v882_v38, 23  ;;  %v1231_v8 = vsel %vm1219_vm2, %v5912_v35, %v5921_v55 }
  0x97   :  { %v1229_v4 = vsel %vm1221_vm8, %v5921_v55, %v1228_v40  ;;  %v1232_v45 = vsel %vm1222_vm12, %v1218_v5, 1326507024  ;;  %v1236_v31 = vand.u32 65535, %v5924_v63  ;;  %v1378_v21 = vsel %vm1376_vm7, %v5749_v37, 2102212464 }
  0x98   :  { %v1401_v38 = vshrl.u32 %v5850_v6, 16  ;;  %v1230_v50 = vsel %vm1220_vm11, %v1227_v0, %v1229_v4  ;;  %v1237_v62 = vshrl.u32 %v5924_v63, 16  ;;  %v1410_v27 = vadd.s32 %v1409_v57, %v1399_v43 }
  0x99   :  { %v1233_v53 = vsel %vm1221_vm8, %v1215_v47, %v1232_v45  ;;  %v1260_v9 = vand.u32 65535, %v1230_v50  ;;  %v1261_v33 = vshrl.u32 %v1230_v50, 16  ;;  %v9213_v5 = vmul.u32 %v5645_v12, %v5857_v41 }
  0x9a   :  { %v1377_v37 = vsel %vm1373_vm6, %v1357_v56, %v5731_v10  ;;  %v1433_v6 = vadd.s32 %v1432_v26, %v1423_v20  ;;  %v1234_v0 = vsel %vm1220_vm11, %v1231_v8, %v1233_v53  ;;  %v4676_v47 = vadd.s32 4294967169, %v883_v39 }
  0x9b   :  { %v5964_v28 = vadd.s32 %v514_v49, %v9213_v5  ;;  %v1238_v40 = vand.u32 65535, %v1234_v0  ;;  %v1239_v43 = vshrl.u32 %v1234_v0, 16  ;;  %v5971_v57 = vmul.u32 %v1261_v33, %v1236_v31 }
  0x9c   :  { %v1379_v4 = vsel %vm1375_vm9, %v5733_v23, %v1378_v21  ;;  %v9214_v12 = vshll.u32 %v5841_v46, 16  ;;  %v1262_v49 = vmul.u32 %v1260_v9, %v1236_v31  ;;  %v5981_v10 = vmul.u32 %v1260_v9, %v1237_v62 }
  0x9d   :  { %v5983_v56 = vadd.s32 %v1410_v27, %v1401_v38  ;;  %v1240_v20 = vmul.u32 %v1238_v40, %v1236_v31  ;;  %v5985_v26 = vmul.u32 %v1239_v43, %v1236_v31  ;;  %v5987_v8 = vmul.u32 %v1238_v40, %v1237_v62 }
  0x9e   :  { %v5979_v41 = vadd.s32 %v5868_v42, %v9214_v12  ;;  %v689_v39 = vand.u32 2147483647, %v5844_v61  ;;  %v9217_v45 = vshll.u32 %v5853_v60, 30  ;;  %v516_v46 = vadd.s32 536870912, %v5964_v28 }
  0x9f   :  { %9216 = vst [vmem:[#allocation14_spill] sm:$0xff] %v5983_v56  ;;  %v1266_v42 = vshll.u32 %v5971_v57, 16  ;;  %v1380_v21 = vsel %vm1374_vm10, %v1377_v37, %v1379_v4  ;;  %v1437_v38 = vadd.s32 1, %v1433_v6  ;;  %v1244_v31 = vshll.u32 %v5985_v26, 16 }
  0xa0   :  { %9215 = vst [vmem:[#allocation13_spill] sm:$0xff] %v5979_v41  ;;  %v5993_v23 = vsub.s32 %v5813_v1, %v9217_v45  ;;  %v889_v50 = vadd.s32 1, %v4676_v47  ;;  %v1246_v27 = vshll.u32 %v5987_v8, 16  ;;  %v1268_v61 = vshll.u32 %v5981_v10, 16 }
  0xa1   :  { %vm1270_vm6 = vc.u32 %v1262_v49, %v1266_v42  ;;  %v6002_v53 = vadd.s32 %v1266_v42, %v1262_v49  ;;  %v9218_v1 = vclz %v5847_v30  ;;  %vm1436_vm7 = vc.u32 %v5983_v56, %v5979_v41 }
  0xa2   :  { %vm1248_vm9 = vc.u32 %v1240_v20, %v1244_v31  ;;  %v1250_v32 = vadd.s32 %v1244_v31, %v1240_v20  ;;  %vm828_vm10 = vcmp.lt.s32.totalorder %v5993_v23, 0  ;;  %v829_v5 = vsub.s32 0, %v5993_v23 }
  0xa3   :  { %v4665_v9 = vadd.s32 4294967294, %v9218_v1  ;;  %v1243_v37 = vmul.u32 %v1239_v43, %v1237_v62  ;;  %v1265_v0 = vmul.u32 %v1261_v33, %v1237_v62  ;;  %v6010_v40 = vshrl.u32 %v516_v46, 30  ;;  %v6027_v46 = vld [vmem:[%s9190_s23 + $0x48] sm:$0xff] }
  0xa4   :  { %v1434_v47 = vmul.u32 %v5779_v25, %v1380_v21  ;;  %v1249_v4 = vsel %vm1248_vm9, 1, %v9211_v59  ;;  %v1271_v30 = vsel %vm1270_vm6, 1, %v9211_v59  ;;  %v1438_v12 = vsel %vm1436_vm7, %v1437_v38, %v1433_v6  ;;  %131 = vperm.xlu0 %4898, %v6027_v46  }
  0xa5   :  { %9219 = vst [vmem:[#allocation15_spill] sm:$0xff] %v6010_v40  ;;  %vm1252_vm13 = vc.u32 %v1250_v32, %v1246_v27  ;;  %vm1274_vm15 = vc.u32 %v6002_v53, %v1268_v61  ;;  %vm890_vm14 = vcmp.gt.s32.totalorder %v889_v50, 0  ;;  %vm4666_vm0 = vcmp.lt.s32.totalorder %v4665_v9, 0 }
  0xa6   :  { %v830_v49 = vsel %vm828_vm10, %v829_v5, %v5993_v23  ;;  %v1251_v43 = vadd.s32 %v1249_v4, %v1243_v37  ;;  %v1273_v62 = vadd.s32 %v1271_v30, %v1265_v0  ;;  %v891_v33 = vsel %vm890_vm14, %v889_v50, 0 }
  0xa7   :  { %v518_v20 = vshll.u32 %v6010_v40, 30  ;;  %v6020_v25 = vadd.s32 %v1438_v12, %v1434_v47  ;;  %v1253_v45 = vsel %vm1252_vm13, 1, %v9211_v59  ;;  %v1275_v6 = vsel %vm1274_vm15, 1, %v9211_v59 }
  0xa8   :  { %v9220_v42 = vcvt.s32.f32 %v5811_v58  ;;  %v6033_v38 = vsel %vm4666_vm0, 0, %v4665_v9  ;;  %v893_v31 = vand.u32 31, %v891_v33  ;;  %v357_v50 = vadd.s32 %v5543_v2, %v5538_v7 }
  0xa9   :  { %v373_v27 = vsub.s32 32, %v6033_v38  ;;  %v831_v1 = vclz %v830_v49  ;;  %v1245_v32 = vshrl.u32 %v5985_v26, 16  ;;  %v1255_v5 = vadd.s32 %v1253_v45, %v1251_v43 }
  0xaa   :  { %v6031_v21 = vmul.f32 %v9220_v42, %v689_v39  ;;  %v1267_v37 = vshrl.u32 %v5971_v57, 16  ;;  %v1277_v0 = vadd.s32 %v1275_v6, %v1273_v62  ;;  %v6042_v58 = vsub.s32 %v5964_v28, %v518_v20 }
  0xab   :  { %v1440_v39 = vadd.s32 536870912, %v6020_v25  ;;  %v374_v47 = vshll.u32 %v5809_v34, %v6033_v38  ;;  %v377_v7 = vsub.s32 4294967266, %v6033_v38  ;;  %v6049_v2 = vsub.s32 32, %v893_v31 }
  0xac   :  { %9221 = vst [vmem:[#allocation16_spill] sm:$0xff] %v6042_v58  ;;  %v693_v9 = vxor.u32 2147483648, %v6031_v21  ;;  %v6051_v4 = vshrl.u32 %v357_v50, %v373_v27  ;;  %v4674_v26 = vadd.s32 4294967294, %v831_v1  ;;  %v1203_v57 = vshrl.u32 %v9212_v16, %v5892_v29 }
  0xad   :  { %v1224_v28 = vsel %vm1222_vm12, %v5921_v55, 2102212464  ;;  %v1247_v30 = vshrl.u32 %v5987_v8, 16  ;;  %v1256_v12 = vadd.s32 %v1255_v5, %v1245_v32  ;;  %v1269_v49 = vshrl.u32 %v5981_v10, 16 }
  0xae   :  { %v1278_v43 = vadd.s32 %v1277_v0, %v1267_v37  ;;  %vm520_vm1 = vcmp.lt.s32.totalorder %v6042_v58, 0  ;;  %v521_v62 = vsub.s32 0, %v6042_v58  ;;  %v6062_v20 = vshrl.u32 %v1440_v39, 30 }
  0xaf   :  { %v9091_v45 = vand.u32 2147483647, %v5886_v51  ;;  %v905_v29 = vshll.u32 %v9207_v14, %v893_v31  ;;  %v906_v6 = vshrl.u32 %v9209_v52, %v6049_v2  ;;  %v908_v55 = vshll.u32 %v9209_v52, %v893_v31 }
  0xb0   :  { %9222 = vst [vmem:[#allocation17_spill] sm:$0xff] %v6062_v20  ;;  %v909_v8 = vshrl.u32 %v9210_v18, %v6049_v2  ;;  %v1223_v42 = vsel %vm1219_vm2, %v1203_v57, %v5910_v44  ;;  %v1225_v50 = vsel %vm1221_vm8, %v5912_v35, %v1224_v28  ;;  %v6080_v27 = vadd.s32 %v6002_v53, %v1268_v61 }
  0xb1   :  { %v6082_v1 = vshrl.u32 %v891_v33, 5  ;;  %v6084_v32 = vadd.s32 %v1256_v12, %v1247_v30  ;;  %v1279_v5 = vadd.s32 %v1278_v43, %v1269_v49  ;;  %v896_v37 = vshll.u32 %v9212_v16, %v893_v31 }
  0xb2   :  { %9223 = vst [vmem:[#allocation18_spill] sm:$0xff] %v6080_v27  ;;  %v9225_v0 = vmov 2475754826   ;;  %v900_v35 = vshrl.u32 %v9208_v15, %v6049_v2  ;;  %v902_v10 = vshll.u32 %v9208_v15, %v893_v31  ;;  %v903_v61 = vshrl.u32 %v9207_v14, %v6049_v2 }
  0xb3   :  { %9224 = vst [vmem:[#allocation19_spill] sm:$0xff] %v6084_v32  ;;  %v899_v39 = vshll.u32 %v9225_v0, %v893_v31  ;;  %v897_v44 = vshrl.u32 %v9225_v0, %v6049_v2  ;;  %v378_v53 = vadd.s32 127, %v377_v7  ;;  %v907_v33 = vor.u32 %v906_v6, %v905_v29 }
  0xb4   :  { %v910_v57 = vor.u32 %v909_v8, %v908_v55  ;;  %v6096_v28 = vmul.f32 0.31415927, %v5740_v22  ;;  %vm4675_vm4 = vcmp.lt.s32.totalorder %v4674_v26, 0  ;;  %v522_v30 = vsel %vm520_vm1, %v521_v62, %v6042_v58 }
  0xb5   :  { %v886_v12 = vand.u32 8388607, %v9091_v45  ;;  %vm914_vm5 = vcmp.lt.s32.totalorder %v6082_v1, 4  ;;  %v1442_v31 = vshll.u32 %v6062_v20, 30  ;;  %v1226_v7 = vsel %vm1220_vm11, %v1223_v42, %v1225_v50 }
  0xb6   :  { %9226 = vst [vmem:[#allocation20_spill] sm:$0xff] %v6096_v28  ;;  %v1283_v49 = vadd.s32 1, %v1279_v5  ;;  %vm911_vm3 = vcmp.lt.s32.totalorder %v6082_v1, 1  ;;  %vm1282_vm2 = vc.u32 %v6084_v32, %v6080_v27  ;;  %v6110_v22 = vor.u32 %v897_v44, %v896_v37 }
  0xb7   :  { %v6112_v43 = vor.u32 %v900_v35, %v899_v39  ;;  %v6114_v62 = vor.u32 %v903_v61, %v902_v10  ;;  %vm913_vm8 = vcmp.lt.s32.totalorder %v6082_v1, 3  ;;  %v920_v29 = vsel %vm914_vm5, %v907_v33, 920167782 }
  0xb8   :  { %v924_v19 = vsel %vm914_vm5, %v910_v57, 1326507024  ;;  %v1806_v6 = vand.u32 2139095040, %v6096_v28  ;;  %v379_v55 = vshll.u32 %v378_v53, 23  ;;  %v834_v8 = vsel %vm4675_vm4, 0, %v4674_v26 }
  0xb9   :  { %v523_v42 = vclz %v522_v30  ;;  %v887_v50 = vor.u32 8388608, %v886_v12  ;;  %v6124_v37 = vsub.s32 %v6020_v25, %v1442_v31  ;;  %v1280_v39 = vmul.u32 %v5924_v63, %v1226_v7 }
  0xba   :  { %v1284_v44 = vsel %vm1282_vm2, %v1283_v49, %v1279_v5  ;;  %vm912_vm11 = vcmp.lt.s32.totalorder %v6082_v1, 2  ;;  %v919_v35 = vsel %vm911_vm3, %v6110_v22, %v6112_v43  ;;  %v921_v10 = vsel %vm913_vm8, %v6114_v62, %v920_v29 }
  0xbb   :  { %9227 = vst [vmem:[#allocation21_spill] sm:$0xff] %v6124_v37  ;;  %v923_v25 = vsel %vm911_vm3, %v6112_v43, %v6114_v62  ;;  %v925_v63 = vsel %vm913_vm8, %v907_v33, %v924_v19  ;;  %vm9169_vm12 = vcmp.lt.s32.totalorder %v5234_v3, 0  ;;  %v819_v26 = vadd.s32 %v5697_v36, %v5692_v54 }
  0xbc   :  { %v835_v5 = vsub.s32 32, %v834_v8  ;;  %v1807_v61 = vshrl.u32 %v1806_v6, 23  ;;  %v6148_v53 = vor.u32 %v6051_v4, %v374_v47  ;;  %v839_v57 = vsub.s32 4294967266, %v834_v8 }
  0xbd   :  { %v6150_v30 = vshll.u32 %v887_v50, 8  ;;  %v6152_v12 = vor.u32 4788187, %v379_v55  ;;  %v6154_v31 = vadd.s32 %v1284_v44, %v1280_v39  ;;  %v922_v33 = vsel %vm912_vm11, %v919_v35, %v921_v10 }
  0xbe   :  { %v926_v54 = vsel %vm912_vm11, %v923_v25, %v925_v63  ;;  %v9228_v36 = vand.u32 2147483647, %v5234_v3  ;;  %v9229_v34 = vmov 0  ;;  %v694_v38 = vsel %vm9169_vm12, %v693_v9, %v6031_v21 }
  0xbf   :  { %v4668_v47 = vadd.s32 4294967294, %v523_v42  ;;  %v1445_v4 = vsub.s32 0, %v6124_v37  ;;  %v836_v7 = vshll.u32 %v5993_v23, %v834_v8  ;;  %v837_v49 = vshrl.u32 %v819_v26, %v835_v5  ;;  %v6188_v8 = vld [vmem:[%s9190_s23 + $0x68] sm:$0xff] }
  0xc0   :  { %vm6162_vm6 = vcmp.le.f32.partialorder %v9228_v36, 0.7853982  ;;  %vm1444_vm7 = vcmp.lt.s32.totalorder %v6124_v37, 0  ;;  %v4694_v29 = vadd.s32 4294967169, %v1807_v61  ;;  %v6174_v19 = vadd.s32 127, %v839_v57  ;;  %9233 = vst [vmem:[#allocation24_spill] sm:$0xff] %v6188_v8  ;;  %151 = vperm.xlu1 %4899, %v6188_v8  }
  0xc1   :  { %v9230_v34 = vsel %vm6162_vm6, 4294967295, %v9229_v34  ;;  %v928_v6 = vand.u32 65535, %v6150_v30  ;;  %v931_v55 = vshrl.u32 %v926_v54, 16  ;;  %v953_v50 = vshrl.u32 %v922_v33, 16 }
  0xc2   :  { %9231 = vst [vmem:[#allocation22_spill] sm:$0xff] %v9230_v34  ;;  %v6180_v39 = vsel %vm6162_vm6, %v5234_v3, %v694_v38  ;;  %v1286_v23 = vadd.s32 536870912, %v6154_v31  ;;  %vm4669_vm9 = vcmp.lt.s32.totalorder %v4668_v47, 0  ;;  %v6191_v42 = vsel %vm1444_vm7, %v1445_v4, %v6124_v37 }
  0xc3   :  { %9232 = vst [vmem:[#allocation23_spill] sm:$0xff] %v6180_v39  ;;  %v895_v44 = vshrl.u32 %v9212_v16, %v6049_v2  ;;  %v9092_v35 = vand.u32 2147483647, %v6096_v28  ;;  %v929_v10 = vshrl.u32 %v6150_v30, 16  ;;  %v930_v25 = vand.u32 65535, %v926_v54 }
  0xc4   :  { %v952_v63 = vand.u32 65535, %v922_v33  ;;  %v1813_v26 = vadd.s32 1, %v4694_v29  ;;  %v6198_v5 = vor.u32 %v837_v49, %v836_v7  ;;  %v6201_v57 = vmul.u32 %v931_v55, %v928_v6 }
  0xc5   :  { %v6203_v36 = vmul.u32 %v953_v50, %v928_v6  ;;  %v6205_v38 = vsel %vm4669_vm9, 0, %v4668_v47  ;;  %v6208_v4 = vshrl.u32 %v1286_v23, 30  ;;  %v6213_v33 = vsel %vm911_vm3, %v895_v44, %v6110_v22  ;;  %v6229_v22 = vld [vmem:[%s9190_s23 + $0x28] sm:$0xff] }
  0xc6   :  { %vm1814_vm10 = vcmp.gt.s32.totalorder %v1813_v26, 0  ;;  %v6218_v54 = vsel %vm914_vm5, %v6114_v62, 2102212464  ;;  %v1810_v7 = vand.u32 8388607, %v9092_v35  ;;  %v6222_v49 = vmul.u32 %v930_v25, %v929_v10  ;;  %111 = vperm.xlu2 %4900, %v6229_v22  }
  0xc7   :  { %9234 = vst [vmem:[#allocation25_spill] sm:$0xff] %v6208_v4  ;;  %v1815_v47 = vsel %vm1814_vm10, %v1813_v26, 0  ;;  %v954_v29 = vmul.u32 %v952_v63, %v928_v6  ;;  %v6224_v23 = vmul.u32 %v952_v63, %v929_v10  ;;  %v932_v44 = vmul.u32 %v930_v25, %v928_v6 }
  0xc8   :  { %v1817_v45 = vand.u32 31, %v1815_v47  ;;  %v936_v9 = vshll.u32 %v6201_v57, 16  ;;  %v957_v62 = vmul.u32 %v953_v50, %v929_v10  ;;  %v958_v21 = vshll.u32 %v6203_v36, 16 }
  0xc9   :  { %v6234_v26 = vshrl.u32 %v1815_v47, 5  ;;  %v1811_v61 = vor.u32 8388608, %v1810_v7  ;;  %v935_v50 = vmul.u32 %v931_v55, %v929_v10  ;;  %v938_v34 = vshll.u32 %v6222_v49, 16 }
  0xca   :  { %v6236_v35 = vsub.s32 32, %v1817_v45  ;;  %v1820_v63 = vshll.u32 %v9212_v16, %v1817_v45  ;;  %v1823_v2 = vshll.u32 %v9225_v0, %v1817_v45  ;;  %v1826_v40 = vshll.u32 %v9208_v15, %v1817_v45 }
  0xcb   :  { %v1829_v6 = vshll.u32 %v9207_v14, %v1817_v45  ;;  %v1832_v25 = vshll.u32 %v9209_v52, %v1817_v45  ;;  %vm6248_vm13 = vc.u32 %v954_v29, %v958_v21  ;;  %vm6258_vm15 = vc.u32 %v932_v44, %v936_v9 }
  0xcc   :  { %v1821_v47 = vshrl.u32 %v9225_v0, %v6236_v35  ;;  %v1824_v3 = vshrl.u32 %v9208_v15, %v6236_v35  ;;  %v1827_v7 = vshrl.u32 %v9207_v14, %v6236_v35  ;;  %v1830_v20 = vshrl.u32 %v9209_v52, %v6236_v35 }
  0xcd   :  { %v1833_v45 = vshrl.u32 %v9210_v18, %v6236_v35  ;;  %vm1835_vm14 = vcmp.lt.s32.totalorder %v6234_v26, 1  ;;  %v6269_v39 = vshll.u32 %v1811_v61, 8  ;;  %v942_v27 = vadd.s32 %v936_v9, %v932_v44 }
  0xce   :  { %v6262_v10 = vor.u32 %v1821_v47, %v1820_v63  ;;  %v6264_v51 = vor.u32 %v1824_v3, %v1823_v2  ;;  %v6267_v28 = vor.u32 %v1827_v7, %v1826_v40  ;;  %v1831_v8 = vor.u32 %v1830_v20, %v1829_v6 }
  0xcf   :  { %v1834_v17 = vor.u32 %v1833_v45, %v1832_v25  ;;  %v9113_v32 = vshll.u32 %v6224_v23, 16  ;;  %v6272_v37 = vadd.s32 %v958_v21, %v954_v29  ;;  %vm1837_vm0 = vcmp.lt.s32.totalorder %v6234_v26, 3 }
  0xd0   :  { %v959_v63 = vshrl.u32 %v6203_v36, 16  ;;  %vm1836_vm1 = vcmp.lt.s32.totalorder %v6234_v26, 2  ;;  %vm1838_vm4 = vcmp.lt.s32.totalorder %v6234_v26, 4  ;;  %v1843_v3 = vsel %vm1835_vm14, %v6262_v10, %v6264_v51 }
  0xd1   :  { %v941_v40 = vsel %vm6258_vm15, 1, %v9211_v59  ;;  %v963_v20 = vsel %vm6248_vm13, 1, %v9211_v59  ;;  %v1844_v21 = vsel %vm1838_vm4, %v1831_v8, 920167782  ;;  %v1847_v9 = vsel %vm1835_vm14, %v6264_v51, %v6267_v28 }
  0xd2   :  { %v1845_v61 = vsel %vm1837_vm0, %v6267_v28, %v1844_v21  ;;  %v1848_v36 = vsel %vm1838_vm4, %v1834_v17, 1326507024  ;;  %v1852_v2 = vand.u32 65535, %v6269_v39  ;;  %v1853_v60 = vshrl.u32 %v6269_v39, 16 }
  0xd3   :  { %vm944_vm5 = vc.u32 %v942_v27, %v938_v34  ;;  %vm966_vm3 = vc.u32 %v6272_v37, %v9113_v32  ;;  %v1846_v29 = vsel %vm1836_vm1, %v1843_v3, %v1845_v61  ;;  %v1849_v44 = vsel %vm1837_vm0, %v1831_v8, %v1848_v36 }
  0xd4   :  { %v1850_v6 = vsel %vm1836_vm1, %v1847_v9, %v1849_v44  ;;  %v1876_v25 = vand.u32 65535, %v1846_v29  ;;  %v1877_v17 = vshrl.u32 %v1846_v29, 16  ;;  %v6311_v47 = vmul.f32 0.31415927, %v6027_v46 }
  0xd5   :  { %v943_v7 = vadd.s32 %v941_v40, %v935_v50  ;;  %v965_v27 = vadd.s32 %v963_v20, %v957_v62  ;;  %v1854_v34 = vand.u32 65535, %v1850_v6  ;;  %v1855_v45 = vshrl.u32 %v1850_v6, 16 }
  0xd6   :  { %9239 = vst [vmem:[#allocation26_spill] sm:$0xff] %v6311_v47  ;;  %v945_v55 = vsel %vm944_vm5, 1, %v9211_v59  ;;  %v1878_v21 = vmul.u32 %v1876_v25, %v1852_v2  ;;  %v1879_v32 = vmul.u32 %v1877_v17, %v1852_v2  ;;  %v6314_v3 = vmul.u32 %v1876_v25, %v1853_v60 }
  0xd7   :  { %v967_v8 = vsel %vm966_vm3, 1, %v9211_v59  ;;  %v1856_v61 = vmul.u32 %v1854_v34, %v1852_v2  ;;  %v1857_v36 = vmul.u32 %v1855_v45, %v1852_v2  ;;  %v1858_v9 = vmul.u32 %v1854_v34, %v1853_v60 }
  0xd8   :  { %v937_v29 = vshrl.u32 %v6201_v57, 16  ;;  %v1881_v44 = vmul.u32 %v1877_v17, %v1853_v60  ;;  %v1882_v46 = vshll.u32 %v1879_v32, 16  ;;  %v1652_v50 = vand.u32 2139095040, %v6311_v47 }
  0xd9   :  { %v947_v62 = vadd.s32 %v945_v55, %v943_v7  ;;  %v1859_v40 = vmul.u32 %v1855_v45, %v1853_v60  ;;  %v1860_v20 = vshll.u32 %v1857_v36, 16  ;;  %v1862_v6 = vshll.u32 %v1858_v9, 16 }
  0xda   :  { %v939_v11 = vshrl.u32 %v6222_v49, 16  ;;  %v969_v41 = vadd.s32 %v967_v8, %v965_v27  ;;  %v1884_v25 = vshll.u32 %v6314_v3, 16  ;;  %vm1886_vm2 = vc.u32 %v1878_v21, %v1882_v46 }
  0xdb   :  { %vm1864_vm7 = vc.u32 %v1856_v61, %v1860_v20  ;;  %v1866_v56 = vadd.s32 %v1860_v20, %v1856_v61  ;;  %v1887_v2 = vsel %vm1886_vm2, 1, %v9211_v59  ;;  %v1888_v34 = vadd.s32 %v1882_v46, %v1878_v21 }
  0xdc   :  { %v961_v57 = vshrl.u32 %v6224_v23, 16  ;;  %v1865_v17 = vsel %vm1864_vm7, 1, %v9211_v59  ;;  %v1889_v58 = vadd.s32 %v1887_v2, %v1881_v44  ;;  %v1653_v7 = vshrl.u32 %v1652_v50, 23 }
  0xdd   :  { %v948_v60 = vadd.s32 %v947_v62, %v937_v29  ;;  %v1867_v45 = vadd.s32 %v1865_v17, %v1859_v40  ;;  %vm1868_vm9 = vc.u32 %v1866_v56, %v1862_v6  ;;  %vm1890_vm10 = vc.u32 %v1888_v34, %v1884_v25 }
  0xde   :  { %v970_v49 = vadd.s32 %v969_v41, %v959_v63  ;;  %v1861_v27 = vshrl.u32 %v1857_v36, 16  ;;  %v1869_v55 = vsel %vm1868_vm9, 1, %v9211_v59  ;;  %v1883_v8 = vshrl.u32 %v1879_v32, 16 }
  0xdf   :  { %v1819_v61 = vshrl.u32 %v9212_v16, %v6236_v35  ;;  %v1871_v20 = vadd.s32 %v1869_v55, %v1867_v45  ;;  %v1891_v21 = vsel %vm1890_vm10, 1, %v9211_v59  ;;  %v4691_v46 = vadd.s32 4294967169, %v1653_v7 }
  0xe0   :  { %v917_v29 = vsel %vm913_vm8, %v6112_v43, %v6218_v54  ;;  %v1885_v56 = vshrl.u32 %v6314_v3, 16  ;;  %v1893_v44 = vadd.s32 %v1891_v21, %v1889_v58  ;;  %v9119_v41 = vand.u32 2147483647, %v6311_v47 }
  0xe1   :  { %v6334_v63 = vadd.s32 %v948_v60, %v939_v11  ;;  %v9240_v32 = vshll.u32 %v6224_v23, 16  ;;  %v1840_v36 = vsel %vm1838_vm4, %v6267_v28, 2102212464  ;;  %v1659_v50 = vadd.s32 1, %v4691_v46 }
  0xe2   :  { %v971_v62 = vadd.s32 %v970_v49, %v961_v57  ;;  %v1863_v40 = vshrl.u32 %v1858_v9, 16  ;;  %v1872_v43 = vadd.s32 %v1871_v20, %v1861_v27  ;;  %v1894_v54 = vadd.s32 %v1893_v44, %v1883_v8 }
  0xe3   :  { %v6339_v35 = vadd.s32 %v6272_v37, %v9240_v32  ;;  %v9241_v58 = vshll.u32 %v6174_v19, 23  ;;  %v531_v11 = vsub.s32 4294967266, %v6205_v38  ;;  %v1839_v37 = vsel %vm1835_vm14, %v1819_v61, %v6262_v10 }
  0xe4   :  { %vm1660_vm8 = vcmp.gt.s32.totalorder %v1659_v50, 0  ;;  %v1841_v28 = vsel %vm1837_vm0, %v6264_v51, %v1840_v36  ;;  %v1895_v23 = vadd.s32 %v1894_v54, %v1885_v56  ;;  %v1656_v9 = vand.u32 8388607, %v9119_v41 }
  0xe5   :  { %v6346_v3 = vor.u32 4788187, %v9241_v58  ;;  %v1661_v6 = vsel %vm1660_vm8, %v1659_v50, 0  ;;  %v9242_v19 = vclz %v6191_v42  ;;  %v1288_v57 = vshll.u32 %v6208_v4, 30 }
  0xe6   :  { %v918_v17 = vsel %vm912_vm11, %v6213_v33, %v917_v29  ;;  %v1663_v10 = vand.u32 31, %v1661_v6  ;;  %vm974_vm13 = vc.u32 %v6334_v63, %v6339_v35  ;;  %v975_v7 = vadd.s32 1, %v971_v62 }
  0xe7   :  { %v4686_v2 = vadd.s32 4294967294, %v9242_v19  ;;  %v6365_v51 = vadd.s32 %v1872_v43, %v1863_v40  ;;  %v6367_v60 = vadd.s32 %v1888_v34, %v1884_v25  ;;  %v1842_v45 = vsel %vm1836_vm1, %v1839_v37, %v1841_v28 }
  0xe8   :  { %v6371_v42 = vsub.s32 32, %v1663_v10  ;;  %v1666_v49 = vshll.u32 %v9212_v16, %v1663_v10  ;;  %v1669_v27 = vshll.u32 %v9225_v0, %v1663_v10  ;;  %v1899_v1 = vadd.s32 1, %v1895_v23 }
  0xe9   :  { %v1657_v33 = vor.u32 8388608, %v1656_v9  ;;  %v6375_v55 = vshrl.u32 %v1661_v6, 5  ;;  %v1672_v8 = vshll.u32 %v9208_v15, %v1663_v10  ;;  %v1675_v26 = vshll.u32 %v9207_v14, %v1663_v10 }
  0xea   :  { %v1667_v61 = vshrl.u32 %v9225_v0, %v6371_v42  ;;  %v1670_v25 = vshrl.u32 %v9208_v15, %v6371_v42  ;;  %v1678_v34 = vshll.u32 %v9209_v52, %v1663_v10  ;;  %vm1898_vm11 = vc.u32 %v6365_v51, %v6367_v60 }
  0xeb   :  { %v1673_v20 = vshrl.u32 %v9207_v14, %v6371_v42  ;;  %v1676_v21 = vshrl.u32 %v9209_v52, %v6371_v42  ;;  %v1679_v46 = vshrl.u32 %v9210_v18, %v6371_v42  ;;  %vm4687_vm15 = vcmp.lt.s32.totalorder %v4686_v2, 0 }
  0xec   :  { %v6393_v29 = vsub.s32 %v6154_v31, %v1288_v57  ;;  %v6395_v56 = vor.u32 %v1667_v61, %v1666_v49  ;;  %v6397_v44 = vor.u32 %v1670_v25, %v1669_v27  ;;  %v972_v32 = vmul.u32 %v6150_v30, %v918_v17 }
  0xed   :  { %v1896_v36 = vmul.u32 %v6269_v39, %v1842_v45  ;;  %v6401_v50 = vor.u32 %v1673_v20, %v1672_v8  ;;  %vm1681_vm14 = vcmp.lt.s32.totalorder %v6375_v55, 1  ;;  %v976_v40 = vsel %vm974_vm13, %v975_v7, %v971_v62 }
  0xee   :  { %v1900_v43 = vsel %vm1898_vm11, %v1899_v1, %v1895_v23  ;;  %v1677_v54 = vor.u32 %v1676_v21, %v1675_v26  ;;  %v1680_v31 = vor.u32 %v1679_v46, %v1678_v34  ;;  %vm1683_vm0 = vcmp.lt.s32.totalorder %v6375_v55, 3 }
  0xef   :  { %vm1684_vm1 = vcmp.lt.s32.totalorder %v6375_v55, 4  ;;  %v6409_v58 = vshll.u32 %v1657_v33, 8  ;;  %v6412_v30 = vmul.f32 0.31415927, %v6229_v22  ;;  %v6415_v39 = vsel %vm4687_vm15, 0, %v4686_v2 }
  0xf0   :  { %vm1290_vm4 = vcmp.lt.s32.totalorder %v6393_v29, 0  ;;  %vm1682_vm5 = vcmp.lt.s32.totalorder %v6375_v55, 2  ;;  %v1689_v62 = vsel %vm1681_vm14, %v6395_v56, %v6397_v44  ;;  %v6423_v37 = vadd.s32 %v1900_v43, %v1896_v36  ;;  %v9247_v43 = vld [vmem:[#allocation14_spill] sm:$0xff] }
  0xf1   :  { %9243 = vst [vmem:[#allocation27_spill] sm:$0xff] %v6412_v30  ;;  %v1690_v28 = vsel %vm1684_vm1, %v1677_v54, 920167782  ;;  %v1693_v22 = vsel %vm1681_vm14, %v6397_v44, %v6401_v50  ;;  %v1694_v23 = vsel %vm1684_vm1, %v1680_v31, 1326507024  ;;  %v1291_v9 = vsub.s32 0, %v6393_v29 }
  0xf2   :  { %v6434_v6 = vadd.s32 %v976_v40, %v972_v32  ;;  %v1691_v19 = vsel %vm1683_vm0, %v6401_v50, %v1690_v28  ;;  %v1695_v2 = vsel %vm1683_vm0, %v1677_v54, %v1694_v23  ;;  %v1698_v10 = vand.u32 65535, %v6409_v58  ;;  %v9246_v32 = vld [vmem:[#allocation16_spill] sm:$0xff]  ;;  %v9248_v54 = vld [vmem:[#allocation13_spill] sm:$0xff] }
  0xf3   :  { %v6443_v57 = vsel %vm1682_vm5, %v1689_v62, %v1691_v19  ;;  %v6447_v17 = vsel %vm1682_vm5, %v1693_v22, %v1695_v2  ;;  %v1036_v7 = vand.u32 2139095040, %v6412_v30  ;;  %v9244_v45 = vand.u32 2147483647, %v6152_v12 }
  0xf4   :  { %v9245_v49 = vcvt.s32.f32 %v6148_v53  ;;  %v843_v1 = vand.u32 2147483647, %v6346_v3  ;;  %v845_v33 = vcvt.s32.f32 %v6198_v5  ;;  %v1701_v8 = vshrl.u32 %v6447_v17, 16 }
  0xf5   :  { %v511_v61 = vadd.s32 %v5862_v48, %v5865_v24  ;;  %v1455_v25 = vsub.s32 4294967266, %v6415_v39  ;;  %v1902_v26 = vadd.s32 536870912, %v6423_v37  ;;  %v1723_v34 = vshrl.u32 %v6443_v57, 16 }
  0xf6   :  { %v6455_v27 = vmul.f32 %v9245_v49, %v9244_v45  ;;  %v527_v12 = vsub.s32 32, %v6205_v38  ;;  %v532_v53 = vadd.s32 127, %v531_v11  ;;  %v1292_v5 = vsel %vm1290_vm4, %v1291_v9, %v6393_v29 }
  0xf7   :  { %v978_v3 = vadd.s32 536870912, %v6434_v6  ;;  %vm9174_vm3 = vcmp.lt.s32.totalorder %v5317_v13, 0  ;;  %v1699_v48 = vshrl.u32 %v6409_v58, 16  ;;  %v1700_v24 = vand.u32 65535, %v6447_v17 }
  0xf8   :  { %v6475_v20 = vmul.u32 %v1701_v8, %v1698_v10  ;;  %v1037_v21 = vshrl.u32 %v1036_v7, 23  ;;  %v846_v46 = vmul.f32 %v845_v33, %v843_v1  ;;  %v528_v36 = vshll.u32 %v9246_v32, %v6205_v38 }
  0xf9   :  { %v1722_v11 = vand.u32 65535, %v6443_v57  ;;  %v6480_v40 = vmul.u32 %v1723_v34, %v1698_v10  ;;  %v1435_v31 = vadd.s32 %v9248_v54, %v9247_v43  ;;  %v1451_v62 = vsub.s32 32, %v6415_v39 }
  0xfa   :  { %v1456_v28 = vadd.s32 127, %v1455_v25  ;;  %v6485_v22 = vshrl.u32 %v1902_v26, 30  ;;  %v529_v23 = vshrl.u32 %v511_v61, %v527_v12  ;;  %v533_v9 = vshll.u32 %v532_v53, 23  ;;  %v9251_v25 = vld [vmem:[#allocation4_spill] sm:$0xff]  ;;  %v9256_v12 = vld [vmem:[#allocation21_spill] sm:$0xff] }
  0xfb   :  { %v1293_v19 = vclz %v1292_v5  ;;  %v6487_v2 = vshrl.u32 %v978_v3, 30  ;;  %v1702_v17 = vmul.u32 %v1700_v24, %v1698_v10  ;;  %v6489_v7 = vmul.u32 %v1700_v24, %v1699_v48 }
  0xfc   :  { %9249 = vst [vmem:[#allocation16_spill] sm:$0xff] %v6485_v22  ;;  %v1706_v38 = vshll.u32 %v6475_v20, 16  ;;  %v4679_v57 = vadd.s32 4294967169, %v1037_v21  ;;  %v385_v45 = vxor.u32 2147483648, %v6455_v27  ;;  %v1724_v49 = vmul.u32 %v1722_v11, %v1698_v10 }
  0xfd   :  { %9250 = vst [vmem:[#allocation14_spill] sm:$0xff] %v6487_v2  ;;  %v6493_v1 = vmul.u32 %v1722_v11, %v1699_v48  ;;  %v1728_v33 = vshll.u32 %v6480_v40, 16  ;;  %vm9147_vm2 = vcmp.lt.s32.totalorder %v9251_v25, 0  ;;  %v9252_v61 = vand.u32 2147483647, %v5317_v13 }
  0xfe   :  { %v9253_v26 = vmov 0  ;;  %v1452_v53 = vshll.u32 %v9256_v12, %v6415_v39  ;;  %v1453_v5 = vshrl.u32 %v1435_v31, %v1451_v62  ;;  %v1457_v3 = vshll.u32 %v1456_v28, 23 }
  0xff   :  { %vm6499_vm7 = vcmp.le.f32.partialorder %v9252_v61, 0.7853982  ;;  %v1904_v24 = vshll.u32 %v6485_v22, 30  ;;  %v847_v10 = vxor.u32 2147483648, %v846_v46  ;;  %v530_v21 = vor.u32 %v529_v23, %v528_v36 }
 0x100   :  { %v9254_v26 = vsel %vm6499_vm7, 4294967295, %v9253_v26  ;;  %v534_v32 = vor.u32 4788187, %v533_v9  ;;  %v4683_v11 = vadd.s32 4294967294, %v1293_v19  ;;  %v980_v43 = vshll.u32 %v6487_v2, 30 }
 0x101   :  { %9255 = vst [vmem:[#allocation13_spill] sm:$0xff] %v9254_v26  ;;  %v1708_v54 = vshll.u32 %v6489_v7, 16  ;;  %vm6508_vm9 = vc.u32 %v1702_v17, %v1706_v38  ;;  %v1043_v41 = vadd.s32 1, %v4679_v57  ;;  %v1712_v4 = vadd.s32 %v1706_v38, %v1702_v17 }
 0x102   :  { %v9124_v39 = vshll.u32 %v6493_v1, 16  ;;  %vm1732_vm10 = vc.u32 %v1724_v49, %v1728_v33  ;;  %v6513_v31 = vadd.s32 %v1728_v33, %v1724_v49  ;;  %v1454_v62 = vor.u32 %v1453_v5, %v1452_v53  ;;  %v9259_v33 = vld [vmem:[#allocation19_spill] sm:$0xff]  ;;  %v9260_v53 = vld [vmem:[#allocation18_spill] sm:$0xff] }
 0x103   :  { %v1458_v28 = vor.u32 4788187, %v1457_v3  ;;  %v6516_v36 = vsub.s32 %v6423_v37, %v1904_v24  ;;  %vm1044_vm8 = vcmp.gt.s32.totalorder %v1043_v41, 0  ;;  %v848_v23 = vsel %vm9174_vm3, %v847_v10, %v846_v46 }
 0x104   :  { %v1705_v9 = vmul.u32 %v1701_v8, %v1699_v48  ;;  %v1727_v19 = vmul.u32 %v1723_v34, %v1699_v48  ;;  %v1045_v12 = vsel %vm1044_vm8, %v1043_v41, 0  ;;  %v537_v2 = vcvt.s32.f32 %v530_v21  ;;  %v6534_v48 = vld [vmem:[%s9190_s23 + $0x60] sm:$0xff] }
 0x105   :  { %vm4684_vm13 = vcmp.lt.s32.totalorder %v4683_v11, 0  ;;  %v1711_v17 = vsel %vm6508_vm9, 1, %v9211_v59  ;;  %v1733_v38 = vsel %vm1732_vm10, 1, %v9211_v59  ;;  %v535_v57 = vand.u32 2147483647, %v534_v32  ;;  %146 = vperm.xlu0 %4898, %v6534_v48   ;;  %v9261_v21 = vld [vmem:[#allocation23_spill] sm:$0xff] }
 0x106   :  { %v6525_v49 = vsub.s32 %v6434_v6, %v980_v43  ;;  %vm1714_vm11 = vc.u32 %v1712_v4, %v1708_v54  ;;  %vm1736_vm15 = vc.u32 %v6513_v31, %v9124_v39  ;;  %v1459_v37 = vand.u32 2147483647, %v1458_v28 }
 0x107   :  { %v1461_v8 = vcvt.s32.f32 %v1454_v62  ;;  %v1907_v41 = vsub.s32 0, %v6516_v36  ;;  %v1047_v34 = vand.u32 31, %v1045_v12  ;;  %v6536_v46 = vsel %vm4684_vm13, 0, %v4683_v11 }
 0x108   :  { %vm1906_vm4 = vcmp.lt.s32.totalorder %v6516_v36, 0  ;;  %v1713_v6 = vadd.s32 %v1711_v17, %v1705_v9  ;;  %v1735_v4 = vadd.s32 %v1733_v38, %v1727_v19  ;;  %v1281_v5 = vadd.s32 %v9260_v53, %v9259_v33 }
 0x109   :  { %v1297_v3 = vsub.s32 32, %v6536_v46  ;;  %v1715_v24 = vsel %vm1714_vm11, 1, %v9211_v59  ;;  %v1737_v10 = vsel %vm1736_vm15, 1, %v9211_v59  ;;  %v6547_v32 = vmul.f32 %v9261_v21, %v9261_v21 }
 0x10a   :  { %v6552_v11 = vsel %vm9147_vm2, %v385_v45, %v6455_v27  ;;  %v6557_v43 = vsel %vm6499_vm7, %v5317_v13, %v848_v23  ;;  %v983_v54 = vsub.s32 0, %v6525_v49  ;;  %v6560_v61 = vmul.f32 %v537_v2, %v535_v57 }
 0x10b   :  { %9262 = vst [vmem:[#allocation21_spill] sm:$0xff] %v6547_v32  ;;  %vm982_vm9 = vcmp.lt.s32.totalorder %v6525_v49, 0  ;;  %v1908_v62 = vsel %vm1906_vm4, %v1907_v41, %v6516_v36  ;;  %v6564_v28 = vsub.s32 32, %v1047_v34  ;;  %v1707_v9 = vshrl.u32 %v6475_v20, 16 }
 0x10c   :  { %9263 = vst [vmem:[#allocation19_spill] sm:$0xff] %v6552_v11  ;;  %v1717_v19 = vadd.s32 %v1715_v24, %v1713_v6  ;;  %v1729_v27 = vshrl.u32 %v6480_v40, 16  ;;  %v1739_v45 = vadd.s32 %v1737_v10, %v1735_v4  ;;  %v6568_v17 = vmul.f32 %v1461_v8, %v1459_v37 }
 0x10d   :  { %9264 = vst [vmem:[#allocation18_spill] sm:$0xff] %v6557_v43  ;;  %v1298_v23 = vshll.u32 %v6393_v29, %v6536_v46  ;;  %v1299_v38 = vshrl.u32 %v1281_v5, %v1297_v3  ;;  %v1301_v2 = vsub.s32 4294967266, %v6536_v46  ;;  %v984_v57 = vsel %vm982_vm9, %v983_v54, %v6525_v49  ;;  %v9265_v54 = vld [vmem:[#allocation7_spill] sm:$0xff] }
 0x10e   :  { %v1665_v41 = vshrl.u32 %v9212_v16, %v6371_v42  ;;  %v1686_v20 = vsel %vm1684_vm1, %v6401_v50, 2102212464  ;;  %v1909_v6 = vclz %v1908_v62  ;;  %v1709_v37 = vshrl.u32 %v6489_v7, 16  ;;  %v9266_v62 = vld [vmem:[#allocation8_spill] sm:$0xff] }
 0x10f   :  { %v1059_v8 = vshll.u32 %v9207_v14, %v1047_v34  ;;  %v1060_v29 = vshrl.u32 %v9209_v52, %v6564_v28  ;;  %v1718_v46 = vadd.s32 %v1717_v19, %v1707_v9  ;;  %v1731_v4 = vshrl.u32 %v6493_v1, 16 }
 0x110   :  { %v1740_v33 = vadd.s32 %v1739_v45, %v1729_v27  ;;  %v6585_v53 = vshrl.u32 %v1045_v12, 5  ;;  %v1050_v42 = vshll.u32 %v9212_v16, %v1047_v34  ;;  %v1053_v50 = vshll.u32 %v9225_v0, %v1047_v34 }
 0x111   :  { %v1056_v5 = vshll.u32 %v9208_v15, %v1047_v34  ;;  %v1062_v3 = vshll.u32 %v9209_v52, %v1047_v34  ;;  %v1051_v7 = vshrl.u32 %v9225_v0, %v6564_v28  ;;  %v1054_v24 = vshrl.u32 %v9208_v15, %v6564_v28  ;;  %v9267_v34 = vld [vmem:[#allocation24_spill] sm:$0xff] }
 0x112   :  { %v1057_v10 = vshrl.u32 %v9207_v14, %v6564_v28  ;;  %v1063_v12 = vshrl.u32 %v9210_v18, %v6564_v28  ;;  %vm9150_vm1 = vcmp.lt.s32.totalorder %v9265_v54, 0  ;;  %vm9176_vm10 = vcmp.lt.s32.totalorder %v9266_v62, 0 }
 0x113   :  { %v1302_v9 = vadd.s32 127, %v1301_v2  ;;  %v985_v19 = vclz %v984_v57  ;;  %v1061_v27 = vor.u32 %v1060_v29, %v1059_v8  ;;  %v6602_v45 = vmul.f32 0.31415927, %v9267_v34 }
 0x114   :  { %v4695_v39 = vadd.s32 4294967294, %v1909_v6  ;;  %v1741_v40 = vadd.s32 %v1740_v33, %v1731_v4  ;;  %v9269_v21 = vand.u32 2147483647, %v6412_v30  ;;  %vm1068_vm8 = vcmp.lt.s32.totalorder %v6585_v53, 4 }
 0x115   :  { %9268 = vst [vmem:[#allocation24_spill] sm:$0xff] %v6602_v45  ;;  %v1685_v32 = vsel %vm1681_vm14, %v1665_v41, %v6395_v56  ;;  %v1687_v2 = vsel %vm1683_vm0, %v6397_v44, %v1686_v20  ;;  %v6613_v57 = vadd.s32 %v1718_v46, %v1709_v37  ;;  %v9271_v8 = vshll.u32 %v6493_v1, 16 }
 0x116   :  { %v1040_v26 = vand.u32 8388607, %v9269_v21  ;;  %v6620_v29 = vor.u32 %v1051_v7, %v1050_v42  ;;  %v6622_v21 = vor.u32 %v1054_v24, %v1053_v50  ;;  %v1058_v4 = vor.u32 %v1057_v10, %v1056_v5 }
 0x117   :  { %9270 = vst [vmem:[#allocation28_spill] sm:$0xff] %v6613_v57  ;;  %v6618_v6 = vadd.s32 %v6513_v31, %v9271_v8  ;;  %v1064_v33 = vor.u32 %v1063_v12, %v1062_v3  ;;  %v4677_v34 = vadd.s32 4294967294, %v985_v19  ;;  %vm1065_vm14 = vcmp.lt.s32.totalorder %v6585_v53, 1 }
 0x118   :  { %vm1067_vm13 = vcmp.lt.s32.totalorder %v6585_v53, 3  ;;  %v1074_v56 = vsel %vm1068_vm8, %v1061_v27, 920167782  ;;  %vm4696_vm0 = vcmp.lt.s32.totalorder %v4695_v39, 0  ;;  %v1688_v44 = vsel %vm1682_vm5, %v1685_v32, %v1687_v2 }
 0x119   :  { %9272 = vst [vmem:[#allocation29_spill] sm:$0xff] %v6618_v6  ;;  %v1745_v1 = vadd.s32 1, %v1741_v40  ;;  %v1041_v31 = vor.u32 8388608, %v1040_v26  ;;  %v539_v41 = vxor.u32 2147483648, %v6560_v61  ;;  %v1463_v20 = vxor.u32 2147483648, %v6568_v17 }
 0x11a   :  { %v1303_v37 = vshll.u32 %v1302_v9, 23  ;;  %vm1744_vm11 = vc.u32 %v6613_v57, %v6618_v6  ;;  %vm1066_vm15 = vcmp.lt.s32.totalorder %v6585_v53, 2  ;;  %v1073_v46 = vsel %vm1065_vm14, %v6620_v29, %v6622_v21 }
 0x11b   :  { %v1075_v55 = vsel %vm1067_vm13, %v1058_v4, %v1074_v56  ;;  %v1078_v26 = vsel %vm1068_vm8, %v1064_v33, 1326507024  ;;  %v6645_v32 = vmul.f32 %v6557_v43, %v6557_v43  ;;  %v6647_v42 = vor.u32 %v1299_v38, %v1298_v23 }
 0x11c   :  { %v6649_v50 = vsel %vm4696_vm0, 0, %v4695_v39  ;;  %v1742_v5 = vmul.u32 %v6409_v58, %v1688_v44  ;;  %vm4678_vm5 = vcmp.lt.s32.totalorder %v4677_v34, 0  ;;  %v1746_v3 = vsel %vm1744_vm11, %v1745_v1, %v1741_v40  ;;  %v6692_v44 = vld [vmem:[%s9190_s23 + $0x40] sm:$0xff] }
 0x11d   :  { %9273 = vst [vmem:[#allocation30_spill] sm:$0xff] %v6645_v32  ;;  %v6652_v7 = vshll.u32 %v1041_v31, 8  ;;  %v2268_v24 = vand.u32 2139095040, %v6602_v45  ;;  %v6655_v10 = vor.u32 4788187, %v1303_v37  ;;  %v6659_v12 = vsel %vm1066_vm15, %v1073_v46, %v1075_v55  ;;  %126 = vperm.xlu2 %4900, %v6692_v44  }
 0x11e   :  { %v1077_v23 = vsel %vm1065_vm14, %v6622_v21, %v1058_v4  ;;  %v1079_v39 = vsel %vm1067_vm13, %v1061_v27, %v1078_v26  ;;  %v6669_v58 = vsel %vm9150_vm1, %v539_v41, %v6560_v61  ;;  %v6674_v38 = vsel %vm9176_vm10, %v1463_v20, %v6568_v17 }
 0x11f   :  { %9274 = vst [vmem:[#allocation31_spill] sm:$0xff] %v6669_v58  ;;  %v1917_v40 = vsub.s32 4294967266, %v6649_v50  ;;  %v2269_v9 = vshrl.u32 %v2268_v24, 23  ;;  %v6678_v2 = vsel %vm4678_vm5, 0, %v4677_v34  ;;  %v6680_v8 = vadd.s32 %v1746_v3, %v1742_v5 }
 0x120   :  { %9275 = vst [vmem:[#allocation32_spill] sm:$0xff] %v6674_v38  ;;  %v9127_v27 = vand.u32 2147483647, %v6602_v45  ;;  %v6685_v61 = vsel %vm1066_vm15, %v1077_v23, %v1079_v39  ;;  %v1082_v33 = vand.u32 65535, %v6652_v7  ;;  %v1107_v17 = vshrl.u32 %v6659_v12, 16 }
 0x121   :  { %v4703_v56 = vadd.s32 4294967169, %v2269_v9  ;;  %v6697_v1 = vadd.s32 %v6339_v35, %v6334_v63  ;;  %v1897_v31 = vadd.s32 %v6367_v60, %v6365_v51  ;;  %v1913_v41 = vsub.s32 32, %v6649_v50 }
 0x122   :  { %v6704_v37 = vadd.s32 127, %v1917_v40  ;;  %v1049_v46 = vshrl.u32 %v9212_v16, %v6564_v28  ;;  %v1748_v26 = vadd.s32 536870912, %v6680_v8  ;;  %v1070_v63 = vsel %vm1068_vm8, %v1058_v4, 2102212464 }
 0x123   :  { %v2275_v55 = vadd.s32 1, %v4703_v56  ;;  %v9128_v35 = vshrl.u32 %v6685_v61, 16  ;;  %v2272_v51 = vand.u32 8388607, %v9127_v27  ;;  %v6715_v60 = vshrl.u32 %v6652_v7, 16 }
 0x124   :  { %v1106_v5 = vand.u32 65535, %v6659_v12  ;;  %v6718_v3 = vmul.u32 %v1107_v17, %v1082_v33  ;;  %v6722_v24 = vshrl.u32 %v1897_v31, %v1913_v41  ;;  %v6725_v4 = vmul.f32 0.31415927, %v6534_v48 }
 0x125   :  { %vm2276_vm4 = vcmp.gt.s32.totalorder %v2275_v55, 0  ;;  %v6731_v40 = vsel %vm1065_vm14, %v1049_v46, %v6620_v29  ;;  %v6736_v12 = vsel %vm1067_vm13, %v6622_v21, %v1070_v63  ;;  %v1084_v9 = vand.u32 65535, %v6685_v61 }
 0x126   :  { %v2277_v23 = vsel %vm2276_vm4, %v2275_v55, 0  ;;  %9276 = vst [vmem:[#allocation33_spill] sm:$0xff] %v6725_v4  ;;  %v6739_v56 = vshrl.u32 %v1748_v26, 30  ;;  %v6743_v48 = vmul.u32 %v9128_v35, %v1082_v33  ;;  %v2273_v31 = vor.u32 8388608, %v2272_v51 }
 0x127   :  { %v2279_v41 = vand.u32 31, %v2277_v23  ;;  %v1108_v55 = vmul.u32 %v1106_v5, %v1082_v33  ;;  %v6746_v27 = vmul.u32 %v1106_v5, %v6715_v60  ;;  %v1112_v29 = vshll.u32 %v6718_v3, 16 }
 0x128   :  { %9277 = vst [vmem:[#allocation34_spill] sm:$0xff] %v6739_v56  ;;  %v6749_v46 = vshrl.u32 %v2277_v23, 5  ;;  %v2114_v39 = vand.u32 2139095040, %v6725_v4  ;;  %v1086_v28 = vmul.u32 %v1084_v9, %v1082_v33  ;;  %v1090_v34 = vshll.u32 %v6743_v48, 16 }
 0x129   :  { %v6751_v21 = vsub.s32 32, %v2279_v41  ;;  %v2282_v63 = vshll.u32 %v9212_v16, %v2279_v41  ;;  %v2285_v26 = vshll.u32 %v9225_v0, %v2279_v41  ;;  %v2288_v51 = vshll.u32 %v9208_v15, %v2279_v41 }
 0x12a   :  { %v2291_v19 = vshll.u32 %v9207_v14, %v2279_v41  ;;  %v2294_v5 = vshll.u32 %v9209_v52, %v2279_v41  ;;  %v6764_v35 = vshll.u32 %v2273_v31, 8  ;;  %vm2297_vm9 = vcmp.lt.s32.totalorder %v6749_v46, 1 }
 0x12b   :  { %v2283_v23 = vshrl.u32 %v9225_v0, %v6751_v21  ;;  %v2286_v20 = vshrl.u32 %v9208_v15, %v6751_v21  ;;  %v2289_v43 = vshrl.u32 %v9207_v14, %v6751_v21  ;;  %v2292_v33 = vshrl.u32 %v9209_v52, %v6751_v21 }
 0x12c   :  { %v2295_v13 = vshrl.u32 %v9210_v18, %v6751_v21  ;;  %vm2300_vm8 = vcmp.lt.s32.totalorder %v6749_v46, 4  ;;  %v2115_v58 = vshrl.u32 %v2114_v39, 23  ;;  %vm2299_vm14 = vcmp.lt.s32.totalorder %v6749_v46, 3 }
 0x12d   :  { %v6773_v41 = vor.u32 %v2283_v23, %v2282_v63  ;;  %v6775_v32 = vor.u32 %v2286_v20, %v2285_v26  ;;  %v6778_v31 = vor.u32 %v2289_v43, %v2288_v51  ;;  %v2293_v11 = vor.u32 %v2292_v33, %v2291_v19  ;;  %v6791_v43 = vld [vmem:[%s9190_s23 + $0x78] sm:$0xff] }
 0x12e   :  { %v2296_v54 = vor.u32 %v2295_v13, %v2294_v5  ;;  %v1750_v25 = vshll.u32 %v6739_v56, 30  ;;  %v1111_v30 = vmul.u32 %v1107_v17, %v6715_v60  ;;  %vm2298_vm13 = vcmp.lt.s32.totalorder %v6749_v46, 2  ;;  %9278 = vst [vmem:[#allocation35_spill] sm:$0xff] %v6791_v43  ;;  %161 = vperm.xlu0 %4898, %v6791_v43  }
 0x12f   :  { %v2305_v20 = vsel %vm2297_vm9, %v6773_v41, %v6775_v32  ;;  %v6794_v13 = vmul.u32 %v1084_v9, %v6715_v60  ;;  %vm6797_vm0 = vc.u32 %v1108_v55, %v1112_v29  ;;  %v2306_v17 = vsel %vm2300_vm8, %v2293_v11, 920167782 }
 0x130   :  { %v2307_v63 = vsel %vm2299_vm14, %v6778_v31, %v2306_v17  ;;  %v2309_v9 = vsel %vm2297_vm9, %v6775_v32, %v6778_v31  ;;  %v2314_v26 = vand.u32 65535, %v6764_v35  ;;  %v4700_v51 = vadd.s32 4294967169, %v2115_v58 }
 0x131   :  { %vm6812_vm11 = vc.u32 %v1086_v28, %v1090_v34  ;;  %v1118_v23 = vadd.s32 %v1112_v29, %v1108_v55  ;;  %v2308_v33 = vsel %vm2298_vm13, %v2305_v20, %v2307_v63  ;;  %v2310_v19 = vsel %vm2300_vm8, %v2296_v54, 1326507024 }
 0x132   :  { %v2311_v17 = vsel %vm2299_vm14, %v2293_v11, %v2310_v19  ;;  %v2315_v56 = vshrl.u32 %v6764_v35, 16  ;;  %v2338_v22 = vand.u32 65535, %v2308_v33  ;;  %v2339_v47 = vshrl.u32 %v2308_v33, 16 }
 0x133   :  { %v9283_v58 = vshrl.u32 %v6685_v61, 16  ;;  %v1092_v38 = vshll.u32 %v6794_v13, 16  ;;  %v1117_v55 = vsel %vm6797_vm0, 1, %v9211_v59  ;;  %v2312_v54 = vsel %vm2298_vm13, %v2309_v9, %v2311_v17 }
 0x134   :  { %v2316_v29 = vand.u32 65535, %v2312_v54  ;;  %v2317_v20 = vshrl.u32 %v2312_v54, 16  ;;  %v6832_v11 = vmul.u32 %v2339_v47, %v2314_v26  ;;  %v2121_v19 = vadd.s32 1, %v4700_v51 }
 0x135   :  { %v1089_v45 = vmul.u32 %v9283_v58, %v6715_v60  ;;  %v1095_v63 = vsel %vm6812_vm11, 1, %v9211_v59  ;;  %v1096_v61 = vadd.s32 %v1090_v34, %v1086_v28  ;;  %v9284_v60 = vshll.u32 %v6746_v27, 16 }
 0x136   :  { %v2340_v33 = vmul.u32 %v2338_v22, %v2314_v26  ;;  %v2318_v58 = vmul.u32 %v2316_v29, %v2314_v26  ;;  %v2319_v39 = vmul.u32 %v2317_v20, %v2314_v26  ;;  %v6839_v62 = vmul.u32 %v2316_v29, %v2315_v56 }
 0x137   :  { %vm1120_vm5 = vc.u32 %v1118_v23, %v9284_v60  ;;  %v6841_v43 = vmul.u32 %v2338_v22, %v2315_v56  ;;  %v6844_v9 = vsub.s32 %v6680_v8, %v1750_v25  ;;  %v1113_v51 = vshrl.u32 %v6718_v3, 16 }
 0x138   :  { %v1119_v17 = vadd.s32 %v1117_v55, %v1111_v30  ;;  %v2344_v5 = vshll.u32 %v6832_v11, 16  ;;  %v1121_v34 = vsel %vm1120_vm5, 1, %v9211_v59  ;;  %v2322_v28 = vshll.u32 %v2319_v39, 16 }
 0x139   :  { %v2324_v54 = vshll.u32 %v6839_v62, 16  ;;  %vm2122_vm4 = vcmp.gt.s32.totalorder %v2121_v19, 0  ;;  %v1097_v60 = vadd.s32 %v1095_v63, %v1089_v45  ;;  %vm1098_vm0 = vc.u32 %v1096_v61, %v1092_v38 }
 0x13a   :  { %v2321_v26 = vmul.u32 %v2317_v20, %v2315_v56  ;;  %v2343_v29 = vmul.u32 %v2339_v47, %v2315_v56  ;;  %vm2326_vm11 = vc.u32 %v2318_v58, %v2322_v28  ;;  %v2328_v22 = vadd.s32 %v2322_v28, %v2318_v58 }
 0x13b   :  { %v2346_v25 = vshll.u32 %v6841_v43, 16  ;;  %vm2348_vm2 = vc.u32 %v2340_v33, %v2344_v5  ;;  %v1123_v8 = vadd.s32 %v1121_v34, %v1119_v17  ;;  %v2327_v30 = vsel %vm2326_vm11, 1, %v9211_v59 }
 0x13c   :  { %v2349_v3 = vsel %vm2348_vm2, 1, %v9211_v59  ;;  %v2123_v55 = vsel %vm2122_vm4, %v2121_v19, 0  ;;  %v1099_v6 = vsel %vm1098_vm0, 1, %v9211_v59  ;;  %v1115_v57 = vshrl.u32 %v6746_v27, 16 }
 0x13d   :  { %vm2330_vm5 = vc.u32 %v2328_v22, %v2324_v54  ;;  %v2350_v45 = vadd.s32 %v2344_v5, %v2340_v33  ;;  %v1091_v38 = vshrl.u32 %v6743_v48, 16  ;;  %v1093_v47 = vshrl.u32 %v6794_v13, 16 }
 0x13e   :  { %v2329_v56 = vadd.s32 %v2327_v30, %v2321_v26  ;;  %v2351_v20 = vadd.s32 %v2349_v3, %v2343_v29  ;;  %v2331_v63 = vsel %vm2330_vm5, 1, %v9211_v59  ;;  %v9151_v61 = vand.u32 2147483647, %v6725_v4 }
 0x13f   :  { %vm2352_vm1 = vc.u32 %v2350_v45, %v2346_v25  ;;  %v2125_v58 = vand.u32 31, %v2123_v55  ;;  %v1101_v17 = vadd.s32 %v1099_v6, %v1097_v60  ;;  %v9285_v19 = vshll.u32 %v6746_v27, 16 }
 0x140   :  { %v1124_v28 = vadd.s32 %v1123_v8, %v1113_v51  ;;  %v2353_v33 = vsel %vm2352_vm1, 1, %v9211_v59  ;;  %v2323_v5 = vshrl.u32 %v2319_v39, 16  ;;  %v2345_v48 = vshrl.u32 %v6832_v11, 16 }
 0x141   :  { %v6861_v34 = vadd.s32 %v1118_v23, %v9285_v19  ;;  %v6865_v13 = vshrl.u32 %v2123_v55, 5  ;;  %v6867_v54 = vsub.s32 32, %v2125_v58  ;;  %v2333_v26 = vadd.s32 %v2331_v63, %v2329_v56 }
 0x142   :  { %v2355_v29 = vadd.s32 %v2353_v33, %v2351_v20  ;;  %v2128_v22 = vshll.u32 %v9212_v16, %v2125_v58  ;;  %v2131_v6 = vshll.u32 %v9225_v0, %v2125_v58  ;;  %v2118_v27 = vand.u32 8388607, %v9151_v61 }
 0x143   :  { %v2129_v23 = vshrl.u32 %v9225_v0, %v6867_v54  ;;  %v2134_v39 = vshll.u32 %v9208_v15, %v2125_v58  ;;  %v2137_v11 = vshll.u32 %v9207_v14, %v2125_v58  ;;  %v2281_v51 = vshrl.u32 %v9212_v16, %v6751_v21 }
 0x144   :  { %v2132_v60 = vshrl.u32 %v9208_v15, %v6867_v54  ;;  %v2135_v8 = vshrl.u32 %v9207_v14, %v6867_v54  ;;  %v2138_v30 = vshrl.u32 %v9209_v52, %v6867_v54  ;;  %v2302_v3 = vsel %vm2300_vm8, %v6778_v31, 2102212464 }
 0x145   :  { %v2325_v55 = vshrl.u32 %v6839_v62, 16  ;;  %v2347_v56 = vshrl.u32 %v6841_v43, 16  ;;  %vm2143_vm2 = vcmp.lt.s32.totalorder %v6865_v13, 1  ;;  %v2334_v21 = vadd.s32 %v2333_v26, %v2323_v5 }
 0x146   :  { %v2356_v20 = vadd.s32 %v2355_v29, %v2345_v48  ;;  %v6891_v63 = vor.u32 %v2129_v23, %v2128_v22  ;;  %v6893_v19 = vor.u32 %v2132_v60, %v2131_v6  ;;  %v6895_v33 = vor.u32 %v2135_v8, %v2134_v39 }
 0x147   :  { %v2139_v61 = vor.u32 %v2138_v30, %v2137_v11  ;;  %v2140_v4 = vshll.u32 %v9209_v52, %v2125_v58  ;;  %v2141_v31 = vshrl.u32 %v9210_v18, %v6867_v54  ;;  %v1102_v14 = vadd.s32 %v1101_v17, %v1091_v38 }
 0x148   :  { %v1125_v62 = vadd.s32 %v1124_v28, %v1115_v57  ;;  %v2119_v15 = vor.u32 8388608, %v2118_v27  ;;  %vm2146_vm1 = vcmp.lt.s32.totalorder %v6865_v13, 4  ;;  %v2301_v43 = vsel %vm2297_vm9, %v2281_v51, %v6773_v41 }
 0x149   :  { %v2303_v5 = vsel %vm2299_vm14, %v6775_v32, %v2302_v3  ;;  %v2142_v48 = vor.u32 %v2141_v31, %v2140_v4  ;;  %vm2145_vm8 = vcmp.lt.s32.totalorder %v6865_v13, 3  ;;  %v6908_v58 = vadd.s32 %v2350_v45, %v2346_v25 }
 0x14a   :  { %v2357_v26 = vadd.s32 %v2356_v20, %v2347_v56  ;;  %vm2144_vm4 = vcmp.lt.s32.totalorder %v6865_v13, 2  ;;  %v2151_v57 = vsel %vm2143_vm2, %v6891_v63, %v6893_v19  ;;  %v6915_v38 = vadd.s32 %v2334_v21, %v2325_v55 }
 0x14b   :  { %v2152_v41 = vsel %vm2146_vm1, %v2139_v61, 920167782  ;;  %v2155_v32 = vsel %vm2143_vm2, %v6893_v19, %v6895_v33  ;;  %v2156_v4 = vsel %vm2146_vm1, %v2142_v48, 1326507024  ;;  %v6925_v25 = vadd.s32 %v1102_v14, %v1093_v47 }
 0x14c   :  { %v2153_v45 = vsel %vm2145_vm8, %v6895_v33, %v2152_v41  ;;  %v2157_v17 = vsel %vm2145_vm8, %v2139_v61, %v2156_v4  ;;  %v6932_v28 = vshll.u32 %v2119_v15, 8  ;;  %v1072_v29 = vsel %vm1066_vm15, %v6731_v40, %v6736_v12 }
 0x14d   :  { %v2304_v22 = vsel %vm2298_vm13, %v2301_v43, %v2303_v5  ;;  %v2154_v14 = vsel %vm2144_vm4, %v2151_v57, %v2153_v45  ;;  %v2158_v47 = vsel %vm2144_vm4, %v2155_v32, %v2157_v17  ;;  %v2361_v6 = vadd.s32 1, %v2357_v26 }
 0x14e   :  { %v2160_v27 = vand.u32 65535, %v6932_v28  ;;  %v2161_v15 = vshrl.u32 %v6932_v28, 16  ;;  %v2162_v61 = vand.u32 65535, %v2158_v47  ;;  %vm2360_vm9 = vc.u32 %v6915_v38, %v6908_v58 }
 0x14f   :  { %v2163_v53 = vshrl.u32 %v2158_v47, 16  ;;  %v2184_v40 = vand.u32 65535, %v2154_v14  ;;  %v2185_v12 = vshrl.u32 %v2154_v14, 16  ;;  %v1753_v46 = vsub.s32 0, %v6844_v9 }
 0x150   :  { %vm1128_vm15 = vc.u32 %v6925_v25, %v6861_v34  ;;  %v1129_v23 = vadd.s32 1, %v1125_v62  ;;  %v6951_v39 = vmul.u32 %v2162_v61, %v2161_v15  ;;  %v2164_v11 = vmul.u32 %v2162_v61, %v2160_v27 }
 0x151   :  { %v2165_v51 = vmul.u32 %v2163_v53, %v2160_v27  ;;  %v2186_v60 = vmul.u32 %v2184_v40, %v2160_v27  ;;  %v2187_v8 = vmul.u32 %v2185_v12, %v2160_v27  ;;  %v2358_v30 = vmul.u32 %v6764_v35, %v2304_v22 }
 0x152   :  { %v2362_v3 = vsel %vm2360_vm9, %v2361_v6, %v2357_v26  ;;  %v2167_v55 = vmul.u32 %v2163_v53, %v2161_v15  ;;  %v2188_v56 = vmul.u32 %v2184_v40, %v2161_v15  ;;  %v2170_v20 = vshll.u32 %v6951_v39, 16 }
 0x153   :  { %v2168_v21 = vshll.u32 %v2165_v51, 16  ;;  %v2189_v31 = vmul.u32 %v2185_v12, %v2161_v15  ;;  %v2190_v43 = vshll.u32 %v2187_v8, 16  ;;  %vm1752_vm14 = vcmp.lt.s32.totalorder %v6844_v9, 0 }
 0x154   :  { %v1126_v5 = vmul.u32 %v6652_v7, %v1072_v29  ;;  %v1130_v48 = vsel %vm1128_vm15, %v1129_v23, %v1125_v62  ;;  %v2192_v57 = vshll.u32 %v2188_v56, 16  ;;  %v6961_v35 = vmul.f32 0.31415927, %v6692_v44 }
 0x155   :  { %vm2172_vm13 = vc.u32 %v2164_v11, %v2168_v21  ;;  %v2174_v41 = vadd.s32 %v2168_v21, %v2164_v11  ;;  %vm2194_vm0 = vc.u32 %v2186_v60, %v2190_v43  ;;  %v6963_v26 = vadd.s32 %v2362_v3, %v2358_v30 }
 0x156   :  { %9286 = vst [vmem:[#allocation36_spill] sm:$0xff] %v6961_v35  ;;  %v2173_v32 = vsel %vm2172_vm13, 1, %v9211_v59  ;;  %v2195_v4 = vsel %vm2194_vm0, 1, %v9211_v59  ;;  %v2196_v45 = vadd.s32 %v2190_v43, %v2186_v60  ;;  %v1754_v7 = vsel %vm1752_vm14, %v1753_v46, %v6844_v9 }
 0x157   :  { %v2175_v17 = vadd.s32 %v2173_v32, %v2167_v55  ;;  %vm2176_vm11 = vc.u32 %v2174_v41, %v2170_v20  ;;  %v2197_v29 = vadd.s32 %v2195_v4, %v2189_v31  ;;  %v2169_v62 = vshrl.u32 %v2165_v51, 16 }
 0x158   :  { %v2177_v22 = vsel %vm2176_vm11, 1, %v9211_v59  ;;  %v2191_v14 = vshrl.u32 %v2187_v8, 16  ;;  %vm2198_vm5 = vc.u32 %v2196_v45, %v2192_v57  ;;  %v6969_v47 = vadd.s32 %v1130_v48, %v1126_v5 }
 0x159   :  { %v2179_v44 = vadd.s32 %v2177_v22, %v2175_v17  ;;  %v2199_v6 = vsel %vm2198_vm5, 1, %v9211_v59  ;;  %v1498_v27 = vand.u32 2139095040, %v6961_v35  ;;  %v989_v15 = vsub.s32 32, %v6678_v2 }
 0x15a   :  { %v1755_v61 = vclz %v1754_v7  ;;  %v2364_v53 = vadd.s32 536870912, %v6963_v26  ;;  %v2201_v40 = vadd.s32 %v2199_v6, %v2197_v29  ;;  %v9287_v12 = vsub.s32 4294967266, %v6678_v2 }
 0x15b   :  { %v2127_v23 = vshrl.u32 %v9212_v16, %v6867_v54  ;;  %v2193_v11 = vshrl.u32 %v2188_v56, 16  ;;  %v1499_v51 = vshrl.u32 %v1498_v27, 23  ;;  %v9288_v60 = vand.u32 2147483647, %v6655_v10 }
 0x15c   :  { %v994_v46 = vadd.s32 127, %v9287_v12  ;;  %v9289_v8 = vcvt.s32.f32 %v6647_v42  ;;  %v2171_v3 = vshrl.u32 %v6951_v39, 16  ;;  %v2180_v55 = vadd.s32 %v2179_v44, %v2169_v62  ;;  %v9295_v44 = vld [vmem:[#allocation29_spill] sm:$0xff] }
 0x15d   :  { %v2202_v21 = vadd.s32 %v2201_v40, %v2191_v14  ;;  %v9290_v20 = vshll.u32 %v6516_v36, %v6649_v50  ;;  %v9291_v43 = vshll.u32 %v6704_v37, 23  ;;  %v1132_v56 = vadd.s32 536870912, %v6969_v47  ;;  %v7003_v36 = vld [vmem:[%s9190_s23 + $0x58] sm:$0xff]  ;;  %v9294_v14 = vld [vmem:[#allocation28_spill] sm:$0xff] }
 0x15e   :  { %v6983_v30 = vmul.f32 %v9289_v8, %v9288_v60  ;;  %v2148_v42 = vsel %vm2146_vm1, %v6895_v33, 2102212464  ;;  %v990_v10 = vshll.u32 %v6525_v49, %v6678_v2  ;;  %v4692_v39 = vadd.s32 4294967294, %v1755_v61  ;;  %141 = vperm.xlu2 %4900, %v7003_v36  }
 0x15f   :  { %v1916_v31 = vor.u32 %v6722_v24, %v9290_v20  ;;  %v1920_v54 = vor.u32 4788187, %v9291_v43  ;;  %v6998_v5 = vshrl.u32 %v2364_v53, 30  ;;  %v4688_v48 = vadd.s32 4294967169, %v1499_v51  ;;  %v9299_v43 = vld [vmem:[#allocation8_spill] sm:$0xff] }
 0x160   :  { %v991_v50 = vshrl.u32 %v6697_v1, %v989_v15  ;;  %v995_v37 = vshll.u32 %v994_v46, 23  ;;  %v2147_v24 = vsel %vm2143_vm2, %v2127_v23, %v6891_v63  ;;  %v2203_v33 = vadd.s32 %v2202_v21, %v2193_v11  ;;  %v9296_v23 = vld [vmem:[#allocation35_spill] sm:$0xff] }
 0x161   :  { %9292 = vst [vmem:[#allocation37_spill] sm:$0xff] %v6998_v5  ;;  %v2149_v49 = vsel %vm2145_vm8, %v6893_v19, %v2148_v42  ;;  %v7013_v2 = vadd.s32 %v2180_v55, %v2171_v3  ;;  %v7015_v41 = vadd.s32 %v2196_v45, %v2192_v57  ;;  %v1505_v32 = vadd.s32 1, %v4688_v48  ;;  %v9304_v42 = vld [vmem:[#allocation10_spill] sm:$0xff] }
 0x162   :  { %v1921_v4 = vand.u32 2147483647, %v1920_v54  ;;  %v1923_v7 = vcvt.s32.f32 %v1916_v31  ;;  %v7017_v1 = vshrl.u32 %v1132_v56, 30  ;;  %v9156_v17 = vand.u32 2147483647, %v6961_v35 }
 0x163   :  { %v1309_v63 = vxor.u32 2147483648, %v6983_v30  ;;  %vm4693_vm2 = vcmp.lt.s32.totalorder %v4692_v39, 0  ;;  %v2366_v29 = vshll.u32 %v6998_v5, 30  ;;  %vm1506_vm1 = vcmp.gt.s32.totalorder %v1505_v32, 0 }
 0x164   :  { %9293 = vst [vmem:[#allocation38_spill] sm:$0xff] %v7017_v1  ;;  %v7022_v62 = vor.u32 %v991_v50, %v990_v10  ;;  %v2150_v19 = vsel %vm2144_vm4, %v2147_v24, %v2149_v49  ;;  %v2207_v57 = vadd.s32 1, %v2203_v33  ;;  %v1507_v45 = vsel %vm1506_vm1, %v1505_v32, 0  ;;  %v9305_v32 = vld [vmem:[#allocation20_spill] sm:$0xff] }
 0x165   :  { %v7026_v22 = vor.u32 4788187, %v995_v37  ;;  %v7030_v6 = vadd.s32 %v9295_v44, %v9294_v14  ;;  %vm2206_vm8 = vc.u32 %v7013_v2, %v7015_v41  ;;  %v1509_v27 = vand.u32 31, %v1507_v45 }
 0x166   :  { %v7034_v15 = vmul.f32 %v1923_v7, %v1921_v4  ;;  %v7036_v61 = vsel %vm4693_vm2, 0, %v4692_v39  ;;  %v1134_v53 = vshll.u32 %v7017_v1, 30  ;;  %v1502_v13 = vand.u32 8388607, %v9156_v17 }
 0x167   :  { %v7042_v40 = vsub.s32 %v6963_v26, %v2366_v29  ;;  %v2204_v12 = vmul.u32 %v6932_v28, %v2150_v19  ;;  %v7045_v46 = vsub.s32 32, %v1509_v27  ;;  %v7048_v11 = vmul.f32 0.31415927, %v9296_v23 }
 0x168   :  { %v2208_v51 = vsel %vm2206_vm8, %v2207_v57, %v2203_v33  ;;  %v1512_v60 = vshll.u32 %v9212_v16, %v1509_v27  ;;  %v1515_v8 = vshll.u32 %v9225_v0, %v1509_v27  ;;  %v9297_v3 = vmov 2131351028  }
 0x169   :  { %v1518_v55 = vshll.u32 %v9297_v3, %v1509_v27  ;;  %v7053_v21 = vshrl.u32 %v1507_v45, 5  ;;  %v1513_v26 = vshrl.u32 %v9225_v0, %v7045_v46  ;;  %v1516_v28 = vshrl.u32 %v9297_v3, %v7045_v46 }
 0x16a   :  { %v9298_v20 = vmov 2102212464   ;;  %v9300_v54 = vand.u32 2147483647, %v9299_v43  ;;  %v9301_v56 = vmov 0  ;;  %vm9175_vm9 = vcmp.lt.s32.totalorder %v9304_v42, 0 }
 0x16b   :  { %v1519_v31 = vshrl.u32 %v9298_v20, %v7045_v46  ;;  %v1759_v10 = vsub.s32 32, %v7036_v61  ;;  %v1503_v39 = vor.u32 8388608, %v1502_v13  ;;  %v1521_v48 = vshll.u32 %v9298_v20, %v1509_v27 }
 0x16c   :  { %vm7063_vm4 = vcmp.le.f32.partialorder %v9300_v54, 0.7853982  ;;  %v1522_v50 = vshrl.u32 %v9209_v52, %v7045_v46  ;;  %v7072_v37 = vor.u32 %v1516_v28, %v1515_v8  ;;  %v1524_v33 = vshll.u32 %v9209_v52, %v1509_v27  ;;  %v7116_v28 = vld [vmem:[%s9190_s23 + $0x70] sm:$0xff] }
 0x16d   :  { %v9302_v56 = vsel %vm7063_vm4, 4294967295, %v9301_v56  ;;  %v1520_v24 = vor.u32 %v1519_v31, %v1518_v55  ;;  %v2576_v49 = vand.u32 2139095040, %v7048_v11  ;;  %vm9177_vm15 = vcmp.lt.s32.totalorder %v9305_v32, 0  ;;  %156 = vperm.xlu2 %4900, %v7116_v28  }
 0x16e   :  { %9303 = vst [vmem:[#allocation28_spill] sm:$0xff] %v9302_v56  ;;  %v7077_v4 = vadd.s32 %v2208_v51, %v2204_v12  ;;  %v7079_v7 = vor.u32 %v1513_v26, %v1512_v60  ;;  %v1523_v29 = vor.u32 %v1522_v50, %v1521_v48  ;;  %v1525_v19 = vshrl.u32 %v9210_v18, %v7045_v46 }
 0x16f   :  { %v1763_v57 = vsub.s32 4294967266, %v7036_v61  ;;  %v7085_v45 = vsub.s32 %v6969_v47, %v1134_v53  ;;  %vm2368_vm14 = vcmp.lt.s32.totalorder %v7042_v40, 0  ;;  %vm1527_vm13 = vcmp.lt.s32.totalorder %v7053_v21, 1 }
 0x170   :  { %v2369_v14 = vsub.s32 0, %v7042_v40  ;;  %v1526_v44 = vor.u32 %v1525_v19, %v1524_v33  ;;  %vm1529_vm0 = vcmp.lt.s32.totalorder %v7053_v21, 3  ;;  %v7091_v27 = vshll.u32 %v1503_v39, 8 }
 0x171   :  { %vm1528_vm11 = vcmp.lt.s32.totalorder %v7053_v21, 2  ;;  %vm1530_vm5 = vcmp.lt.s32.totalorder %v7053_v21, 4  ;;  %v1539_v47 = vsel %vm1527_vm13, %v7072_v37, %v1520_v24  ;;  %v2577_v53 = vshrl.u32 %v2576_v49, 23 }
 0x172   :  { %v2210_v13 = vadd.s32 536870912, %v7077_v4  ;;  %v1535_v12 = vsel %vm1527_vm13, %v7079_v7, %v7072_v37  ;;  %v1536_v23 = vsel %vm1530_vm5, %v1523_v29, 920167782  ;;  %v1540_v51 = vsel %vm1530_vm5, %v1526_v44, 1326507024  ;;  %v9307_v44 = vld [vmem:[#allocation32_spill] sm:$0xff] }
 0x173   :  { %v997_v60 = vand.u32 2147483647, %v7026_v22  ;;  %v999_v8 = vcvt.s32.f32 %v7022_v62  ;;  %v1537_v55 = vsel %vm1529_vm0, %v1520_v24, %v1536_v23  ;;  %v1541_v26 = vsel %vm1529_vm0, %v1523_v29, %v1540_v51 }
 0x174   :  { %v1925_v31 = vxor.u32 2147483648, %v7034_v15  ;;  %v2370_v54 = vsel %vm2368_vm14, %v2369_v14, %v7042_v40  ;;  %v1542_v62 = vsel %vm1528_vm11, %v1539_v47, %v1541_v26  ;;  %v1544_v22 = vand.u32 65535, %v7091_v27 }
 0x175   :  { %v1764_v39 = vadd.s32 127, %v1763_v57  ;;  %v7128_v48 = vsel %vm1528_vm11, %v1535_v12, %v1537_v55  ;;  %v1547_v50 = vshrl.u32 %v1542_v62, 16  ;;  %v4709_v33 = vadd.s32 4294967169, %v2577_v53 }
 0x176   :  { %v1760_v49 = vshll.u32 %v6844_v9, %v7036_v61  ;;  %v1761_v29 = vshrl.u32 %v7030_v6, %v1759_v10  ;;  %v1137_v19 = vsub.s32 0, %v7085_v45  ;;  %v7134_v14 = vshrl.u32 %v2210_v13, 30 }
 0x177   :  { %v7140_v57 = vsel %vm7063_vm4, %v9299_v43, %v9307_v44  ;;  %v7147_v47 = vsel %vm9175_vm9, %v1309_v63, %v6983_v30  ;;  %vm1136_vm2 = vcmp.lt.s32.totalorder %v7085_v45, 0  ;;  %v2371_v9 = vclz %v2370_v54 }
 0x178   :  { %9306 = vst [vmem:[#allocation29_spill] sm:$0xff] %v7134_v14  ;;  %v7150_v6 = vmul.f32 %v999_v8, %v997_v60  ;;  %v1546_v61 = vand.u32 65535, %v1542_v62  ;;  %v7152_v10 = vmul.u32 %v1547_v50, %v1544_v22  ;;  %v1569_v53 = vshrl.u32 %v7128_v48, 16 }
 0x179   :  { %v7158_v13 = vsel %vm9177_vm15, %v1925_v31, %v7034_v15  ;;  %v1765_v12 = vshll.u32 %v1764_v39, 23  ;;  %v1545_v23 = vshrl.u32 %v7091_v27, 16  ;;  %v2583_v30 = vadd.s32 1, %v4709_v33 }
 0x17a   :  { %9308 = vst [vmem:[#allocation35_spill] sm:$0xff] %v7150_v6  ;;  %v7161_v63 = vor.u32 %v1761_v29, %v1760_v49  ;;  %v1138_v51 = vsel %vm1136_vm2, %v1137_v19, %v7085_v45  ;;  %v2212_v60 = vshll.u32 %v7134_v14, 30  ;;  %v9157_v8 = vand.u32 2147483647, %v7048_v11 }
 0x17b   :  { %v7168_v55 = vadd.s32 %v6861_v34, %v6925_v25  ;;  %v4704_v26 = vadd.s32 4294967294, %v2371_v9  ;;  %v1511_v15 = vshrl.u32 %v9212_v16, %v7045_v46  ;;  %v1568_v31 = vand.u32 65535, %v7128_v48 }
 0x17c   :  { %v1532_v54 = vsel %vm1530_vm5, %v1520_v24, 2102212464  ;;  %v1548_v62 = vmul.u32 %v1546_v61, %v1544_v22  ;;  %v1552_v39 = vshll.u32 %v7152_v10, 16  ;;  %v7176_v33 = vmul.u32 %v1569_v53, %v1544_v22 }
 0x17d   :  { %v7178_v49 = vor.u32 4788187, %v1765_v12  ;;  %v1139_v29 = vclz %v1138_v51  ;;  %v7180_v19 = vmul.u32 %v1546_v61, %v1545_v23  ;;  %vm2584_vm1 = vcmp.gt.s32.totalorder %v2583_v30, 0 }
 0x17e   :  { %v7184_v25 = vsub.s32 %v7077_v4, %v2212_v60  ;;  %v2580_v46 = vand.u32 8388607, %v9157_v8  ;;  %v7189_v24 = vmul.f32 0.31415927, %v7003_v36  ;;  %vm4705_vm8 = vcmp.lt.s32.totalorder %v4704_v26, 0 }
 0x17f   :  { %v1531_v48 = vsel %vm1527_vm13, %v1511_v15, %v7079_v7  ;;  %v1533_v44 = vsel %vm1529_vm0, %v7072_v37, %v1532_v54  ;;  %v1570_v9 = vmul.u32 %v1568_v31, %v1544_v22  ;;  %vm1556_vm14 = vc.u32 %v1548_v62, %v1552_v39 }
 0x180   :  { %v7197_v61 = vmul.u32 %v1568_v31, %v1545_v23  ;;  %v1574_v4 = vshll.u32 %v7176_v33, 16  ;;  %v2585_v12 = vsel %vm2584_vm1, %v2583_v30, 0  ;;  %v7200_v51 = vadd.s32 4294967294, %v1139_v29 }
 0x181   :  { %v1554_v36 = vshll.u32 %v7180_v19, 16  ;;  %v1558_v60 = vadd.s32 %v1552_v39, %v1548_v62  ;;  %v2587_v17 = vand.u32 31, %v2585_v12  ;;  %v7203_v34 = vsel %vm4705_vm8, 0, %v4704_v26 }
 0x182   :  { %v2581_v15 = vor.u32 8388608, %v2580_v46  ;;  %v7209_v22 = vsel %vm1528_vm11, %v1531_v48, %v1533_v44  ;;  %v1551_v31 = vmul.u32 %v1547_v50, %v1545_v23  ;;  %v1557_v30 = vsel %vm1556_vm14, 1, %v9211_v59 }
 0x183   :  { %v2588_v54 = vsub.s32 32, %v2587_v17  ;;  %v1576_v29 = vshll.u32 %v7197_v61, 16  ;;  %vm1578_vm13 = vc.u32 %v1570_v9, %v1574_v4  ;;  %v1580_v62 = vadd.s32 %v1574_v4, %v1570_v9 }
 0x184   :  { %v2590_v26 = vshll.u32 %v9212_v16, %v2587_v17  ;;  %vm1560_vm0 = vc.u32 %v1558_v60, %v1554_v36  ;;  %v1573_v39 = vmul.u32 %v1569_v53, %v1545_v23  ;;  %v2593_v46 = vshll.u32 %v9225_v0, %v2587_v17 }
 0x185   :  { %v2596_v8 = vshll.u32 %v9297_v3, %v2587_v17  ;;  %v7216_v7 = vshrl.u32 %v2585_v12, 5  ;;  %v2591_v21 = vshrl.u32 %v9225_v0, %v2588_v54  ;;  %v2594_v50 = vshrl.u32 %v9297_v3, %v2588_v54 }
 0x186   :  { %v2597_v48 = vshrl.u32 %v9298_v20, %v2588_v54  ;;  %v1559_v44 = vadd.s32 %v1557_v30, %v1551_v31  ;;  %v1579_v37 = vsel %vm1578_vm13, 1, %v9211_v59  ;;  %v2599_v9 = vshll.u32 %v9298_v20, %v2587_v17 }
 0x187   :  { %v2600_v4 = vshrl.u32 %v9209_v52, %v2588_v54  ;;  %v1561_v53 = vsel %vm1560_vm0, 1, %v9211_v59  ;;  %vm1582_vm11 = vc.u32 %v1580_v62, %v1576_v29  ;;  %v2592_v23 = vor.u32 %v2591_v21, %v2590_v26 }
 0x188   :  { %v7225_v36 = vshll.u32 %v2581_v15, 8  ;;  %v1553_v12 = vshrl.u32 %v7152_v10, 16  ;;  %v2595_v60 = vor.u32 %v2594_v50, %v2593_v46  ;;  %v2598_v1 = vor.u32 %v2597_v48, %v2596_v8 }
 0x189   :  { %v2601_v56 = vor.u32 %v2600_v4, %v2599_v9  ;;  %v1581_v43 = vadd.s32 %v1579_v37, %v1573_v39  ;;  %v2602_v31 = vshll.u32 %v9209_v52, %v2587_v17  ;;  %v2603_v30 = vshrl.u32 %v9210_v18, %v2588_v54 }
 0x18a   :  { %vm2605_vm5 = vcmp.lt.s32.totalorder %v7216_v7, 1  ;;  %v1563_v14 = vadd.s32 %v1561_v53, %v1559_v44  ;;  %v1583_v35 = vsel %vm1582_vm11, 1, %v9211_v59  ;;  %vm2607_vm2 = vcmp.lt.s32.totalorder %v7216_v7, 3 }
 0x18b   :  { %vm2608_vm1 = vcmp.lt.s32.totalorder %v7216_v7, 4  ;;  %v1555_v15 = vshrl.u32 %v7180_v19, 16  ;;  %v2604_v10 = vor.u32 %v2603_v30, %v2602_v31  ;;  %vm2606_vm8 = vcmp.lt.s32.totalorder %v7216_v7, 2 }
 0x18c   :  { %v2613_v8 = vsel %vm2605_vm5, %v2592_v23, %v2595_v60  ;;  %v1575_v17 = vshrl.u32 %v7176_v33, 16  ;;  %v2614_v37 = vsel %vm2608_vm1, %v2601_v56, 920167782  ;;  %v2617_v26 = vsel %vm2605_vm5, %v2595_v60, %v2598_v1 }
 0x18d   :  { %v2622_v39 = vand.u32 65535, %v7225_v36  ;;  %v1585_v46 = vadd.s32 %v1583_v35, %v1581_v43  ;;  %v2615_v19 = vsel %vm2607_vm2, %v2598_v1, %v2614_v37  ;;  %v2618_v21 = vsel %vm2608_vm1, %v2604_v10, 1326507024 }
 0x18e   :  { %v2623_v50 = vshrl.u32 %v7225_v36, 16  ;;  %v1564_v48 = vadd.s32 %v1563_v14, %v1553_v12  ;;  %v1577_v33 = vshrl.u32 %v7197_v61, 16  ;;  %v2616_v44 = vsel %vm2606_vm8, %v2613_v8, %v2615_v19 }
 0x18f   :  { %v2619_v9 = vsel %vm2607_vm2, %v2601_v56, %v2618_v21  ;;  %v7254_v4 = vadd.s32 %v1580_v62, %v1576_v29  ;;  %v2646_v43 = vand.u32 65535, %v2616_v44  ;;  %v2647_v53 = vshrl.u32 %v2616_v44, 16 }
 0x190   :  { %v2620_v35 = vsel %vm2606_vm8, %v2617_v26, %v2619_v9  ;;  %v2589_v31 = vshrl.u32 %v9212_v16, %v2588_v54  ;;  %v1586_v61 = vadd.s32 %v1585_v46, %v1575_v17  ;;  %vm2214_vm14 = vcmp.lt.s32.totalorder %v7184_v25, 0 }
 0x191   :  { %v2624_v30 = vand.u32 65535, %v2620_v35  ;;  %v2625_v10 = vshrl.u32 %v2620_v35, 16  ;;  %v2648_v12 = vmul.u32 %v2646_v43, %v2622_v39  ;;  %v2649_v37 = vmul.u32 %v2647_v53, %v2622_v39 }
 0x192   :  { %v2650_v8 = vmul.u32 %v2646_v43, %v2623_v50  ;;  %v9309_v19 = vand.u32 2139095040, %v7189_v24  ;;  %v7263_v21 = vadd.s32 %v1564_v48, %v1555_v15  ;;  %v2610_v54 = vsel %vm2608_vm1, %v2598_v1, 2102212464 }
 0x193   :  { %v2626_v56 = vmul.u32 %v2624_v30, %v2622_v39  ;;  %v2627_v29 = vmul.u32 %v2625_v10, %v2622_v39  ;;  %v2628_v62 = vmul.u32 %v2624_v30, %v2623_v50  ;;  %v2652_v44 = vshll.u32 %v2649_v37, 16 }
 0x194   :  { %v1961_v26 = vshrl.u32 %v9309_v19, 23  ;;  %v2654_v9 = vshll.u32 %v2650_v8, 16  ;;  %vm4681_vm13 = vcmp.lt.s32.totalorder %v7200_v51, 0  ;;  %v2629_v17 = vmul.u32 %v2625_v10, %v2623_v50 }
 0x195   :  { %v2630_v46 = vshll.u32 %v2627_v29, 16  ;;  %v2632_v35 = vshll.u32 %v2628_v62, 16  ;;  %v2651_v43 = vmul.u32 %v2647_v53, %v2623_v50  ;;  %v1587_v14 = vadd.s32 %v1586_v61, %v1577_v33 }
 0x196   :  { %v2609_v39 = vsel %vm2605_vm5, %v2589_v31, %v2592_v23  ;;  %vm2656_vm0 = vc.u32 %v2648_v12, %v2652_v44  ;;  %v2658_v30 = vadd.s32 %v2652_v44, %v2648_v12  ;;  %v2611_v15 = vsel %vm2607_vm2, %v2595_v60, %v2610_v54 }
 0x197   :  { %vm2634_vm11 = vc.u32 %v2626_v56, %v2630_v46  ;;  %v2636_v48 = vadd.s32 %v2630_v46, %v2626_v56  ;;  %v4697_v1 = vadd.s32 4294967169, %v1961_v26  ;;  %v2653_v5 = vshrl.u32 %v2649_v37, 16 }
 0x198   :  { %v2635_v19 = vsel %vm2634_vm11, 1, %v9211_v59  ;;  %v2657_v10 = vsel %vm2656_vm0, 1, %v9211_v59  ;;  %vm2660_vm1 = vc.u32 %v2658_v30, %v2654_v9  ;;  %v2631_v6 = vshrl.u32 %v2627_v29, 16 }
 0x199   :  { %v2637_v50 = vadd.s32 %v2635_v19, %v2629_v17  ;;  %vm2638_vm12 = vc.u32 %v2636_v48, %v2632_v35  ;;  %v2659_v33 = vadd.s32 %v2657_v10, %v2651_v43  ;;  %v1591_v53 = vadd.s32 1, %v1587_v14 }
 0x19a   :  { %v2633_v23 = vshrl.u32 %v2628_v62, 16  ;;  %v2639_v31 = vsel %vm2638_vm12, 1, %v9211_v59  ;;  %v2661_v61 = vsel %vm2660_vm1, 1, %v9211_v59  ;;  %v2655_v12 = vshrl.u32 %v2650_v8, 16 }
 0x19b   :  { %v2641_v60 = vadd.s32 %v2639_v31, %v2637_v50  ;;  %v2663_v56 = vadd.s32 %v2661_v61, %v2659_v33  ;;  %v1967_v26 = vadd.s32 1, %v4697_v1  ;;  %v2359_v37 = vadd.s32 %v6908_v58, %v6915_v38 }
 0x19c   :  { %v2375_v54 = vsub.s32 32, %v7203_v34  ;;  %vm1590_vm5 = vc.u32 %v7263_v21, %v7254_v4  ;;  %v2612_v29 = vsel %vm2606_vm8, %v2609_v39, %v2611_v15  ;;  %v7283_v44 = vadd.s32 %v2658_v30, %v2654_v9 }
 0x19d   :  { %v2642_v62 = vadd.s32 %v2641_v60, %v2631_v6  ;;  %v2664_v17 = vadd.s32 %v2663_v56, %v2653_v5  ;;  %vm1968_vm12 = vcmp.gt.s32.totalorder %v1967_v26, 0  ;;  %v2379_v8 = vsub.s32 4294967266, %v7203_v34 }
 0x19e   :  { %v9310_v46 = vsub.s32 0, %v7184_v25  ;;  %v1588_v38 = vmul.u32 %v7091_v27, %v7209_v22  ;;  %v1969_v35 = vsel %vm1968_vm12, %v1967_v26, 0  ;;  %v1592_v43 = vsel %vm1590_vm5, %v1591_v53, %v1587_v14 }
 0x19f   :  { %v7293_v7 = vadd.s32 %v2642_v62, %v2633_v23  ;;  %v2665_v6 = vadd.s32 %v2664_v17, %v2655_v12  ;;  %v9311_v9 = vand.u32 2147483647, %v7189_v24  ;;  %v7301_v30 = vsel %vm4681_vm13, 0, %v7200_v51 }
 0x1a0   :  { %v2216_v58 = vsel %vm2214_vm14, %v9310_v46, %v7184_v25  ;;  %v2666_v15 = vmul.u32 %v7225_v36, %v2612_v29  ;;  %v1971_v48 = vand.u32 31, %v1969_v35  ;;  %v2376_v27 = vshll.u32 %v7042_v40, %v7203_v34 }
 0x1a1   :  { %v1964_v5 = vand.u32 8388607, %v9311_v9  ;;  %v2377_v22 = vshrl.u32 %v2359_v37, %v2375_v54  ;;  %vm2668_vm2 = vc.u32 %v7293_v7, %v7283_v44  ;;  %v2669_v14 = vadd.s32 1, %v2665_v6 }
 0x1a2   :  { %v2380_v1 = vadd.s32 127, %v2379_v8  ;;  %v2217_v19 = vclz %v2216_v58  ;;  %v7308_v10 = vadd.s32 %v1592_v43, %v1588_v38  ;;  %v7310_v50 = vsub.s32 32, %v1971_v48 }
 0x1a3   :  { %v2670_v33 = vsel %vm2668_vm2, %v2669_v14, %v2665_v6  ;;  %v1965_v51 = vor.u32 8388608, %v1964_v5  ;;  %v1974_v53 = vshll.u32 %v9212_v16, %v1971_v48  ;;  %v1977_v36 = vshll.u32 %v9225_v0, %v1971_v48 }
 0x1a4   :  { %v2671_v23 = vadd.s32 %v2670_v33, %v2666_v15  ;;  %v7314_v31 = vshrl.u32 %v1969_v35, 5  ;;  %v1980_v40 = vshll.u32 %v9297_v3, %v1971_v48  ;;  %v1983_v34 = vshll.u32 %v9298_v20, %v1971_v48 }
 0x1a5   :  { %v1975_v61 = vshrl.u32 %v9225_v0, %v7310_v50  ;;  %v1978_v60 = vshrl.u32 %v9297_v3, %v7310_v50  ;;  %v1981_v12 = vshrl.u32 %v9298_v20, %v7310_v50  ;;  %v1984_v56 = vshrl.u32 %v9209_v52, %v7310_v50 }
 0x1a6   :  { %v7326_v26 = vor.u32 %v2377_v22, %v2376_v27  ;;  %v2381_v37 = vshll.u32 %v2380_v1, 23  ;;  %v4701_v54 = vadd.s32 4294967294, %v2217_v19  ;;  %v2672_v29 = vadd.s32 536870912, %v2671_v23 }
 0x1a7   :  { %v1594_v62 = vadd.s32 536870912, %v7308_v10  ;;  %v7329_v17 = vor.u32 %v1975_v61, %v1974_v53  ;;  %v7331_v8 = vor.u32 %v1978_v60, %v1977_v36  ;;  %v1986_v46 = vshll.u32 %v9209_v52, %v1971_v48 }
 0x1a8   :  { %v7334_v58 = vshrl.u32 %v2672_v29, 30  ;;  %v1982_v38 = vor.u32 %v1981_v12, %v1980_v40  ;;  %v1985_v35 = vor.u32 %v1984_v56, %v1983_v34  ;;  %vm1989_vm8 = vcmp.lt.s32.totalorder %v7314_v31, 1 }
 0x1a9   :  { %v1987_v43 = vshrl.u32 %v9210_v18, %v7310_v50  ;;  %vm1991_vm14 = vcmp.lt.s32.totalorder %v7314_v31, 3  ;;  %vm1992_vm13 = vcmp.lt.s32.totalorder %v7314_v31, 4  ;;  %v7341_v6 = vshll.u32 %v1965_v51, 8 }
 0x1aa   :  { %9312 = vst [vmem:[#allocation10_spill] sm:$0xff] %v7334_v58  ;;  %v7344_v5 = vor.u32 4788187, %v2381_v37  ;;  %v2674_v15 = vshll.u32 %v7334_v58, 30  ;;  %vm1990_vm0 = vcmp.lt.s32.totalorder %v7314_v31, 2  ;;  %v7348_v48 = vshrl.u32 %v1594_v62, 30 }
 0x1ab   :  { %v1988_v27 = vor.u32 %v1987_v43, %v1986_v46  ;;  %v1997_v22 = vsel %vm1989_vm8, %v7329_v17, %v7331_v8  ;;  %v1998_v14 = vsel %vm1992_vm13, %v1985_v35, 920167782  ;;  %vm4702_vm11 = vcmp.lt.s32.totalorder %v4701_v54, 0 }
 0x1ac   :  { %9313 = vst [vmem:[#allocation20_spill] sm:$0xff] %v7348_v48  ;;  %v7357_v19 = vsub.s32 %v2671_v23, %v2674_v15  ;;  %v1999_v33 = vsel %vm1991_vm14, %v1982_v38, %v1998_v14  ;;  %v2001_v53 = vsel %vm1989_vm8, %v7331_v8, %v1982_v38  ;;  %v2006_v40 = vand.u32 65535, %v7341_v6 }
 0x1ad   :  { %v2000_v51 = vsel %vm1990_vm0, %v1997_v22, %v1999_v33  ;;  %v2002_v36 = vsel %vm1992_vm13, %v1988_v27, 1326507024  ;;  %v2007_v61 = vshrl.u32 %v7341_v6, 16  ;;  %v1596_v60 = vshll.u32 %v7348_v48, 30 }
 0x1ae   :  { %vm2676_vm1 = vcmp.lt.s32.totalorder %v7357_v19, 0  ;;  %v2677_v23 = vsub.s32 0, %v7357_v19  ;;  %v2003_v34 = vsel %vm1991_vm14, %v1985_v35, %v2002_v36  ;;  %v2030_v56 = vand.u32 65535, %v2000_v51 }
 0x1af   :  { %v2004_v12 = vsel %vm1990_vm0, %v2001_v53, %v2003_v34  ;;  %v2031_v37 = vshrl.u32 %v2000_v51, 16  ;;  %v7378_v29 = vsel %vm4702_vm11, 0, %v4701_v54  ;;  %v2383_v15 = vand.u32 2147483647, %v7344_v5 }
 0x1b0   :  { %v2678_v62 = vsel %vm2676_vm1, %v2677_v23, %v7357_v19  ;;  %v2008_v46 = vand.u32 65535, %v2004_v12  ;;  %v2009_v43 = vshrl.u32 %v2004_v12, 16  ;;  %v2032_v35 = vmul.u32 %v2030_v56, %v2006_v40 }
 0x1b1   :  { %v2679_v27 = vclz %v2678_v62  ;;  %v2033_v22 = vmul.u32 %v2031_v37, %v2006_v40  ;;  %v2034_v39 = vmul.u32 %v2030_v56, %v2007_v61  ;;  %v2225_v53 = vsub.s32 4294967266, %v7378_v29 }
 0x1b2   :  { %v2010_v14 = vmul.u32 %v2008_v46, %v2006_v40  ;;  %v2011_v33 = vmul.u32 %v2009_v43, %v2006_v40  ;;  %v2012_v36 = vmul.u32 %v2008_v46, %v2007_v61  ;;  %v7384_v51 = vsub.s32 %v7308_v10, %v1596_v60 }
 0x1b3   :  { %v4710_v54 = vadd.s32 4294967294, %v2679_v27  ;;  %v2036_v34 = vshll.u32 %v2033_v22, 16  ;;  %v2013_v9 = vmul.u32 %v2009_v43, %v2007_v61  ;;  %v2035_v12 = vmul.u32 %v2031_v37, %v2007_v61 }
 0x1b4   :  { %v2014_v23 = vshll.u32 %v2011_v33, 16  ;;  %v2016_v1 = vshll.u32 %v2012_v36, 16  ;;  %v1973_v5 = vshrl.u32 %v9212_v16, %v7310_v50  ;;  %v7389_v40 = vmul.f32 0.31415927, %v7116_v28 }
 0x1b5   :  { %vm4711_vm5 = vcmp.lt.s32.totalorder %v4710_v54, 0  ;;  %vm2040_vm12 = vc.u32 %v2032_v35, %v2036_v34  ;;  %v2038_v62 = vshll.u32 %v2034_v39, 16  ;;  %v1994_v46 = vsel %vm1992_vm13, %v1982_v38, 2102212464 }
 0x1b6   :  { %vm2018_vm2 = vc.u32 %v2010_v14, %v2014_v23  ;;  %v2020_v56 = vadd.s32 %v2014_v23, %v2010_v14  ;;  %v2041_v10 = vsel %vm2040_vm12, 1, %v9211_v59  ;;  %v2682_v60 = vsel %vm4711_vm5, 0, %v4710_v54 }
 0x1b7   :  { %v2015_v43 = vshrl.u32 %v2011_v33, 16  ;;  %v2019_v61 = vsel %vm2018_vm2, 1, %v9211_v59  ;;  %v2042_v27 = vadd.s32 %v2036_v34, %v2032_v35  ;;  %v2043_v50 = vadd.s32 %v2041_v10, %v2035_v12 }
 0x1b8   :  { %v2021_v37 = vadd.s32 %v2019_v61, %v2013_v9  ;;  %vm2022_vm11 = vc.u32 %v2020_v56, %v2016_v1  ;;  %v1993_v28 = vsel %vm1989_vm8, %v1973_v5, %v7329_v17  ;;  %v2419_v23 = vand.u32 2147483647, %v7389_v40 }
 0x1b9   :  { %v2023_v14 = vsel %vm2022_vm11, 1, %v9211_v59  ;;  %v2422_v54 = vand.u32 2139095040, %v7389_v40  ;;  %v2017_v48 = vshrl.u32 %v2012_v36, 16  ;;  %v2037_v38 = vshrl.u32 %v2033_v22, 16 }
 0x1ba   :  { %v2025_v58 = vadd.s32 %v2023_v14, %v2021_v37  ;;  %vm2044_vm13 = vc.u32 %v2042_v27, %v2038_v62  ;;  %v2687_v33 = vsub.s32 4294967266, %v2682_v60  ;;  %v1995_v9 = vsel %vm1991_vm14, %v7331_v8, %v1994_v46 }
 0x1bb   :  { %v2045_v1 = vsel %vm2044_vm13, 1, %v9211_v59  ;;  %v2423_v35 = vshrl.u32 %v2422_v54, 23  ;;  %vm1598_vm8 = vcmp.lt.s32.totalorder %v7384_v51, 0  ;;  %v2039_v34 = vshrl.u32 %v2034_v39, 16 }
 0x1bc   :  { %v2026_v17 = vadd.s32 %v2025_v58, %v2015_v43  ;;  %v2047_v12 = vadd.s32 %v2045_v1, %v2043_v50  ;;  %v1599_v5 = vsub.s32 0, %v7384_v51  ;;  %v2667_v36 = vadd.s32 %v7283_v44, %v7293_v7  ;;  %v9315_v1 = vld [vmem:[#allocation24_spill] sm:$0xff] }
 0x1bd   :  { %v7409_v22 = vadd.s32 %v2042_v27, %v2038_v62  ;;  %v4706_v56 = vadd.s32 4294967169, %v2423_v35  ;;  %v2683_v10 = vsub.s32 32, %v2682_v60  ;;  %v1996_v8 = vsel %vm1990_vm0, %v1993_v28, %v1995_v9 }
 0x1be   :  { %v7413_v46 = vadd.s32 %v2026_v17, %v2017_v48  ;;  %v2048_v61 = vadd.s32 %v2047_v12, %v2037_v38  ;;  %v2205_v58 = vadd.s32 %v7015_v41, %v7013_v2  ;;  %v2688_v39 = vadd.s32 127, %v2687_v33 }
 0x1bf   :  { %v2426_v43 = vand.u32 8388607, %v2419_v23  ;;  %v2429_v37 = vadd.s32 1, %v4706_v56  ;;  %v9314_v44 = vcvt.s32.f32 %v7326_v26  ;;  %v2221_v62 = vsub.s32 32, %v7378_v29 }
 0x1c0   :  { %v7424_v27 = vadd.s32 127, %v2225_v53  ;;  %v2049_v31 = vadd.s32 %v2048_v61, %v2039_v34  ;;  %v1600_v48 = vsel %vm1598_vm8, %v1599_v5, %v7384_v51  ;;  %v2050_v2 = vmul.u32 %v7341_v6, %v1996_v8 }
 0x1c1   :  { %v7421_v7 = vmul.f32 %v9314_v44, %v2383_v15  ;;  %vm2052_vm14 = vc.u32 %v7413_v46, %v7409_v22  ;;  %vm2430_vm0 = vcmp.gt.s32.totalorder %v2429_v37, 0  ;;  %v2684_v41 = vshll.u32 %v7357_v19, %v2682_v60 }
 0x1c2   :  { %v2685_v26 = vshrl.u32 %v2667_v36, %v2683_v10  ;;  %v2053_v15 = vadd.s32 1, %v2049_v31  ;;  %v2431_v50 = vsel %vm2430_vm0, %v2429_v37, 0  ;;  %v1147_v28 = vsub.s32 4294967266, %v7301_v30 }
 0x1c3   :  { %v2689_v53 = vshll.u32 %v2688_v39, 23  ;;  %v2427_v14 = vor.u32 8388608, %v2426_v43  ;;  %v2433_v54 = vand.u32 31, %v2431_v50  ;;  %v2387_v38 = vxor.u32 2147483648, %v7421_v7 }
 0x1c4   :  { %v2222_v33 = vshll.u32 %v7184_v25, %v7378_v29  ;;  %v2223_v6 = vshrl.u32 %v2205_v58, %v2221_v62  ;;  %v2054_v9 = vsel %vm2052_vm14, %v2053_v15, %v2049_v31  ;;  %vm2267_vm1 = vcmp.lt.s32.totalorder %v9315_v1, 0 }
 0x1c5   :  { %v2227_v35 = vshll.u32 %v7424_v27, 23  ;;  %v1601_v19 = vclz %v1600_v48  ;;  %v2055_v60 = vadd.s32 %v2054_v9, %v2050_v2  ;;  %v7439_v17 = vsub.s32 32, %v2433_v54 }
 0x1c6   :  { %v2686_v34 = vor.u32 %v2685_v26, %v2684_v41  ;;  %v7441_v12 = vshrl.u32 %v2431_v50, 5  ;;  %v2436_v5 = vshll.u32 %v9212_v16, %v2433_v54  ;;  %v2439_v36 = vshll.u32 %v9225_v0, %v2433_v54 }
 0x1c7   :  { %v2690_v56 = vor.u32 4788187, %v2689_v53  ;;  %v2056_v10 = vadd.s32 536870912, %v2055_v60  ;;  %v2437_v25 = vshrl.u32 %v9225_v0, %v7439_v17  ;;  %v7447_v29 = vshll.u32 %v2427_v14, 8 }
 0x1c8   :  { %v2440_v8 = vshrl.u32 %v9297_v3, %v7439_v17  ;;  %v2442_v61 = vshll.u32 %v9297_v3, %v2433_v54  ;;  %v2443_v58 = vshrl.u32 %v9298_v20, %v7439_v17  ;;  %v2445_v39 = vshll.u32 %v9298_v20, %v2433_v54 }
 0x1c9   :  { %v7455_v43 = vshrl.u32 %v2056_v10, 30  ;;  %v7457_v37 = vor.u32 %v2437_v25, %v2436_v5  ;;  %v2446_v44 = vshrl.u32 %v9209_v52, %v7439_v17  ;;  %v2448_v0 = vshll.u32 %v9209_v52, %v2433_v54 }
 0x1ca   :  { %v7462_v62 = vor.u32 %v2440_v8, %v2439_v36  ;;  %v2444_v27 = vor.u32 %v2443_v58, %v2442_v61  ;;  %v2449_v3 = vshrl.u32 %v9210_v18, %v7439_v17  ;;  %vm2451_vm5 = vcmp.lt.s32.totalorder %v7441_v12, 1 }
 0x1cb   :  { %v4689_v31 = vadd.s32 4294967294, %v1601_v19  ;;  %v2058_v20 = vshll.u32 %v7455_v43, 30  ;;  %v2447_v48 = vor.u32 %v2446_v44, %v2445_v39  ;;  %vm2453_vm12 = vcmp.lt.s32.totalorder %v7441_v12, 3 }
 0x1cc   :  { %v2450_v2 = vor.u32 %v2449_v3, %v2448_v0  ;;  %vm2452_vm2 = vcmp.lt.s32.totalorder %v7441_v12, 2  ;;  %vm2454_vm11 = vcmp.lt.s32.totalorder %v7441_v12, 4  ;;  %v2459_v52 = vsel %vm2451_vm5, %v7457_v37, %v7462_v62 }
 0x1cd   :  { %v2691_v41 = vand.u32 2147483647, %v2690_v56  ;;  %v2693_v18 = vcvt.s32.f32 %v2686_v34  ;;  %v7475_v26 = vsub.s32 %v2055_v60, %v2058_v20  ;;  %v2460_v15 = vsel %vm2454_vm11, %v2447_v48, 920167782 }
 0x1ce   :  { %v2461_v50 = vsel %vm2453_vm12, %v2444_v27, %v2460_v15  ;;  %v2463_v53 = vsel %vm2451_vm5, %v7462_v62, %v2444_v27  ;;  %v2464_v14 = vsel %vm2454_vm11, %v2450_v2, 1326507024  ;;  %v2468_v54 = vand.u32 65535, %v7447_v29 }
 0x1cf   :  { %vm2060_vm13 = vcmp.lt.s32.totalorder %v7475_v26, 0  ;;  %v2061_v9 = vsub.s32 0, %v7475_v26  ;;  %v2462_v19 = vsel %vm2452_vm2, %v2459_v52, %v2461_v50  ;;  %v2469_v60 = vshrl.u32 %v7447_v29, 16 }
 0x1d0   :  { %v7495_v34 = vsel %vm2267_vm1, %v2387_v38, %v7421_v7  ;;  %v2465_v5 = vsel %vm2453_vm12, %v2447_v48, %v2464_v14  ;;  %v2492_v36 = vand.u32 65535, %v2462_v19  ;;  %v2493_v56 = vshrl.u32 %v2462_v19, 16 }
 0x1d1   :  { %v7499_v10 = vor.u32 %v2223_v6, %v2222_v33  ;;  %v7501_v25 = vmul.f32 %v2693_v18, %v2691_v41  ;;  %v2062_v8 = vsel %vm2060_vm13, %v2061_v9, %v7475_v26  ;;  %v2466_v61 = vsel %vm2452_vm2, %v2463_v53, %v2465_v5 }
 0x1d2   :  { %vm4690_vm8 = vcmp.lt.s32.totalorder %v4689_v31, 0  ;;  %v2063_v58 = vclz %v2062_v8  ;;  %v2470_v39 = vand.u32 65535, %v2466_v61  ;;  %v2471_v44 = vshrl.u32 %v2466_v61, 16 }
 0x1d3   :  { %v7506_v7 = vor.u32 4788187, %v2227_v35  ;;  %v2494_v38 = vmul.u32 %v2492_v36, %v2468_v54  ;;  %v2495_v0 = vmul.u32 %v2493_v56, %v2468_v54  ;;  %v2496_v3 = vmul.u32 %v2492_v36, %v2469_v60 }
 0x1d4   :  { %v4698_v20 = vadd.s32 4294967294, %v2063_v58  ;;  %v2472_v48 = vmul.u32 %v2470_v39, %v2468_v54  ;;  %v2473_v33 = vmul.u32 %v2471_v44, %v2468_v54  ;;  %v2474_v6 = vmul.u32 %v2470_v39, %v2469_v60 }
 0x1d5   :  { %v7508_v2 = vsel %vm4690_vm8, 0, %v4689_v31  ;;  %v2695_v52 = vxor.u32 2147483648, %v7501_v25  ;;  %v2051_v41 = vadd.s32 %v7409_v22, %v7413_v46  ;;  %v2498_v18 = vshll.u32 %v2495_v0, 16 }
 0x1d6   :  { %vm2575_vm14 = vcmp.lt.s32.totalorder %v7048_v11, 0  ;;  %vm4699_vm0 = vcmp.lt.s32.totalorder %v4698_v20, 0  ;;  %v2475_v35 = vmul.u32 %v2471_v44, %v2469_v60  ;;  %v2476_v15 = vshll.u32 %v2473_v33, 16 }
 0x1d7   :  { %v2497_v50 = vmul.u32 %v2493_v56, %v2469_v60  ;;  %v2066_v53 = vsel %vm4699_vm0, 0, %v4698_v20  ;;  %v2478_v14 = vshll.u32 %v2474_v6, 16  ;;  %v2500_v9 = vshll.u32 %v2496_v3, 16 }
 0x1d8   :  { %vm2502_vm13 = vc.u32 %v2494_v38, %v2498_v18  ;;  %v2071_v54 = vsub.s32 4294967266, %v2066_v53  ;;  %v2435_v31 = vshrl.u32 %v9212_v16, %v7439_v17  ;;  %v2456_v19 = vsel %vm2454_vm11, %v2444_v27, 2102212464 }
 0x1d9   :  { %vm2480_vm8 = vc.u32 %v2472_v48, %v2476_v15  ;;  %v9316_v22 = vand.u32 2147483647, %v9315_v1  ;;  %v2482_v5 = vadd.s32 %v2476_v15, %v2472_v48  ;;  %v2503_v36 = vsel %vm2502_vm13, 1, %v9211_v59 }
 0x1da   :  { %v2481_v60 = vsel %vm2480_vm8, 1, %v9211_v59  ;;  %v2504_v56 = vadd.s32 %v2498_v18, %v2494_v38  ;;  %v2067_v8 = vsub.s32 32, %v2066_v53  ;;  %v2072_v61 = vadd.s32 127, %v2071_v54 }
 0x1db   :  { %vm7520_vm3 = vcmp.le.f32.partialorder %v9316_v22, 0.7853982  ;;  %v2483_v58 = vadd.s32 %v2481_v60, %v2475_v35  ;;  %v2505_v16 = vadd.s32 %v2503_v36, %v2497_v50  ;;  %v2477_v17 = vshrl.u32 %v2473_v33, 16 }
 0x1dc   :  { %vm2484_vm0 = vc.u32 %v2482_v5, %v2478_v14  ;;  %v2499_v27 = vshrl.u32 %v2495_v0, 16  ;;  %vm2506_vm11 = vc.u32 %v2504_v56, %v2500_v9  ;;  %v2455_v39 = vsel %vm2451_vm5, %v2435_v31, %v7457_v37 }
 0x1dd   :  { %v2457_v44 = vsel %vm2453_vm12, %v7462_v62, %v2456_v19  ;;  %v2485_v20 = vsel %vm2484_vm0, 1, %v9211_v59  ;;  %v2507_v38 = vsel %vm2506_vm11, 1, %v9211_v59  ;;  %v9319_v48 = vand.u32 2147483647, %v9305_v32 }
 0x1de   :  { %v2479_v0 = vshrl.u32 %v2474_v6, 16  ;;  %v2487_v33 = vadd.s32 %v2485_v20, %v2483_v58  ;;  %v2501_v35 = vshrl.u32 %v2496_v3, 16  ;;  %v2509_v15 = vadd.s32 %v2507_v38, %v2505_v16 }
 0x1df   :  { %vm7536_vm13 = vcmp.le.f32.partialorder %v9319_v48, 0.7853982  ;;  %v9322_v37 = vand.u32 2147483647, %v9304_v42  ;;  %v1609_v62 = vsub.s32 4294967266, %v7508_v2  ;;  %v2068_v59 = vshll.u32 %v7475_v26, %v2066_v53 }
 0x1e0   :  { %v2069_v14 = vshrl.u32 %v2051_v41, %v2067_v8  ;;  %v2073_v54 = vshll.u32 %v2072_v61, 23  ;;  %v2458_v31 = vsel %vm2452_vm2, %v2455_v39, %v2457_v44  ;;  %v2488_v19 = vadd.s32 %v2487_v33, %v2477_v17 }
 0x1e1   :  { %vm7542_vm5 = vcmp.le.f32.partialorder %v9322_v37, 0.7853982  ;;  %v7550_v6 = vadd.s32 %v2504_v56, %v2500_v9  ;;  %v2510_v3 = vadd.s32 %v2509_v15, %v2499_v27  ;;  %v2229_v22 = vand.u32 2147483647, %v7506_v7  ;;  %v9331_v15 = vld [vmem:[#allocation35_spill] sm:$0xff] }
 0x1e2   :  { %v2231_v60 = vcvt.s32.f32 %v7499_v10  ;;  %v1589_v5 = vadd.s32 %v7254_v4, %v7263_v21  ;;  %v9325_v36 = vand.u32 2147483647, %v7048_v11  ;;  %v1605_v12 = vsub.s32 32, %v7508_v2 }
 0x1e3   :  { %v2696_v41 = vsel %vm2575_vm14, %v2695_v52, %v7501_v25  ;;  %v7566_v53 = vadd.s32 %v2488_v19, %v2479_v0  ;;  %v2511_v7 = vadd.s32 %v2510_v3, %v2501_v35  ;;  %v1610_v9 = vadd.s32 127, %v1609_v62  ;;  %v9332_v62 = vld [vmem:[#allocation33_spill] sm:$0xff] }
 0x1e4   :  { %vm7558_vm12 = vcmp.le.f32.partialorder %v9325_v36, 0.7853982  ;;  %v2070_v10 = vor.u32 %v2069_v14, %v2068_v59  ;;  %v2074_v56 = vor.u32 4788187, %v2073_v54  ;;  %v2512_v4 = vmul.u32 %v7447_v29, %v2458_v31 }
 0x1e5   :  { %v1144_v21 = vshll.u32 %v7085_v45, %v7301_v30  ;;  %v1148_v8 = vadd.s32 127, %v1147_v28  ;;  %vm2514_vm2 = vc.u32 %v7566_v53, %v7550_v6  ;;  %v2515_v61 = vadd.s32 1, %v2511_v7 }
 0x1e6   :  { %v9328_v25 = vsub.s32 32, %v7301_v30  ;;  %v7582_v58 = vsel %vm7520_vm3, %v9315_v1, %v7495_v34  ;;  %v2232_v29 = vmul.f32 %v2231_v60, %v2229_v22  ;;  %v7587_v45 = vsel %vm7558_vm12, %v7048_v11, %v2696_v41 }
 0x1e7   :  { %v9329_v28 = vand.u32 2147483647, %v7178_v49  ;;  %v9330_v16 = vcvt.s32.f32 %v7161_v63  ;;  %v1607_v30 = vshrl.u32 %v1589_v5, %v1605_v12  ;;  %v2516_v27 = vsel %vm2514_vm2, %v2515_v61, %v2511_v7 }
 0x1e8   :  { %v1145_v52 = vshrl.u32 %v7168_v55, %v9328_v25  ;;  %v1606_v55 = vshll.u32 %v7384_v51, %v7508_v2  ;;  %v1611_v39 = vshll.u32 %v1610_v9, 23  ;;  %v2075_v34 = vand.u32 2147483647, %v2074_v56 }
 0x1e9   :  { %v7593_v17 = vmul.f32 %v9330_v16, %v9329_v28  ;;  %v2077_v44 = vcvt.s32.f32 %v2070_v10  ;;  %v2517_v20 = vadd.s32 %v2516_v27, %v2512_v4  ;;  %v7599_v38 = vmul.f32 %v7140_v57, %v7140_v57 }
 0x1ea   :  { %v1149_v48 = vshll.u32 %v1148_v8, 23  ;;  %v7603_v49 = vmul.f32 %v7582_v58, %v7582_v58  ;;  %v2701_v63 = vmul.f32 %v7587_v45, %v7587_v45  ;;  %v7611_v51 = vsel %vm7536_vm13, %v9305_v32, %v7158_v13 }
 0x1eb   :  { %v7613_v2 = vor.u32 %v1145_v52, %v1144_v21  ;;  %v2233_v0 = vxor.u32 2147483648, %v2232_v29  ;;  %v2518_v33 = vadd.s32 536870912, %v2517_v20  ;;  %v7619_v35 = vsel %vm7542_vm5, %v9304_v42, %v7147_v47 }
 0x1ec   :  { %v1001_v37 = vxor.u32 2147483648, %v9331_v15  ;;  %vm2113_vm8 = vcmp.lt.s32.totalorder %v9332_v62, 0  ;;  %v1608_v59 = vor.u32 %v1607_v30, %v1606_v55  ;;  %v1771_v14 = vxor.u32 2147483648, %v7593_v17 }
 0x1ed   :  { %v1612_v54 = vor.u32 4788187, %v1611_v39  ;;  %v2078_v13 = vmul.f32 %v2077_v44, %v2075_v34  ;;  %v7624_v31 = vshrl.u32 %v2518_v33, 30  ;;  %v7628_v19 = vmul.f32 %v7611_v51, %v7611_v51 }
 0x1ee   :  { %v7630_v3 = vor.u32 4788187, %v1149_v48  ;;  %v2709_v22 = vmul.f32 -0.00019511016, %v2701_v63  ;;  %v2401_v47 = vmul.f32 -0.00019511016, %v7603_v49  ;;  %v1153_v60 = vcvt.s32.f32 %v7613_v2 }
 0x1ef   :  { %v9333_v5 = vand.u32 2147483647, %v9332_v62  ;;  %v2234_v12 = vsel %vm2113_vm8, %v2233_v0, %v2232_v29  ;;  %v2520_v41 = vshll.u32 %v7624_v31, 30  ;;  %v1615_v7 = vcvt.s32.f32 %v1608_v59 }
 0x1f0   :  { %v2702_v9 = vmul.f32 -0.001358992, %v2701_v63  ;;  %v2710_v10 = vadd.f32 0.008332121, %v2709_v22  ;;  %v2394_v56 = vmul.f32 -0.001358992, %v7603_v49  ;;  %vm2408_vm15 = vweird.f32 %v9315_v1 }
 0x1f1   :  { %vm7636_vm0 = vcmp.le.f32.partialorder %v9333_v5, 0.7853982  ;;  %v1613_v4 = vand.u32 2147483647, %v1612_v54  ;;  %v2079_v21 = vxor.u32 2147483648, %v2078_v13  ;;  %v2521_v8 = vsub.s32 %v2517_v20, %v2520_v41  ;;  %v9339_v41 = vld [vmem:[#allocation10_spill] sm:$0xff] }
 0x1f2   :  { %v2402_v61 = vadd.f32 0.008332121, %v2401_v47  ;;  %vm1959_vm11 = vcmp.lt.s32.totalorder %v7189_v24, 0  ;;  %v2703_v25 = vadd.f32 0.041655596, %v2702_v9  ;;  %v2711_v52 = vmul.f32 %v2710_v10, %v2701_v63  ;;  %v9340_v10 = vld [vmem:[#allocation37_spill] sm:$0xff] }
 0x1f3   :  { %v2395_v28 = vadd.f32 0.041655596, %v2394_v56  ;;  %v7648_v29 = vsel %vm7636_vm0, %v9332_v62, %v2234_v12  ;;  %vm2522_vm2 = vcmp.lt.s32.totalorder %v2521_v8, 0  ;;  %v2523_v16 = vsub.s32 0, %v2521_v8 }
 0x1f4   :  { %v2403_v55 = vmul.f32 %v2402_v61, %v7603_v49  ;;  %v9336_v30 = vand.u32 2147483647, %v7189_v24  ;;  %v2704_v39 = vmul.f32 %v2703_v25, %v2701_v63  ;;  %v2712_v34 = vadd.f32 -0.16666654, %v2711_v52 }
 0x1f5   :  { %v2396_v44 = vmul.f32 %v2395_v28, %v7603_v49  ;;  %v7658_v20 = vmul.f32 %v1615_v7, %v1613_v4  ;;  %v2080_v48 = vsel %vm1959_vm11, %v2079_v21, %v2078_v13  ;;  %v2524_v0 = vsel %vm2522_vm2, %v2523_v16, %v2521_v8 }
 0x1f6   :  { %vm7653_vm9 = vcmp.le.f32.partialorder %v9336_v30, 0.7853982  ;;  %v2404_v33 = vadd.f32 -0.16666654, %v2403_v55  ;;  %v2525_v59 = vclz %v2524_v0  ;;  %v2705_v54 = vadd.f32 -0.4999988, %v2704_v39 }
 0x1f7   :  { %v2713_v22 = vmul.f32 %v2712_v34, %v2701_v63  ;;  %v2397_v47 = vadd.f32 -0.4999988, %v2396_v44  ;;  %v1151_v5 = vand.u32 2147483647, %v7630_v3  ;;  %v7665_v12 = vmul.f32 %v7648_v29, %v7648_v29 }
 0x1f8   :  { %v2697_v9 = vsub.s32 4, %v9339_v41  ;;  %v2389_v7 = vsub.s32 4, %v9340_v10  ;;  %v4707_v56 = vadd.s32 4294967294, %v2525_v59  ;;  %v2706_v4 = vmul.f32 %v2705_v54, %v2701_v63 }
 0x1f9   :  { %v2714_v61 = vadd.f32 1.0, %v2713_v22  ;;  %v2405_v13 = vmul.f32 %v2404_v33, %v7603_v49  ;;  %v1617_v21 = vxor.u32 2147483648, %v7658_v20  ;;  %v7674_v25 = vsel %vm7653_vm9, %v7189_v24, %v2080_v48 }
 0x1fa   :  { %v2513_v52 = vadd.s32 %v7550_v6, %v7566_v53  ;;  %v2698_v28 = vsel %vm2575_vm14, %v2697_v9, %v9339_v41  ;;  %vm4708_vm2 = vcmp.lt.s32.totalorder %v4707_v56, 0  ;;  %v2390_v16 = vsel %vm2267_vm1, %v2389_v7, %v9340_v10 }
 0x1fb   :  { %v2700_v63 = vsel %vm7558_vm12, 0, %v2698_v28  ;;  %v2398_v55 = vmul.f32 %v2397_v47, %v7603_v49  ;;  %v2528_v30 = vsel %vm4708_vm2, 0, %v4707_v56  ;;  %v2707_v39 = vadd.f32 1.0, %v2706_v4 }
 0x1fc   :  { %v2715_v34 = vmul.f32 %v2714_v61, %v7587_v45  ;;  %v2717_v44 = vand.u32 3, %v2700_v63  ;;  %v2529_v6 = vsub.s32 32, %v2528_v30  ;;  %v2530_v53 = vshll.u32 %v2521_v8, %v2528_v30 }
 0x1fd   :  { %v2533_v48 = vsub.s32 4294967266, %v2528_v30  ;;  %v2406_v0 = vadd.f32 1.0, %v2405_v13  ;;  %v7690_v33 = vmul.f32 %v7674_v25, %v7674_v25  ;;  %v2543_v26 = vsub.s32 4, %v7624_v31 }
 0x1fe   :  { %vm2719_vm14 = vcmp.eq.s32.totalorder %v2717_v44, 0  ;;  %v2720_v59 = vxor.u32 2147483648, %v2715_v34  ;;  %v2531_v54 = vshrl.u32 %v2513_v52, %v2529_v6  ;;  %vm2718_vm1 = vcmp.lt.s32.totalorder %v2717_v44, 2 }
 0x1ff   :  { %v2534_v22 = vadd.s32 127, %v2533_v48  ;;  %vm2722_vm12 = vcmp.eq.s32.totalorder %v2717_v44, 2  ;;  %vm2716_vm2 = vweird.f32 %v7048_v11  ;;  %v2723_v49 = vxor.u32 2147483648, %v2707_v39 }
 0x200   :  { %v2721_v45 = vsel %vm2719_vm14, %v2707_v39, %v2720_v59  ;;  %v2392_v8 = vsel %vm7520_vm3, 0, %v2390_v16  ;;  %v2532_v47 = vor.u32 %v2531_v54, %v2530_v53  ;;  %v2399_v9 = vadd.f32 1.0, %v2398_v55  ;;  %v9341_v39 = vld [vmem:[#allocation26_spill] sm:$0xff] }
 0x201   :  { %v2535_v41 = vshll.u32 %v2534_v22, 23  ;;  %v2407_v10 = vmul.f32 %v2406_v0, %v7582_v58  ;;  %v2724_v7 = vsel %vm2722_vm12, %v2723_v49, %v2715_v34  ;;  %v2409_v56 = vand.u32 3, %v2392_v8  ;;  %v2774_v34 = vld [vmem:[%s9342_s6 + $0x78] sm:$0xff] }
 0x202   :  { %v2086_v4 = vmul.f32 -0.001358992, %v7690_v33  ;;  %v2093_v61 = vmul.f32 -0.00019511016, %v7690_v33  ;;  %v2539_v52 = vcvt.s32.f32 %v2532_v47  ;;  %v2725_v28 = vsel %vm2718_vm1, %v2721_v45, %v2724_v7 }
 0x203   :  { %v2536_v13 = vor.u32 4788187, %v2535_v41  ;;  %v2412_v63 = vxor.u32 2147483648, %v2407_v10  ;;  %v2726_v46 = vsel %vm2716_vm2, nan, %v2725_v28  ;;  %vm2410_vm3 = vcmp.lt.s32.totalorder %v2409_v56, 2 }
 0x204   :  { %vm2411_vm14 = vcmp.eq.s32.totalorder %v2409_v56, 0  ;;  %vm2414_vm10 = vcmp.eq.s32.totalorder %v2409_v56, 2  ;;  %v2742_v55 = vadd.f32 1.0, %v2726_v46  ;;  %v2415_v30 = vxor.u32 2147483648, %v2399_v9  ;;  %v2772_v56 = vld [vmem:[%s9342_s6 + $0x68] sm:$0xff] }
 0x205   :  { %v2537_v16 = vand.u32 2147483647, %v2536_v13  ;;  %v2413_v58 = vsel %vm2411_vm14, %v2399_v9, %v2412_v63  ;;  %vm9178_vm12 = vcmp.lt.s32.totalorder %v9341_v39, 0  ;;  %v2081_v44 = vsub.s32 4, %v7455_v43 }
 0x206   :  { %v2087_v6 = vadd.f32 0.041655596, %v2086_v4  ;;  %v2094_v11 = vadd.f32 0.008332121, %v2093_v61  ;;  %vm2421_vm1 = vcmp.lt.s32.totalorder %v7389_v40, 0  ;;  %v2758_v48 = vmul.f32 0.5, %v2742_v55 }
 0x207   :  { %v2540_v53 = vmul.f32 %v2539_v52, %v2537_v16  ;;  %v2416_v0 = vsel %vm2414_vm10, %v2415_v30, %v2407_v10  ;;  %v2544_v59 = vsel %vm2421_vm1, %v2543_v26, %v7624_v31  ;;  %vm7717_vm2 = vcmp.le.f32.partialorder %v2419_v23, 0.7853982  ;;  %v9345_v10 = vld [vmem:[#allocation36_spill] sm:$0xff]  ;;  %v9346_v4 = vld [vmem:[#allocation29_spill] sm:$0xff] }
 0x208   :  { %v2417_v54 = vsel %vm2410_vm3, %v2413_v58, %v2416_v0  ;;  %v2088_v22 = vmul.f32 %v2087_v6, %v7690_v33  ;;  %v2095_v45 = vmul.f32 %v2094_v11, %v7690_v33  ;;  %v2790_v8 = vmul.f32 %v2774_v34, %v2758_v48 }
 0x209   :  { %v2541_v49 = vxor.u32 2147483648, %v2540_v53  ;;  %v2418_v47 = vsel %vm2408_vm15, nan, %v2417_v54  ;;  %v2082_v31 = vsel %vm1959_vm11, %v2081_v44, %v7455_v43  ;;  %vm9179_vm10 = vcmp.lt.s32.totalorder %v9345_v10, 0 }
 0x20a   :  { %v2740_v41 = vadd.f32 1.0, %v2418_v47  ;;  %v2089_v26 = vadd.f32 -0.4999988, %v2088_v22  ;;  %v2096_v9 = vadd.f32 -0.16666654, %v2095_v45  ;;  %v2546_v23 = vsel %vm7717_vm2, 0, %v2544_v59  ;;  %3434 = vperm.xlu1 %4899, %v2790_v8  }
 0x20b   :  { %v2542_v7 = vsel %vm2421_vm1, %v2541_v49, %v2540_v53  ;;  %v2235_v61 = vsub.s32 4, %v9346_v4  ;;  %v2084_v46 = vsel %vm7653_vm9, 0, %v2082_v31  ;;  %v2240_v16 = vmul.f32 -0.001358992, %v7665_v12 }
 0x20c   :  { %v7736_v43 = vsel %vm7717_vm2, %v7389_v40, %v2542_v7  ;;  %v2756_v13 = vmul.f32 0.5, %v2740_v41  ;;  %v2090_v52 = vmul.f32 %v2089_v26, %v7690_v33  ;;  %v2097_v28 = vmul.f32 %v2096_v9, %v7690_v33  ;;  %v9350_v7 = vld [vmem:[#allocation12_spill] sm:$0xff] }
 0x20d   :  { %v2547_v63 = vmul.f32 %v7736_v43, %v7736_v43  ;;  %v2247_v55 = vmul.f32 -0.00019511016, %v7665_v12  ;;  %v9347_v58 = vand.u32 2147483647, %v9345_v10  ;;  %v1618_v33 = vsel %vm9179_vm10, %v1617_v21, %v7658_v20 }
 0x20e   :  { %v2788_v34 = vmul.f32 %v2772_v56, %v2756_v13  ;;  %v2098_v44 = vadd.f32 1.0, %v2097_v28  ;;  %v2236_v11 = vsel %vm2113_vm8, %v2235_v61, %v9346_v4  ;;  %v2241_v53 = vadd.f32 0.041655596, %v2240_v16  ;;  %v9351_v61 = vld [vmem:[#allocation16_spill] sm:$0xff] }
 0x20f   :  { %vm7748_vm15 = vcmp.le.f32.partialorder %v9347_v58, 0.7853982  ;;  %v2548_v27 = vmul.f32 -0.001358992, %v2547_v63  ;;  %v2555_v6 = vmul.f32 -0.00019511016, %v2547_v63  ;;  %v7767_v20 = vsel %vm9178_vm12, %v1771_v14, %v7593_v17 }
 0x210   :  { %v7760_v48 = vand.u32 3, %v2546_v23  ;;  %3424 = vperm.xlu0 %4898, %v2788_v34   ;;  %v2091_v0 = vadd.f32 1.0, %v2090_v52  ;;  %v2101_v59 = vand.u32 3, %v2084_v46  ;;  %v2248_v54 = vadd.f32 0.008332121, %v2247_v55 }
 0x211   :  { %v2549_v21 = vadd.f32 0.041655596, %v2548_v27  ;;  %v2556_v22 = vadd.f32 0.008332121, %v2555_v6  ;;  %v2242_v45 = vmul.f32 %v2241_v53, %v7665_v12  ;;  %v7774_v1 = vmul.f32 %v1153_v60, %v1151_v5  ;;  %v7934_v55 = vld [vmem:[%s9374_s27] ss:$0 sm:$0xff] }
 0x212   :  { %v2099_v49 = vmul.f32 %v2098_v44, %v7674_v25  ;;  %v2238_v8 = vsel %vm7636_vm0, 0, %v2236_v11  ;;  %v2249_v47 = vmul.f32 %v2248_v54, %v7665_v12  ;;  %v7783_v17 = vsel %vm7748_vm15, %v9345_v10, %v1618_v33 }
 0x213   :  { %v2550_v14 = vmul.f32 %v2549_v21, %v2547_v63  ;;  %v2557_v41 = vmul.f32 %v2556_v22, %v2547_v63  ;;  %v2243_v31 = vadd.f32 -0.4999988, %v2242_v45  ;;  %vm2565_vm9 = vcmp.eq.s32.totalorder %v7760_v48, 0 }
 0x214   :  { %vm2568_vm8 = vcmp.eq.s32.totalorder %v7760_v48, 2  ;;  %vm2106_vm11 = vcmp.eq.s32.totalorder %v2101_v59, 2  ;;  %v2107_v2 = vxor.u32 2147483648, %v2091_v0  ;;  %v2250_v3 = vadd.f32 -0.16666654, %v2249_v47 }
 0x215   :  { %v2551_v60 = vadd.f32 -0.4999988, %v2550_v14  ;;  %v2558_v36 = vadd.f32 -0.16666654, %v2557_v41  ;;  %vm2564_vm0 = vcmp.lt.s32.totalorder %v7760_v48, 2  ;;  %v2244_v5 = vmul.f32 %v2243_v31, %v7665_v12 }
 0x216   :  { %v2255_v25 = vand.u32 3, %v2238_v8  ;;  %vm2102_vm14 = vcmp.lt.s32.totalorder %v2101_v59, 2  ;;  %vm2103_vm1 = vcmp.eq.s32.totalorder %v2101_v59, 0  ;;  %v2104_v26 = vxor.u32 2147483648, %v2099_v49 }
 0x217   :  { %v2251_v9 = vmul.f32 %v2250_v3, %v7665_v12  ;;  %v2552_v23 = vmul.f32 %v2551_v60, %v2547_v63  ;;  %v2559_v56 = vmul.f32 %v2558_v36, %v2547_v63  ;;  %v2245_v4 = vadd.f32 1.0, %v2244_v5 }
 0x218   :  { %v1927_v13 = vsub.s32 4, %v9351_v61  ;;  %v2108_v52 = vsel %vm2106_vm11, %v2107_v2, %v2099_v49  ;;  %v1932_v46 = vmul.f32 -0.001358992, %v7628_v19  ;;  %v9352_v16 = vand.u32 2147483647, %v9341_v39 }
 0x219   :  { %v2252_v28 = vadd.f32 1.0, %v2251_v9  ;;  %v2553_v12 = vadd.f32 1.0, %v2552_v23  ;;  %v2560_v58 = vadd.f32 1.0, %v2559_v56  ;;  %vm2260_vm2 = vcmp.eq.s32.totalorder %v2255_v25, 2  ;;  %v9359_v9 = vld [vmem:[#allocation20_spill] sm:$0xff] }
 0x21a   :  { %vm7798_vm10 = vcmp.le.f32.partialorder %v9352_v16, 0.7853982  ;;  %v2261_v63 = vxor.u32 2147483648, %v2245_v4  ;;  %v2105_v33 = vsel %vm2103_vm1, %v2091_v0, %v2104_v26  ;;  %vm2257_vm11 = vcmp.eq.s32.totalorder %v2255_v25, 0  ;;  %v2773_v56 = vld [vmem:[%s9342_s6 + $0x70] sm:$0xff] }
 0x21b   :  { %v2253_v34 = vmul.f32 %v2252_v28, %v7648_v29  ;;  %v1933_v44 = vadd.f32 0.041655596, %v1932_v46  ;;  %v2561_v27 = vmul.f32 %v2560_v58, %v7736_v43  ;;  %v2569_v6 = vxor.u32 2147483648, %v2553_v12  ;;  %v9363_v46 = vld [vmem:[#allocation27_spill] sm:$0xff] }
 0x21c   :  { %vm9355_vm12 = vcmp.lt.s32.totalorder %v9305_v32, 0  ;;  %v1939_v53 = vmul.f32 -0.00019511016, %v7628_v19  ;;  %vm2256_vm3 = vcmp.lt.s32.totalorder %v2255_v25, 2  ;;  %v2109_v0 = vsel %vm2102_vm14, %v2105_v33, %v2108_v52 }
 0x21d   :  { %v1928_v11 = vsel %vm9355_vm12, %v1927_v13, %v9351_v61  ;;  %v2258_v54 = vxor.u32 2147483648, %v2253_v34  ;;  %v2262_v21 = vsel %vm2260_vm2, %v2261_v63, %v2253_v34  ;;  %v1934_v22 = vmul.f32 %v1933_v44, %v7628_v19 }
 0x21e   :  { %v2566_v45 = vxor.u32 2147483648, %v2561_v27  ;;  %v2570_v29 = vsel %vm2568_vm8, %v2569_v6, %v2561_v27  ;;  %v1940_v49 = vadd.f32 0.008332121, %v1939_v53  ;;  %vm2562_vm1 = vweird.f32 %v7389_v40 }
 0x21f   :  { %v2259_v43 = vsel %vm2257_vm11, %v2245_v4, %v2258_v54  ;;  %v1930_v8 = vsel %vm7536_vm13, 0, %v1928_v11  ;;  %v1935_v47 = vadd.f32 -0.4999988, %v1934_v22  ;;  %v7818_v14 = vmul.f32 %v7783_v17, %v7783_v17  ;;  %v2770_v22 = vld [vmem:[%s9342_s6 + $0x58] sm:$0xff] }
 0x220   :  { %v2567_v41 = vsel %vm2565_vm9, %v2553_v12, %v2566_v45  ;;  %v2263_v31 = vsel %vm2256_vm3, %v2259_v43, %v2262_v21  ;;  %v1941_v2 = vmul.f32 %v1940_v49, %v7628_v19  ;;  %vm9356_vm12 = vweird.f32 %v7189_v24  ;;  %v2771_v24 = vld [vmem:[%s9342_s6 + $0x60] sm:$0xff] }
 0x221   :  { %v2571_v59 = vsel %vm2564_vm0, %v2567_v41, %v2570_v29  ;;  %v2110_v40 = vsel %vm9356_vm12, nan, %v2109_v0  ;;  %vm9357_vm8 = vweird.f32 %v9332_v62  ;;  %v1936_v3 = vmul.f32 %v1935_v47, %v7628_v19 }
 0x222   :  { %v2264_v18 = vsel %vm9357_vm8, nan, %v2263_v31  ;;  %v2572_v60 = vsel %vm2562_vm1, nan, %v2571_v59  ;;  %v1942_v5 = vadd.f32 -0.16666654, %v1941_v2  ;;  %v1947_v25 = vand.u32 3, %v1930_v8  ;;  %v9368_v8 = vld [vmem:[#allocation34_spill] sm:$0xff] }
 0x223   :  { %v2739_v36 = vadd.f32 1.0, %v2264_v18  ;;  %vm9358_vm13 = vcmp.lt.s32.totalorder %v9350_v7, 0  ;;  %v2741_v48 = vadd.f32 1.0, %v2572_v60  ;;  %v1937_v62 = vadd.f32 1.0, %v1936_v3 }
 0x224   :  { %v7835_v26 = vsel %vm9358_vm13, %v1001_v37, %v9331_v15  ;;  %v1619_v23 = vsub.s32 4, %v9359_v9  ;;  %v2738_v4 = vadd.f32 1.0, %v2110_v40  ;;  %v1943_v13 = vmul.f32 %v1942_v5, %v7628_v19 }
 0x225   :  { %v2755_v61 = vmul.f32 0.5, %v2739_v36  ;;  %v1624_v52 = vmul.f32 -0.001358992, %v7818_v14  ;;  %v9360_v15 = vand.u32 2147483647, %v9350_v7  ;;  %v7856_v28 = vsel %vm7798_vm10, %v9341_v39, %v7767_v20 }
 0x226   :  { %vm1035_vm0 = vcmp.lt.s32.totalorder %v9363_v46, 0  ;;  %v1155_v16 = vxor.u32 2147483648, %v7774_v1  ;;  %v2757_v12 = vmul.f32 0.5, %v2741_v48  ;;  %v1944_v58 = vadd.f32 1.0, %v1943_v13 }
 0x227   :  { %vm7848_vm9 = vcmp.le.f32.partialorder %v9360_v15, 0.7853982  ;;  %v2787_v19 = vmul.f32 %v2771_v24, %v2755_v61  ;;  %vm1952_vm3 = vcmp.eq.s32.totalorder %v1947_v25, 2  ;;  %v1953_v63 = vxor.u32 2147483648, %v1937_v62 }
 0x228   :  { %v2789_v33 = vmul.f32 %v2773_v56, %v2757_v12  ;;  %vm9364_vm14 = vcmp.lt.s32.totalorder %v9345_v10, 0  ;;  %v1625_v44 = vadd.f32 0.041655596, %v1624_v52  ;;  %v1631_v27 = vmul.f32 -0.00019511016, %v7818_v14 }
 0x229   :  { %v1620_v34 = vsel %vm9364_vm14, %v1619_v23, %v9359_v9  ;;  %v7866_v20 = vmul.f32 %v7856_v28, %v7856_v28  ;;  %v9365_v6 = vand.u32 2147483647, %v9363_v46  ;;  %v2754_v53 = vmul.f32 0.5, %v2738_v4  ;;  %3419 = vperm.xlu1 %4899, %v2787_v19  }
 0x22a   :  { %v1945_v54 = vmul.f32 %v1944_v58, %v7611_v51  ;;  %v1156_v21 = vsel %vm1035_vm0, %v1155_v16, %v7774_v1  ;;  %3429 = vperm.xlu2 %4900, %v2789_v33   ;;  %vm1949_vm11 = vcmp.eq.s32.totalorder %v1947_v25, 0  ;;  %v1626_v45 = vmul.f32 %v1625_v44, %v7818_v14  ;;  %v9371_v16 = vld [vmem:[#allocation17_spill] sm:$0xff] }
 0x22b   :  { %vm7870_vm2 = vcmp.le.f32.partialorder %v9365_v6, 0.7853982  ;;  %v1632_v29 = vadd.f32 0.008332121, %v1631_v27  ;;  %vm1948_vm1 = vcmp.lt.s32.totalorder %v1947_v25, 2  ;;  %v1622_v51 = vsel %vm7748_vm15, 0, %v1620_v34 }
 0x22c   :  { %v1950_v0 = vxor.u32 2147483648, %v1945_v54  ;;  %v1954_v49 = vsel %vm1952_vm3, %v1953_v63, %v1945_v54  ;;  %vm1946_vm12 = vweird.f32 %v9305_v32  ;;  %v1627_v43 = vadd.f32 -0.4999988, %v1626_v45  ;;  %v2812_v25 = vld [vmem:[%s9369_s24 + $0x8] sm:$0xff]  ;;  %v107_v45 = vpop.permute.xlu2 %106 }
 0x22d   :  { %v1633_v1 = vmul.f32 %v1632_v29, %v7818_v14  ;;  %v1773_v47 = vsub.s32 4, %v9368_v8  ;;  %v7891_v41 = vsel %vm7870_vm2, %v9363_v46, %v1156_v21  ;;  %v2786_v31 = vmul.f32 %v2770_v22, %v2754_v53  ;;  %2880 = vmatpush.msra.mxu0 %v2812_v25  ;;  %4885 = vmatpush.msra.mxu3 %v2812_v25  ;;  %v9372_v27 = vld [vmem:[#allocation8_spill] sm:$0xff]  ;;  %v87_v29 = vpop.permute.xlu0 %86 }
 0x22e   :  { %v1951_v2 = vsel %vm1949_vm11, %v1937_v62, %v1950_v0  ;;  %v1778_v59 = vmul.f32 -0.001358992, %v7866_v20  ;;  %v1628_v30 = vmul.f32 %v1627_v43, %v7818_v14  ;;  %v1639_v3 = vand.u32 3, %v1622_v51 }
 0x22f   :  { %v1955_v40 = vsel %vm1948_vm1, %v1951_v2, %v1954_v49  ;;  %v1634_v18 = vadd.f32 -0.16666654, %v1633_v1  ;;  %v7897_v32 = vmul.f32 %v7619_v35, %v7619_v35  ;;  %v1785_v5 = vmul.f32 -0.00019511016, %v7866_v20 }
 0x230   :  { %v1956_v60 = vsel %vm1946_vm12, nan, %v1955_v40  ;;  %v1779_v36 = vadd.f32 0.041655596, %v1778_v59  ;;  %v1629_v24 = vadd.f32 1.0, %v1628_v30  ;;  %vm9370_vm15 = vcmp.lt.s32.totalorder %v9341_v39, 0 }
 0x231   :  { %v2737_v48 = vadd.f32 1.0, %v1956_v60  ;;  %v1635_v62 = vmul.f32 %v1634_v18, %v7818_v14  ;;  %v1774_v9 = vsel %vm9370_vm15, %v1773_v47, %v9368_v8  ;;  %v7911_v23 = vsel %vm7848_vm9, %v9350_v7, %v7835_v26  ;;  %v2769_v14 = vld [vmem:[%s9342_s6 + $0x50] sm:$0xff] }
 0x232   :  { %v7915_v56 = vmul.f32 %v7891_v41, %v7891_v41  ;;  %v1780_v4 = vmul.f32 %v1779_v36, %v7866_v20  ;;  %v1786_v61 = vadd.f32 0.008332121, %v1785_v5  ;;  %3414 = vperm.xlu2 %4900, %v2786_v31   ;;  %v1645_v15 = vxor.u32 2147483648, %v1629_v24 }
 0x233   :  { %v2753_v13 = vmul.f32 0.5, %v2737_v48  ;;  %v1636_v52 = vadd.f32 1.0, %v1635_v62  ;;  %v1465_v12 = vsub.s32 4, %v9371_v16  ;;  %vm1644_vm8 = vcmp.eq.s32.totalorder %v1639_v3, 2 }
 0x234   :  { %v1776_v26 = vsel %vm7798_vm10, 0, %v1774_v9  ;;  %v1781_v19 = vadd.f32 -0.4999988, %v1780_v4  ;;  %v1787_v58 = vmul.f32 %v1786_v61, %v7866_v20  ;;  %vm1640_vm13 = vcmp.lt.s32.totalorder %v1639_v3, 2 }
 0x235   :  { %v2785_v63 = vmul.f32 %v2769_v14, %v2753_v13  ;;  %v1637_v33 = vmul.f32 %v1636_v52, %v7783_v17  ;;  %vm1641_vm3 = vcmp.eq.s32.totalorder %v1639_v3, 0  ;;  %vm9373_vm14 = vcmp.lt.s32.totalorder %v9372_v27, 0  ;;  %v2767_v3 = vld [vmem:[%s9342_s6 + $0x40] sm:$0xff] }
 0x236   :  { %v1782_v34 = vmul.f32 %v1781_v19, %v7866_v20  ;;  %v1788_v44 = vadd.f32 -0.16666654, %v1787_v58  ;;  %v1466_v6 = vsel %vm9373_vm14, %v1465_v12, %v9371_v16  ;;  %v1470_v53 = vmul.f32 -0.001358992, %v7599_v38 }
 0x237   :  { %3409 = vperm.xlu0 %4898, %v2785_v63   ;;  %v1642_v54 = vxor.u32 2147483648, %v1637_v33  ;;  %v1646_v21 = vsel %vm1644_vm8, %v1645_v15, %v1637_v33  ;;  %v1793_v17 = vand.u32 3, %v1776_v26  ;;  %v1477_v22 = vmul.f32 -0.00019511016, %v7599_v38 }
 0x238   :  { %vm1638_vm10 = vweird.f32 %v9345_v10  ;;  %v1783_v0 = vadd.f32 1.0, %v1782_v34  ;;  %v1789_v49 = vmul.f32 %v1788_v44, %v7866_v20  ;;  %v1471_v51 = vadd.f32 0.041655596, %v1470_v53  ;;  %v97_v10 = vpop.permute.xlu1 %96 }
 0x239   :  { %v7940_v43 = vsub.f32 %v107_v45, %v7934_v55  ;;  %v1643_v1 = vsel %vm1641_vm3, %v1629_v24, %v1642_v54  ;;  %v1468_v47 = vsel %vm7063_vm4, 0, %v1466_v6  ;;  %v1478_v31 = vadd.f32 0.008332121, %v1477_v22  ;;  %v2768_v22 = vld [vmem:[%s9342_s6 + $0x48] sm:$0xff]  ;;  %v92_v45 = vpop.permute.xlu0 %91 }
 0x23a   :  { %v1647_v2 = vsel %vm1640_vm13, %v1643_v1, %v1646_v21  ;;  %v1790_v59 = vadd.f32 1.0, %v1789_v49  ;;  %v1799_v40 = vxor.u32 2147483648, %v1783_v0  ;;  %v1472_v30 = vmul.f32 %v1471_v51, %v7599_v38 }
 0x23b   :  { %v167_v18 = vsub.f32 %v87_v29, %v7934_v55  ;;  %v1648_v20 = vsel %vm1638_vm10, nan, %v1647_v2  ;;  %vm1798_vm11 = vcmp.eq.s32.totalorder %v1793_v17, 2  ;;  %v1479_v60 = vmul.f32 %v1478_v31, %v7599_v38 }
 0x23c   :  { %v7950_v36 = vsub.f32 %v97_v10, %v7934_v55  ;;  %v2735_v5 = vadd.f32 1.0, %v1648_v20  ;;  %v1791_v25 = vmul.f32 %v1790_v59, %v7856_v28  ;;  %v1473_v48 = vadd.f32 -0.4999988, %v1472_v30  ;;  %v9376_v28 = vld [vmem:[#allocation38_spill] sm:$0xff]  ;;  %v9377_v20 = vld [vmem:[#allocation25_spill] sm:$0xff] }
 0x23d   :  { %vm1794_vm4 = vcmp.lt.s32.totalorder %v1793_v17, 2  ;;  %vm1795_vm1 = vcmp.eq.s32.totalorder %v1793_v17, 0  ;;  %v1480_v24 = vadd.f32 -0.16666654, %v1479_v60  ;;  %v1485_v62 = vand.u32 3, %v1468_v47 }
 0x23e   :  { %v2751_v9 = vmul.f32 0.5, %v2735_v5  ;;  %v1796_v14 = vxor.u32 2147483648, %v1791_v25  ;;  %v1800_v4 = vsel %vm1798_vm11, %v1799_v40, %v1791_v25  ;;  %v1474_v61 = vmul.f32 %v1473_v48, %v7599_v38 }
 0x23f   :  { %v183_v13 = vmul.f32 -1.125, %v167_v18  ;;  %vm1792_vm12 = vweird.f32 %v9341_v39  ;;  %v1481_v52 = vmul.f32 %v1480_v24, %v7599_v38  ;;  %v1157_v15 = vsub.s32 4, %v9376_v28 }
 0x240   :  { %v7961_v16 = vmul.f32 -1.125, %v7940_v43  ;;  %v2783_v12 = vmul.f32 %v2767_v3, %v2751_v9  ;;  %v1797_v26 = vsel %vm1795_vm1, %v1783_v0, %v1796_v14  ;;  %v1475_v19 = vadd.f32 1.0, %v1474_v61  ;;  %v2766_v3 = vld [vmem:[%s9342_s6 + $0x38] sm:$0xff] }
 0x241   :  { %v185_v58 = vmul.f32 -1.125, %v7950_v36  ;;  %v1801_v63 = vsel %vm1794_vm4, %v1797_v26, %v1800_v4  ;;  %v1482_v33 = vadd.f32 1.0, %v1481_v52  ;;  %vm1490_vm15 = vcmp.eq.s32.totalorder %v1485_v62, 2  ;;  %v2811_v52 = vld [vmem:[%s9369_s24] sm:$0xff] }
 0x242   :  { %3399 = vperm.xlu2 %4900, %v2783_v12   ;;  %v1802_v34 = vsel %vm1792_vm12, nan, %v1801_v63  ;;  %v1491_v44 = vxor.u32 2147483648, %v1475_v19  ;;  %v1162_v39 = vmul.f32 -0.001358992, %v7915_v56  ;;  %v1169_v38 = vmul.f32 -0.00019511016, %v7915_v56  ;;  %2881 = vmatpush.msra.mxu0 %v2811_v52 }
 0x243   :  { %v199_v6 = vmul.f32 %v183_v13, %v167_v18  ;;  %v2736_v53 = vadd.f32 1.0, %v1802_v34  ;;  %v1483_v54 = vmul.f32 %v1482_v33, %v7140_v57  ;;  %v1158_v21 = vsel %vm1035_vm0, %v1157_v15, %v9376_v28  ;;  %4886 = vmatpush.msra.mxu3 %v2811_v52  ;;  %v9379_v33 = vld [vmem:[#allocation14_spill] sm:$0xff] }
 0x244   :  { %v7973_v17 = vmul.f32 %v7911_v23, %v7911_v23  ;;  %vm1487_vm8 = vcmp.eq.s32.totalorder %v1485_v62, 0  ;;  %v1163_v29 = vadd.f32 0.041655596, %v1162_v39  ;;  %v1170_v0 = vadd.f32 0.008332121, %v1169_v38 }
 0x245   :  { %v2752_v49 = vmul.f32 0.5, %v2736_v53  ;;  %vm1486_vm13 = vcmp.lt.s32.totalorder %v1485_v62, 2  ;;  %v1488_v51 = vxor.u32 2147483648, %v1483_v54  ;;  %v1492_v57 = vsel %vm1490_vm15, %v1491_v44, %v1483_v54  ;;  %v9380_v54 = vld [vmem:[#allocation4_spill] sm:$0xff] }
 0x246   :  { %vm1484_vm3 = vweird.f32 %v9372_v27  ;;  %v1160_v1 = vsel %vm7870_vm2, 0, %v1158_v21  ;;  %v1164_v8 = vmul.f32 %v1163_v29, %v7915_v56  ;;  %v1171_v47 = vmul.f32 %v1170_v0, %v7915_v56  ;;  %v102_v0 = vpop.permute.xlu1 %101 }
 0x247   :  { %v215_v31 = vmul.f32 1.442695, %v199_v6  ;;  %v2784_v2 = vmul.f32 %v2768_v22, %v2752_v49  ;;  %v1489_v59 = vsel %vm1487_vm8, %v1475_v19, %v1488_v51  ;;  %v168_v40 = vsub.f32 %v92_v45, %v7934_v55  ;;  %v9384_v45 = vld [vmem:[#allocation7_spill] sm:$0xff] }
 0x248   :  { %v1493_v30 = vsel %vm1486_vm13, %v1489_v59, %v1492_v57  ;;  %v1165_v10 = vadd.f32 -0.4999988, %v1164_v8  ;;  %v1172_v18 = vadd.f32 -0.16666654, %v1171_v47  ;;  %v1311_v60 = vsub.s32 4, %v9377_v20 }
 0x249   :  { %3404 = vperm.xlu1 %4899, %v2784_v2   ;;  %v1494_v5 = vsel %vm1484_vm3, nan, %v1493_v30  ;;  %v1177_v27 = vand.u32 3, %v1160_v1  ;;  %v1316_v11 = vmul.f32 -0.001358992, %v7897_v32  ;;  %v1323_v25 = vmul.f32 -0.00019511016, %v7897_v32 }
 0x24a   :  { %v2734_v48 = vadd.f32 1.0, %v1494_v5  ;;  %v1166_v24 = vmul.f32 %v1165_v10, %v7915_v56  ;;  %v1173_v62 = vmul.f32 %v1172_v18, %v7915_v56  ;;  %vm9378_vm0 = vcmp.lt.s32.totalorder %v9304_v42, 0 }
 0x24b   :  { %v1312_v9 = vsel %vm9378_vm0, %v1311_v60, %v9377_v20  ;;  %v7997_v14 = vmul.f32 %v185_v58, %v7950_v36  ;;  %v184_v4 = vmul.f32 -1.125, %v168_v40  ;;  %v1317_v61 = vadd.f32 0.041655596, %v1316_v11 }
 0x24c   :  { %v1324_v13 = vadd.f32 0.008332121, %v1323_v25  ;;  %4912 = vpow2.f32 %v215_v31  ;;  %v2750_v28 = vmul.f32 0.5, %v2734_v48  ;;  %v1167_v15 = vadd.f32 1.0, %v1166_v24  ;;  %v2764_v25 = vld [vmem:[%s9342_s6 + $0x28] sm:$0xff] }
 0x24d   :  { %v1174_v12 = vadd.f32 1.0, %v1173_v62  ;;  %vm1182_vm2 = vcmp.eq.s32.totalorder %v1177_v27, 2  ;;  %v1314_v56 = vsel %vm7542_vm5, 0, %v1312_v9  ;;  %v1318_v36 = vmul.f32 %v1317_v61, %v7897_v32 }
 0x24e   :  { %v1325_v26 = vmul.f32 %v1324_v13, %v7897_v32  ;;  %v2782_v19 = vmul.f32 %v2766_v3, %v2750_v28  ;;  %v1183_v63 = vxor.u32 2147483648, %v1167_v15  ;;  %v1003_v34 = vsub.s32 4, %v9379_v33 }
 0x24f   :  { %v1175_v58 = vmul.f32 %v1174_v12, %v7891_v41  ;;  %v200_v44 = vmul.f32 %v184_v4, %v168_v40  ;;  %vm1179_vm14 = vcmp.eq.s32.totalorder %v1177_v27, 0  ;;  %v1319_v39 = vadd.f32 -0.4999988, %v1318_v36 }
 0x250   :  { %v1326_v38 = vadd.f32 -0.16666654, %v1325_v26  ;;  %3394 = vperm.xlu0 %4898, %v2782_v19   ;;  %vm1178_vm10 = vcmp.lt.s32.totalorder %v1177_v27, 2  ;;  %v1331_v50 = vand.u32 3, %v1314_v56  ;;  %v9381_v21 = vand.u32 2147483647, %v9380_v54 }
 0x251   :  { %v1180_v6 = vxor.u32 2147483648, %v1175_v58  ;;  %v1184_v53 = vsel %vm1182_vm2, %v1183_v63, %v1175_v58  ;;  %v9385_v41 = vand.u32 2147483647, %v9384_v45  ;;  %vm1176_vm4 = vweird.f32 %v9363_v46  ;;  %v9389_v63 = vld [vmem:[#allocation19_spill] sm:$0xff] }
 0x252   :  { %vm8010_vm5 = vcmp.le.f32.partialorder %v9381_v21, 0.7853982  ;;  %v1320_v49 = vmul.f32 %v1319_v39, %v7897_v32  ;;  %v1327_v51 = vmul.f32 %v1326_v38, %v7897_v32  ;;  %v1008_v57 = vmul.f32 -0.001358992, %v7973_v17  ;;  %v8024_v1 = vpop.eup %4912  ;;  %v9392_v38 = vld [vmem:[#allocation30_spill] sm:$0xff] }
 0x253   :  { %vm8016_vm11 = vcmp.le.f32.partialorder %v9385_v41, 0.7853982  ;;  %v170_v8 = vsub.f32 %v102_v0, %v7934_v55  ;;  %v1181_v47 = vsel %vm1179_vm14, %v1167_v15, %v1180_v6  ;;  %vm9388_vm1 = vcmp.lt.s32.totalorder %v9350_v7, 0  ;;  %v112_v15 = vpop.permute.xlu2 %111 }
 0x254   :  { %v1004_v31 = vsel %vm9388_vm1, %v1003_v34, %v9379_v33  ;;  %v1015_v2 = vmul.f32 -0.00019511016, %v7973_v17  ;;  %v1185_v46 = vsel %vm1178_vm10, %v1181_v47, %v1184_v53  ;;  %v1321_v59 = vadd.f32 1.0, %v1320_v49 }
 0x255   :  { %v1328_v40 = vadd.f32 1.0, %v1327_v51  ;;  %v1009_v30 = vadd.f32 0.041655596, %v1008_v57  ;;  %v217_v32 = vmul.f32 1.442695, %v200_v44  ;;  %v1186_v10 = vsel %vm1176_vm4, nan, %v1185_v46 }
 0x256   :  { %vm1336_vm12 = vcmp.eq.s32.totalorder %v1331_v50, 2  ;;  %v1016_v18 = vadd.f32 0.008332121, %v1015_v2  ;;  %v2732_v20 = vadd.f32 1.0, %v1186_v10  ;;  %v1337_v5 = vxor.u32 2147483648, %v1321_v59  ;;  %v9391_v44 = vld [vmem:[#allocation11_spill] sm:$0xff]  ;;  %v117_v2 = vpop.permute.xlu0 %116 }
 0x257   :  { %v1329_v60 = vmul.f32 %v1328_v40, %v7619_v35  ;;  %v1010_v11 = vmul.f32 %v1009_v30, %v7973_v17  ;;  %vm1332_vm15 = vcmp.lt.s32.totalorder %v1331_v50, 2  ;;  %vm1333_vm8 = vcmp.eq.s32.totalorder %v1331_v50, 0  ;;  %v9393_v46 = vld [vmem:[#allocation5_spill] sm:$0xff]  ;;  %v9395_v30 = vld [vmem:[#allocation6_spill] sm:$0xff] }
 0x258   :  { %v1006_v27 = vsel %vm7848_vm9, 0, %v1004_v31  ;;  %v1017_v48 = vmul.f32 %v1016_v18, %v7973_v17  ;;  %v2748_v3 = vmul.f32 0.5, %v2732_v20  ;;  %4914 = vpow2.f32 %v217_v32  ;;  %v9396_v10 = vld [vmem:[#allocation21_spill] sm:$0xff] }
 0x259   :  { %v1334_v24 = vxor.u32 2147483648, %v1329_v60  ;;  %v1338_v62 = vsel %vm1336_vm12, %v1337_v5, %v1329_v60  ;;  %v1011_v9 = vadd.f32 -0.4999988, %v1010_v11  ;;  %vm1330_vm13 = vweird.f32 %v9304_v42  ;;  %v2765_v42 = vld [vmem:[%s9342_s6 + $0x30] sm:$0xff] }
 0x25a   :  { %v1018_v35 = vadd.f32 -0.16666654, %v1017_v48  ;;  %vm2817_vm3 = vcmask 130048   ;;  %v2780_v4 = vmul.f32 %v2764_v25, %v2748_v3  ;;  %v1023_v52 = vand.u32 3, %v1006_v27 }
 0x25b   :  { %v1335_v61 = vsel %vm1333_vm8, %v1321_v59, %v1334_v24  ;;  %v1012_v13 = vmul.f32 %v1011_v9, %v7973_v17  ;;  %4712 = vmatmul.msk.f32.vlgmr.msra.gmra.mxu0 %vm2817_vm3, %v8024_v1  ;;  %v203_v37 = vmul.f32 %v7961_v16, %v7940_v43  ;;  %v219_v28 = vmul.f32 1.442695, %v7997_v14  ;;  %v9390_v16 = vld [vmem:[#allocation31_spill] sm:$0xff] }
 0x25c   :  { %v1339_v12 = vsel %vm1332_vm15, %v1335_v61, %v1338_v62  ;;  %v1019_v56 = vmul.f32 %v1018_v35, %v7973_v17  ;;  %v172_v36 = vsub.f32 %v112_v15, %v7934_v55  ;;  %v186_v26 = vmul.f32 -1.125, %v170_v8  ;;  %3384 = vperm.xlu2 %4900, %v2780_v4   ;;  %v9397_v24 = vld [vmem:[#allocation3_spill] sm:$0xff] }
 0x25d   :  { %v1340_v19 = vsel %vm1330_vm13, nan, %v1339_v12  ;;  %v1013_v58 = vadd.f32 1.0, %v1012_v13  ;;  %v8057_v43 = vsel %vm8010_vm5, %v9380_v54, %v9389_v63  ;;  %v8063_v14 = vsel %vm8016_vm11, %v9384_v45, %v9390_v16 }
 0x25e   :  { %v2733_v17 = vadd.f32 1.0, %v1340_v19  ;;  %v1020_v33 = vadd.f32 1.0, %v1019_v56  ;;  %vm1028_vm9 = vcmp.eq.s32.totalorder %v1023_v52, 2  ;;  %v849_v39 = vsub.s32 4, %v9391_v44  ;;  %v8070_v53 = vpop.eup %4914 }
 0x25f   :  { %v1029_v34 = vxor.u32 2147483648, %v1013_v58  ;;  %v854_v6 = vmul.f32 -0.001358992, %v9392_v38  ;;  %v223_v50 = vmul.f32 1.442695, %v203_v37  ;;  %4916 = vpow2.f32 %v219_v28  ;;  %v2763_v37 = vld [vmem:[%s9342_s6 + $0x20] sm:$0xff] }
 0x260   :  { %v2749_v21 = vmul.f32 0.5, %v2733_v17  ;;  %v1021_v41 = vmul.f32 %v1020_v33, %v7911_v23  ;;  %v188_v0 = vmul.f32 -1.125, %v172_v36  ;;  %v202_v49 = vmul.f32 %v186_v26, %v170_v8 }
 0x261   :  { %vm1025_vm0 = vcmp.eq.s32.totalorder %v1023_v52, 0  ;;  %v855_v51 = vadd.f32 0.041655596, %v854_v6  ;;  %vm1024_vm2 = vcmp.lt.s32.totalorder %v1023_v52, 2  ;;  %vm1022_vm14 = vweird.f32 %v9350_v7 }
 0x262   :  { %v2781_v57 = vmul.f32 %v2765_v42, %v2749_v21  ;;  %v1026_v47 = vxor.u32 2147483648, %v1021_v41  ;;  %v1030_v31 = vsel %vm1028_vm9, %v1029_v34, %v1021_v41  ;;  %vm9394_vm10 = vcmp.lt.s32.totalorder %v9393_v46, 0  ;;  %v8120_v41 = vpop.permute.xlu0 %131 }
 0x263   :  { %v850_v59 = vsel %vm9394_vm10, %v849_v39, %v9391_v44  ;;  %v856_v40 = vmul.f32 %v855_v51, %v9392_v38  ;;  %v861_v23 = vmul.f32 -0.00019511016, %v9392_v38  ;;  %4713 = vmatmul.msk.f32.gmra.mxu0 %vm2817_vm3, %v8070_v53  ;;  %v695_v32 = vsub.s32 4, %v9395_v30 }
 0x264   :  { %3389 = vperm.xlu1 %4899, %v2781_v57   ;;  %v1027_v8 = vsel %vm1025_vm0, %v1013_v58, %v1026_v47  ;;  %v700_v18 = vmul.f32 -0.001358992, %v9396_v10  ;;  %v707_v20 = vmul.f32 -0.00019511016, %v9396_v10  ;;  %v8087_v60 = vmul.f32 %v8063_v14, %v8063_v14  ;;  %v9401_v58 = vld [vmem:[#allocation15_spill] sm:$0xff] }
 0x265   :  { %v1031_v5 = vsel %vm1024_vm2, %v1027_v8, %v1030_v31  ;;  %v857_v11 = vadd.f32 -0.4999988, %v856_v40  ;;  %v862_v25 = vadd.f32 0.008332121, %v861_v23  ;;  %v8089_v27 = vpop.eup %4916  ;;  %4918 = vpow2.f32 %v223_v50 }
 0x266   :  { %v221_v48 = vmul.f32 1.442695, %v202_v49  ;;  %v1032_v3 = vsel %vm1022_vm14, nan, %v1031_v5  ;;  %vm9398_vm4 = vcmp.lt.s32.totalorder %v9397_v24, 0  ;;  %v852_v4 = vsel %vm6499_vm7, 0, %v850_v59 }
 0x267   :  { %v696_v62 = vsel %vm9398_vm4, %v695_v32, %v9395_v30  ;;  %v2731_v9 = vadd.f32 1.0, %v1032_v3  ;;  %v858_v61 = vmul.f32 %v857_v11, %v9392_v38  ;;  %v863_v13 = vmul.f32 %v862_v25, %v9392_v38  ;;  %v9404_v11 = vld [vmem:[#allocation23_spill] sm:$0xff] }
 0x268   :  { %v8100_v52 = vmul.f32 %v188_v0, %v172_v36  ;;  %v698_v28 = vsel %vm6162_vm6, 0, %v696_v62  ;;  %v701_v15 = vadd.f32 0.041655596, %v700_v18  ;;  %v708_v12 = vadd.f32 0.008332121, %v707_v20 }
 0x269   :  { %v2747_v56 = vmul.f32 0.5, %v2731_v9  ;;  %v859_v26 = vadd.f32 1.0, %v858_v61  ;;  %v864_v19 = vadd.f32 -0.16666654, %v863_v13  ;;  %v541_v63 = vsub.s32 4, %v9401_v58 }
 0x26a   :  { %4920 = vpow2.f32 %v221_v48  ;;  %v869_v16 = vand.u32 3, %v852_v4  ;;  %v702_v17 = vmul.f32 %v701_v15, %v9396_v10  ;;  %v709_v36 = vmul.f32 %v708_v12, %v9396_v10  ;;  %v122_v15 = vpop.permute.xlu1 %121 }
 0x26b   :  { %v2779_v33 = vmul.f32 %v2763_v37, %v2747_v56  ;;  %v8111_v42 = vsub.f32 %v117_v2, %v7934_v55  ;;  %v865_v34 = vmul.f32 %v864_v19, %v9392_v38  ;;  %v715_v44 = vand.u32 3, %v698_v28  ;;  %4714 = vmatmul.msk.f32.gmra.mxu0 %vm2817_vm3, %v8089_v27  ;;  %v8116_v39 = vpop.eup %4918  ;;  %v9403_v2 = vld [vmem:[#allocation18_spill] sm:$0xff]  ;;  %v8148_v19 = vpop.permute.xlu0 %146 }
 0x26c   :  { %vm868_vm6 = vweird.f32 %v9393_v46  ;;  %v703_v6 = vadd.f32 -0.4999988, %v702_v17  ;;  %v710_v50 = vadd.f32 -0.16666654, %v709_v36  ;;  %v546_v21 = vmul.f32 -0.001358992, %v8087_v60 }
 0x26d   :  { %3379 = vperm.xlu0 %4898, %v2779_v33   ;;  %v866_v0 = vadd.f32 1.0, %v865_v34  ;;  %v875_v49 = vxor.u32 2147483648, %v859_v26  ;;  %vm9402_vm7 = vcmp.lt.s32.totalorder %v9384_v45, 0  ;;  %v553_v51 = vmul.f32 -0.00019511016, %v8087_v60  ;;  %v2762_v46 = vld [vmem:[%s9342_s6 + $0x18] sm:$0xff] }
 0x26e   :  { %v542_v38 = vsel %vm9402_vm7, %v541_v63, %v9401_v58  ;;  %vm874_vm1 = vcmp.eq.s32.totalorder %v869_v16, 2  ;;  %v704_v57 = vmul.f32 %v703_v6, %v9396_v10  ;;  %v711_v47 = vmul.f32 %v710_v50, %v9396_v10 }
 0x26f   :  { %v547_v31 = vadd.f32 0.041655596, %v546_v21  ;;  %v867_v59 = vmul.f32 %v866_v0, %v9403_v2  ;;  %vm870_vm12 = vcmp.lt.s32.totalorder %v869_v16, 2  ;;  %vm871_vm15 = vcmp.eq.s32.totalorder %v869_v16, 0  ;;  %v9405_v21 = vld [vmem:[#allocation9_spill] sm:$0xff] }
 0x270   :  { %v554_v40 = vadd.f32 0.008332121, %v553_v51  ;;  %v8129_v23 = vpop.eup %4920  ;;  %v705_v8 = vadd.f32 1.0, %v704_v57  ;;  %v712_v30 = vadd.f32 1.0, %v711_v47  ;;  %v544_v32 = vsel %vm8016_vm11, 0, %v542_v38 }
 0x271   :  { %v548_v18 = vmul.f32 %v547_v31, %v8087_v60  ;;  %v872_v20 = vxor.u32 2147483648, %v867_v59  ;;  %v876_v5 = vsel %vm874_vm1, %v875_v49, %v867_v59  ;;  %vm720_vm8 = vcmp.eq.s32.totalorder %v715_v44, 2 }
 0x272   :  { %v555_v10 = vmul.f32 %v554_v40, %v8087_v60  ;;  %v713_v25 = vmul.f32 %v712_v30, %v9404_v11  ;;  %vm716_vm13 = vcmp.lt.s32.totalorder %v715_v44, 2  ;;  %v721_v48 = vxor.u32 2147483648, %v705_v8 }
 0x273   :  { %v549_v3 = vadd.f32 -0.4999988, %v548_v18  ;;  %v873_v62 = vsel %vm871_vm15, %v859_v26, %v872_v20  ;;  %vm717_vm9 = vcmp.eq.s32.totalorder %v715_v44, 0  ;;  %v561_v35 = vand.u32 3, %v544_v32  ;;  %4715 = vmatmul.msk.f32.gmra.mxu0 %vm2817_vm3, %v8129_v23  ;;  %v162_v30 = vpop.permute.xlu0 %161 }
 0x274   :  { %v556_v9 = vadd.f32 -0.16666654, %v555_v10  ;;  %v877_v29 = vsel %vm870_vm12, %v873_v62, %v876_v5  ;;  %v718_v4 = vxor.u32 2147483648, %v713_v25  ;;  %v722_v61 = vsel %vm720_vm8, %v721_v48, %v713_v25  ;;  %v2760_v10 = vld [vmem:[%s9342_s6 + $0x8] sm:$0xff]  ;;  %v127_v62 = vpop.permute.xlu2 %126 }
 0x275   :  { %v550_v13 = vmul.f32 %v549_v3, %v8087_v60  ;;  %v878_v37 = vsel %vm868_vm6, nan, %v877_v29  ;;  %vm714_vm11 = vweird.f32 %v9397_v24  ;;  %v8146_v28 = vmul.f32 %v8057_v43, %v8057_v43 }
 0x276   :  { %v557_v7 = vmul.f32 %v556_v9, %v8087_v60  ;;  %v2730_v12 = vadd.f32 1.0, %v878_v37  ;;  %v719_v56 = vsel %vm717_vm9, %v705_v8, %v718_v4  ;;  %v225_v58 = vmul.f32 1.442695, %v8100_v52  ;;  %v2761_v52 = vld [vmem:[%s9342_s6 + $0x10] sm:$0xff] }
 0x277   :  { %v551_v26 = vadd.f32 1.0, %v550_v13  ;;  %v189_v63 = vmul.f32 -1.125, %v8111_v42  ;;  %v723_v60 = vsel %vm716_vm13, %v719_v56, %v722_v61  ;;  %vm566_vm0 = vcmp.eq.s32.totalorder %v561_v35, 2 }
 0x278   :  { %v558_v24 = vadd.f32 1.0, %v557_v7  ;;  %v2746_v16 = vmul.f32 0.5, %v2730_v12  ;;  %v724_v17 = vsel %vm714_vm11, nan, %v723_v60  ;;  %v174_v33 = vsub.f32 %v122_v15, %v7934_v55 }
 0x279   :  { %v567_v36 = vxor.u32 2147483648, %v551_v26  ;;  %v2729_v34 = vadd.f32 1.0, %v724_v17  ;;  %vm563_vm2 = vcmp.eq.s32.totalorder %v561_v35, 0  ;;  %v387_v0 = vsub.s32 4, %v9405_v21 }
 0x27a   :  { %v559_v6 = vmul.f32 %v558_v24, %v8063_v14  ;;  %v2778_v50 = vmul.f32 %v2762_v46, %v2746_v16  ;;  %v392_v44 = vmul.f32 -0.001358992, %v8146_v28  ;;  %vm562_vm14 = vcmp.lt.s32.totalorder %v561_v35, 2 }
 0x27b   :  { %v2745_v49 = vmul.f32 0.5, %v2729_v34  ;;  %4716 = vmatmul.msk.f32.gmra.mxu0 %vm2817_vm3, %v8116_v39  ;;  %4922 = vpow2.f32 %v225_v58  ;;  %v205_v14 = vmul.f32 %v189_v63, %v8111_v42  ;;  %vm560_vm10 = vweird.f32 %v9384_v45 }
 0x27c   :  { %v564_v38 = vxor.u32 2147483648, %v559_v6  ;;  %v568_v51 = vsel %vm566_vm0, %v567_v36, %v559_v6  ;;  %3374 = vperm.xlu1 %4899, %v2778_v50   ;;  %v393_v57 = vadd.f32 0.041655596, %v392_v44  ;;  %v399_v2 = vmul.f32 -0.00019511016, %v8146_v28  ;;  %v2759_v44 = vld [vmem:[%s9342_s6] sm:$0xff] }
 0x27d   :  { %v2777_v47 = vmul.f32 %v2761_v52, %v2745_v49  ;;  %vm9406_vm4 = vcmp.lt.s32.totalorder %v9380_v54, 0  ;;  %v190_v32 = vmul.f32 -1.125, %v174_v33  ;;  %v227_v20 = vmul.f32 1.442695, %v205_v14 }
 0x27e   :  { %v565_v31 = vsel %vm563_vm2, %v551_v26, %v564_v38  ;;  %v388_v40 = vsel %vm9406_vm4, %v387_v0, %v9405_v21  ;;  %v394_v8 = vmul.f32 %v393_v57, %v8146_v28  ;;  %v400_v42 = vadd.f32 0.008332121, %v399_v2  ;;  %v137_v0 = vpop.permute.xlu1 %136 }
 0x27f   :  { %v569_v59 = vsel %vm562_vm14, %v565_v31, %v568_v51  ;;  %3369 = vperm.xlu2 %4900, %v2777_v47   ;;  %v390_v11 = vsel %vm8010_vm5, 0, %v388_v40  ;;  %v182_v48 = vsub.f32 %v162_v30, %v7934_v55  ;;  %v175_v29 = vsub.f32 %v127_v62, %v7934_v55  ;;  %v142_v31 = vpop.permute.xlu2 %141 }
 0x280   :  { %v570_v18 = vsel %vm560_vm10, nan, %v569_v59  ;;  %v395_v45 = vadd.f32 -0.4999988, %v394_v8  ;;  %v401_v25 = vmul.f32 %v400_v42, %v8146_v28  ;;  %v206_v4 = vmul.f32 %v190_v32, %v174_v33 }
 0x281   :  { %v2728_v5 = vadd.f32 1.0, %v570_v18  ;;  %v8179_v3 = vpop.eup %4922  ;;  %v198_v13 = vmul.f32 -1.125, %v182_v48  ;;  %4924 = vpow2.f32 %v227_v20  ;;  %v407_v7 = vand.u32 3, %v390_v11 }
 0x282   :  { %v396_v35 = vmul.f32 %v395_v45, %v8146_v28  ;;  %v402_v61 = vadd.f32 -0.16666654, %v401_v25  ;;  %v191_v63 = vmul.f32 -1.125, %v175_v29  ;;  %v229_v46 = vmul.f32 1.442695, %v206_v4 }
 0x283   :  { %v2744_v9 = vmul.f32 0.5, %v2728_v5  ;;  %4717 = vmatmul.msk.f32.gmra.mxu0 %vm2817_vm3, %v8179_v3  ;;  %v214_v12 = vmul.f32 %v198_v13, %v182_v48  ;;  %vm412_vm5 = vcmp.eq.s32.totalorder %v407_v7, 2  ;;  %vm409_vm6 = vcmp.eq.s32.totalorder %v407_v7, 0 }
 0x284   :  { %v397_v37 = vadd.f32 1.0, %v396_v35  ;;  %v403_v15 = vmul.f32 %v402_v61, %v8146_v28  ;;  %vm408_vm7 = vcmp.lt.s32.totalorder %v407_v7, 2  ;;  %v207_v28 = vmul.f32 %v191_v63, %v175_v29 }
 0x285   :  { %v2776_v22 = vmul.f32 %v2760_v10, %v2744_v9  ;;  %v245_v58 = vmul.f32 1.442695, %v214_v12  ;;  %v176_v36 = vsub.f32 %v8120_v41, %v7934_v55  ;;  %vm406_vm1 = vweird.f32 %v9380_v54 }
 0x286   :  { %v404_v56 = vadd.f32 1.0, %v403_v15  ;;  %v413_v26 = vxor.u32 2147483648, %v397_v37  ;;  %v231_v50 = vmul.f32 1.442695, %v207_v28  ;;  %v177_v54 = vsub.f32 %v137_v0, %v7934_v55  ;;  %v152_v5 = vpop.permute.xlu1 %151 }
 0x287   :  { %3364 = vperm.xlu0 %4898, %v2776_v22   ;;  %v8187_v24 = vpop.eup %4924  ;;  %4926 = vpow2.f32 %v245_v58  ;;  %v192_v52 = vmul.f32 -1.125, %v176_v36  ;;  %v178_v2 = vsub.f32 %v142_v31, %v7934_v55  ;;  %v179_v18 = vsub.f32 %v8148_v19, %v7934_v55  ;;  %v157_v62 = vpop.permute.xlu2 %156 }
 0x288   :  { %v405_v60 = vmul.f32 %v404_v56, %v8057_v43  ;;  %4928 = vpow2.f32 %v229_v46  ;;  %v193_v14 = vmul.f32 -1.125, %v177_v54  ;;  %v180_v10 = vsub.f32 %v152_v5, %v7934_v55 }
 0x289   :  { %4930 = vpow2.f32 %v231_v50  ;;  %v208_v38 = vmul.f32 %v192_v52, %v176_v36  ;;  %v194_v40 = vmul.f32 -1.125, %v178_v2  ;;  %v195_v20 = vmul.f32 -1.125, %v179_v18  ;;  %v3236_v36 = vld [vmem:[%s9042_s8 + $0x8] sm:$0xff] }
 0x28a   :  { %v410_v16 = vxor.u32 2147483648, %v405_v60  ;;  %v414_v17 = vsel %vm412_vm5, %v413_v26, %v405_v60  ;;  %v209_v59 = vmul.f32 %v193_v14, %v177_v54  ;;  %v196_v25 = vmul.f32 -1.125, %v180_v10  ;;  %v3238_v60 = vld [vmem:[%s9042_s8 + $0x18] sm:$0xff] }
 0x28b   :  { %4718 = vmatmul.msk.f32.gmra.mxu0 %vm2817_vm3, %v8187_v24  ;;  %v233_v57 = vmul.f32 1.442695, %v208_v38  ;;  %v210_v32 = vmul.f32 %v194_v40, %v178_v2  ;;  %v211_v11 = vmul.f32 %v195_v20, %v179_v18  ;;  %v181_v19 = vsub.f32 %v157_v62, %v7934_v55  ;;  %v8242_v55 = vld [vmem:[%s9409_s25] ss:$0 sm:$0xff]  ;;  %3304 = vmatpush.msra.mxu1 %v3238_v60 }
 0x28c   :  { %v411_v33 = vsel %vm409_vm6, %v397_v37, %v410_v16  ;;  %v235_v8 = vmul.f32 1.442695, %v209_v59  ;;  %v212_v35 = vmul.f32 %v196_v25, %v180_v10  ;;  %v3237_v16 = vld [vmem:[%s9042_s8 + $0x10] sm:$0xff]  ;;  %4887 = vmatpush.msra.mxu2 %v3238_v60  ;;  %vm3243_vm8 = vcmask 261120  }
 0x28d   :  { %v415_v34 = vsel %vm408_vm7, %v411_v33, %v414_v17  ;;  %v8194_v6 = vpop.eup %4926  ;;  %4932 = vpow2.f32 %v233_v57  ;;  %v237_v42 = vmul.f32 1.442695, %v210_v32  ;;  %v239_v48 = vmul.f32 1.442695, %v211_v11  ;;  %3305 = vmatpush.msra.mxu1 %v3237_v16 }
 0x28e   :  { %v416_v43 = vsel %vm406_vm1, nan, %v415_v34  ;;  %9407 = vst [vmem:[#allocation32_spill] sm:$0xff] %v8194_v6  ;;  %4727 = vmatmul.msk.f32.vlgmr.msra.gmra.mxu3 %vm2817_vm3, %v8194_v6  ;;  %v8201_v49 = vpop.eup %4928  ;;  %4934 = vpow2.f32 %v235_v8  ;;  %v197_v29 = vmul.f32 -1.125, %v181_v19  ;;  %v241_v4 = vmul.f32 1.442695, %v212_v35  ;;  %4888 = vmatpush.msra.mxu2 %v3237_v16 }
 0x28f   :  { %v2727_v21 = vadd.f32 1.0, %v416_v43  ;;  %v8206_v47 = vpop.eup %4930  ;;  %4936 = vpow2.f32 %v237_v42  ;;  %v3235_v43 = vld [vmem:[%s9042_s8] sm:$0xff]  ;;  %3306 = vmatpush.msra.mxu1 %v3236_v36 }
 0x290   :  { %4938 = vpow2.f32 %v239_v48  ;;  %v213_v13 = vmul.f32 %v197_v29, %v181_v19  ;;  %4889 = vmatpush.msra.mxu2 %v3236_v36 }
 0x291   :  { %v2743_v41 = vmul.f32 0.5, %v2727_v21  ;;  %4940 = vpow2.f32 %v241_v4  ;;  %3307 = vmatpush.msra.mxu1 %v3235_v43 }
 0x292   :  { %v243_v22 = vmul.f32 1.442695, %v213_v13  ;;  %4890 = vmatpush.msra.mxu2 %v3235_v43 }
 0x293   :  { %4719 = vmatmul.msk.f32.gmra.mxu0 %vm2817_vm3, %v8201_v49  ;;  %v2775_v51 = vmul.f32 %v2759_v44, %v2743_v41  ;;  %v8211_v30 = vpop.eup %4932 }
 0x294   :  { %v8217_v45 = vpop.eup %4934  ;;  %4942 = vpow2.f32 %v243_v22 }
 0x295   :  { %3359 = vperm.xlu1 %4899, %v2775_v51   ;;  %v8222_v9 = vpop.eup %4936 }
 0x296   :  { %v8227_v61 = vpop.eup %4938 }
 0x297   :  { %v8231_v37 = vpop.eup %4940 }
 0x29a   :  { %v8235_v7 = vpop.eup %4942 }
 0x29b   :  { %4720 = vmatmul.msk.f32.gmra.mxu0 %vm2817_vm3, %v8206_v47  ;;  %9408 = vst [vmem:[#allocation24_spill] sm:$0xff] %v8235_v7 }
 0x2a3   :  { %4721 = vmatmul.msk.f32.gmra.mxu0 %vm2817_vm3, %v8211_v30 }
 0x2ab   :  { %4722 = vmatmul.msk.f32.gmra.mxu0 %vm2817_vm3, %v8217_v45 }
 0x2b3   :  { %4723 = vmatmul.msk.f32.gmra.mxu0 %vm2817_vm3, %v8222_v9 }
 0x2bb   :  { %4724 = vmatmul.msk.f32.gmra.mxu0 %vm2817_vm3, %v8227_v61 }
 0x2c3   :  { %4725 = vmatmul.msk.f32.gmra.mxu0 %vm2817_vm3, %v8231_v37 }
 0x2cb   :  { %4726 = vmatmul.msk.f32.gmra.mxu0 %vm2817_vm3, %v8235_v7 }
 0x2d8   :  { %v2883_v15 = vpop.f32.mrf.mxu0 }
 0x2d9   :  { %v2884_v12 = vadd.f32 %v8242_v55, %v2883_v15 }
 0x2db   :  { %v2979_v56 = vand.u32 2147483647, %v2884_v12  ;;  %v2931_v14 = vmax.f32 %v2884_v12, 0.0  ;;  %vm2947_vm15 = vcmp.ne.f32.partialorder %v2884_v12, %v2884_v12 }
 0x2dd   :  { %v2995_v26 = vsub.f32 0.0, %v2979_v56 }
 0x2df   :  { %v3011_v58 = vmul.f32 1.442695, %v2995_v26 }
 0x2e0   :  { %v2886_v46 = vpop.f32.mrf.mxu0 }
 0x2e1   :  { %4944 = vpow2.f32 %v3011_v58  ;;  %v8252_v17 = vadd.f32 %v8242_v55, %v2886_v46 }
 0x2e3   :  { %v2980_v34 = vand.u32 2147483647, %v8252_v17  ;;  %v2932_v26 = vmax.f32 %v8252_v17, 0.0  ;;  %vm2948_vm9 = vcmp.ne.f32.partialorder %v8252_v17, %v8252_v17 }
 0x2e5   :  { %v2996_v50 = vsub.f32 0.0, %v2980_v34 }
 0x2e7   :  { %v4945_v63 = vpop.eup %4944  ;;  %v3013_v21 = vmul.f32 1.442695, %v2996_v50 }
 0x2e8   :  { %v3043_v28 = vadd.f32 1.0, %v4945_v63  ;;  %v3046_v33 = vmul.f32 -0.5, %v4945_v63  ;;  %v3049_v0 = vand.u32 2147483647, %v4945_v63  ;;  %v2889_v44 = vpop.f32.mrf.mxu0 }
 0x2e9   :  { %v8262_v54 = vadd.f32 %v8242_v55, %v2889_v44 }
 0x2ea   :  { %4946 = vlog2.f32 %v3043_v28  ;;  %v3047_v52 = vadd.f32 1.0, %v3046_v33  ;;  %vm3050_vm12 = vcmp.lt.f32.partialorder %v3049_v0, 0.0004427343 }
 0x2eb   :  { %4948 = vpow2.f32 %v3013_v21  ;;  %v2981_v57 = vand.u32 2147483647, %v8262_v54  ;;  %vm2949_vm0 = vcmp.ne.f32.partialorder %v8262_v54, %v8262_v54 }
 0x2ec   :  { %v3048_v51 = vmul.f32 %v4945_v63, %v3047_v52 }
 0x2ed   :  { %v2997_v2 = vsub.f32 0.0, %v2981_v57 }
 0x2ef   :  { %v3015_v8 = vmul.f32 1.442695, %v2997_v2 }
 0x2f0   :  { %v4947_v41 = vpop.eup %4946  ;;  %v2892_v18 = vpop.f32.mrf.mxu0 }
 0x2f1   :  { %v3045_v38 = vmul.f32 0.6931472, %v4947_v41  ;;  %v4949_v40 = vpop.eup %4948  ;;  %4950 = vpow2.f32 %v3015_v8  ;;  %v8266_v10 = vadd.f32 %v8242_v55, %v2892_v18 }
 0x2f2   :  { %v3052_v20 = vadd.f32 1.0, %v4949_v40  ;;  %v3055_v5 = vmul.f32 -0.5, %v4949_v40  ;;  %v3058_v62 = vand.u32 2147483647, %v4949_v40 }
 0x2f3   :  { %v3051_v31 = vsel %vm3050_vm12, %v3048_v51, %v3045_v38  ;;  %v2982_v11 = vand.u32 2147483647, %v8266_v10  ;;  %v2933_v51 = vmax.f32 %v8262_v54, 0.0  ;;  %vm2950_vm14 = vcmp.ne.f32.partialorder %v8266_v10, %v8266_v10 }
 0x2f4   :  { %v3187_v59 = vadd.f32 %v3051_v31, %v2931_v14  ;;  %4952 = vlog2.f32 %v3052_v20  ;;  %v3056_v25 = vadd.f32 1.0, %v3055_v5  ;;  %vm3059_vm13 = vcmp.lt.f32.partialorder %v3058_v62, 0.0004427343 }
 0x2f5   :  { %v2998_v48 = vsub.f32 0.0, %v2982_v11 }
 0x2f6   :  { %v3203_v32 = vsel %vm2947_vm15, %v2884_v12, %v3187_v59  ;;  %v3057_v13 = vmul.f32 %v4949_v40, %v3056_v25 }
 0x2f7   :  { %v4728_v42 = vadd.f32 -0.6931472, %v3203_v32  ;;  %v4951_v19 = vpop.eup %4950  ;;  %v3017_v35 = vmul.f32 1.442695, %v2998_v48 }
 0x2f8   :  { %v2895_v4 = vpop.f32.mrf.mxu0  ;;  %v3061_v22 = vadd.f32 1.0, %v4951_v19  ;;  %v3064_v56 = vmul.f32 -0.5, %v4951_v19  ;;  %v3067_v36 = vand.u32 2147483647, %v4951_v19 }
 0x2f9   :  { %4744 = vmatmul.msk.f32.vlgmr.msra.gmra.mxu1 %vm3243_vm8, %v4728_v42  ;;  %4954 = vpow2.f32 %v3017_v35  ;;  %v8271_v15 = vadd.f32 %v8242_v55, %v2895_v4 }
 0x2fa   :  { %v4953_v29 = vpop.eup %4952  ;;  %4956 = vlog2.f32 %v3061_v22  ;;  %v3065_v16 = vadd.f32 1.0, %v3064_v56  ;;  %vm3068_vm11 = vcmp.lt.f32.partialorder %v3067_v36, 0.0004427343 }
 0x2fb   :  { %v3054_v12 = vmul.f32 0.6931472, %v4953_v29  ;;  %v2983_v58 = vand.u32 2147483647, %v8271_v15  ;;  %vm2951_vm4 = vcmp.ne.f32.partialorder %v8271_v15, %v8271_v15 }
 0x2fc   :  { %v3066_v38 = vmul.f32 %v4951_v19, %v3065_v16  ;;  %v2934_v19 = vmax.f32 %v8266_v10, 0.0 }
 0x2fd   :  { %v3060_v63 = vsel %vm3059_vm13, %v3057_v13, %v3054_v12  ;;  %v2999_v60 = vsub.f32 0.0, %v2983_v58 }
 0x2fe   :  { %v3188_v46 = vadd.f32 %v3060_v63, %v2932_v26 }
 0x2ff   :  { %v4955_v33 = vpop.eup %4954  ;;  %v3019_v34 = vmul.f32 1.442695, %v2999_v60 }
 0x300   :  { %v3204_v28 = vsel %vm2948_vm9, %v8252_v17, %v3188_v46  ;;  %v4957_v50 = vpop.eup %4956  ;;  %v2898_v52 = vpop.f32.mrf.mxu0  ;;  %v3070_v21 = vadd.f32 1.0, %v4955_v33  ;;  %v3073_v0 = vmul.f32 -0.5, %v4955_v33  ;;  %v3076_v40 = vand.u32 2147483647, %v4955_v33 }
 0x301   :  { %v4729_v43 = vadd.f32 -0.6931472, %v3204_v28  ;;  %4958 = vpow2.f32 %v3019_v34  ;;  %v8279_v44 = vadd.f32 %v8242_v55, %v2898_v52  ;;  %v3063_v41 = vmul.f32 0.6931472, %v4957_v50 }
 0x302   :  { %4960 = vlog2.f32 %v3070_v21  ;;  %v3074_v31 = vadd.f32 1.0, %v3073_v0  ;;  %vm3077_vm2 = vcmp.lt.f32.partialorder %v3076_v40, 0.0004427343  ;;  %v2935_v34 = vmax.f32 %v8271_v15, 0.0 }
 0x303   :  { %4745 = vmatmul.msk.f32.gmra.mxu1 %vm3243_vm8, %v4729_v43  ;;  %v2984_v17 = vand.u32 2147483647, %v8279_v44  ;;  %v3069_v14 = vsel %vm3068_vm11, %v3066_v38, %v3063_v41  ;;  %vm2952_vm6 = vcmp.ne.f32.partialorder %v8279_v44, %v8279_v44 }
 0x304   :  { %v3189_v57 = vadd.f32 %v3069_v14, %v2933_v51  ;;  %v3075_v5 = vmul.f32 %v4955_v33, %v3074_v31 }
 0x305   :  { %v3000_v2 = vsub.f32 0.0, %v2984_v17 }
 0x306   :  { %v3205_v59 = vsel %vm2949_vm0, %v8262_v54, %v3189_v57 }
 0x307   :  { %v4959_v8 = vpop.eup %4958  ;;  %v3021_v32 = vmul.f32 1.442695, %v3000_v2  ;;  %v4730_v18 = vadd.f32 -0.6931472, %v3205_v59 }
 0x308   :  { %v4961_v42 = vpop.eup %4960  ;;  %v2901_v20 = vpop.f32.mrf.mxu0  ;;  %v3079_v11 = vadd.f32 1.0, %v4959_v8  ;;  %v3082_v62 = vmul.f32 -0.5, %v4959_v8  ;;  %v3085_v12 = vand.u32 2147483647, %v4959_v8 }
 0x309   :  { %4962 = vpow2.f32 %v3021_v32  ;;  %v8288_v25 = vadd.f32 %v8242_v55, %v2901_v20  ;;  %v3072_v48 = vmul.f32 0.6931472, %v4961_v42  ;;  %v2936_v32 = vmax.f32 %v8279_v44, 0.0 }
 0x30a   :  { %4964 = vlog2.f32 %v3079_v11  ;;  %v3083_v13 = vadd.f32 1.0, %v3082_v62  ;;  %vm3086_vm10 = vcmp.lt.f32.partialorder %v3085_v12, 0.0004427343 }
 0x30b   :  { %4746 = vmatmul.msk.f32.gmra.mxu1 %vm3243_vm8, %v4730_v18  ;;  %v2985_v54 = vand.u32 2147483647, %v8288_v25  ;;  %v3078_v35 = vsel %vm3077_vm2, %v3075_v5, %v3072_v48  ;;  %vm2953_vm1 = vcmp.ne.f32.partialorder %v8288_v25, %v8288_v25 }
 0x30c   :  { %v3190_v29 = vadd.f32 %v3078_v35, %v2934_v19  ;;  %v3084_v33 = vmul.f32 %v4959_v8, %v3083_v13 }
 0x30d   :  { %v3001_v4 = vsub.f32 0.0, %v2985_v54 }
 0x30e   :  { %v3206_v22 = vsel %vm2950_vm14, %v8266_v10, %v3190_v29 }
 0x30f   :  { %v4963_v56 = vpop.eup %4962  ;;  %v3023_v26 = vmul.f32 1.442695, %v3001_v4  ;;  %v4731_v46 = vadd.f32 -0.6931472, %v3206_v22 }
 0x310   :  { %v4965_v58 = vpop.eup %4964  ;;  %v2904_v63 = vpop.f32.mrf.mxu0  ;;  %v3088_v60 = vadd.f32 1.0, %v4963_v56  ;;  %v3091_v16 = vmul.f32 -0.5, %v4963_v56  ;;  %v3094_v41 = vand.u32 2147483647, %v4963_v56 }
 0x311   :  { %4966 = vpow2.f32 %v3023_v26  ;;  %v8297_v28 = vadd.f32 %v8242_v55, %v2904_v63  ;;  %v3081_v36 = vmul.f32 0.6931472, %v4965_v58  ;;  %v2937_v26 = vmax.f32 %v8288_v25, 0.0 }
 0x312   :  { %4968 = vlog2.f32 %v3088_v60  ;;  %v3092_v52 = vadd.f32 1.0, %v3091_v16  ;;  %vm3095_vm5 = vcmp.lt.f32.partialorder %v3094_v41, 0.0004427343 }
 0x313   :  { %4747 = vmatmul.msk.f32.gmra.mxu1 %vm3243_vm8, %v4731_v46  ;;  %v2986_v10 = vand.u32 2147483647, %v8297_v28  ;;  %v3087_v43 = vsel %vm3086_vm10, %v3084_v33, %v3081_v36  ;;  %vm2954_vm15 = vcmp.ne.f32.partialorder %v8297_v28, %v8297_v28 }
 0x314   :  { %v3191_v50 = vadd.f32 %v3087_v43, %v2935_v34  ;;  %v3093_v31 = vmul.f32 %v4963_v56, %v3092_v52 }
 0x315   :  { %v3002_v21 = vsub.f32 0.0, %v2986_v10 }
 0x316   :  { %v3207_v0 = vsel %vm2951_vm4, %v8271_v15, %v3191_v50 }
 0x317   :  { %v4967_v38 = vpop.eup %4966  ;;  %v3025_v51 = vmul.f32 1.442695, %v3002_v21  ;;  %v4732_v17 = vadd.f32 -0.6931472, %v3207_v0 }
 0x318   :  { %v4969_v14 = vpop.eup %4968  ;;  %v2907_v57 = vpop.f32.mrf.mxu0  ;;  %v3097_v2 = vadd.f32 1.0, %v4967_v38  ;;  %v3100_v8 = vmul.f32 -0.5, %v4967_v38  ;;  %v3103_v48 = vand.u32 2147483647, %v4967_v38 }
 0x319   :  { %4970 = vpow2.f32 %v3025_v51  ;;  %v8306_v59 = vadd.f32 %v8242_v55, %v2907_v57  ;;  %v3090_v40 = vmul.f32 0.6931472, %v4969_v14  ;;  %v2938_v51 = vmax.f32 %v8297_v28, 0.0 }
 0x31a   :  { %4972 = vlog2.f32 %v3097_v2  ;;  %v3101_v5 = vadd.f32 1.0, %v3100_v8  ;;  %vm3104_vm7 = vcmp.lt.f32.partialorder %v3103_v48, 0.0004427343 }
 0x31b   :  { %4748 = vmatmul.msk.f32.gmra.mxu1 %vm3243_vm8, %v4732_v17  ;;  %v2987_v15 = vand.u32 2147483647, %v8306_v59  ;;  %v3096_v18 = vsel %vm3095_vm5, %v3093_v31, %v3090_v40  ;;  %vm2955_vm9 = vcmp.ne.f32.partialorder %v8306_v59, %v8306_v59 }
 0x31c   :  { %v3192_v42 = vadd.f32 %v3096_v18, %v2936_v32  ;;  %v3102_v56 = vmul.f32 %v4967_v38, %v3101_v5 }
 0x31d   :  { %v3003_v20 = vsub.f32 0.0, %v2987_v15 }
 0x31e   :  { %v3208_v11 = vsel %vm2952_vm6, %v8279_v44, %v3192_v42 }
 0x31f   :  { %v4971_v62 = vpop.eup %4970  ;;  %v3027_v19 = vmul.f32 1.442695, %v3003_v20  ;;  %v4733_v54 = vadd.f32 -0.6931472, %v3208_v11 }
 0x320   :  { %v4973_v35 = vpop.eup %4972  ;;  %v2910_v29 = vpop.f32.mrf.mxu0  ;;  %v3106_v4 = vadd.f32 1.0, %v4971_v62  ;;  %v3109_v13 = vmul.f32 -0.5, %v4971_v62  ;;  %v3112_v36 = vand.u32 2147483647, %v4971_v62 }
 0x321   :  { %4974 = vpow2.f32 %v3027_v19  ;;  %v8315_v22 = vadd.f32 %v8242_v55, %v2910_v29  ;;  %v3099_v12 = vmul.f32 0.6931472, %v4973_v35  ;;  %v2939_v19 = vmax.f32 %v8306_v59, 0.0 }
 0x322   :  { %4976 = vlog2.f32 %v3106_v4  ;;  %v3110_v46 = vadd.f32 1.0, %v3109_v13  ;;  %vm3113_vm12 = vcmp.lt.f32.partialorder %v3112_v36, 0.0004427343 }
 0x323   :  { %4749 = vmatmul.msk.f32.gmra.mxu1 %vm3243_vm8, %v4733_v54  ;;  %v2988_v44 = vand.u32 2147483647, %v8315_v22  ;;  %v3105_v58 = vsel %vm3104_vm7, %v3102_v56, %v3099_v12  ;;  %vm2956_vm0 = vcmp.ne.f32.partialorder %v8315_v22, %v8315_v22 }
 0x324   :  { %v3193_v63 = vadd.f32 %v3105_v58, %v2937_v26  ;;  %v3111_v52 = vmul.f32 %v4971_v62, %v3110_v46 }
 0x325   :  { %v3004_v60 = vsub.f32 0.0, %v2988_v44 }
 0x326   :  { %v3209_v16 = vsel %vm2953_vm1, %v8288_v25, %v3193_v63  ;;  %v2928_v63 = vpop.f32.mrf.mxu3 }
 0x327   :  { %v4975_v33 = vpop.eup %4974  ;;  %v3029_v34 = vmul.f32 1.442695, %v3004_v60  ;;  %v4734_v10 = vadd.f32 -0.6931472, %v3209_v16 }
 0x328   :  { %v4977_v43 = vpop.eup %4976  ;;  %v2913_v50 = vpop.f32.mrf.mxu0  ;;  %v3115_v21 = vadd.f32 1.0, %v4975_v33  ;;  %v3118_v38 = vmul.f32 -0.5, %v4975_v33  ;;  %v3121_v40 = vand.u32 2147483647, %v4975_v33 }
 0x329   :  { %4978 = vpow2.f32 %v3029_v34  ;;  %v8324_v0 = vadd.f32 %v8242_v55, %v2913_v50  ;;  %v3108_v41 = vmul.f32 0.6931472, %v4977_v43 }
 0x32a   :  { %4980 = vlog2.f32 %v3115_v21  ;;  %v3119_v31 = vadd.f32 1.0, %v3118_v38  ;;  %vm3122_vm13 = vcmp.lt.f32.partialorder %v3121_v40, 0.0004427343 }
 0x32b   :  { %4750 = vmatmul.msk.f32.gmra.mxu1 %vm3243_vm8, %v4734_v10  ;;  %v2989_v25 = vand.u32 2147483647, %v8324_v0  ;;  %v3114_v17 = vsel %vm3113_vm12, %v3111_v52, %v3108_v41  ;;  %v2940_v10 = vmax.f32 %v8315_v22, 0.0  ;;  %vm2957_vm14 = vcmp.ne.f32.partialorder %v8324_v0, %v8324_v0 }
 0x32c   :  { %v3194_v14 = vadd.f32 %v3114_v17, %v2938_v51  ;;  %v3120_v62 = vmul.f32 %v4975_v33, %v3119_v31 }
 0x32d   :  { %v3005_v57 = vsub.f32 0.0, %v2989_v25 }
 0x32e   :  { %v3210_v2 = vsel %vm2954_vm15, %v8297_v28, %v3194_v14 }
 0x32f   :  { %v4979_v8 = vpop.eup %4978  ;;  %v3031_v32 = vmul.f32 1.442695, %v3005_v57  ;;  %v4735_v15 = vadd.f32 -0.6931472, %v3210_v2 }
 0x330   :  { %v4981_v18 = vpop.eup %4980  ;;  %v2916_v42 = vpop.f32.mrf.mxu0  ;;  %v3124_v20 = vadd.f32 1.0, %v4979_v8  ;;  %v3127_v5 = vmul.f32 -0.5, %v4979_v8  ;;  %v3130_v12 = vand.u32 2147483647, %v4979_v8 }
 0x331   :  { %4982 = vpow2.f32 %v3031_v32  ;;  %v8333_v11 = vadd.f32 %v8242_v55, %v2916_v42  ;;  %v3117_v48 = vmul.f32 0.6931472, %v4981_v18  ;;  %v2941_v42 = vmax.f32 %v8324_v0, 0.0 }
 0x332   :  { %4984 = vlog2.f32 %v3124_v20  ;;  %v3128_v29 = vadd.f32 1.0, %v3127_v5  ;;  %vm3131_vm11 = vcmp.lt.f32.partialorder %v3130_v12, 0.0004427343 }
 0x333   :  { %4751 = vmatmul.msk.f32.gmra.mxu1 %vm3243_vm8, %v4735_v15  ;;  %v2990_v28 = vand.u32 2147483647, %v8333_v11  ;;  %v3123_v54 = vsel %vm3122_vm13, %v3120_v62, %v3117_v48  ;;  %vm2958_vm4 = vcmp.ne.f32.partialorder %v8333_v11, %v8333_v11 }
 0x334   :  { %v3195_v35 = vadd.f32 %v3123_v54, %v2939_v19  ;;  %v3129_v60 = vmul.f32 %v4979_v8, %v3128_v29 }
 0x335   :  { %v3006_v4 = vsub.f32 0.0, %v2990_v28 }
 0x336   :  { %v3211_v13 = vsel %vm2955_vm9, %v8306_v59, %v3195_v35  ;;  %v8347_v59 = vadd.f32 %v8242_v55, %v2928_v63 }
 0x337   :  { %v4983_v56 = vpop.eup %4982  ;;  %v3033_v26 = vmul.f32 1.442695, %v3006_v4  ;;  %v4736_v44 = vadd.f32 -0.6931472, %v3211_v13 }
 0x338   :  { %v4985_v58 = vpop.eup %4984  ;;  %v2919_v46 = vpop.f32.mrf.mxu0  ;;  %v3133_v16 = vadd.f32 1.0, %v4983_v56  ;;  %v3136_v34 = vmul.f32 -0.5, %v4983_v56  ;;  %v3139_v51 = vand.u32 2147483647, %v4983_v56  ;;  %v2994_v17 = vand.u32 2147483647, %v8347_v59 }
 0x339   :  { %4986 = vpow2.f32 %v3033_v26  ;;  %v8342_v36 = vadd.f32 %v8242_v55, %v2919_v46  ;;  %v3126_v33 = vmul.f32 0.6931472, %v4985_v58  ;;  %vm2962_vm9 = vcmp.ne.f32.partialorder %v8347_v59, %v8347_v59 }
 0x33a   :  { %4988 = vlog2.f32 %v3133_v16  ;;  %v3137_v41 = vadd.f32 1.0, %v3136_v34  ;;  %vm3140_vm2 = vcmp.lt.f32.partialorder %v3139_v51, 0.0004427343 }
 0x33b   :  { %4752 = vmatmul.msk.f32.gmra.mxu1 %vm3243_vm8, %v4736_v44  ;;  %v2991_v43 = vand.u32 2147483647, %v8342_v36  ;;  %v3132_v50 = vsel %vm3131_vm11, %v3129_v60, %v3126_v33  ;;  %v2942_v60 = vmax.f32 %v8333_v11, 0.0  ;;  %vm2959_vm6 = vcmp.ne.f32.partialorder %v8342_v36, %v8342_v36 }
 0x33c   :  { %v3196_v52 = vadd.f32 %v3132_v50, %v2940_v10  ;;  %v3138_v18 = vmul.f32 %v4983_v56, %v3137_v41 }
 0x33d   :  { %v3007_v21 = vsub.f32 0.0, %v2991_v43 }
 0x33e   :  { %v3212_v38 = vsel %vm2956_vm0, %v8315_v22, %v3196_v52  ;;  %v3010_v22 = vsub.f32 0.0, %v2994_v17 }
 0x33f   :  { %v4987_v25 = vpop.eup %4986  ;;  %v3035_v14 = vmul.f32 1.442695, %v3007_v21  ;;  %v4737_v57 = vadd.f32 -0.6931472, %v3212_v38 }
 0x340   :  { %v4989_v31 = vpop.eup %4988  ;;  %v2922_v2 = vpop.f32.mrf.mxu0  ;;  %v3142_v40 = vadd.f32 1.0, %v4987_v25  ;;  %v3145_v8 = vmul.f32 -0.5, %v4987_v25  ;;  %v3148_v54 = vand.u32 2147483647, %v4987_v25  ;;  %v3041_v29 = vmul.f32 1.442695, %v3010_v22 }
 0x341   :  { %4990 = vpow2.f32 %v3035_v14  ;;  %v8355_v32 = vadd.f32 %v8242_v55, %v2922_v2  ;;  %v3135_v15 = vmul.f32 0.6931472, %v4989_v31  ;;  %v3455_v31 = vld [vmem:[%s9044_s10 + $0x10] sm:$0xff] }
 0x342   :  { %4992 = vlog2.f32 %v3142_v40  ;;  %v3146_v62 = vadd.f32 1.0, %v3145_v8  ;;  %vm3149_vm10 = vcmp.lt.f32.partialorder %v3148_v54, 0.0004427343  ;;  %v3454_v40 = vld [vmem:[%s9044_s10 + $0x8] sm:$0xff] }
 0x343   :  { %4753 = vmatmul.msk.f32.gmra.mxu1 %vm3243_vm8, %v4737_v57  ;;  %v2992_v20 = vand.u32 2147483647, %v8355_v32  ;;  %v3141_v5 = vsel %vm3140_vm2, %v3138_v18, %v3135_v15  ;;  %v3456_v57 = vld [vmem:[%s9044_s10 + $0x18] sm:$0xff]  ;;  %vm2960_vm1 = vcmp.ne.f32.partialorder %v8355_v32, %v8355_v32 }
 0x344   :  { %v3197_v48 = vadd.f32 %v3141_v5, %v2941_v42  ;;  %v3147_v26 = vmul.f32 %v4987_v25, %v3146_v62  ;;  %3475 = vmatpush.msrb.mxu2 %v3456_v57  ;;  %v3453_v42 = vld [vmem:[%s9044_s10] sm:$0xff] }
 0x345   :  { %v3008_v19 = vsub.f32 0.0, %v2992_v20 }
 0x346   :  { %v3213_v28 = vsel %vm2957_vm14, %v8324_v0, %v3197_v48  ;;  %3476 = vmatpush.msrb.mxu2 %v3455_v31 }
 0x347   :  { %v4991_v35 = vpop.eup %4990  ;;  %v3037_v4 = vmul.f32 1.442695, %v3008_v19  ;;  %v4738_v13 = vadd.f32 -0.6931472, %v3213_v28 }
 0x348   :  { %v4993_v12 = vpop.eup %4992  ;;  %v2925_v56 = vpop.f32.mrf.mxu0  ;;  %v3151_v44 = vadd.f32 1.0, %v4991_v35  ;;  %v3154_v46 = vmul.f32 -0.5, %v4991_v35  ;;  %v3157_v43 = vand.u32 2147483647, %v4991_v35  ;;  %3477 = vmatpush.msrb.mxu2 %v3454_v40  ;;  %v2795_v40 = vld [vmem:[%s9046_s4 + $0x10] sm:$0xff] }
 0x349   :  { %4994 = vpow2.f32 %v3037_v4  ;;  %v8364_v58 = vadd.f32 %v8242_v55, %v2925_v56  ;;  %v3144_v63 = vmul.f32 0.6931472, %v4993_v12 }
 0x34a   :  { %4996 = vlog2.f32 %v3151_v44  ;;  %v3155_v10 = vadd.f32 1.0, %v3154_v46  ;;  %vm3158_vm5 = vcmp.lt.f32.partialorder %v3157_v43, 0.0004427343  ;;  %3478 = vmatpush.msrb.mxu2 %v3453_v42  ;;  %v2799_v42 = vld [vmem:[%s9046_s4 + $0x30] sm:$0xff] }
 0x34b   :  { %4754 = vmatmul.msk.f32.gmra.mxu1 %vm3243_vm8, %v4738_v13  ;;  %4998 = vpow2.f32 %v3041_v29  ;;  %v2993_v0 = vand.u32 2147483647, %v8364_v58  ;;  %v3150_v16 = vsel %vm3149_vm10, %v3147_v26, %v3144_v63  ;;  %v2944_v29 = vmax.f32 %v8355_v32, 0.0 }
 0x34c   :  { %v3198_v33 = vadd.f32 %v3150_v16, %v2942_v60  ;;  %v3156_v17 = vmul.f32 %v4991_v35, %v3155_v10  ;;  %v2945_v10 = vmax.f32 %v8364_v58, 0.0  ;;  %vm2961_vm13 = vcmp.ne.f32.partialorder %v8364_v58, %v8364_v58 }
 0x34d   :  { %v3009_v34 = vsub.f32 0.0, %v2993_v0 }
 0x34e   :  { %v3214_v55 = vsel %vm2958_vm4, %v8333_v11, %v3198_v33  ;;  %v2943_v11 = vmax.f32 %v8342_v36, 0.0 }
 0x34f   :  { %v4995_v50 = vpop.eup %4994  ;;  %v3039_v52 = vmul.f32 1.442695, %v3009_v34  ;;  %v4739_v21 = vadd.f32 -0.6931472, %v3214_v55 }
 0x350   :  { %v4997_v41 = vpop.eup %4996  ;;  %v3160_v38 = vadd.f32 1.0, %v4995_v50  ;;  %v3163_v14 = vmul.f32 -0.5, %v4995_v50  ;;  %v3166_v20 = vand.u32 2147483647, %v4995_v50 }
 0x351   :  { %v4999_v51 = vpop.eup %4998  ;;  %5000 = vpow2.f32 %v3039_v52  ;;  %v3153_v25 = vmul.f32 0.6931472, %v4997_v41  ;;  %v2946_v52 = vmax.f32 %v8347_v59, 0.0 }
 0x352   :  { %5002 = vlog2.f32 %v3160_v38  ;;  %v3178_v15 = vadd.f32 1.0, %v4999_v51  ;;  %v3164_v18 = vadd.f32 1.0, %v3163_v14  ;;  %vm3167_vm7 = vcmp.lt.f32.partialorder %v3166_v20, 0.0004427343  ;;  %v2801_v20 = vld [vmem:[%s9046_s4 + $0x40] sm:$0xff] }
 0x353   :  { %4755 = vmatmul.msk.f32.gmra.mxu1 %vm3243_vm8, %v4739_v21  ;;  %v3159_v2 = vsel %vm3158_vm5, %v3156_v17, %v3153_v25  ;;  %v3181_v13 = vmul.f32 -0.5, %v4999_v51  ;;  %v3184_v0 = vand.u32 2147483647, %v4999_v51  ;;  %v8408_v17 = vld [vmem:[%s9045_s3] sm:$0xff] }
 0x354   :  { %v3199_v8 = vadd.f32 %v3159_v2, %v2943_v11  ;;  %5004 = vlog2.f32 %v3178_v15  ;;  %v3165_v54 = vmul.f32 %v4995_v50, %v3164_v18  ;;  %9410 = vst [vmem:[#allocation35_spill] sm:$0xff] %v8408_v17  ;;  %v2793_v11 = vld [vmem:[%s9046_s4] sm:$0xff]  ;;  %v2794_v2 = vld [vmem:[%s9046_s4 + $0x8] sm:$0xff] }
 0x355   :  { %v3182_v46 = vadd.f32 1.0, %v3181_v13  ;;  %vm3185_vm15 = vcmp.lt.f32.partialorder %v3184_v0, 0.0004427343  ;;  %v2797_v15 = vld [vmem:[%s9046_s4 + $0x20] sm:$0xff]  ;;  %v2798_v18 = vld [vmem:[%s9046_s4 + $0x28] sm:$0xff] }
 0x356   :  { %v3215_v22 = vsel %vm2959_vm6, %v8342_v36, %v3199_v8  ;;  %v2796_v8 = vld [vmem:[%s9046_s4 + $0x18] sm:$0xff] }
 0x357   :  { %v5001_v5 = vpop.eup %5000  ;;  %v4740_v48 = vadd.f32 -0.6931472, %v3215_v22  ;;  %v3183_v43 = vmul.f32 %v4999_v51, %v3182_v46  ;;  %v2800_v22 = vld [vmem:[%s9046_s4 + $0x38] sm:$0xff] }
 0x358   :  { %v5003_v62 = vpop.eup %5002  ;;  %v3169_v19 = vadd.f32 1.0, %v5001_v5  ;;  %v3172_v35 = vmul.f32 -0.5, %v5001_v5  ;;  %v3175_v44 = vand.u32 2147483647, %v5001_v5 }
 0x359   :  { %v3162_v28 = vmul.f32 0.6931472, %v5003_v62  ;;  %v2804_v62 = vld [vmem:[%s9046_s4 + $0x58] sm:$0xff] }
 0x35a   :  { %5006 = vlog2.f32 %v3169_v19  ;;  %v3173_v12 = vadd.f32 1.0, %v3172_v35  ;;  %v5005_v56 = vpop.eup %5004  ;;  %vm3176_vm12 = vcmp.lt.f32.partialorder %v3175_v44, 0.0004427343  ;;  %v2805_v19 = vld [vmem:[%s9046_s4 + $0x60] sm:$0xff] }
 0x35b   :  { %4756 = vmatmul.msk.f32.gmra.mxu1 %vm3243_vm8, %v4740_v48  ;;  %v3168_v4 = vsel %vm3167_vm7, %v3165_v54, %v3162_v28  ;;  %v3180_v34 = vmul.f32 0.6931472, %v5005_v56  ;;  %v2803_v48 = vld [vmem:[%s9046_s4 + $0x50] sm:$0xff]  ;;  %v2806_v28 = vld [vmem:[%s9046_s4 + $0x68] sm:$0xff] }
 0x35c   :  { %v3200_v36 = vadd.f32 %v3168_v4, %v2944_v29  ;;  %v3174_v33 = vmul.f32 %v5001_v5, %v3173_v12  ;;  %v2802_v5 = vld [vmem:[%s9046_s4 + $0x48] sm:$0xff]  ;;  %v2807_v54 = vld [vmem:[%s9046_s4 + $0x70] sm:$0xff]  ;;  %v2808_v29 = vld [vmem:[%s9046_s4 + $0x78] sm:$0xff] }
 0x35e   :  { %v3216_v26 = vsel %vm2960_vm1, %v8355_v32, %v3200_v36  ;;  %v3186_v32 = vsel %vm3185_vm15, %v3183_v43, %v3180_v34 }
 0x35f   :  { %v4741_v63 = vadd.f32 -0.6931472, %v3216_v26  ;;  %v3202_v38 = vadd.f32 %v3186_v32, %v2946_v52  ;;  %v8499_v26 = vpop.permute.xlu1 %3434 }
 0x360   :  { %v5007_v60 = vpop.eup %5006 }
 0x361   :  { %v3171_v16 = vmul.f32 0.6931472, %v5007_v60  ;;  %v3218_v25 = vsel %vm2962_vm9, %v8347_v59, %v3202_v38 }
 0x362   :  { %v4743_v51 = vadd.f32 -0.6931472, %v3218_v25 }
 0x363   :  { %4757 = vmatmul.msk.f32.gmra.mxu1 %vm3243_vm8, %v4741_v63  ;;  %v3177_v55 = vsel %vm3176_vm12, %v3174_v33, %v3171_v16 }
 0x364   :  { %v3201_v50 = vadd.f32 %v3177_v55, %v2945_v10  ;;  %v8520_v55 = vld [vmem:[%s9043_s9] ss:$0 sm:$0xff] }
 0x366   :  { %v3217_v21 = vsel %vm2961_vm13, %v8364_v58, %v3201_v50  ;;  %v8415_v58 = vld [vmem:[%s9045_s3 + $0x8] sm:$0xff] }
 0x367   :  { %v4742_v41 = vadd.f32 -0.6931472, %v3217_v21  ;;  %9411 = vst [vmem:[#allocation33_spill] sm:$0xff] %v8415_v58  ;;  %v8507_v60 = vpop.permute.xlu1 %3419 }
 0x369   :  { %4758 = vmatmul.msk.f32.vlgmr.msra.gmra.mxu2 %vm3243_vm8, %v4742_v41 }
 0x36f   :  { %v8513_v33 = vpop.permute.xlu1 %3404 }
 0x371   :  { %4759 = vmatmul.msk.f32.gmra.mxu2 %vm3243_vm8, %v4743_v51 }
 0x376   :  { %v8482_v35 = vpop.f32.mrf.mxu1 }
 0x377   :  { %v8523_v50 = vpop.permute.xlu1 %3389 }
 0x378   :  { %9412 = vst [vmem:[#allocation10_spill] sm:$0xff] %v8523_v50 }
 0x379   :  { %4760 = vmatmul.msk.f32.vlgmr.msrb.gmra.mxu2 %vm3243_vm8, %v8408_v17 }
 0x380   :  { %v8489_v4 = vpop.f32.mrf.mxu1 }
 0x381   :  { %4761 = vmatmul.msk.f32.gmra.mxu2 %vm3243_vm8, %v8415_v58 }
 0x388   :  { %v8491_v13 = vpop.f32.mrf.mxu1 }
 0x390   :  { %v8497_v56 = vpop.f32.mrf.mxu1 }
 0x398   :  { %v8503_v63 = vpop.f32.mrf.mxu1 }
 0x3a0   :  { %v8509_v0 = vpop.f32.mrf.mxu1 }
 0x3a8   :  { %v3327_v34 = vpop.f32.mrf.mxu1 }
 0x3a9   :  { %v3328_v43 = vadd.f32 %v8520_v55, %v3327_v34 }
 0x3ab   :  { %v3443_v32 = vmul.f32 %v8523_v50, %v3328_v43 }
 0x3b0   :  { %v3330_v41 = vpop.f32.mrf.mxu1 }
 0x3b8   :  { %v3333_v51 = vpop.f32.mrf.mxu1 }
 0x3ec   :  { %v8419_v59 = vpop.f32.mrf.mxu2 }
 0x3f4   :  { %v8421_v14 = vpop.f32.mrf.mxu2 }
 0x3fc   :  { %v3480_v57 = vpop.f32.mrf.mxu2 }
 0x404   :  { %v3483_v31 = vpop.f32.mrf.mxu2 }
 0x405   :  { %3548 = vmatpush.msrb.mxu3 %v3483_v31  ;;  %v3336_v31 = vpop.f32.mrf.mxu1 }
 0x407   :  { %3549 = vmatpush.msrb.mxu3 %v3480_v57 }
 0x408   :  { %4762 = vmatmul.msk.f32.vlgmr.msrb.gmra.mxu3 %vm2817_vm3, %v2793_v11 }
 0x410   :  { %4763 = vmatmul.msk.f32.gmra.mxu3 %vm2817_vm3, %v2794_v2  ;;  %v3339_v2 = vpop.f32.mrf.mxu1 }
 0x418   :  { %4764 = vmatmul.msk.f32.gmra.mxu3 %vm2817_vm3, %v2795_v40 }
 0x420   :  { %4765 = vmatmul.msk.f32.gmra.mxu3 %vm2817_vm3, %v2796_v8  ;;  %v3342_v8 = vpop.f32.mrf.mxu1 }
 0x421   :  { %v3343_v58 = vadd.f32 %v8520_v55, %v3342_v8  ;;  %v3334_v8 = vadd.f32 %v8520_v55, %v3333_v51 }
 0x428   :  { %4766 = vmatmul.msk.f32.gmra.mxu3 %vm2817_vm3, %v2797_v15 }
 0x430   :  { %4767 = vmatmul.msk.f32.gmra.mxu3 %vm2817_vm3, %v2798_v18  ;;  %v8528_v18 = vpop.permute.xlu2 %3429 }
 0x438   :  { %4768 = vmatmul.msk.f32.gmra.mxu3 %vm2817_vm3, %v2799_v42 }
 0x440   :  { %4769 = vmatmul.msk.f32.gmra.mxu3 %vm2817_vm3, %v2800_v22  ;;  %v8530_v22 = vpop.permute.xlu0 %3424 }
 0x448   :  { %4770 = vmatmul.msk.f32.gmra.mxu3 %vm2817_vm3, %v2801_v20  ;;  %v3345_v20 = vpop.f32.mrf.mxu1 }
 0x450   :  { %4771 = vmatmul.msk.f32.gmra.mxu3 %vm2817_vm3, %v2802_v5 }
 0x458   :  { %4772 = vmatmul.msk.f32.gmra.mxu3 %vm2817_vm3, %v2803_v48  ;;  %v8532_v48 = vpop.permute.xlu2 %3414 }
 0x460   :  { %4773 = vmatmul.msk.f32.gmra.mxu3 %vm2817_vm3, %v2804_v62  ;;  %v3355_v62 = vadd.f32 %v8520_v55, %v8421_v14  ;;  %v8546_v17 = vpop.permute.xlu2 %3399 }
 0x462   :  { %v3452_v34 = vmul.f32 %v8499_v26, %v3355_v62 }
 0x468   :  { %4774 = vmatmul.msk.f32.gmra.mxu3 %vm2817_vm3, %v2805_v19  ;;  %v8536_v19 = vpop.permute.xlu0 %3409 }
 0x470   :  { %4775 = vmatmul.msk.f32.gmra.mxu3 %vm2817_vm3, %v2806_v28  ;;  %v3348_v28 = vpop.f32.mrf.mxu1  ;;  %v8550_v62 = vpop.permute.xlu0 %3394 }
 0x478   :  { %4776 = vmatmul.msk.f32.gmra.mxu3 %vm2817_vm3, %v2807_v54  ;;  %v3352_v54 = vadd.f32 %v8520_v55, %v8419_v59  ;;  %v3340_v59 = vadd.f32 %v8520_v55, %v3339_v2  ;;  %v3331_v2 = vadd.f32 %v8520_v55, %v3330_v41  ;;  %v3322_v41 = vadd.f32 %v8520_v55, %v8503_v63 }
 0x479   :  { %v3313_v63 = vadd.f32 %v8520_v55, %v8489_v4 }
 0x480   :  { %4777 = vmatmul.msk.f32.gmra.mxu3 %vm2817_vm3, %v2808_v29  ;;  %v3349_v29 = vadd.f32 %v8520_v55, %v3348_v28 }
 0x482   :  { %v3450_v14 = vmul.f32 %v8530_v22, %v3349_v29 }
 0x48b   :  { %v8493_v36 = vpop.f32.mrf.mxu3 }
 0x493   :  { %v8495_v12 = vpop.f32.mrf.mxu3 }
 0x49b   :  { %v8501_v44 = vpop.f32.mrf.mxu3 }
 0x4a3   :  { %v8505_v46 = vpop.f32.mrf.mxu3 }
 0x4ab   :  { %v8511_v16 = vpop.f32.mrf.mxu3 }
 0x4b3   :  { %v8515_v10 = vpop.f32.mrf.mxu3 }
 0x4bb   :  { %v3569_v52 = vpop.f32.mrf.mxu3 }
 0x4bc   :  { %v8526_v21 = vmul.f32 %v3569_v52, %v3443_v32  ;;  %v3346_v32 = vadd.f32 %v8520_v55, %v3345_v20  ;;  %v3451_v52 = vmul.f32 %v8528_v18, %v3352_v54  ;;  %v3337_v20 = vadd.f32 %v8520_v55, %v3336_v31  ;;  %v8559_v31 = vpop.permute.xlu2 %3384 }
 0x4bd   :  { %v3448_v54 = vmul.f32 %v8532_v48, %v3343_v58  ;;  %v3444_v58 = vmul.f32 %v8550_v62, %v3331_v2  ;;  %v3716_v2 = vld [vmem:[%s9050_s13 + $0x18] sm:$0xff] }
 0x4be   :  { %v3449_v28 = vmul.f32 %v8507_v60, %v3346_v32  ;;  %v3446_v29 = vmul.f32 %v8513_v33, %v3337_v20 }
 0x4c3   :  { %v3572_v38 = vpop.f32.mrf.mxu3 }
 0x4cb   :  { %v3575_v25 = vpop.f32.mrf.mxu3 }
 0x4d3   :  { %v3578_v57 = vpop.f32.mrf.mxu3 }
 0x4db   :  { %v3581_v11 = vpop.f32.mrf.mxu3 }
 0x4e3   :  { %v3584_v40 = vpop.f32.mrf.mxu3 }
 0x4eb   :  { %v3587_v15 = vpop.f32.mrf.mxu3 }
 0x4f3   :  { %v3590_v42 = vpop.f32.mrf.mxu3 }
 0x4f4   :  { %v3612_v7 = vmul.f32 %v3590_v42, %v3450_v14 }
 0x4fb   :  { %v3593_v5 = vpop.f32.mrf.mxu3 }
 0x4fc   :  { %v3613_v6 = vmul.f32 %v3593_v5, %v3451_v52  ;;  %v3610_v5 = vmul.f32 %v3584_v40, %v3448_v54  ;;  %v8564_v40 = vpop.permute.xlu0 %3379 }
 0x503   :  { %v3596_v43 = vpop.f32.mrf.mxu3 }
 0x504   :  { %v3614_v50 = vmul.f32 %v3596_v43, %v3452_v34  ;;  %v3611_v34 = vmul.f32 %v3587_v15, %v3449_v28  ;;  %v3608_v43 = vmul.f32 %v3578_v57, %v3446_v29  ;;  %v8568_v15 = vpop.permute.xlu1 %3374  ;;  %v3319_v57 = vadd.f32 %v8520_v55, %v8497_v56  ;;  %v8582_v56 = vpop.permute.xlu2 %3369  ;;  %v3715_v29 = vld [vmem:[%s9050_s13 + $0x10] sm:$0xff] }
 0x506   :  { %3615 = vmatpush.msra.mxu2 %v3614_v50  ;;  %v3447_v50 = vmul.f32 %v8536_v19, %v3340_v59  ;;  %v3310_v59 = vadd.f32 %v8520_v55, %v8482_v35 }
 0x508   :  { %3616 = vmatpush.msra.mxu2 %v3613_v6  ;;  %v3609_v42 = vmul.f32 %v3581_v11, %v3447_v50  ;;  %v3445_v6 = vmul.f32 %v8546_v17, %v3334_v8  ;;  %v3606_v11 = vmul.f32 %v3572_v38, %v3444_v58  ;;  %v3440_v38 = vmul.f32 %v8568_v15, %v3319_v57  ;;  %v3713_v58 = vld [vmem:[%s9050_s13] sm:$0xff] }
 0x50a   :  { %3617 = vmatpush.msra.mxu2 %v3612_v7  ;;  %v3325_v7 = vadd.f32 %v8520_v55, %v8509_v0  ;;  %v3607_v51 = vmul.f32 %v3575_v25, %v3445_v6  ;;  %v3316_v0 = vadd.f32 %v8520_v55, %v8491_v13  ;;  %v3441_v25 = vmul.f32 %v8564_v40, %v3322_v41  ;;  %v3641_v55 = vld [vmem:[%s9048_s11 + $0x18] sm:$0xff] }
 0x50b   :  { %v3602_v28 = vmul.f32 %v8505_v46, %v3440_v38  ;;  %v2809_v46 = vld [vmem:[%s9047_s5] sm:$0xff] }
 0x50c   :  { %3618 = vmatpush.msra.mxu2 %v3611_v34  ;;  %v3442_v32 = vmul.f32 %v8559_v31, %v3325_v7  ;;  %v3603_v14 = vmul.f32 %v8511_v16, %v3441_v25  ;;  %v3439_v13 = vmul.f32 %v8582_v56, %v3316_v0  ;;  %v8592_v20 = vpop.permute.xlu1 %3359  ;;  %v3638_v34 = vld [vmem:[%s9048_s11] sm:$0xff]  ;;  %v4784_v0 = vld [vmem:[%s9369_s24 + $0x10] sm:$0xff] }
 0x50d   :  { %v3437_v16 = vmul.f32 %v8592_v20, %v3310_v59 }
 0x50e   :  { %3619 = vmatpush.msra.mxu2 %v3610_v5  ;;  %v3604_v52 = vmul.f32 %v8515_v10, %v3442_v32  ;;  %v8588_v10 = vpop.permute.xlu0 %3364  ;;  %v3601_v4 = vmul.f32 %v8501_v44, %v3439_v13  ;;  %v3640_v44 = vld [vmem:[%s9048_s11 + $0x10] sm:$0xff]  ;;  %v4904_v5 = vld [vmem:[%s9049_s12] ss:$0 sm:$0xff]  ;;  %v4785_v32 = vld [vmem:[%s9369_s24 + $0x18] sm:$0xff] }
 0x50f   :  { %v3599_v35 = vmul.f32 %v8493_v36, %v3437_v16  ;;  %v3639_v36 = vld [vmem:[%s9048_s11 + $0x8] sm:$0xff] }
 0x510   :  { %3620 = vmatpush.msra.mxu2 %v3609_v42 }
 0x512   :  { %3621 = vmatpush.msra.mxu2 %v3608_v43  ;;  %v3714_v43 = vld [vmem:[%s9050_s13 + $0x8] sm:$0xff] }
 0x514   :  { %3622 = vmatpush.msra.mxu2 %v3607_v51 }
 0x516   :  { %3623 = vmatpush.msra.mxu2 %v3606_v11 }
 0x518   :  { %3624 = vmatpush.msra.mxu2 %v8526_v21  ;;  %v3438_v21 = vmul.f32 %v8588_v10, %v3313_v63 }
 0x51a   :  { %3625 = vmatpush.msra.mxu2 %v3604_v52  ;;  %v3600_v54 = vmul.f32 %v8495_v12, %v3438_v21  ;;  %v2810_v12 = vld [vmem:[%s9047_s5 + $0x8] sm:$0xff] }
 0x51c   :  { %3626 = vmatpush.msra.mxu2 %v3603_v14 }
 0x51e   :  { %3627 = vmatpush.msra.mxu2 %v3602_v28 }
 0x520   :  { %3628 = vmatpush.msra.mxu2 %v3601_v4 }
 0x522   :  { %3629 = vmatpush.msra.mxu2 %v3600_v54 }
 0x524   :  { %3630 = vmatpush.msra.mxu2 %v3599_v35 }
 0x525   :  { %3631 = vmatmul.f32.vlgmr.msra.gmra.mxu2 %v2809_v46 }
 0x526   :  { %3664 = vmatpush.msrb.mxu2 %v3641_v55 }
 0x528   :  { %3665 = vmatpush.msrb.mxu2 %v3640_v44 }
 0x52a   :  { %3666 = vmatpush.msrb.mxu2 %v3639_v36 }
 0x52c   :  { %3667 = vmatpush.msrb.mxu2 %v3638_v34 }
 0x52d   :  { %3634 = vmatmul.f32.gmra.mxu2 %v2810_v12 }
 0x52e   :  { %3739 = vmatpush.msra.mxu2 %v3716_v2 }
 0x530   :  { %3740 = vmatpush.msra.mxu2 %v3715_v29 }
 0x532   :  { %3741 = vmatpush.msra.mxu2 %v3714_v43 }
 0x534   :  { %3742 = vmatpush.msra.mxu2 %v3713_v58 }
 0x5a8   :  { %v3632_v8 = vpop.f32.mrf.mxu2 }
 0x5a9   :  { %4778 = vmatmul.msk.f32.vlgmr.msrb.gmra.mxu2 %vm3243_vm8, %v3632_v8 }
 0x5aa   :  { %3774 = vmatpush.msrb.mxu2 %v4785_v32  ;;  %v4822_v32 = vld [vmem:[%s9042_s8 + $0x38] sm:$0xff] }
 0x5ab   :  { %4199 = vmatpush.msrb.mxu0 %v4822_v32 }
 0x5ac   :  { %3775 = vmatpush.msrb.mxu2 %v4784_v0  ;;  %v4821_v0 = vld [vmem:[%s9042_s8 + $0x30] sm:$0xff] }
 0x5ad   :  { %4200 = vmatpush.msrb.mxu0 %v4821_v0 }
 0x5b0   :  { %v3635_v50 = vpop.f32.mrf.mxu2 }
 0x5b1   :  { %4779 = vmatmul.msk.f32.gmra.mxu2 %vm3243_vm8, %v3635_v50 }
 0x62c   :  { %v3669_v42 = vpop.f32.mrf.mxu2 }
 0x62d   :  { %v3670_v6 = vadd.f32 %v4904_v5, %v3669_v42 }
 0x62f   :  { %v3681_v7 = vand.u32 2147483647, %v3670_v6  ;;  %v3675_v55 = vmax.f32 %v3670_v6, 0.0  ;;  %vm3677_vm0 = vcmp.ne.f32.partialorder %v3670_v6, %v3670_v6 }
 0x631   :  { %v3683_v51 = vsub.f32 0.0, %v3681_v7 }
 0x633   :  { %v3685_v41 = vmul.f32 1.442695, %v3683_v51 }
 0x634   :  { %v3672_v11 = vpop.f32.mrf.mxu2 }
 0x635   :  { %5008 = vpow2.f32 %v3685_v41  ;;  %v3673_v57 = vadd.f32 %v4904_v5, %v3672_v11  ;;  %v8700_v41 = vld [vmem:[%s9409_s25 + $0x1] ss:$0 sm:$0xff] }
 0x637   :  { %v3682_v25 = vand.u32 2147483647, %v3673_v57  ;;  %v3676_v2 = vmax.f32 %v3673_v57, 0.0  ;;  %vm3678_vm14 = vcmp.ne.f32.partialorder %v3673_v57, %v3673_v57 }
 0x639   :  { %v3684_v52 = vsub.f32 0.0, %v3682_v25 }
 0x63b   :  { %v5009_v63 = vpop.eup %5008  ;;  %v3687_v38 = vmul.f32 1.442695, %v3684_v52  ;;  %v4820_v52 = vld [vmem:[%s9042_s8 + $0x28] sm:$0xff] }
 0x63c   :  { %v3689_v14 = vadd.f32 1.0, %v5009_v63  ;;  %v3692_v59 = vmul.f32 -0.5, %v5009_v63  ;;  %v3695_v28 = vand.u32 2147483647, %v5009_v63  ;;  %4201 = vmatpush.msrb.mxu0 %v4820_v52 }
 0x63d   :  { %5010 = vpow2.f32 %v3687_v38 }
 0x63e   :  { %5012 = vlog2.f32 %v3689_v14  ;;  %v3693_v13 = vadd.f32 1.0, %v3692_v59  ;;  %vm3696_vm11 = vcmp.lt.f32.partialorder %v3695_v28, 0.0004427343 }
 0x640   :  { %v3694_v35 = vmul.f32 %v5009_v63, %v3693_v13  ;;  %v4819_v13 = vld [vmem:[%s9042_s8 + $0x20] sm:$0xff] }
 0x641   :  { %4202 = vmatpush.msrb.mxu0 %v4819_v13 }
 0x643   :  { %v5011_v21 = vpop.eup %5010 }
 0x644   :  { %v5013_v4 = vpop.eup %5012  ;;  %v3698_v16 = vadd.f32 1.0, %v5011_v21  ;;  %v3701_v46 = vmul.f32 -0.5, %v5011_v21  ;;  %v3704_v8 = vand.u32 2147483647, %v5011_v21 }
 0x645   :  { %v3691_v54 = vmul.f32 0.6931472, %v5013_v4 }
 0x646   :  { %5014 = vlog2.f32 %v3698_v16  ;;  %v3702_v12 = vadd.f32 1.0, %v3701_v46  ;;  %vm3705_vm2 = vcmp.lt.f32.partialorder %v3704_v8, 0.0004427343 }
 0x647   :  { %v3697_v44 = vsel %vm3696_vm11, %v3694_v35, %v3691_v54 }
 0x648   :  { %v3707_v36 = vadd.f32 %v3697_v44, %v3675_v55  ;;  %v3703_v42 = vmul.f32 %v5011_v21, %v3702_v12 }
 0x64a   :  { %v3709_v34 = vsel %vm3677_vm0, %v3670_v6, %v3707_v36 }
 0x64b   :  { %v4780_v50 = vadd.f32 -0.6931472, %v3709_v34 }
 0x64c   :  { %v5015_v5 = vpop.eup %5014 }
 0x64d   :  { %4782 = vmatmul.msk.f32.vlgmr.msra.gmra.mxu2 %vm3243_vm8, %v4780_v50  ;;  %v3700_v29 = vmul.f32 0.6931472, %v5015_v5 }
 0x64f   :  { %v3706_v43 = vsel %vm3705_vm2, %v3703_v42, %v3700_v29 }
 0x650   :  { %v3708_v7 = vadd.f32 %v3706_v43, %v3676_v2 }
 0x652   :  { %v3710_v58 = vsel %vm3678_vm14, %v3673_v57, %v3708_v7 }
 0x653   :  { %v4781_v51 = vadd.f32 -0.6931472, %v3710_v58 }
 0x655   :  { %4783 = vmatmul.msk.f32.gmra.mxu2 %vm3243_vm8, %v4781_v51 }
 0x65d   :  { %4787 = vmatmul.msk.f32.vlgmr.msrb.gmra.mxu2 %vm2817_vm3, %v8024_v1  ;;  %v4843_v1 = vld [vmem:[%s9044_s10 + $0x38] sm:$0xff] }
 0x65e   :  { %4291 = vmatpush.msra.mxu3 %v4843_v1 }
 0x665   :  { %4788 = vmatmul.msk.f32.gmra.mxu2 %vm2817_vm3, %v8070_v53  ;;  %v4842_v53 = vld [vmem:[%s9044_s10 + $0x30] sm:$0xff] }
 0x666   :  { %4292 = vmatpush.msra.mxu3 %v4842_v53 }
 0x66d   :  { %4789 = vmatmul.msk.f32.gmra.mxu2 %vm2817_vm3, %v8089_v27  ;;  %v4841_v27 = vld [vmem:[%s9044_s10 + $0x28] sm:$0xff] }
 0x66e   :  { %4293 = vmatpush.msra.mxu3 %v4841_v27 }
 0x675   :  { %4790 = vmatmul.msk.f32.gmra.mxu2 %vm2817_vm3, %v8129_v23  ;;  %v9413_v23 = vld [vmem:[#allocation24_spill] sm:$0xff] }
 0x67d   :  { %4791 = vmatmul.msk.f32.gmra.mxu2 %vm2817_vm3, %v8116_v39  ;;  %v4840_v39 = vld [vmem:[%s9044_s10 + $0x20] sm:$0xff] }
 0x67e   :  { %4294 = vmatpush.msra.mxu3 %v4840_v39 }
 0x685   :  { %4792 = vmatmul.msk.f32.gmra.mxu2 %vm2817_vm3, %v8179_v3  ;;  %v4905_v3 = vld [vmem:[%s9051_s14] ss:$0 sm:$0xff] }
 0x68d   :  { %4793 = vmatmul.msk.f32.gmra.mxu2 %vm2817_vm3, %v8187_v24 }
 0x695   :  { %4794 = vmatmul.msk.f32.gmra.mxu2 %vm2817_vm3, %v8201_v49 }
 0x69d   :  { %4795 = vmatmul.msk.f32.gmra.mxu2 %vm2817_vm3, %v8206_v47  ;;  %v9414_v47 = vld [vmem:[#allocation35_spill] sm:$0xff] }
 0x6a5   :  { %4796 = vmatmul.msk.f32.gmra.mxu2 %vm2817_vm3, %v8211_v30 }
 0x6ad   :  { %4797 = vmatmul.msk.f32.gmra.mxu2 %vm2817_vm3, %v8217_v45  ;;  %v9415_v45 = vld [vmem:[#allocation32_spill] sm:$0xff] }
 0x6b5   :  { %4798 = vmatmul.msk.f32.gmra.mxu2 %vm2817_vm3, %v8222_v9 }
 0x6bd   :  { %4799 = vmatmul.msk.f32.gmra.mxu2 %vm2817_vm3, %v8227_v61 }
 0x6c5   :  { %4800 = vmatmul.msk.f32.gmra.mxu2 %vm2817_vm3, %v8231_v37  ;;  %v9416_v37 = vld [vmem:[#allocation33_spill] sm:$0xff] }
 0x6cd   :  { %4801 = vmatmul.msk.f32.gmra.mxu2 %vm2817_vm3, %v9413_v23 }
 0x6d0   :  { %v3744_v24 = vpop.f32.mrf.mxu2 }
 0x6d1   :  { %v3745_v49 = vadd.f32 %v4905_v3, %v3744_v24 }
 0x6d3   :  { %v8686_v30 = vadd.f32 %v3745_v49, %v9414_v47 }
 0x6d5   :  { %4802 = vmatmul.msk.f32.gmra.mxu2 %vm2817_vm3, %v9415_v45  ;;  %4844 = vmatmul.msk.f32.vlgmr.msra.gmra.mxu3 %vm3243_vm8, %v8686_v30 }
 0x6d8   :  { %v3747_v9 = vpop.f32.mrf.mxu2 }
 0x6d9   :  { %v3748_v61 = vadd.f32 %v4905_v3, %v3747_v9 }
 0x6db   :  { %v8693_v6 = vadd.f32 %v3748_v61, %v9416_v37 }
 0x6dd   :  { %4845 = vmatmul.msk.f32.gmra.mxu3 %vm3243_vm8, %v8693_v6 }
 0x6e0   :  { %v3777_v11 = vpop.f32.mrf.mxu2 }
 0x6e1   :  { %v3778_v57 = vadd.f32 %v8700_v41, %v3777_v11 }
 0x6e3   :  { %v3873_v25 = vand.u32 2147483647, %v3778_v57  ;;  %v3825_v51 = vmax.f32 %v3778_v57, 0.0  ;;  %vm3841_vm4 = vcmp.ne.f32.partialorder %v3778_v57, %v3778_v57 }
 0x6e5   :  { %v3889_v63 = vsub.f32 0.0, %v3873_v25 }
 0x6e7   :  { %v3905_v38 = vmul.f32 1.442695, %v3889_v63 }
 0x6e8   :  { %v3780_v14 = vpop.f32.mrf.mxu2 }
 0x6e9   :  { %5016 = vpow2.f32 %v3905_v38  ;;  %v3781_v59 = vadd.f32 %v8700_v41, %v3780_v14 }
 0x6eb   :  { %v3874_v28 = vand.u32 2147483647, %v3781_v59  ;;  %v3826_v52 = vmax.f32 %v3781_v59, 0.0  ;;  %vm3842_vm6 = vcmp.ne.f32.partialorder %v3781_v59, %v3781_v59 }
 0x6ed   :  { %v3890_v21 = vsub.f32 0.0, %v3874_v28 }
 0x6ef   :  { %v5017_v4 = vpop.eup %5016  ;;  %v3907_v16 = vmul.f32 1.442695, %v3890_v21 }
 0x6f0   :  { %v3937_v54 = vadd.f32 1.0, %v5017_v4  ;;  %v3940_v35 = vmul.f32 -0.5, %v5017_v4  ;;  %v3783_v46 = vpop.f32.mrf.mxu2  ;;  %v3943_v34 = vand.u32 2147483647, %v5017_v4 }
 0x6f1   :  { %5018 = vpow2.f32 %v3907_v16  ;;  %v8717_v55 = vadd.f32 %v8700_v41, %v3783_v46 }
 0x6f2   :  { %5020 = vlog2.f32 %v3937_v54  ;;  %v3941_v36 = vadd.f32 1.0, %v3940_v35  ;;  %vm3944_vm10 = vcmp.lt.f32.partialorder %v3943_v34, 0.0004427343 }
 0x6f3   :  { %v3875_v44 = vand.u32 2147483647, %v8717_v55  ;;  %vm3843_vm1 = vcmp.ne.f32.partialorder %v8717_v55, %v8717_v55 }
 0x6f4   :  { %v3942_v2 = vmul.f32 %v5017_v4, %v3941_v36 }
 0x6f5   :  { %v3891_v12 = vsub.f32 0.0, %v3875_v44 }
 0x6f7   :  { %v5019_v8 = vpop.eup %5018  ;;  %v3909_v50 = vmul.f32 1.442695, %v3891_v12 }
 0x6f8   :  { %v5021_v5 = vpop.eup %5020  ;;  %v3786_v29 = vpop.f32.mrf.mxu2  ;;  %v3946_v42 = vadd.f32 1.0, %v5019_v8  ;;  %v3949_v58 = vmul.f32 -0.5, %v5019_v8  ;;  %v3952_v24 = vand.u32 2147483647, %v5019_v8 }
 0x6f9   :  { %v3939_v43 = vmul.f32 0.6931472, %v5021_v5  ;;  %5022 = vpow2.f32 %v3909_v50  ;;  %v8721_v7 = vadd.f32 %v8700_v41, %v3786_v29  ;;  %v3827_v50 = vmax.f32 %v8717_v55, 0.0 }
 0x6fa   :  { %5024 = vlog2.f32 %v3946_v42  ;;  %v3950_v23 = vadd.f32 1.0, %v3949_v58  ;;  %vm3953_vm5 = vcmp.lt.f32.partialorder %v3952_v24, 0.0004427343 }
 0x6fb   :  { %v3945_v1 = vsel %vm3944_vm10, %v3942_v2, %v3939_v43  ;;  %v3876_v53 = vand.u32 2147483647, %v8721_v7  ;;  %vm3844_vm15 = vcmp.ne.f32.partialorder %v8721_v7, %v8721_v7 }
 0x6fc   :  { %v4081_v27 = vadd.f32 %v3945_v1, %v3825_v51  ;;  %v3951_v25 = vmul.f32 %v5019_v8, %v3950_v23 }
 0x6fd   :  { %v3892_v39 = vsub.f32 0.0, %v3876_v53 }
 0x6fe   :  { %v4097_v3 = vsel %vm3841_vm4, %v3778_v57, %v4081_v27 }
 0x6ff   :  { %v5023_v49 = vpop.eup %5022  ;;  %v3911_v47 = vmul.f32 1.442695, %v3892_v39  ;;  %v4803_v45 = vadd.f32 -0.6931472, %v4097_v3 }
 0x700   :  { %v5025_v9 = vpop.eup %5024  ;;  %v3789_v61 = vpop.f32.mrf.mxu2  ;;  %v3955_v37 = vadd.f32 1.0, %v5023_v49  ;;  %v3958_v11 = vmul.f32 -0.5, %v5023_v49  ;;  %v3961_v21 = vand.u32 2147483647, %v5023_v49 }
 0x701   :  { %5026 = vpow2.f32 %v3911_v47  ;;  %v8725_v32 = vadd.f32 %v8700_v41, %v3789_v61  ;;  %4824 = vmatmul.msk.f32.vlgmr.msrb.gmra.mxu0 %vm3243_vm8, %v4803_v45  ;;  %v3948_v0 = vmul.f32 0.6931472, %v5025_v9  ;;  %v3828_v45 = vmax.f32 %v8721_v7, 0.0 }
 0x702   :  { %5028 = vlog2.f32 %v3955_v37  ;;  %v3959_v14 = vadd.f32 1.0, %v3958_v11  ;;  %vm3962_vm7 = vcmp.lt.f32.partialorder %v3961_v21, 0.0004427343 }
 0x703   :  { %v3877_v57 = vand.u32 2147483647, %v8725_v32  ;;  %v3954_v63 = vsel %vm3953_vm5, %v3951_v25, %v3948_v0  ;;  %vm3845_vm9 = vcmp.ne.f32.partialorder %v8725_v32, %v8725_v32 }
 0x704   :  { %v4082_v38 = vadd.f32 %v3954_v63, %v3826_v52  ;;  %v3960_v44 = vmul.f32 %v5023_v49, %v3959_v14 }
 0x705   :  { %v3893_v13 = vsub.f32 0.0, %v3877_v57 }
 0x706   :  { %v4098_v28 = vsel %vm3842_vm6, %v3781_v59, %v4082_v38 }
 0x707   :  { %v5027_v4 = vpop.eup %5026  ;;  %v3913_v16 = vmul.f32 1.442695, %v3893_v13  ;;  %v4804_v54 = vadd.f32 -0.6931472, %v4098_v28 }
 0x708   :  { %v5029_v35 = vpop.eup %5028  ;;  %v3792_v46 = vpop.f32.mrf.mxu2  ;;  %v3964_v36 = vadd.f32 1.0, %v5027_v4  ;;  %v3967_v8 = vmul.f32 -0.5, %v5027_v4  ;;  %v3970_v58 = vand.u32 2147483647, %v5027_v4 }
 0x709   :  { %5030 = vpow2.f32 %v3913_v16  ;;  %v8730_v12 = vadd.f32 %v8700_v41, %v3792_v46  ;;  %4825 = vmatmul.msk.f32.gmra.mxu0 %vm3243_vm8, %v4804_v54  ;;  %v3957_v34 = vmul.f32 0.6931472, %v5029_v35 }
 0x70a   :  { %5032 = vlog2.f32 %v3964_v36  ;;  %v3968_v42 = vadd.f32 1.0, %v3967_v8  ;;  %vm3971_vm12 = vcmp.lt.f32.partialorder %v3970_v58, 0.0004427343 }
 0x70b   :  { %v3878_v59 = vand.u32 2147483647, %v8730_v12  ;;  %v3963_v5 = vsel %vm3962_vm7, %v3960_v44, %v3957_v34  ;;  %vm3846_vm0 = vcmp.ne.f32.partialorder %v8730_v12, %v8730_v12 }
 0x70c   :  { %v4083_v2 = vadd.f32 %v3963_v5, %v3827_v50  ;;  %v3969_v49 = vmul.f32 %v5027_v4, %v3968_v42  ;;  %v3829_v4 = vmax.f32 %v8725_v32, 0.0 }
 0x70d   :  { %v3894_v29 = vsub.f32 0.0, %v3878_v59 }
 0x70e   :  { %v4099_v43 = vsel %vm3843_vm1, %v8717_v55, %v4083_v2 }
 0x70f   :  { %v5031_v51 = vpop.eup %5030  ;;  %v4805_v1 = vadd.f32 -0.6931472, %v4099_v43  ;;  %v3915_v27 = vmul.f32 1.442695, %v3894_v29 }
 0x710   :  { %v5033_v53 = vpop.eup %5032  ;;  %v3795_v39 = vpop.f32.mrf.mxu2  ;;  %v3973_v23 = vadd.f32 1.0, %v5031_v51  ;;  %v3976_v47 = vmul.f32 -0.5, %v5031_v51  ;;  %v3979_v25 = vand.u32 2147483647, %v5031_v51 }
 0x711   :  { %v8739_v3 = vadd.f32 %v8700_v41, %v3795_v39  ;;  %4826 = vmatmul.msk.f32.gmra.mxu0 %vm3243_vm8, %v4805_v1  ;;  %v3966_v24 = vmul.f32 0.6931472, %v5033_v53 }
 0x712   :  { %5034 = vlog2.f32 %v3973_v23  ;;  %v3977_v11 = vadd.f32 1.0, %v3976_v47  ;;  %vm3980_vm13 = vcmp.lt.f32.partialorder %v3979_v25, 0.0004427343 }
 0x713   :  { %v3879_v55 = vand.u32 2147483647, %v8739_v3  ;;  %v3972_v9 = vsel %vm3971_vm12, %v3969_v49, %v3966_v24  ;;  %5036 = vpow2.f32 %v3915_v27  ;;  %v3830_v27 = vmax.f32 %v8730_v12, 0.0 }
 0x714   :  { %v4084_v61 = vadd.f32 %v3972_v9, %v3828_v45  ;;  %v3978_v28 = vmul.f32 %v5031_v51, %v3977_v11  ;;  %vm3847_vm14 = vcmp.ne.f32.partialorder %v8739_v3, %v8739_v3 }
 0x715   :  { %v3895_v37 = vsub.f32 0.0, %v3879_v55 }
 0x716   :  { %v4100_v0 = vsel %vm3844_vm15, %v8721_v7, %v4084_v61 }
 0x717   :  { %v4806_v52 = vadd.f32 -0.6931472, %v4100_v0  ;;  %v3917_v63 = vmul.f32 1.442695, %v3895_v37 }
 0x718   :  { %v5035_v57 = vpop.eup %5034  ;;  %v3798_v38 = vpop.f32.mrf.mxu2 }
 0x719   :  { %v8748_v14 = vadd.f32 %v8700_v41, %v3798_v38  ;;  %4827 = vmatmul.msk.f32.gmra.mxu0 %vm3243_vm8, %v4806_v52  ;;  %v3975_v13 = vmul.f32 0.6931472, %v5035_v57  ;;  %v5037_v21 = vpop.eup %5036  ;;  %5038 = vpow2.f32 %v3917_v63 }
 0x71a   :  { %v3982_v46 = vadd.f32 1.0, %v5037_v21  ;;  %v3985_v36 = vmul.f32 -0.5, %v5037_v21  ;;  %v3988_v42 = vand.u32 2147483647, %v5037_v21 }
 0x71b   :  { %v3880_v16 = vand.u32 2147483647, %v8748_v14  ;;  %v3981_v54 = vsel %vm3980_vm13, %v3978_v28, %v3975_v13  ;;  %v3831_v13 = vmax.f32 %v8739_v3, 0.0  ;;  %vm3848_vm4 = vcmp.ne.f32.partialorder %v8748_v14, %v8748_v14 }
 0x71c   :  { %v4085_v7 = vadd.f32 %v3981_v54, %v3829_v4  ;;  %5040 = vlog2.f32 %v3982_v46  ;;  %v3986_v2 = vadd.f32 1.0, %v3985_v36  ;;  %vm3989_vm11 = vcmp.lt.f32.partialorder %v3988_v42, 0.0004427343 }
 0x71d   :  { %v3896_v35 = vsub.f32 0.0, %v3880_v16 }
 0x71e   :  { %v4101_v44 = vsel %vm3845_vm9, %v8725_v32, %v4085_v7  ;;  %v3987_v1 = vmul.f32 %v5037_v21, %v3986_v2 }
 0x71f   :  { %v4807_v34 = vadd.f32 -0.6931472, %v4101_v44  ;;  %v3919_v8 = vmul.f32 1.442695, %v3896_v35  ;;  %v5039_v5 = vpop.eup %5038 }
 0x720   :  { %v3801_v50 = vpop.f32.mrf.mxu2  ;;  %v3991_v51 = vadd.f32 1.0, %v5039_v5  ;;  %v3994_v53 = vmul.f32 -0.5, %v5039_v5  ;;  %v3997_v37 = vand.u32 2147483647, %v5039_v5 }
 0x721   :  { %v8757_v59 = vadd.f32 %v8700_v41, %v3801_v50  ;;  %4828 = vmatmul.msk.f32.gmra.mxu0 %vm3243_vm8, %v4807_v34  ;;  %5042 = vpow2.f32 %v3919_v8 }
 0x722   :  { %v5041_v43 = vpop.eup %5040  ;;  %5044 = vlog2.f32 %v3991_v51  ;;  %v3995_v55 = vadd.f32 1.0, %v3994_v53  ;;  %vm3998_vm2 = vcmp.lt.f32.partialorder %v3997_v37, 0.0004427343 }
 0x723   :  { %v3881_v29 = vand.u32 2147483647, %v8757_v59  ;;  %v3984_v32 = vmul.f32 0.6931472, %v5041_v43  ;;  %v3832_v43 = vmax.f32 %v8748_v14, 0.0  ;;  %vm3849_vm7 = vcmp.ne.f32.partialorder %v8757_v59, %v8757_v59 }
 0x724   :  { %v3996_v63 = vmul.f32 %v5039_v5, %v3995_v55 }
 0x725   :  { %v3897_v58 = vsub.f32 0.0, %v3881_v29  ;;  %v3990_v24 = vsel %vm3989_vm11, %v3987_v1, %v3984_v32 }
 0x726   :  { %v4086_v47 = vadd.f32 %v3990_v24, %v3830_v27 }
 0x727   :  { %v3921_v39 = vmul.f32 1.442695, %v3897_v58  ;;  %v5043_v45 = vpop.eup %5042 }
 0x728   :  { %v3804_v23 = vpop.f32.mrf.mxu2  ;;  %v4102_v61 = vsel %vm3846_vm0, %v8730_v12, %v4086_v47  ;;  %v5045_v0 = vpop.eup %5044  ;;  %v4000_v52 = vadd.f32 1.0, %v5043_v45  ;;  %v4003_v38 = vmul.f32 -0.5, %v5043_v45  ;;  %v4006_v44 = vand.u32 2147483647, %v5043_v45 }
 0x729   :  { %v8763_v49 = vadd.f32 %v8700_v41, %v3804_v23  ;;  %5046 = vpow2.f32 %v3921_v39  ;;  %v4808_v11 = vadd.f32 -0.6931472, %v4102_v61  ;;  %v3993_v57 = vmul.f32 0.6931472, %v5045_v0 }
 0x72a   :  { %5048 = vlog2.f32 %v4000_v52  ;;  %v4004_v7 = vadd.f32 1.0, %v4003_v38  ;;  %vm4007_vm10 = vcmp.lt.f32.partialorder %v4006_v44, 0.0004427343  ;;  %v3833_v52 = vmax.f32 %v8757_v59, 0.0 }
 0x72b   :  { %v3882_v9 = vand.u32 2147483647, %v8763_v49  ;;  %4829 = vmatmul.msk.f32.gmra.mxu0 %vm3243_vm8, %v4808_v11  ;;  %v3999_v4 = vsel %vm3998_vm2, %v3996_v63, %v3993_v57  ;;  %vm3850_vm1 = vcmp.ne.f32.partialorder %v8763_v49, %v8763_v49 }
 0x72c   :  { %v4087_v16 = vadd.f32 %v3999_v4, %v3831_v13  ;;  %v4005_v2 = vmul.f32 %v5043_v45, %v4004_v7 }
 0x72d   :  { %v3898_v25 = vsub.f32 0.0, %v3882_v9 }
 0x72e   :  { %v4103_v46 = vsel %vm3847_vm14, %v8739_v3, %v4087_v16 }
 0x72f   :  { %v3923_v28 = vmul.f32 1.442695, %v3898_v25  ;;  %v5047_v54 = vpop.eup %5046  ;;  %v4809_v36 = vadd.f32 -0.6931472, %v4103_v46 }
 0x730   :  { %v3807_v21 = vpop.f32.mrf.mxu2  ;;  %v5049_v34 = vpop.eup %5048  ;;  %v4009_v50 = vadd.f32 1.0, %v5047_v54  ;;  %v4012_v29 = vmul.f32 -0.5, %v5047_v54  ;;  %v4015_v47 = vand.u32 2147483647, %v5047_v54 }
 0x731   :  { %5050 = vpow2.f32 %v3923_v28  ;;  %v8772_v12 = vadd.f32 %v8700_v41, %v3807_v21  ;;  %v4002_v5 = vmul.f32 0.6931472, %v5049_v34 }
 0x732   :  { %5052 = vlog2.f32 %v4009_v50  ;;  %v4013_v39 = vadd.f32 1.0, %v4012_v29  ;;  %vm4016_vm5 = vcmp.lt.f32.partialorder %v4015_v47, 0.0004427343 }
 0x733   :  { %v3883_v35 = vand.u32 2147483647, %v8772_v12  ;;  %4830 = vmatmul.msk.f32.gmra.mxu0 %vm3243_vm8, %v4809_v36  ;;  %v4008_v3 = vsel %vm4007_vm10, %v4005_v2, %v4002_v5  ;;  %vm3851_vm15 = vcmp.ne.f32.partialorder %v8772_v12, %v8772_v12 }
 0x734   :  { %v4088_v27 = vadd.f32 %v4008_v3, %v3832_v43  ;;  %v4014_v0 = vmul.f32 %v5047_v54, %v4013_v39 }
 0x735   :  { %v3899_v8 = vsub.f32 0.0, %v3883_v35  ;;  %v3834_v35 = vmax.f32 %v8763_v49, 0.0 }
 0x736   :  { %v4104_v24 = vsel %vm3848_vm4, %v8748_v14, %v4088_v27  ;;  %v3835_v27 = vmax.f32 %v8772_v12, 0.0 }
 0x737   :  { %v5051_v42 = vpop.eup %5050  ;;  %v3925_v58 = vmul.f32 1.442695, %v3899_v8  ;;  %v4810_v55 = vadd.f32 -0.6931472, %v4104_v24 }
 0x738   :  { %v4018_v51 = vadd.f32 1.0, %v5051_v42  ;;  %v4021_v32 = vmul.f32 -0.5, %v5051_v42  ;;  %v3810_v1 = vpop.f32.mrf.mxu2  ;;  %v5053_v9 = vpop.eup %5052  ;;  %v4024_v37 = vand.u32 2147483647, %v5051_v42 }
 0x739   :  { %5054 = vpow2.f32 %v3925_v58  ;;  %v8781_v53 = vadd.f32 %v8700_v41, %v3810_v1  ;;  %v4011_v11 = vmul.f32 0.6931472, %v5053_v9 }
 0x73a   :  { %5056 = vlog2.f32 %v4018_v51  ;;  %v4022_v45 = vadd.f32 1.0, %v4021_v32  ;;  %vm4025_vm6 = vcmp.lt.f32.partialorder %v4024_v37, 0.0004427343 }
 0x73b   :  { %v3884_v23 = vand.u32 2147483647, %v8781_v53  ;;  %4831 = vmatmul.msk.f32.gmra.mxu0 %vm3243_vm8, %v4810_v55  ;;  %v4017_v21 = vsel %vm4016_vm5, %v4014_v0, %v4011_v11  ;;  %vm3852_vm9 = vcmp.ne.f32.partialorder %v8781_v53, %v8781_v53 }
 0x73c   :  { %v4023_v38 = vmul.f32 %v5051_v42, %v4022_v45  ;;  %v4089_v7 = vadd.f32 %v4017_v21, %v3833_v52 }
 0x73d   :  { %v3900_v61 = vsub.f32 0.0, %v3884_v23 }
 0x73e   :  { %v4105_v34 = vsel %vm3849_vm7, %v8757_v59, %v4089_v7 }
 0x73f   :  { %v5055_v25 = vpop.eup %5054  ;;  %v3927_v57 = vmul.f32 1.442695, %v3900_v61  ;;  %v4811_v50 = vadd.f32 -0.6931472, %v4105_v34 }
 0x740   :  { %v5057_v63 = vpop.eup %5056  ;;  %v4027_v13 = vadd.f32 1.0, %v5055_v25  ;;  %v4030_v28 = vmul.f32 -0.5, %v5055_v25  ;;  %v3813_v14 = vpop.f32.mrf.mxu2  ;;  %v4033_v5 = vand.u32 2147483647, %v5055_v25 }
 0x741   :  { %v4020_v4 = vmul.f32 0.6931472, %v5057_v63  ;;  %5058 = vpow2.f32 %v3927_v57  ;;  %v8790_v16 = vadd.f32 %v8700_v41, %v3813_v14 }
 0x742   :  { %5060 = vlog2.f32 %v4027_v13  ;;  %v4031_v36 = vadd.f32 1.0, %v4030_v28  ;;  %vm4034_vm12 = vcmp.lt.f32.partialorder %v4033_v5, 0.0004427343  ;;  %v3836_v13 = vmax.f32 %v8781_v53, 0.0 }
 0x743   :  { %v4026_v54 = vsel %vm4025_vm6, %v4023_v38, %v4020_v4  ;;  %v3885_v46 = vand.u32 2147483647, %v8790_v16  ;;  %4832 = vmatmul.msk.f32.gmra.mxu0 %vm3243_vm8, %v4811_v50  ;;  %vm3853_vm0 = vcmp.ne.f32.partialorder %v8790_v16, %v8790_v16 }
 0x744   :  { %v4090_v44 = vadd.f32 %v4026_v54, %v3834_v35  ;;  %v4032_v43 = vmul.f32 %v5055_v25, %v4031_v36 }
 0x745   :  { %v3901_v8 = vsub.f32 0.0, %v3885_v46 }
 0x746   :  { %v4106_v32 = vsel %vm3850_vm1, %v8763_v49, %v4090_v44 }
 0x747   :  { %v5059_v2 = vpop.eup %5058  ;;  %v3929_v29 = vmul.f32 1.442695, %v3901_v8  ;;  %v4812_v24 = vadd.f32 -0.6931472, %v4106_v32 }
 0x748   :  { %v5061_v42 = vpop.eup %5060  ;;  %v4036_v58 = vadd.f32 1.0, %v5059_v2  ;;  %v3816_v51 = vpop.f32.mrf.mxu2  ;;  %v4039_v3 = vmul.f32 -0.5, %v5059_v2  ;;  %v4042_v9 = vand.u32 2147483647, %v5059_v2 }
 0x749   :  { %v4029_v1 = vmul.f32 0.6931472, %v5061_v42  ;;  %5062 = vpow2.f32 %v3929_v29  ;;  %v8802_v59 = vadd.f32 %v8700_v41, %v3816_v51 }
 0x74a   :  { %5064 = vlog2.f32 %v4036_v58  ;;  %v4040_v45 = vadd.f32 1.0, %v4039_v3  ;;  %vm4043_vm13 = vcmp.lt.f32.partialorder %v4042_v9, 0.0004427343 }
 0x74b   :  { %v4035_v39 = vsel %vm4034_vm12, %v4032_v43, %v4029_v1  ;;  %v3886_v23 = vand.u32 2147483647, %v8802_v59  ;;  %4833 = vmatmul.msk.f32.gmra.mxu0 %vm3243_vm8, %v4812_v24  ;;  %v3837_v43 = vmax.f32 %v8790_v16, 0.0  ;;  %vm3854_vm14 = vcmp.ne.f32.partialorder %v8802_v59, %v8802_v59 }
 0x74c   :  { %v4091_v47 = vadd.f32 %v4035_v39, %v3835_v27  ;;  %v4041_v63 = vmul.f32 %v5059_v2, %v4040_v45 }
 0x74d   :  { %v3902_v55 = vsub.f32 0.0, %v3886_v23 }
 0x74e   :  { %v4107_v52 = vsel %vm3851_vm15, %v8772_v12, %v4091_v47 }
 0x74f   :  { %v5063_v61 = vpop.eup %5062  ;;  %v3931_v49 = vmul.f32 1.442695, %v3902_v55  ;;  %v4813_v21 = vadd.f32 -0.6931472, %v4107_v52 }
 0x750   :  { %v5065_v37 = vpop.eup %5064  ;;  %v4045_v11 = vadd.f32 1.0, %v5063_v61  ;;  %v4048_v0 = vmul.f32 -0.5, %v5063_v61  ;;  %v3819_v25 = vpop.f32.mrf.mxu2  ;;  %v4051_v54 = vand.u32 2147483647, %v5063_v61 }
 0x751   :  { %v4038_v57 = vmul.f32 0.6931472, %v5065_v37  ;;  %5066 = vpow2.f32 %v3931_v49  ;;  %v8811_v38 = vadd.f32 %v8700_v41, %v3819_v25  ;;  %v3838_v49 = vmax.f32 %v8802_v59, 0.0  ;;  %v5096_v25 = vld [vmem:[%s9046_s4] sm:$0xff] }
 0x752   :  { %5068 = vlog2.f32 %v4045_v11  ;;  %v4049_v7 = vadd.f32 1.0, %v4048_v0  ;;  %vm4052_vm11 = vcmp.lt.f32.partialorder %v4051_v54, 0.0004427343 }
 0x753   :  { %v4044_v28 = vsel %vm4043_vm13, %v4041_v63, %v4038_v57  ;;  %v3887_v14 = vand.u32 2147483647, %v8811_v38  ;;  %4834 = vmatmul.msk.f32.gmra.mxu0 %vm3243_vm8, %v4813_v21  ;;  %vm3855_vm4 = vcmp.ne.f32.partialorder %v8811_v38, %v8811_v38 }
 0x754   :  { %v4092_v4 = vadd.f32 %v4044_v28, %v3836_v13  ;;  %v4050_v36 = vmul.f32 %v5063_v61, %v4049_v7  ;;  %v3839_v7 = vmax.f32 %v8811_v38, 0.0 }
 0x755   :  { %v3903_v35 = vsub.f32 0.0, %v3887_v14 }
 0x756   :  { %v4108_v5 = vsel %vm3852_vm9, %v8781_v53, %v4092_v4 }
 0x757   :  { %v5067_v46 = vpop.eup %5066  ;;  %v3933_v12 = vmul.f32 1.442695, %v3903_v35  ;;  %v4814_v32 = vadd.f32 -0.6931472, %v4108_v5 }
 0x758   :  { %v5069_v44 = vpop.eup %5068  ;;  %v4054_v34 = vadd.f32 1.0, %v5067_v46  ;;  %v3822_v8 = vpop.f32.mrf.mxu2  ;;  %v4057_v29 = vmul.f32 -0.5, %v5067_v46  ;;  %v4060_v39 = vand.u32 2147483647, %v5067_v46 }
 0x759   :  { %v4296_v50 = vpop.f32.mrf.mxu3  ;;  %v4047_v2 = vmul.f32 0.6931472, %v5069_v44  ;;  %5070 = vpow2.f32 %v3933_v12  ;;  %v8820_v42 = vadd.f32 %v8700_v41, %v3822_v8  ;;  %v5097_v12 = vld [vmem:[%s9046_s4 + $0x8] sm:$0xff] }
 0x75a   :  { %5072 = vlog2.f32 %v4054_v34  ;;  %v4058_v3 = vadd.f32 1.0, %v4057_v29  ;;  %vm4061_vm2 = vcmp.lt.f32.partialorder %v4060_v39, 0.0004427343  ;;  %v5104_v39 = vld [vmem:[%s9046_s4 + $0x40] sm:$0xff] }
 0x75b   :  { %v4053_v58 = vsel %vm4052_vm11, %v4050_v36, %v4047_v2  ;;  %v3888_v51 = vand.u32 2147483647, %v8820_v42  ;;  %4835 = vmatmul.msk.f32.gmra.mxu0 %vm3243_vm8, %v4814_v32  ;;  %v3840_v5 = vmax.f32 %v8820_v42, 0.0  ;;  %vm3856_vm6 = vcmp.ne.f32.partialorder %v8820_v42, %v8820_v42  ;;  %v5099_v32 = vld [vmem:[%s9046_s4 + $0x18] sm:$0xff] }
 0x75c   :  { %v4093_v1 = vadd.f32 %v4053_v58, %v3837_v43  ;;  %v4059_v9 = vmul.f32 %v5067_v46, %v4058_v3  ;;  %v5098_v58 = vld [vmem:[%s9046_s4 + $0x10] sm:$0xff]  ;;  %v5101_v3 = vld [vmem:[%s9046_s4 + $0x28] sm:$0xff] }
 0x75d   :  { %v3904_v27 = vsub.f32 0.0, %v3888_v51 }
 0x75e   :  { %v4109_v45 = vsel %vm3853_vm0, %v8790_v16, %v4093_v1  ;;  %v5100_v1 = vld [vmem:[%s9046_s4 + $0x20] sm:$0xff]  ;;  %vm4658_vm0 = vcmask 1024  }
 0x75f   :  { %v5071_v23 = vpop.eup %5070  ;;  %v3935_v53 = vmul.f32 1.442695, %v3904_v27  ;;  %v4815_v11 = vadd.f32 -0.6931472, %v4109_v45  ;;  %v5103_v27 = vld [vmem:[%s9046_s4 + $0x38] sm:$0xff] }
 0x760   :  { %v5073_v41 = vpop.eup %5072  ;;  %v4063_v24 = vadd.f32 1.0, %v5071_v23  ;;  %v4066_v61 = vmul.f32 -0.5, %v5071_v23  ;;  %v4069_v52 = vand.u32 2147483647, %v5071_v23 }
 0x761   :  { %v4299_v47 = vpop.f32.mrf.mxu3  ;;  %v4056_v55 = vmul.f32 0.6931472, %v5073_v41  ;;  %5074 = vpow2.f32 %v3935_v53  ;;  %v5106_v53 = vld [vmem:[%s9046_s4 + $0x50] sm:$0xff] }
 0x762   :  { %4316 = vmatpush.msrb.mxu1 %v4299_v47  ;;  %5076 = vlog2.f32 %v4063_v24  ;;  %v4067_v16 = vadd.f32 1.0, %v4066_v61  ;;  %vm4070_vm10 = vcmp.lt.f32.partialorder %v4069_v52, 0.0004427343  ;;  %v5107_v24 = vld [vmem:[%s9046_s4 + $0x58] sm:$0xff]  ;;  %v5108_v47 = vld [vmem:[%s9046_s4 + $0x60] sm:$0xff]  ;;  %v5110_v61 = vld [vmem:[%s9046_s4 + $0x70] sm:$0xff] }
 0x763   :  { %v4062_v37 = vsel %vm4061_vm2, %v4059_v9, %v4056_v55  ;;  %4836 = vmatmul.msk.f32.gmra.mxu0 %vm3243_vm8, %v4815_v11  ;;  %v5109_v55 = vld [vmem:[%s9046_s4 + $0x68] sm:$0xff] }
 0x764   :  { %4317 = vmatpush.msrb.mxu1 %v4296_v50  ;;  %v4094_v0 = vadd.f32 %v4062_v37, %v3838_v49  ;;  %v4068_v21 = vmul.f32 %v5071_v23, %v4067_v16  ;;  %v5105_v23 = vld [vmem:[%s9046_s4 + $0x48] sm:$0xff]  ;;  %v8907_v49 = vld [vmem:[%s9043_s9 + $0x1] ss:$0 sm:$0xff] }
 0x765   :  { %4846 = vmatmul.msk.f32.vlgmr.msrb.gmra.mxu1 %vm2817_vm3, %v5096_v25 }
 0x766   :  { %v4110_v28 = vsel %vm3854_vm14, %v8802_v59, %v4094_v0  ;;  %v5111_v0 = vld [vmem:[%s9046_s4 + $0x78] sm:$0xff] }
 0x767   :  { %v5075_v57 = vpop.eup %5074  ;;  %v4816_v54 = vadd.f32 -0.6931472, %v4110_v28 }
 0x768   :  { %v5077_v63 = vpop.eup %5076  ;;  %v4072_v13 = vadd.f32 1.0, %v5075_v57  ;;  %v4075_v4 = vmul.f32 -0.5, %v5075_v57  ;;  %v4078_v36 = vand.u32 2147483647, %v5075_v57 }
 0x769   :  { %v4065_v14 = vmul.f32 0.6931472, %v5077_v63 }
 0x76a   :  { %5078 = vlog2.f32 %v4072_v13  ;;  %v4076_v44 = vadd.f32 1.0, %v4075_v4  ;;  %vm4079_vm5 = vcmp.lt.f32.partialorder %v4078_v36, 0.0004427343 }
 0x76b   :  { %v4071_v35 = vsel %vm4070_vm10, %v4068_v21, %v4065_v14  ;;  %4837 = vmatmul.msk.f32.gmra.mxu0 %vm3243_vm8, %v4816_v54 }
 0x76c   :  { %v4095_v46 = vadd.f32 %v4071_v35, %v3839_v7  ;;  %v4077_v50 = vmul.f32 %v5075_v57, %v4076_v44 }
 0x76d   :  { %4847 = vmatmul.msk.f32.gmra.mxu1 %vm2817_vm3, %v5097_v12 }
 0x76e   :  { %v4111_v34 = vsel %vm3855_vm4, %v8811_v38, %v4095_v46 }
 0x76f   :  { %v4817_v29 = vadd.f32 -0.6931472, %v4111_v34 }
 0x770   :  { %v5079_v59 = vpop.eup %5078 }
 0x771   :  { %v4074_v8 = vmul.f32 0.6931472, %v5079_v59 }
 0x773   :  { %v4080_v2 = vsel %vm4079_vm5, %v4077_v50, %v4074_v8  ;;  %4838 = vmatmul.msk.f32.gmra.mxu0 %vm3243_vm8, %v4817_v29 }
 0x774   :  { %v4096_v43 = vadd.f32 %v4080_v2, %v3840_v5 }
 0x775   :  { %4848 = vmatmul.msk.f32.gmra.mxu1 %vm2817_vm3, %v5098_v58  ;;  %v9417_v58 = vld [vmem:[#allocation10_spill] sm:$0xff] }
 0x776   :  { %v4112_v38 = vsel %vm3856_vm6, %v8820_v42, %v4096_v43  ;;  %v5102_v42 = vld [vmem:[%s9046_s4 + $0x30] sm:$0xff] }
 0x777   :  { %v4818_v51 = vadd.f32 -0.6931472, %v4112_v38 }
 0x77b   :  { %4839 = vmatmul.msk.f32.gmra.mxu0 %vm3243_vm8, %v4818_v51 }
 0x77d   :  { %4849 = vmatmul.msk.f32.gmra.mxu1 %vm2817_vm3, %v5099_v32 }
 0x77e   :  { %v4204_v41 = vpop.f32.mrf.mxu0 }
 0x77f   :  { %v4205_v11 = vadd.f32 %v8907_v49, %v4204_v41 }
 0x781   :  { %v4252_v25 = vmul.f32 %v4205_v11, %v8592_v20 }
 0x785   :  { %4850 = vmatmul.msk.f32.gmra.mxu1 %vm2817_vm3, %v5100_v1 }
 0x786   :  { %v4207_v45 = vpop.f32.mrf.mxu0 }
 0x787   :  { %v4208_v63 = vadd.f32 %v8907_v49, %v4207_v45 }
 0x789   :  { %v4253_v13 = vmul.f32 %v4208_v63, %v8588_v10 }
 0x78d   :  { %4851 = vmatmul.msk.f32.gmra.mxu1 %vm2817_vm3, %v5101_v3 }
 0x78e   :  { %v4210_v9 = vpop.f32.mrf.mxu0 }
 0x78f   :  { %v4211_v21 = vadd.f32 %v8907_v49, %v4210_v9 }
 0x791   :  { %v4254_v7 = vmul.f32 %v4211_v21, %v8582_v56 }
 0x795   :  { %4852 = vmatmul.msk.f32.gmra.mxu1 %vm2817_vm3, %v5102_v42 }
 0x796   :  { %v4213_v37 = vpop.f32.mrf.mxu0 }
 0x797   :  { %v4214_v20 = vadd.f32 %v8907_v49, %v4213_v37 }
 0x799   :  { %v4255_v12 = vmul.f32 %v4214_v20, %v8568_v15 }
 0x79d   :  { %4853 = vmatmul.msk.f32.gmra.mxu1 %vm2817_vm3, %v5103_v27 }
 0x79e   :  { %v4216_v57 = vpop.f32.mrf.mxu0 }
 0x79f   :  { %v4217_v10 = vadd.f32 %v8907_v49, %v4216_v57 }
 0x7a1   :  { %v4256_v59 = vmul.f32 %v4217_v10, %v8564_v40 }
 0x7a5   :  { %4854 = vmatmul.msk.f32.gmra.mxu1 %vm2817_vm3, %v5104_v39 }
 0x7a8   :  { %v4219_v4 = vpop.f32.mrf.mxu0 }
 0x7a9   :  { %v4220_v56 = vadd.f32 %v8907_v49, %v4219_v4 }
 0x7ab   :  { %v4257_v5 = vmul.f32 %v4220_v56, %v8559_v31 }
 0x7ad   :  { %4855 = vmatmul.msk.f32.gmra.mxu1 %vm2817_vm3, %v5105_v23 }
 0x7b0   :  { %v4222_v46 = vpop.f32.mrf.mxu0 }
 0x7b1   :  { %v4223_v15 = vadd.f32 %v8907_v49, %v4222_v46 }
 0x7b3   :  { %v4258_v38 = vmul.f32 %v4223_v15, %v9417_v58  ;;  %v4872_v58 = vld [vmem:[%s9050_s13 + $0x28] sm:$0xff] }
 0x7b5   :  { %4856 = vmatmul.msk.f32.gmra.mxu1 %vm2817_vm3, %v5106_v53 }
 0x7b8   :  { %v4225_v34 = vpop.f32.mrf.mxu0 }
 0x7b9   :  { %v4226_v1 = vadd.f32 %v8907_v49, %v4225_v34 }
 0x7bb   :  { %v4259_v3 = vmul.f32 %v4226_v1, %v8550_v62 }
 0x7bd   :  { %4857 = vmatmul.msk.f32.gmra.mxu1 %vm2817_vm3, %v5107_v24 }
 0x7c0   :  { %v4228_v43 = vpop.f32.mrf.mxu0 }
 0x7c1   :  { %v4229_v39 = vadd.f32 %v8907_v49, %v4228_v43  ;;  %v4873_v43 = vld [vmem:[%s9050_s13 + $0x30] sm:$0xff] }
 0x7c3   :  { %v4260_v31 = vmul.f32 %v4229_v39, %v8546_v17 }
 0x7c5   :  { %4858 = vmatmul.msk.f32.gmra.mxu1 %vm2817_vm3, %v5108_v47 }
 0x7c8   :  { %v4231_v40 = vpop.f32.mrf.mxu0 }
 0x7cd   :  { %4859 = vmatmul.msk.f32.gmra.mxu1 %vm2817_vm3, %v5109_v55 }
 0x7d0   :  { %v4234_v23 = vpop.f32.mrf.mxu0 }
 0x7d1   :  { %v4235_v46 = vadd.f32 %v8907_v49, %v4234_v23 }
 0x7d5   :  { %4860 = vmatmul.msk.f32.gmra.mxu1 %vm2817_vm3, %v5110_v61 }
 0x7d8   :  { %v4237_v24 = vpop.f32.mrf.mxu0 }
 0x7dd   :  { %4861 = vmatmul.msk.f32.gmra.mxu1 %vm2817_vm3, %v5111_v0 }
 0x7e0   :  { %v4240_v55 = vpop.f32.mrf.mxu0 }
 0x7e2   :  { %v4319_v16 = vpop.f32.mrf.mxu1 }
 0x7e3   :  { %v8915_v52 = vmul.f32 %v4319_v16, %v4252_v25 }
 0x7e8   :  { %v4243_v61 = vpop.f32.mrf.mxu0 }
 0x7e9   :  { %v4244_v63 = vadd.f32 %v8907_v49, %v4243_v61 }
 0x7ea   :  { %v4322_v28 = vpop.f32.mrf.mxu1 }
 0x7eb   :  { %v8919_v14 = vmul.f32 %v4322_v28, %v4253_v13  ;;  %v4241_v28 = vadd.f32 %v8907_v49, %v4240_v55 }
 0x7f0   :  { %v4246_v11 = vpop.f32.mrf.mxu0 }
 0x7f1   :  { %v4247_v57 = vadd.f32 %v8907_v49, %v4246_v11 }
 0x7f2   :  { %v4325_v35 = vpop.f32.mrf.mxu1 }
 0x7f3   :  { %v8923_v54 = vmul.f32 %v4325_v35, %v4254_v7  ;;  %v4266_v21 = vmul.f32 %v4247_v57, %v8528_v18  ;;  %v4238_v7 = vadd.f32 %v8907_v49, %v4237_v24  ;;  %v4265_v35 = vmul.f32 %v4244_v63, %v8530_v22 }
 0x7f4   :  { %v4262_v18 = vmul.f32 %v4235_v46, %v8536_v19  ;;  %v4863_v19 = vld [vmem:[%s9048_s11 + $0x28] sm:$0xff] }
 0x7f5   :  { %v4263_v10 = vmul.f32 %v4238_v7, %v8532_v48  ;;  %v4864_v48 = vld [vmem:[%s9048_s11 + $0x30] sm:$0xff]  ;;  %v4525_v46 = vld [vmem:[%s9052_s15 + $0x8] sm:$0xff] }
 0x7f8   :  { %v4249_v25 = vpop.f32.mrf.mxu0 }
 0x7f9   :  { %v4250_v16 = vadd.f32 %v8907_v49, %v4249_v25 }
 0x7fa   :  { %v4328_v44 = vpop.f32.mrf.mxu1 }
 0x7fb   :  { %v8927_v36 = vmul.f32 %v4328_v44, %v4255_v12  ;;  %v4267_v17 = vmul.f32 %v4250_v16, %v8499_v26  ;;  %v4264_v12 = vmul.f32 %v4241_v28, %v8507_v60  ;;  %v4232_v26 = vadd.f32 %v8907_v49, %v4231_v40  ;;  %v4865_v60 = vld [vmem:[%s9048_s11 + $0x38] sm:$0xff]  ;;  %v5113_v49 = vld [vmem:[%s9047_s5 + $0x8] sm:$0xff] }
 0x7fc   :  { %v4527_v40 = vld [vmem:[%s9052_s15 + $0x18] sm:$0xff] }
 0x7fd   :  { %v4261_v22 = vmul.f32 %v4232_v26, %v8513_v33  ;;  %v5112_v33 = vld [vmem:[%s9047_s5] sm:$0xff] }
 0x802   :  { %v4331_v8 = vpop.f32.mrf.mxu1 }
 0x803   :  { %v8931_v50 = vmul.f32 %v4331_v8, %v4256_v59 }
 0x80a   :  { %v4334_v2 = vpop.f32.mrf.mxu1 }
 0x80b   :  { %v4372_v29 = vmul.f32 %v4334_v2, %v4257_v5 }
 0x812   :  { %v4337_v51 = vpop.f32.mrf.mxu1 }
 0x813   :  { %v4373_v32 = vmul.f32 %v4337_v51, %v4258_v38 }
 0x81a   :  { %v4340_v42 = vpop.f32.mrf.mxu1 }
 0x81b   :  { %v4374_v27 = vmul.f32 %v4340_v42, %v4259_v3 }
 0x822   :  { %v4343_v53 = vpop.f32.mrf.mxu1 }
 0x823   :  { %v4375_v41 = vmul.f32 %v4343_v53, %v4260_v31 }
 0x82a   :  { %v4346_v47 = vpop.f32.mrf.mxu1 }
 0x82b   :  { %v4376_v56 = vmul.f32 %v4346_v47, %v4261_v22 }
 0x832   :  { %v4349_v45 = vpop.f32.mrf.mxu1 }
 0x833   :  { %v4377_v8 = vmul.f32 %v4349_v45, %v4262_v18 }
 0x83a   :  { %v4352_v9 = vpop.f32.mrf.mxu1 }
 0x83b   :  { %v4378_v34 = vmul.f32 %v4352_v9, %v4263_v10 }
 0x842   :  { %v4355_v37 = vpop.f32.mrf.mxu1 }
 0x843   :  { %v4379_v59 = vmul.f32 %v4355_v37, %v4264_v12  ;;  %v4524_v12 = vld [vmem:[%s9052_s15] sm:$0xff] }
 0x84a   :  { %v4358_v0 = vpop.f32.mrf.mxu1 }
 0x84b   :  { %v4380_v44 = vmul.f32 %v4358_v0, %v4265_v35 }
 0x852   :  { %v4361_v62 = vpop.f32.mrf.mxu1 }
 0x853   :  { %v4381_v20 = vmul.f32 %v4361_v62, %v4266_v21 }
 0x85a   :  { %v4364_v13 = vpop.f32.mrf.mxu1 }
 0x85b   :  { %v4382_v4 = vmul.f32 %v4364_v13, %v4267_v17 }
 0x85d   :  { %4383 = vmatpush.msrb.mxu3 %v4382_v4 }
 0x85f   :  { %4384 = vmatpush.msrb.mxu3 %v4381_v20  ;;  %v4526_v20 = vld [vmem:[%s9052_s15 + $0x10] sm:$0xff] }
 0x861   :  { %4385 = vmatpush.msrb.mxu3 %v4380_v44  ;;  %v4909_v44 = vld [vmem:[%s9051_s14 + $0x1] ss:$0 sm:$0xff] }
 0x863   :  { %4386 = vmatpush.msrb.mxu3 %v4379_v59 }
 0x865   :  { %4387 = vmatpush.msrb.mxu3 %v4378_v34 }
 0x867   :  { %4388 = vmatpush.msrb.mxu3 %v4377_v8  ;;  %v4910_v8 = vld [vmem:[%s9053_s16] ss:$0 sm:$0xff] }
 0x869   :  { %4389 = vmatpush.msrb.mxu3 %v4376_v56 }
 0x86b   :  { %4390 = vmatpush.msrb.mxu3 %v4375_v41 }
 0x86d   :  { %4391 = vmatpush.msrb.mxu3 %v4374_v27 }
 0x86f   :  { %4392 = vmatpush.msrb.mxu3 %v4373_v32  ;;  %v4871_v32 = vld [vmem:[%s9050_s13 + $0x20] sm:$0xff] }
 0x871   :  { %4393 = vmatpush.msrb.mxu3 %v4372_v29  ;;  %v4874_v29 = vld [vmem:[%s9050_s13 + $0x38] sm:$0xff] }
 0x873   :  { %4394 = vmatpush.msrb.mxu3 %v8931_v50 }
 0x875   :  { %4395 = vmatpush.msrb.mxu3 %v8927_v36  ;;  %v4908_v36 = vld [vmem:[%s9049_s12 + $0x1] ss:$0 sm:$0xff] }
 0x877   :  { %4396 = vmatpush.msrb.mxu3 %v8923_v54 }
 0x879   :  { %4397 = vmatpush.msrb.mxu3 %v8919_v14 }
 0x87b   :  { %4398 = vmatpush.msrb.mxu3 %v8915_v52  ;;  %v4862_v52 = vld [vmem:[%s9048_s11 + $0x20] sm:$0xff] }
 0x87c   :  { %4399 = vmatmul.f32.vlgmr.msrb.gmra.mxu3 %v5112_v33 }
 0x87d   :  { %4434 = vmatpush.msra.mxu3 %v4865_v60 }
 0x87f   :  { %4435 = vmatpush.msra.mxu3 %v4864_v48  ;;  %v4600_v48 = vld [vmem:[%s9054_s17 + $0x8] sm:$0xff] }
 0x880   :  { %4625 = vmatpush.msra.mxu2 %v4600_v48 }
 0x881   :  { %4436 = vmatpush.msra.mxu3 %v4863_v19 }
 0x883   :  { %4437 = vmatpush.msra.mxu3 %v4862_v52 }
 0x884   :  { %4402 = vmatmul.f32.gmra.mxu3 %v5113_v49 }
 0x885   :  { %4511 = vmatpush.msrb.mxu3 %v4874_v29 }
 0x887   :  { %4512 = vmatpush.msrb.mxu3 %v4873_v43 }
 0x889   :  { %4513 = vmatpush.msrb.mxu3 %v4872_v58 }
 0x88b   :  { %4514 = vmatpush.msrb.mxu3 %v4871_v32 }
 0x8ff   :  { %v4400_v14 = vpop.f32.mrf.mxu3 }
 0x900   :  { %4867 = vmatmul.msk.f32.vlgmr.msra.gmra.mxu3 %vm3243_vm8, %v4400_v14  ;;  %v25_v14 = vstv %s9055_s18 }
 0x901   :  { %4550 = vmatpush.msra.mxu3 %v4527_v40  ;;  %26 = vst [vmem:[#allocation2] sm:$0x1] %v25_v14 }
 0x903   :  { %4551 = vmatpush.msra.mxu3 %v4526_v20 }
 0x905   :  { %4552 = vmatpush.msra.mxu3 %v4525_v46 }
 0x907   :  { %v4403_v54 = vpop.f32.mrf.mxu3  ;;  %4553 = vmatpush.msra.mxu3 %v4524_v12 }
 0x908   :  { %4868 = vmatmul.msk.f32.gmra.mxu3 %vm3243_vm8, %v4403_v54 }
 0x983   :  { %v4439_v50 = vpop.f32.mrf.mxu3 }
 0x984   :  { %v4440_v5 = vadd.f32 %v4908_v36, %v4439_v50 }
 0x986   :  { %v4451_v2 = vand.u32 2147483647, %v4440_v5  ;;  %v4445_v37 = vmax.f32 %v4440_v5, 0.0  ;;  %vm4447_vm1 = vcmp.ne.f32.partialorder %v4440_v5, %v4440_v5 }
 0x988   :  { %v4453_v15 = vsub.f32 0.0, %v4451_v2 }
 0x98a   :  { %v4455_v38 = vmul.f32 1.442695, %v4453_v15 }
 0x98b   :  { %v4442_v51 = vpop.f32.mrf.mxu3 }
 0x98c   :  { %5080 = vpow2.f32 %v4455_v38  ;;  %v4443_v1 = vadd.f32 %v4908_v36, %v4442_v51 }
 0x98e   :  { %v4452_v3 = vand.u32 2147483647, %v4443_v1  ;;  %v4446_v28 = vmax.f32 %v4443_v1, 0.0  ;;  %vm4448_vm15 = vcmp.ne.f32.partialorder %v4443_v1, %v4443_v1 }
 0x990   :  { %v4454_v42 = vsub.f32 0.0, %v4452_v3 }
 0x992   :  { %v5081_v27 = vpop.eup %5080  ;;  %v4457_v39 = vmul.f32 1.442695, %v4454_v42 }
 0x993   :  { %v4459_v23 = vadd.f32 1.0, %v5081_v27  ;;  %v4462_v31 = vmul.f32 -0.5, %v5081_v27  ;;  %v4465_v41 = vand.u32 2147483647, %v5081_v27 }
 0x994   :  { %5082 = vpow2.f32 %v4457_v39 }
 0x995   :  { %5084 = vlog2.f32 %v4459_v23  ;;  %v4463_v53 = vadd.f32 1.0, %v4462_v31  ;;  %vm4466_vm7 = vcmp.lt.f32.partialorder %v4465_v41, 0.0004427343 }
 0x997   :  { %v4464_v9 = vmul.f32 %v5081_v27, %v4463_v53 }
 0x99a   :  { %v5083_v24 = vpop.eup %5082 }
 0x99b   :  { %v5085_v47 = vpop.eup %5084  ;;  %v4468_v45 = vadd.f32 1.0, %v5083_v24  ;;  %v4471_v61 = vmul.f32 -0.5, %v5083_v24  ;;  %v4474_v16 = vand.u32 2147483647, %v5083_v24 }
 0x99c   :  { %v4461_v55 = vmul.f32 0.6931472, %v5085_v47 }
 0x99d   :  { %5086 = vlog2.f32 %v4468_v45  ;;  %v4472_v25 = vadd.f32 1.0, %v4471_v61  ;;  %vm4475_vm12 = vcmp.lt.f32.partialorder %v4474_v16, 0.0004427343 }
 0x99e   :  { %v4467_v11 = vsel %vm4466_vm7, %v4464_v9, %v4461_v55 }
 0x99f   :  { %v4477_v0 = vadd.f32 %v4467_v11, %v4445_v37  ;;  %v4473_v13 = vmul.f32 %v5083_v24, %v4472_v25 }
 0x9a1   :  { %v4479_v62 = vsel %vm4447_vm1, %v4440_v5, %v4477_v0  ;;  %v4911_v0 = vld [vmem:[#allocation2] ss:$0 sm:$0xff] }
 0x9a2   :  { %v4869_v57 = vadd.f32 -0.6931472, %v4479_v62 }
 0x9a3   :  { %v5087_v63 = vpop.eup %5086 }
 0x9a4   :  { %v4470_v17 = vmul.f32 0.6931472, %v5087_v63  ;;  %4876 = vmatmul.msk.f32.vlgmr.msrb.gmra.mxu3 %vm3243_vm8, %v4869_v57  ;;  %v4634_v57 = vld [vmem:[%s9056_s19] sm:$0x3] }
 0x9a6   :  { %v4476_v21 = vsel %vm4475_vm12, %v4473_v13, %v4470_v17 }
 0x9a7   :  { %v4478_v4 = vadd.f32 %v4476_v21, %v4446_v28 }
 0x9a9   :  { %v4480_v7 = vsel %vm4448_vm15, %v4443_v1, %v4478_v4 }
 0x9aa   :  { %v4870_v35 = vadd.f32 -0.6931472, %v4480_v7 }
 0x9ac   :  { %4877 = vmatmul.msk.f32.gmra.mxu3 %vm3243_vm8, %v4870_v35 }
 0xa27   :  { %v4516_v26 = vpop.f32.mrf.mxu3 }
 0xa28   :  { %v4517_v10 = vadd.f32 %v4909_v44, %v4516_v26 }
 0xa2a   :  { %v4522_v59 = vadd.f32 %v4517_v10, %v8686_v30  ;;  %v4599_v30 = vld [vmem:[%s9054_s17] sm:$0xff] }
 0xa2b   :  { %4626 = vmatpush.msra.mxu2 %v4599_v30 }
 0xa2c   :  { %4878 = vmatmul.msk.f32.vlgmr.msra.gmra.mxu3 %vm3243_vm8, %v4522_v59 }
 0xa2f   :  { %v4519_v18 = vpop.f32.mrf.mxu3 }
 0xa30   :  { %v4520_v34 = vadd.f32 %v4909_v44, %v4519_v18 }
 0xa32   :  { %v4523_v22 = vadd.f32 %v4520_v34, %v8693_v6 }
 0xa34   :  { %4879 = vmatmul.msk.f32.gmra.mxu3 %vm3243_vm8, %v4523_v22 }
 0xaaf   :  { %v4555_v56 = vpop.f32.mrf.mxu3 }
 0xab0   :  { %v4556_v60 = vadd.f32 %v4910_v8, %v4555_v56 }
 0xab2   :  { %v4567_v33 = vand.u32 2147483647, %v4556_v60  ;;  %v4561_v3 = vmax.f32 %v4556_v60, 0.0  ;;  %vm4563_vm13 = vcmp.ne.f32.partialorder %v4556_v60, %v4556_v60 }
 0xab4   :  { %v4569_v19 = vsub.f32 0.0, %v4567_v33 }
 0xab6   :  { %v4571_v6 = vmul.f32 1.442695, %v4569_v19 }
 0xab7   :  { %v4558_v49 = vpop.f32.mrf.mxu3 }
 0xab8   :  { %5088 = vpow2.f32 %v4571_v6  ;;  %v4559_v52 = vadd.f32 %v4910_v8, %v4558_v49 }
 0xaba   :  { %v4568_v54 = vand.u32 2147483647, %v4559_v52  ;;  %v4562_v45 = vmax.f32 %v4559_v52, 0.0  ;;  %vm4564_vm11 = vcmp.ne.f32.partialorder %v4559_v52, %v4559_v52 }
 0xabc   :  { %v4570_v36 = vsub.f32 0.0, %v4568_v54 }
 0xabe   :  { %v5089_v50 = vpop.eup %5088  ;;  %v4573_v5 = vmul.f32 1.442695, %v4570_v36 }
 0xabf   :  { %v4575_v2 = vadd.f32 1.0, %v5089_v50  ;;  %v4578_v29 = vmul.f32 -0.5, %v5089_v50  ;;  %v4581_v15 = vand.u32 2147483647, %v5089_v50 }
 0xac0   :  { %5090 = vpow2.f32 %v4573_v5 }
 0xac1   :  { %5092 = vlog2.f32 %v4575_v2  ;;  %v4579_v43 = vadd.f32 1.0, %v4578_v29  ;;  %vm4582_vm8 = vcmp.lt.f32.partialorder %v4581_v15, 0.0004427343 }
 0xac3   :  { %v4580_v1 = vmul.f32 %v5089_v50, %v4579_v43 }
 0xac6   :  { %v5091_v58 = vpop.eup %5090 }
 0xac7   :  { %v5093_v38 = vpop.eup %5092  ;;  %v4584_v51 = vadd.f32 1.0, %v5091_v58  ;;  %v4587_v40 = vmul.f32 -0.5, %v5091_v58  ;;  %v4590_v31 = vand.u32 2147483647, %v5091_v58 }
 0xac8   :  { %v4577_v32 = vmul.f32 0.6931472, %v5093_v38 }
 0xac9   :  { %5094 = vlog2.f32 %v4584_v51  ;;  %v4588_v39 = vadd.f32 1.0, %v4587_v40  ;;  %vm4591_vm9 = vcmp.lt.f32.partialorder %v4590_v31, 0.0004427343 }
 0xaca   :  { %v4583_v42 = vsel %vm4582_vm8, %v4580_v1, %v4577_v32 }
 0xacb   :  { %v4593_v27 = vadd.f32 %v4583_v42, %v4561_v3  ;;  %v4589_v47 = vmul.f32 %v5091_v58, %v4588_v39 }
 0xacd   :  { %v4595_v23 = vsel %vm4563_vm13, %v4556_v60, %v4593_v27 }
 0xace   :  { %v4880_v53 = vadd.f32 -0.6931472, %v4595_v23 }
 0xacf   :  { %v5095_v41 = vpop.eup %5094 }
 0xad0   :  { %v4586_v24 = vmul.f32 0.6931472, %v5095_v41  ;;  %4882 = vmatmul.msk.f32.vlgmr.msra.gmra.mxu2 %vm2817_vm3, %v4880_v53 }
 0xad2   :  { %v4592_v55 = vsel %vm4591_vm9, %v4589_v47, %v4586_v24 }
 0xad3   :  { %v4594_v9 = vadd.f32 %v4592_v55, %v4562_v45 }
 0xad5   :  { %v4596_v61 = vsel %vm4564_vm11, %v4559_v52, %v4594_v9 }
 0xad6   :  { %v4881_v37 = vadd.f32 -0.6931472, %v4596_v61 }
 0xad8   :  { %4883 = vmatmul.msk.f32.gmra.mxu2 %vm2817_vm3, %v4881_v37 }
 0xb53   :  { %v4628_v11 = vpop.f32.mrf.mxu2 }
 0xb54   :  { %v4629_v16 = vadd.f32 %v4911_v0, %v4628_v11 }
 0xb5b   :  { %v4631_v25 = vpop.f32.mrf.mxu2 }
 0xb5c   :  { %v4632_v62 = vadd.f32 %v4911_v0, %v4631_v25 }
 0xb5e   :  { %4652 = vmatpush.msrb.mxu3 %v4632_v62 }
 0xb60   :  { %4653 = vmatpush.msrb.mxu3 %v4629_v16 }
 0xb61   :  { %4884 = vmatmul.msk.f32.vlgmr.msrb.gmra.mxu3 %vm2817_vm3, %v4634_v57 }
 0xbe4   :  { %v4655_v63 = vpop.f32.mrf.mxu3 }
 0xbe5   :  { %4659 = vst.msk [vmem:[%s9057_s20] sm:$0x3] %vm4658_vm0, %v4655_v63 }

</bundles_post_ra>
